<compile_context>
chip_gen: v7x
topology: tpu7x:2x2x1
jax: 0.10.0
libtpu: 0.0.40
codegen_flags: <defaults>
</compile_context>

<pallas_src>
import jax
import jax.numpy as jnp
from jax.experimental import pallas as pl
from jax.experimental.pallas import tpu as pltpu

_VMEM_LIMIT = 16 * 1024 * 1024
_BN_EPS = 1e-5


# ------------------------------ fused kernel ------------------------------- #

def _cnn_fused_kernel(x_ref, w1_ref, b1_ref, w2_ref, b2_ref,
                      fw1_ref, fb1_ref, fw2_ref, fb2_ref,
                      fw3_ref, fb3_ref, fw4_ref, fb4_ref, out_ref):
    """Full forward pass for one sample.

    x_ref  : (1, 16, 8, 128) f32 -- space-to-depth(4) of the zero-padded 32x32
             image, broadcast over 16 channel lanes:
             x_ref[0, 4*r+s, m, 16*n+c] = x_pad[4*m+r, 4*n+s]  (for all c).
    w1_ref : (9, 112)  f32 -- conv1 weight * BN1 scale, tap-major, tiled 7x
             over lanes (lane = 16*v + c).
    b1_ref : (1, 112)  f32 -- BN1-folded bias, tiled 7x.
    w2_ref : (864, 192) bf16 -- conv2 weight * BN2 scale, block-diagonal over
             the 6 pooled output columns:
             w2_ref[96*t + 16*w + ci, 32*jj + co] = w2f[16*t+ci, co] * (w == jj).
    b2_ref : (1, 192)  f32 -- BN2-folded bias, tiled 6x.
    fw*/fb*: lane-padded MLP weights/biases (1152 -> 1024 -> 512 -> 128 -> 128),
             fb4 holds -1e30 on the 118 padded logit lanes.
    out_ref: (1, 8, 128) f32 -- softmax probabilities (8 identical rows).
    """
    # ---- layer 1: Conv2d(1->16, k3, pad1) + BN + ReLU + MaxPool(2) on the VPU.
    # Pre-load the 36 distinct shifted (stride-4 -> contiguous) views of the
    # input; taps[(c1, c2)][u, 16*v + c] == x_pad[4*u + c1, 4*v + c2].
    taps = {}
    for c1 in range(6):
        for c2 in range(6):
            rs = (c1 % 4) * 4 + (c2 % 4)
            taps[(c1, c2)] = x_ref[0, rs,
                                   (c1 // 4):(c1 // 4) + 7,
                                   16 * (c2 // 4):16 * (c2 // 4) + 112]
    w1 = w1_ref[...]                      # (9, 112)
    b1 = b1_ref[...]                      # (1, 112)
    # o1[(a, b)][u, 16*v + c] = pooled layer-1 output at spatial (2u+a, 2v+b),
    # channel c  (this parity split makes layer-2's strided reads contiguous).
    o1 = {}
    for a in range(2):
        for b in range(2):
            best = None
            for py in range(2):               # 2x2 pooling window position
                for px in range(2):
                    acc = None
                    for t in range(9):        # 3x3 conv tap
                        dy, dx = t // 3, t % 3
                        term = taps[(2 * a + py + dy, 2 * b + px + dx)] * w1[t:t + 1]
                        acc = term if acc is None else acc + term
                    best = acc if best is None else jnp.maximum(best, acc)
            o1[(a, b)] = jnp.maximum(best + b1, 0.0)          # (7, 112) f32

    # ---- layer 2: Conv2d(16->32, k3) + BN + ReLU + MaxPool(2) on the MXU. ----
    w2 = w2_ref[...]                      # (864, 192) bf16
    b2 = b2_ref[...]                      # (1, 192)
    zmax = None
    for qy in range(2):                   # 2x2 pooling window position
        for qx in range(2):
            parts = []
            for t in range(9):            # 3x3 conv tap
                ey, ex = t // 3, t % 3
                d1, d2 = qy + ey, qx + ex
                src = o1[(d1 % 2, d2 % 2)]
                parts.append(src[(d1 // 2):(d1 // 2) + 6,
                                 16 * (d2 // 2):16 * (d2 // 2) + 96])   # (6, 96)
            lhs = jnp.concatenate(parts, axis=1).astype(jnp.bfloat16)   # (6, 864)
            z = jnp.dot(lhs, w2, preferred_element_type=jnp.float32)    # (6, 192)
            zmax = z if zmax is None else jnp.maximum(zmax, z)
    o2 = jnp.maximum(zmax + b2, 0.0)      # (6, 192) f32, [ii, 32*jj + co]

    # ---- flatten (NHWC order (ii, jj, c)) + MLP + softmax. --------------------
    flat = jnp.concatenate([o2[r:r + 1, :] for r in range(6)], axis=1)  # (1, 1152)
    h = jnp.broadcast_to(flat, (8, flat.shape[1])).astype(jnp.bfloat16)
    h = jnp.dot(h, fw1_ref[...], preferred_element_type=jnp.float32) + fb1_ref[...]
    h = jnp.maximum(h, 0.0).astype(jnp.bfloat16)        # dropout = identity (eval)
    h = jnp.dot(h, fw2_ref[...], preferred_element_type=jnp.float32) + fb2_ref[...]
    h = jnp.maximum(h, 0.0).astype(jnp.bfloat16)
    h = jnp.dot(h, fw3_ref[...], preferred_element_type=jnp.float32) + fb3_ref[...]
    h = jnp.maximum(h, 0.0).astype(jnp.bfloat16)
    logits = (jnp.dot(h, fw4_ref[...], preferred_element_type=jnp.float32)
              + fb4_ref[...])
    m = jnp.max(logits, axis=-1, keepdims=True)
    e = jnp.exp(logits - m)               # padded lanes: exp(-1e30 - m) == 0
    denom = jnp.sum(e, axis=-1, keepdims=True)
    out_ref[0, :, :] = e * pl.reciprocal(denom, approx=True)


# --------------------------------- wrapper --------------------------------- #

def _fold_bn(gamma, beta, mean, var, conv_bias, eps=_BN_EPS):
    scale = gamma / jnp.sqrt(var + eps)
    bias = (conv_bias - mean) * scale + beta
    return scale, bias


def cnn_forward(x_nchw, p):
    """x_nchw: (N, 1, 28, 28) f32.  Returns (N, 10) softmax probabilities."""
    n, cin, h, w = x_nchw.shape
    assert (cin, h, w) == (1, 28, 28), "fused kernel is specialized to 1x28x28"

    # Input: 1px conv pad + 2px never-read alignment pad -> 32x32, then
    # space-to-depth(4) and broadcast over the 16 conv1 output-channel lanes.
    xp = jnp.pad(x_nchw[:, 0].astype(jnp.float32), ((0, 0), (1, 3), (1, 3)))
    xs = xp.reshape(n, 8, 4, 8, 4).transpose(0, 2, 4, 1, 3)      # (N, r, s, m, n)
    xs = jnp.broadcast_to(xs.reshape(n, 16, 8, 8)[..., None], (n, 16, 8, 8, 16))
    xs = xs.reshape(n, 16, 8, 128)

    # Conv weights with BatchNorm folded in (eval mode).
    s1, b1f = _fold_bn(p["bn1_g"], p["bn1_b"], p["bn1_m"], p["bn1_v"], p["conv1_b"])
    w1f = jnp.transpose(p["conv1_w"][:, 0], (1, 2, 0)).reshape(9, 16) * s1[None, :]
    w1t = jnp.tile(w1f, (1, 7)).astype(jnp.float32)              # (9, 112)
    b1t = jnp.tile(b1f[None, :], (1, 7)).astype(jnp.float32)     # (1, 112)

    s2, b2f = _fold_bn(p["bn2_g"], p["bn2_b"], p["bn2_m"], p["bn2_v"], p["conv2_b"])
    w2f = jnp.transpose(p["conv2_w"], (2, 3, 1, 0)).reshape(144, 32) * s2[None, :]
    # Block-diagonal over the 6 pooled output columns, so the in-kernel conv2
    # matmul LHS is built purely from lane-aligned static slices (no reshapes).
    w2big = jnp.einsum("tco,wj->twcjo", w2f.reshape(9, 16, 32),
                       jnp.eye(6, dtype=jnp.float32))
    w2big = w2big.reshape(864, 192).astype(jnp.bfloat16)
    b2t = jnp.tile(b2f[None, :], (1, 6)).astype(jnp.float32)     # (1, 192)

    flops_per_sample = (
        2 * 28 * 28 * 9 * 16                       # conv1 (VPU)
        + 2 * 4 * 6 * 864 * 192                    # conv2 (4 pooling-phase matmuls)
        + 2 * 8 * (1152 * 1024 + 1024 * 512 + 512 * 128 + 128 * 128))
    weight_bytes = ((w1t.size + b1t.size + b2t.size) * 4 + w2big.size * 2
                    + sum(p[k].size * p[k].dtype.itemsize for k in
                          ("fc1_w", "fc1_b", "fc2_w", "fc2_b",
                           "fc3_w", "fc3_b", "fc4_w", "fc4_b")))

    def _pin(shape):
        return pl.BlockSpec(shape, lambda i: (0,) * len(shape))

    out = pl.pallas_call(
        _cnn_fused_kernel,
        out_shape=jax.ShapeDtypeStruct((n, 8, 128), jnp.float32),
        grid_spec=pltpu.PrefetchScalarGridSpec(
            num_scalar_prefetch=0,
            grid=(n,),
            in_specs=[
                pl.BlockSpec((1, 16, 8, 128), lambda i: (i, 0, 0, 0)),
                _pin((9, 112)), _pin((1, 112)),
                _pin((864, 192)), _pin((1, 192)),
                _pin((1152, 1024)), _pin((1, 1024)),
                _pin((1024, 512)), _pin((1, 512)),
                _pin((512, 128)), _pin((1, 128)),
                _pin((128, 128)), _pin((1, 128)),
            ],
            out_specs=pl.BlockSpec((1, 8, 128), lambda i: (i, 0, 0)),
        ),
        compiler_params=pltpu.CompilerParams(
            dimension_semantics=("parallel",),
            vmem_limit_bytes=_VMEM_LIMIT,
        ),
        cost_estimate=pl.CostEstimate(
            flops=n * flops_per_sample,
            transcendentals=n * 8 * 128,
            bytes_accessed=weight_bytes + xs.size * 4 + n * 8 * 128 * 4),
    )(xs, w1t, b1t, w2big, b2t,
      p["fc1_w"], p["fc1_b"], p["fc2_w"], p["fc2_b"],
      p["fc3_w"], p["fc3_b"], p["fc4_w"], p["fc4_b"])

    return out[:, 0, :10]


# ------------------------- pure-JAX reference (f32) ------------------------- #

def reference_forward(x_nchw, p, eps=_BN_EPS):
    x = x_nchw.astype(jnp.float32)

    def conv(v, wt, bias, padding):
        y = jax.lax.conv_general_dilated(
            v, wt, (1, 1), padding, dimension_numbers=("NCHW", "OIHW", "NCHW"))
        return y + bias[None, :, None, None]

    def bn(v, g, b, m, var):
        return ((v - m[None, :, None, None])
                / jnp.sqrt(var[None, :, None, None] + eps)
                * g[None, :, None, None] + b[None, :, None, None])

    def pool(v):
        return jax.lax.reduce_window(v, -jnp.inf, jax.lax.max,
                                     (1, 1, 2, 2), (1, 1, 2, 2), "VALID")

    h = pool(jax.nn.relu(bn(conv(x, p["conv1_w"], p["conv1_b"], "SAME"),
                            p["bn1_g"], p["bn1_b"], p["bn1_m"], p["bn1_v"])))
    h = pool(jax.nn.relu(bn(conv(h, p["conv2_w"], p["conv2_b"], "VALID"),
                            p["bn2_g"], p["bn2_b"], p["bn2_m"], p["bn2_v"])))
    flat = jnp.transpose(h, (0, 2, 3, 1)).reshape(h.shape[0], -1)  # NHWC flatten
    a = jax.nn.relu(flat @ p["fc1_w"].astype(jnp.float32) + p["fc1_b"])
    a = jax.nn.relu(a @ p["fc2_w"].astype(jnp.float32) + p["fc2_b"])
    a = jax.nn.relu(a @ p["fc3_w"].astype(jnp.float32) + p["fc3_b"])
    logits = a @ p["fc4_w"].astype(jnp.float32) + p["fc4_b"]
    return jax.nn.softmax(logits, axis=-1)[:, :10]


# ----------------------------------- init ----------------------------------- #

def init_params(key):
    """Random parameters matching the PyTorch module (BN in eval form).

    fc1 rows are indexed in NHWC flatten order of the (6, 6, 32) conv output
    (a pure reparameterization of the PyTorch NCHW flatten); fc widths are
    zero-padded to 1024/512/128/128 with a -1e30 mask on the 118 padded logits.
    """
    flat = 6 * 6 * 32
    ks = jax.random.split(key, 16)

    def nrm(k, shape, s=0.05):
        return jax.random.normal(k, shape, jnp.float32) * s

    def pad_w(w, rows, cols):
        return jnp.pad(w, ((0, rows - w.shape[0]), (0, cols - w.shape[1])))

    fc1_w = pad_w(nrm(ks[12], (flat, 1000), 0.03), flat, 1024).astype(jnp.bfloat16)
    fc2_w = pad_w(nrm(ks[13], (1000, 500), 0.03), 1024, 512).astype(jnp.bfloat16)
    fc3_w = pad_w(nrm(ks[14], (500, 100), 0.05), 512, 128).astype(jnp.bfloat16)
    fc4_w = pad_w(nrm(ks[15], (100, 10), 0.1), 128, 128).astype(jnp.bfloat16)
    fc4_b = jnp.concatenate(
        [jnp.zeros((1, 10), jnp.float32),
         jnp.full((1, 118), -1e30, jnp.float32)], axis=-1)

    return {
        "conv1_w": nrm(ks[0], (16, 1, 3, 3), 0.2),
        "conv1_b": nrm(ks[1], (16,), 0.1),
        "bn1_g": 1.0 + nrm(ks[2], (16,), 0.1),
        "bn1_b": nrm(ks[3], (16,), 0.1),
        "bn1_m": nrm(ks[4], (16,), 0.1),
        "bn1_v": 0.9 + jnp.abs(nrm(ks[5], (16,), 0.1)),
        "conv2_w": nrm(ks[6], (32, 16, 3, 3), 0.1),
        "conv2_b": nrm(ks[7], (32,), 0.1),
        "bn2_g": 1.0 + nrm(ks[8], (32,), 0.1),
        "bn2_b": nrm(ks[9], (32,), 0.1),
        "bn2_m": nrm(ks[10], (32,), 0.1),
        "bn2_v": 0.9 + jnp.abs(nrm(ks[11], (32,), 0.1)),
        "fc1_w": fc1_w, "fc1_b": jnp.zeros((1, 1024), jnp.float32),
        "fc2_w": fc2_w, "fc2_b": jnp.zeros((1, 512), jnp.float32),
        "fc3_w": fc3_w, "fc3_b": jnp.zeros((1, 128), jnp.float32),
        "fc4_w": fc4_w, "fc4_b": fc4_b,
    }


if __name__ == "__main__":
    key = jax.random.PRNGKey(0)
    kx, kp = jax.random.split(key)
    x = jax.random.normal(kx, (2, 1, 28, 28), jnp.float32)   # NCHW, MNIST-sized
    params = init_params(kp)

    out = jax.jit(cnn_forward)(x, params)
    out = jax.block_until_ready(out)

    assert out.shape == (2, 10)
    assert bool(jnp.all(jnp.isfinite(out)))
    # softmax rows must sum to ~1 (approx reciprocal in the kernel denominator)
    assert bool(jnp.all(jnp.abs(jnp.sum(out, axis=-1) - 1.0) < 5e-3))
    # match the pure-JAX f32 reference (kernel uses bf16 MXU inputs)
    ref = reference_forward(x, params)
    assert bool(jnp.max(jnp.abs(out - ref)) < 5e-2)
    print("KERNEL_OK")
</pallas_src>

<mosaic_0001>
module attributes {stable_mosaic.version = 11 : i64} {
  func.func @_cnn_fused_kernel(%arg0: i32, %arg1: memref<1x16x8x128xf32, #tpu.memory_space<vmem>>, %arg2: memref<9x112xf32, #tpu.memory_space<vmem>>, %arg3: memref<1x112xf32, #tpu.memory_space<vmem>>, %arg4: memref<864x192xbf16, #tpu.memory_space<vmem>>, %arg5: memref<1x192xf32, #tpu.memory_space<vmem>>, %arg6: memref<1152x1024xbf16, #tpu.memory_space<vmem>>, %arg7: memref<1x1024xf32, #tpu.memory_space<vmem>>, %arg8: memref<1024x512xbf16, #tpu.memory_space<vmem>>, %arg9: memref<1x512xf32, #tpu.memory_space<vmem>>, %arg10: memref<512x128xbf16, #tpu.memory_space<vmem>>, %arg11: memref<1x128xf32, #tpu.memory_space<vmem>>, %arg12: memref<128x128xbf16, #tpu.memory_space<vmem>>, %arg13: memref<1x128xf32, #tpu.memory_space<vmem>>, %arg14: memref<1x8x128xf32, #tpu.memory_space<vmem>>) attributes {dimension_semantics = [#tpu.dimension_semantics<parallel>], iteration_bounds = array<i64: 2>, scalar_prefetch = 0 : i64, scratch_operands = 0 : i64, tpu.core_type = #tpu.core_type<tc>, window_params = [{transform_indices = @transform_0, window_bounds = array<i64: 1, 16, 8, 128>}, {pipeline_mode = #tpu.pipeline_mode<synchronous>, transform_indices = @transform_1, window_bounds = array<i64: 9, 112>}, {pipeline_mode = #tpu.pipeline_mode<synchronous>, transform_indices = @transform_2, window_bounds = array<i64: 1, 112>}, {pipeline_mode = #tpu.pipeline_mode<synchronous>, transform_indices = @transform_3, window_bounds = array<i64: 864, 192>}, {pipeline_mode = #tpu.pipeline_mode<synchronous>, transform_indices = @transform_4, window_bounds = array<i64: 1, 192>}, {pipeline_mode = #tpu.pipeline_mode<synchronous>, transform_indices = @transform_5, window_bounds = array<i64: 1152, 1024>}, {pipeline_mode = #tpu.pipeline_mode<synchronous>, transform_indices = @transform_6, window_bounds = array<i64: 1, 1024>}, {pipeline_mode = #tpu.pipeline_mode<synchronous>, transform_indices = @transform_7, window_bounds = array<i64: 1024, 512>}, {pipeline_mode = #tpu.pipeline_mode<synchronous>, transform_indices = @transform_8, window_bounds = array<i64: 1, 512>}, {pipeline_mode = #tpu.pipeline_mode<synchronous>, transform_indices = @transform_9, window_bounds = array<i64: 512, 128>}, {pipeline_mode = #tpu.pipeline_mode<synchronous>, transform_indices = @transform_10, window_bounds = array<i64: 1, 128>}, {pipeline_mode = #tpu.pipeline_mode<synchronous>, transform_indices = @transform_11, window_bounds = array<i64: 128, 128>}, {pipeline_mode = #tpu.pipeline_mode<synchronous>, transform_indices = @transform_12, window_bounds = array<i64: 1, 128>}, {transform_indices = @transform_13, window_bounds = array<i64: 1, 8, 128>}]} {
    %c0 = arith.constant 0 : index
    %c0_0 = arith.constant 0 : index
    %c0_1 = arith.constant 0 : index
    %c0_2 = arith.constant 0 : index
    %0 = vector.load %arg1[%c0, %c0_0, %c0_1, %c0_2] : memref<1x16x8x128xf32, #tpu.memory_space<vmem>>, vector<1x1x7x112xf32>
    %1 = vector.shape_cast %0 : vector<1x1x7x112xf32> to vector<7x112xf32>
    %c0_3 = arith.constant 0 : index
    %c1 = arith.constant 1 : index
    %c0_4 = arith.constant 0 : index
    %c0_5 = arith.constant 0 : index
    %2 = vector.load %arg1[%c0_3, %c1, %c0_4, %c0_5] : memref<1x16x8x128xf32, #tpu.memory_space<vmem>>, vector<1x1x7x112xf32>
    %3 = vector.shape_cast %2 : vector<1x1x7x112xf32> to vector<7x112xf32>
    %c0_6 = arith.constant 0 : index
    %c2 = arith.constant 2 : index
    %c0_7 = arith.constant 0 : index
    %c0_8 = arith.constant 0 : index
    %4 = vector.load %arg1[%c0_6, %c2, %c0_7, %c0_8] : memref<1x16x8x128xf32, #tpu.memory_space<vmem>>, vector<1x1x7x112xf32>
    %5 = vector.shape_cast %4 : vector<1x1x7x112xf32> to vector<7x112xf32>
    %c0_9 = arith.constant 0 : index
    %c3 = arith.constant 3 : index
    %c0_10 = arith.constant 0 : index
    %c0_11 = arith.constant 0 : index
    %6 = vector.load %arg1[%c0_9, %c3, %c0_10, %c0_11] : memref<1x16x8x128xf32, #tpu.memory_space<vmem>>, vector<1x1x7x112xf32>
    %7 = vector.shape_cast %6 : vector<1x1x7x112xf32> to vector<7x112xf32>
    %c0_12 = arith.constant 0 : index
    %c0_13 = arith.constant 0 : index
    %c0_14 = arith.constant 0 : index
    %c16 = arith.constant 16 : index
    %8 = vector.load %arg1[%c0_12, %c0_13, %c0_14, %c16] : memref<1x16x8x128xf32, #tpu.memory_space<vmem>>, vector<1x1x7x112xf32>
    %9 = vector.shape_cast %8 : vector<1x1x7x112xf32> to vector<7x112xf32>
    %c0_15 = arith.constant 0 : index
    %c1_16 = arith.constant 1 : index
    %c0_17 = arith.constant 0 : index
    %c16_18 = arith.constant 16 : index
    %10 = vector.load %arg1[%c0_15, %c1_16, %c0_17, %c16_18] : memref<1x16x8x128xf32, #tpu.memory_space<vmem>>, vector<1x1x7x112xf32>
    %11 = vector.shape_cast %10 : vector<1x1x7x112xf32> to vector<7x112xf32>
    %c0_19 = arith.constant 0 : index
    %c4 = arith.constant 4 : index
    %c0_20 = arith.constant 0 : index
    %c0_21 = arith.constant 0 : index
    %12 = vector.load %arg1[%c0_19, %c4, %c0_20, %c0_21] : memref<1x16x8x128xf32, #tpu.memory_space<vmem>>, vector<1x1x7x112xf32>
    %13 = vector.shape_cast %12 : vector<1x1x7x112xf32> to vector<7x112xf32>
    %c0_22 = arith.constant 0 : index
    %c5 = arith.constant 5 : index
    %c0_23 = arith.constant 0 : index
    %c0_24 = arith.constant 0 : index
    %14 = vector.load %arg1[%c0_22, %c5, %c0_23, %c0_24] : memref<1x16x8x128xf32, #tpu.memory_space<vmem>>, vector<1x1x7x112xf32>
    %15 = vector.shape_cast %14 : vector<1x1x7x112xf32> to vector<7x112xf32>
    %c0_25 = arith.constant 0 : index
    %c6 = arith.constant 6 : index
    %c0_26 = arith.constant 0 : index
    %c0_27 = arith.constant 0 : index
    %16 = vector.load %arg1[%c0_25, %c6, %c0_26, %c0_27] : memref<1x16x8x128xf32, #tpu.memory_space<vmem>>, vector<1x1x7x112xf32>
    %17 = vector.shape_cast %16 : vector<1x1x7x112xf32> to vector<7x112xf32>
    %c0_28 = arith.constant 0 : index
    %c7 = arith.constant 7 : index
    %c0_29 = arith.constant 0 : index
    %c0_30 = arith.constant 0 : index
    %18 = vector.load %arg1[%c0_28, %c7, %c0_29, %c0_30] : memref<1x16x8x128xf32, #tpu.memory_space<vmem>>, vector<1x1x7x112xf32>
    %19 = vector.shape_cast %18 : vector<1x1x7x112xf32> to vector<7x112xf32>
    %c0_31 = arith.constant 0 : index
    %c4_32 = arith.constant 4 : index
    %c0_33 = arith.constant 0 : index
    %c16_34 = arith.constant 16 : index
    %20 = vector.load %arg1[%c0_31, %c4_32, %c0_33, %c16_34] : memref<1x16x8x128xf32, #tpu.memory_space<vmem>>, vector<1x1x7x112xf32>
    %21 = vector.shape_cast %20 : vector<1x1x7x112xf32> to vector<7x112xf32>
    %c0_35 = arith.constant 0 : index
    %c5_36 = arith.constant 5 : index
    %c0_37 = arith.constant 0 : index
    %c16_38 = arith.constant 16 : index
    %22 = vector.load %arg1[%c0_35, %c5_36, %c0_37, %c16_38] : memref<1x16x8x128xf32, #tpu.memory_space<vmem>>, vector<1x1x7x112xf32>
    %23 = vector.shape_cast %22 : vector<1x1x7x112xf32> to vector<7x112xf32>
    %c0_39 = arith.constant 0 : index
    %c8 = arith.constant 8 : index
    %c0_40 = arith.constant 0 : index
    %c0_41 = arith.constant 0 : index
    %24 = vector.load %arg1[%c0_39, %c8, %c0_40, %c0_41] : memref<1x16x8x128xf32, #tpu.memory_space<vmem>>, vector<1x1x7x112xf32>
    %25 = vector.shape_cast %24 : vector<1x1x7x112xf32> to vector<7x112xf32>
    %c0_42 = arith.constant 0 : index
    %c9 = arith.constant 9 : index
    %c0_43 = arith.constant 0 : index
    %c0_44 = arith.constant 0 : index
    %26 = vector.load %arg1[%c0_42, %c9, %c0_43, %c0_44] : memref<1x16x8x128xf32, #tpu.memory_space<vmem>>, vector<1x1x7x112xf32>
    %27 = vector.shape_cast %26 : vector<1x1x7x112xf32> to vector<7x112xf32>
    %c0_45 = arith.constant 0 : index
    %c10 = arith.constant 10 : index
    %c0_46 = arith.constant 0 : index
    %c0_47 = arith.constant 0 : index
    %28 = vector.load %arg1[%c0_45, %c10, %c0_46, %c0_47] : memref<1x16x8x128xf32, #tpu.memory_space<vmem>>, vector<1x1x7x112xf32>
    %29 = vector.shape_cast %28 : vector<1x1x7x112xf32> to vector<7x112xf32>
    %c0_48 = arith.constant 0 : index
    %c11 = arith.constant 11 : index
    %c0_49 = arith.constant 0 : index
    %c0_50 = arith.constant 0 : index
    %30 = vector.load %arg1[%c0_48, %c11, %c0_49, %c0_50] : memref<1x16x8x128xf32, #tpu.memory_space<vmem>>, vector<1x1x7x112xf32>
    %31 = vector.shape_cast %30 : vector<1x1x7x112xf32> to vector<7x112xf32>
    %c0_51 = arith.constant 0 : index
    %c8_52 = arith.constant 8 : index
    %c0_53 = arith.constant 0 : index
    %c16_54 = arith.constant 16 : index
    %32 = vector.load %arg1[%c0_51, %c8_52, %c0_53, %c16_54] : memref<1x16x8x128xf32, #tpu.memory_space<vmem>>, vector<1x1x7x112xf32>
    %33 = vector.shape_cast %32 : vector<1x1x7x112xf32> to vector<7x112xf32>
    %c0_55 = arith.constant 0 : index
    %c9_56 = arith.constant 9 : index
    %c0_57 = arith.constant 0 : index
    %c16_58 = arith.constant 16 : index
    %34 = vector.load %arg1[%c0_55, %c9_56, %c0_57, %c16_58] : memref<1x16x8x128xf32, #tpu.memory_space<vmem>>, vector<1x1x7x112xf32>
    %35 = vector.shape_cast %34 : vector<1x1x7x112xf32> to vector<7x112xf32>
    %c0_59 = arith.constant 0 : index
    %c12 = arith.constant 12 : index
    %c0_60 = arith.constant 0 : index
    %c0_61 = arith.constant 0 : index
    %36 = vector.load %arg1[%c0_59, %c12, %c0_60, %c0_61] : memref<1x16x8x128xf32, #tpu.memory_space<vmem>>, vector<1x1x7x112xf32>
    %37 = vector.shape_cast %36 : vector<1x1x7x112xf32> to vector<7x112xf32>
    %c0_62 = arith.constant 0 : index
    %c13 = arith.constant 13 : index
    %c0_63 = arith.constant 0 : index
    %c0_64 = arith.constant 0 : index
    %38 = vector.load %arg1[%c0_62, %c13, %c0_63, %c0_64] : memref<1x16x8x128xf32, #tpu.memory_space<vmem>>, vector<1x1x7x112xf32>
    %39 = vector.shape_cast %38 : vector<1x1x7x112xf32> to vector<7x112xf32>
    %c0_65 = arith.constant 0 : index
    %c14 = arith.constant 14 : index
    %c0_66 = arith.constant 0 : index
    %c0_67 = arith.constant 0 : index
    %40 = vector.load %arg1[%c0_65, %c14, %c0_66, %c0_67] : memref<1x16x8x128xf32, #tpu.memory_space<vmem>>, vector<1x1x7x112xf32>
    %41 = vector.shape_cast %40 : vector<1x1x7x112xf32> to vector<7x112xf32>
    %c0_68 = arith.constant 0 : index
    %c15 = arith.constant 15 : index
    %c0_69 = arith.constant 0 : index
    %c0_70 = arith.constant 0 : index
    %42 = vector.load %arg1[%c0_68, %c15, %c0_69, %c0_70] : memref<1x16x8x128xf32, #tpu.memory_space<vmem>>, vector<1x1x7x112xf32>
    %43 = vector.shape_cast %42 : vector<1x1x7x112xf32> to vector<7x112xf32>
    %c0_71 = arith.constant 0 : index
    %c12_72 = arith.constant 12 : index
    %c0_73 = arith.constant 0 : index
    %c16_74 = arith.constant 16 : index
    %44 = vector.load %arg1[%c0_71, %c12_72, %c0_73, %c16_74] : memref<1x16x8x128xf32, #tpu.memory_space<vmem>>, vector<1x1x7x112xf32>
    %45 = vector.shape_cast %44 : vector<1x1x7x112xf32> to vector<7x112xf32>
    %c0_75 = arith.constant 0 : index
    %c13_76 = arith.constant 13 : index
    %c0_77 = arith.constant 0 : index
    %c16_78 = arith.constant 16 : index
    %46 = vector.load %arg1[%c0_75, %c13_76, %c0_77, %c16_78] : memref<1x16x8x128xf32, #tpu.memory_space<vmem>>, vector<1x1x7x112xf32>
    %47 = vector.shape_cast %46 : vector<1x1x7x112xf32> to vector<7x112xf32>
    %c0_79 = arith.constant 0 : index
    %c0_80 = arith.constant 0 : index
    %c1_81 = arith.constant 1 : index
    %c0_82 = arith.constant 0 : index
    %48 = vector.load %arg1[%c0_79, %c0_80, %c1_81, %c0_82] : memref<1x16x8x128xf32, #tpu.memory_space<vmem>>, vector<1x1x7x112xf32>
    %49 = vector.shape_cast %48 : vector<1x1x7x112xf32> to vector<7x112xf32>
    %c0_83 = arith.constant 0 : index
    %c1_84 = arith.constant 1 : index
    %c1_85 = arith.constant 1 : index
    %c0_86 = arith.constant 0 : index
    %50 = vector.load %arg1[%c0_83, %c1_84, %c1_85, %c0_86] : memref<1x16x8x128xf32, #tpu.memory_space<vmem>>, vector<1x1x7x112xf32>
    %51 = vector.shape_cast %50 : vector<1x1x7x112xf32> to vector<7x112xf32>
    %c0_87 = arith.constant 0 : index
    %c2_88 = arith.constant 2 : index
    %c1_89 = arith.constant 1 : index
    %c0_90 = arith.constant 0 : index
    %52 = vector.load %arg1[%c0_87, %c2_88, %c1_89, %c0_90] : memref<1x16x8x128xf32, #tpu.memory_space<vmem>>, vector<1x1x7x112xf32>
    %53 = vector.shape_cast %52 : vector<1x1x7x112xf32> to vector<7x112xf32>
    %c0_91 = arith.constant 0 : index
    %c3_92 = arith.constant 3 : index
    %c1_93 = arith.constant 1 : index
    %c0_94 = arith.constant 0 : index
    %54 = vector.load %arg1[%c0_91, %c3_92, %c1_93, %c0_94] : memref<1x16x8x128xf32, #tpu.memory_space<vmem>>, vector<1x1x7x112xf32>
    %55 = vector.shape_cast %54 : vector<1x1x7x112xf32> to vector<7x112xf32>
    %c0_95 = arith.constant 0 : index
    %c0_96 = arith.constant 0 : index
    %c1_97 = arith.constant 1 : index
    %c16_98 = arith.constant 16 : index
    %56 = vector.load %arg1[%c0_95, %c0_96, %c1_97, %c16_98] : memref<1x16x8x128xf32, #tpu.memory_space<vmem>>, vector<1x1x7x112xf32>
    %57 = vector.shape_cast %56 : vector<1x1x7x112xf32> to vector<7x112xf32>
    %c0_99 = arith.constant 0 : index
    %c1_100 = arith.constant 1 : index
    %c1_101 = arith.constant 1 : index
    %c16_102 = arith.constant 16 : index
    %58 = vector.load %arg1[%c0_99, %c1_100, %c1_101, %c16_102] : memref<1x16x8x128xf32, #tpu.memory_space<vmem>>, vector<1x1x7x112xf32>
    %59 = vector.shape_cast %58 : vector<1x1x7x112xf32> to vector<7x112xf32>
    %c0_103 = arith.constant 0 : index
    %c4_104 = arith.constant 4 : index
    %c1_105 = arith.constant 1 : index
    %c0_106 = arith.constant 0 : index
    %60 = vector.load %arg1[%c0_103, %c4_104, %c1_105, %c0_106] : memref<1x16x8x128xf32, #tpu.memory_space<vmem>>, vector<1x1x7x112xf32>
    %61 = vector.shape_cast %60 : vector<1x1x7x112xf32> to vector<7x112xf32>
    %c0_107 = arith.constant 0 : index
    %c5_108 = arith.constant 5 : index
    %c1_109 = arith.constant 1 : index
    %c0_110 = arith.constant 0 : index
    %62 = vector.load %arg1[%c0_107, %c5_108, %c1_109, %c0_110] : memref<1x16x8x128xf32, #tpu.memory_space<vmem>>, vector<1x1x7x112xf32>
    %63 = vector.shape_cast %62 : vector<1x1x7x112xf32> to vector<7x112xf32>
    %c0_111 = arith.constant 0 : index
    %c6_112 = arith.constant 6 : index
    %c1_113 = arith.constant 1 : index
    %c0_114 = arith.constant 0 : index
    %64 = vector.load %arg1[%c0_111, %c6_112, %c1_113, %c0_114] : memref<1x16x8x128xf32, #tpu.memory_space<vmem>>, vector<1x1x7x112xf32>
    %65 = vector.shape_cast %64 : vector<1x1x7x112xf32> to vector<7x112xf32>
    %c0_115 = arith.constant 0 : index
    %c7_116 = arith.constant 7 : index
    %c1_117 = arith.constant 1 : index
    %c0_118 = arith.constant 0 : index
    %66 = vector.load %arg1[%c0_115, %c7_116, %c1_117, %c0_118] : memref<1x16x8x128xf32, #tpu.memory_space<vmem>>, vector<1x1x7x112xf32>
    %67 = vector.shape_cast %66 : vector<1x1x7x112xf32> to vector<7x112xf32>
    %c0_119 = arith.constant 0 : index
    %c4_120 = arith.constant 4 : index
    %c1_121 = arith.constant 1 : index
    %c16_122 = arith.constant 16 : index
    %68 = vector.load %arg1[%c0_119, %c4_120, %c1_121, %c16_122] : memref<1x16x8x128xf32, #tpu.memory_space<vmem>>, vector<1x1x7x112xf32>
    %69 = vector.shape_cast %68 : vector<1x1x7x112xf32> to vector<7x112xf32>
    %c0_123 = arith.constant 0 : index
    %c5_124 = arith.constant 5 : index
    %c1_125 = arith.constant 1 : index
    %c16_126 = arith.constant 16 : index
    %70 = vector.load %arg1[%c0_123, %c5_124, %c1_125, %c16_126] : memref<1x16x8x128xf32, #tpu.memory_space<vmem>>, vector<1x1x7x112xf32>
    %71 = vector.shape_cast %70 : vector<1x1x7x112xf32> to vector<7x112xf32>
    %c0_127 = arith.constant 0 : index
    %c0_128 = arith.constant 0 : index
    %72 = vector.load %arg2[%c0_127, %c0_128] : memref<9x112xf32, #tpu.memory_space<vmem>>, vector<9x112xf32>
    %c0_129 = arith.constant 0 : index
    %c0_130 = arith.constant 0 : index
    %73 = vector.load %arg3[%c0_129, %c0_130] : memref<1x112xf32, #tpu.memory_space<vmem>>, vector<1x112xf32>
    %74 = vector.extract_strided_slice %72 {offsets = [0, 0], sizes = [1, 112], strides = [1, 1]} : vector<9x112xf32> to vector<1x112xf32>
    %75 = vector.broadcast %74 : vector<1x112xf32> to vector<7x112xf32>
    %76 = arith.mulf %1, %75 : vector<7x112xf32>
    %77 = vector.extract_strided_slice %72 {offsets = [1, 0], sizes = [1, 112], strides = [1, 1]} : vector<9x112xf32> to vector<1x112xf32>
    %78 = vector.broadcast %77 : vector<1x112xf32> to vector<7x112xf32>
    %79 = arith.mulf %3, %78 : vector<7x112xf32>
    %80 = arith.addf %76, %79 : vector<7x112xf32>
    %81 = vector.extract_strided_slice %72 {offsets = [2, 0], sizes = [1, 112], strides = [1, 1]} : vector<9x112xf32> to vector<1x112xf32>
    %82 = vector.broadcast %81 : vector<1x112xf32> to vector<7x112xf32>
    %83 = arith.mulf %5, %82 : vector<7x112xf32>
    %84 = arith.addf %80, %83 : vector<7x112xf32>
    %85 = vector.extract_strided_slice %72 {offsets = [3, 0], sizes = [1, 112], strides = [1, 1]} : vector<9x112xf32> to vector<1x112xf32>
    %86 = vector.broadcast %85 : vector<1x112xf32> to vector<7x112xf32>
    %87 = arith.mulf %13, %86 : vector<7x112xf32>
    %88 = arith.addf %84, %87 : vector<7x112xf32>
    %89 = vector.extract_strided_slice %72 {offsets = [4, 0], sizes = [1, 112], strides = [1, 1]} : vector<9x112xf32> to vector<1x112xf32>
    %90 = vector.broadcast %89 : vector<1x112xf32> to vector<7x112xf32>
    %91 = arith.mulf %15, %90 : vector<7x112xf32>
    %92 = arith.addf %88, %91 : vector<7x112xf32>
    %93 = vector.extract_strided_slice %72 {offsets = [5, 0], sizes = [1, 112], strides = [1, 1]} : vector<9x112xf32> to vector<1x112xf32>
    %94 = vector.broadcast %93 : vector<1x112xf32> to vector<7x112xf32>
    %95 = arith.mulf %17, %94 : vector<7x112xf32>
    %96 = arith.addf %92, %95 : vector<7x112xf32>
    %97 = vector.extract_strided_slice %72 {offsets = [6, 0], sizes = [1, 112], strides = [1, 1]} : vector<9x112xf32> to vector<1x112xf32>
    %98 = vector.broadcast %97 : vector<1x112xf32> to vector<7x112xf32>
    %99 = arith.mulf %25, %98 : vector<7x112xf32>
    %100 = arith.addf %96, %99 : vector<7x112xf32>
    %101 = vector.extract_strided_slice %72 {offsets = [7, 0], sizes = [1, 112], strides = [1, 1]} : vector<9x112xf32> to vector<1x112xf32>
    %102 = vector.broadcast %101 : vector<1x112xf32> to vector<7x112xf32>
    %103 = arith.mulf %27, %102 : vector<7x112xf32>
    %104 = arith.addf %100, %103 : vector<7x112xf32>
    %105 = vector.extract_strided_slice %72 {offsets = [8, 0], sizes = [1, 112], strides = [1, 1]} : vector<9x112xf32> to vector<1x112xf32>
    %106 = vector.broadcast %105 : vector<1x112xf32> to vector<7x112xf32>
    %107 = arith.mulf %29, %106 : vector<7x112xf32>
    %108 = arith.addf %104, %107 : vector<7x112xf32>
    %109 = vector.extract_strided_slice %72 {offsets = [0, 0], sizes = [1, 112], strides = [1, 1]} : vector<9x112xf32> to vector<1x112xf32>
    %110 = vector.broadcast %109 : vector<1x112xf32> to vector<7x112xf32>
    %111 = arith.mulf %3, %110 : vector<7x112xf32>
    %112 = vector.extract_strided_slice %72 {offsets = [1, 0], sizes = [1, 112], strides = [1, 1]} : vector<9x112xf32> to vector<1x112xf32>
    %113 = vector.broadcast %112 : vector<1x112xf32> to vector<7x112xf32>
    %114 = arith.mulf %5, %113 : vector<7x112xf32>
    %115 = arith.addf %111, %114 : vector<7x112xf32>
    %116 = vector.extract_strided_slice %72 {offsets = [2, 0], sizes = [1, 112], strides = [1, 1]} : vector<9x112xf32> to vector<1x112xf32>
    %117 = vector.broadcast %116 : vector<1x112xf32> to vector<7x112xf32>
    %118 = arith.mulf %7, %117 : vector<7x112xf32>
    %119 = arith.addf %115, %118 : vector<7x112xf32>
    %120 = vector.extract_strided_slice %72 {offsets = [3, 0], sizes = [1, 112], strides = [1, 1]} : vector<9x112xf32> to vector<1x112xf32>
    %121 = vector.broadcast %120 : vector<1x112xf32> to vector<7x112xf32>
    %122 = arith.mulf %15, %121 : vector<7x112xf32>
    %123 = arith.addf %119, %122 : vector<7x112xf32>
    %124 = vector.extract_strided_slice %72 {offsets = [4, 0], sizes = [1, 112], strides = [1, 1]} : vector<9x112xf32> to vector<1x112xf32>
    %125 = vector.broadcast %124 : vector<1x112xf32> to vector<7x112xf32>
    %126 = arith.mulf %17, %125 : vector<7x112xf32>
    %127 = arith.addf %123, %126 : vector<7x112xf32>
    %128 = vector.extract_strided_slice %72 {offsets = [5, 0], sizes = [1, 112], strides = [1, 1]} : vector<9x112xf32> to vector<1x112xf32>
    %129 = vector.broadcast %128 : vector<1x112xf32> to vector<7x112xf32>
    %130 = arith.mulf %19, %129 : vector<7x112xf32>
    %131 = arith.addf %127, %130 : vector<7x112xf32>
    %132 = vector.extract_strided_slice %72 {offsets = [6, 0], sizes = [1, 112], strides = [1, 1]} : vector<9x112xf32> to vector<1x112xf32>
    %133 = vector.broadcast %132 : vector<1x112xf32> to vector<7x112xf32>
    %134 = arith.mulf %27, %133 : vector<7x112xf32>
    %135 = arith.addf %131, %134 : vector<7x112xf32>
    %136 = vector.extract_strided_slice %72 {offsets = [7, 0], sizes = [1, 112], strides = [1, 1]} : vector<9x112xf32> to vector<1x112xf32>
    %137 = vector.broadcast %136 : vector<1x112xf32> to vector<7x112xf32>
    %138 = arith.mulf %29, %137 : vector<7x112xf32>
    %139 = arith.addf %135, %138 : vector<7x112xf32>
    %140 = vector.extract_strided_slice %72 {offsets = [8, 0], sizes = [1, 112], strides = [1, 1]} : vector<9x112xf32> to vector<1x112xf32>
    %141 = vector.broadcast %140 : vector<1x112xf32> to vector<7x112xf32>
    %142 = arith.mulf %31, %141 : vector<7x112xf32>
    %143 = arith.addf %139, %142 : vector<7x112xf32>
    %144 = arith.maximumf %108, %143 : vector<7x112xf32>
    %145 = vector.extract_strided_slice %72 {offsets = [0, 0], sizes = [1, 112], strides = [1, 1]} : vector<9x112xf32> to vector<1x112xf32>
    %146 = vector.broadcast %145 : vector<1x112xf32> to vector<7x112xf32>
    %147 = arith.mulf %13, %146 : vector<7x112xf32>
    %148 = vector.extract_strided_slice %72 {offsets = [1, 0], sizes = [1, 112], strides = [1, 1]} : vector<9x112xf32> to vector<1x112xf32>
    %149 = vector.broadcast %148 : vector<1x112xf32> to vector<7x112xf32>
    %150 = arith.mulf %15, %149 : vector<7x112xf32>
    %151 = arith.addf %147, %150 : vector<7x112xf32>
    %152 = vector.extract_strided_slice %72 {offsets = [2, 0], sizes = [1, 112], strides = [1, 1]} : vector<9x112xf32> to vector<1x112xf32>
    %153 = vector.broadcast %152 : vector<1x112xf32> to vector<7x112xf32>
    %154 = arith.mulf %17, %153 : vector<7x112xf32>
    %155 = arith.addf %151, %154 : vector<7x112xf32>
    %156 = vector.extract_strided_slice %72 {offsets = [3, 0], sizes = [1, 112], strides = [1, 1]} : vector<9x112xf32> to vector<1x112xf32>
    %157 = vector.broadcast %156 : vector<1x112xf32> to vector<7x112xf32>
    %158 = arith.mulf %25, %157 : vector<7x112xf32>
    %159 = arith.addf %155, %158 : vector<7x112xf32>
    %160 = vector.extract_strided_slice %72 {offsets = [4, 0], sizes = [1, 112], strides = [1, 1]} : vector<9x112xf32> to vector<1x112xf32>
    %161 = vector.broadcast %160 : vector<1x112xf32> to vector<7x112xf32>
    %162 = arith.mulf %27, %161 : vector<7x112xf32>
    %163 = arith.addf %159, %162 : vector<7x112xf32>
    %164 = vector.extract_strided_slice %72 {offsets = [5, 0], sizes = [1, 112], strides = [1, 1]} : vector<9x112xf32> to vector<1x112xf32>
    %165 = vector.broadcast %164 : vector<1x112xf32> to vector<7x112xf32>
    %166 = arith.mulf %29, %165 : vector<7x112xf32>
    %167 = arith.addf %163, %166 : vector<7x112xf32>
    %168 = vector.extract_strided_slice %72 {offsets = [6, 0], sizes = [1, 112], strides = [1, 1]} : vector<9x112xf32> to vector<1x112xf32>
    %169 = vector.broadcast %168 : vector<1x112xf32> to vector<7x112xf32>
    %170 = arith.mulf %37, %169 : vector<7x112xf32>
    %171 = arith.addf %167, %170 : vector<7x112xf32>
    %172 = vector.extract_strided_slice %72 {offsets = [7, 0], sizes = [1, 112], strides = [1, 1]} : vector<9x112xf32> to vector<1x112xf32>
    %173 = vector.broadcast %172 : vector<1x112xf32> to vector<7x112xf32>
    %174 = arith.mulf %39, %173 : vector<7x112xf32>
    %175 = arith.addf %171, %174 : vector<7x112xf32>
    %176 = vector.extract_strided_slice %72 {offsets = [8, 0], sizes = [1, 112], strides = [1, 1]} : vector<9x112xf32> to vector<1x112xf32>
    %177 = vector.broadcast %176 : vector<1x112xf32> to vector<7x112xf32>
    %178 = arith.mulf %41, %177 : vector<7x112xf32>
    %179 = arith.addf %175, %178 : vector<7x112xf32>
    %180 = arith.maximumf %144, %179 : vector<7x112xf32>
    %181 = vector.extract_strided_slice %72 {offsets = [0, 0], sizes = [1, 112], strides = [1, 1]} : vector<9x112xf32> to vector<1x112xf32>
    %182 = vector.broadcast %181 : vector<1x112xf32> to vector<7x112xf32>
    %183 = arith.mulf %15, %182 : vector<7x112xf32>
    %184 = vector.extract_strided_slice %72 {offsets = [1, 0], sizes = [1, 112], strides = [1, 1]} : vector<9x112xf32> to vector<1x112xf32>
    %185 = vector.broadcast %184 : vector<1x112xf32> to vector<7x112xf32>
    %186 = arith.mulf %17, %185 : vector<7x112xf32>
    %187 = arith.addf %183, %186 : vector<7x112xf32>
    %188 = vector.extract_strided_slice %72 {offsets = [2, 0], sizes = [1, 112], strides = [1, 1]} : vector<9x112xf32> to vector<1x112xf32>
    %189 = vector.broadcast %188 : vector<1x112xf32> to vector<7x112xf32>
    %190 = arith.mulf %19, %189 : vector<7x112xf32>
    %191 = arith.addf %187, %190 : vector<7x112xf32>
    %192 = vector.extract_strided_slice %72 {offsets = [3, 0], sizes = [1, 112], strides = [1, 1]} : vector<9x112xf32> to vector<1x112xf32>
    %193 = vector.broadcast %192 : vector<1x112xf32> to vector<7x112xf32>
    %194 = arith.mulf %27, %193 : vector<7x112xf32>
    %195 = arith.addf %191, %194 : vector<7x112xf32>
    %196 = vector.extract_strided_slice %72 {offsets = [4, 0], sizes = [1, 112], strides = [1, 1]} : vector<9x112xf32> to vector<1x112xf32>
    %197 = vector.broadcast %196 : vector<1x112xf32> to vector<7x112xf32>
    %198 = arith.mulf %29, %197 : vector<7x112xf32>
    %199 = arith.addf %195, %198 : vector<7x112xf32>
    %200 = vector.extract_strided_slice %72 {offsets = [5, 0], sizes = [1, 112], strides = [1, 1]} : vector<9x112xf32> to vector<1x112xf32>
    %201 = vector.broadcast %200 : vector<1x112xf32> to vector<7x112xf32>
    %202 = arith.mulf %31, %201 : vector<7x112xf32>
    %203 = arith.addf %199, %202 : vector<7x112xf32>
    %204 = vector.extract_strided_slice %72 {offsets = [6, 0], sizes = [1, 112], strides = [1, 1]} : vector<9x112xf32> to vector<1x112xf32>
    %205 = vector.broadcast %204 : vector<1x112xf32> to vector<7x112xf32>
    %206 = arith.mulf %39, %205 : vector<7x112xf32>
    %207 = arith.addf %203, %206 : vector<7x112xf32>
    %208 = vector.extract_strided_slice %72 {offsets = [7, 0], sizes = [1, 112], strides = [1, 1]} : vector<9x112xf32> to vector<1x112xf32>
    %209 = vector.broadcast %208 : vector<1x112xf32> to vector<7x112xf32>
    %210 = arith.mulf %41, %209 : vector<7x112xf32>
    %211 = arith.addf %207, %210 : vector<7x112xf32>
    %212 = vector.extract_strided_slice %72 {offsets = [8, 0], sizes = [1, 112], strides = [1, 1]} : vector<9x112xf32> to vector<1x112xf32>
    %213 = vector.broadcast %212 : vector<1x112xf32> to vector<7x112xf32>
    %214 = arith.mulf %43, %213 : vector<7x112xf32>
    %215 = arith.addf %211, %214 : vector<7x112xf32>
    %216 = arith.maximumf %180, %215 : vector<7x112xf32>
    %217 = vector.broadcast %73 : vector<1x112xf32> to vector<7x112xf32>
    %218 = arith.addf %216, %217 : vector<7x112xf32>
    %cst = arith.constant 0.000000e+00 : f32
    %219 = vector.broadcast %cst : f32 to vector<7x112xf32>
    %220 = arith.maximumf %218, %219 : vector<7x112xf32>
    %221 = vector.extract_strided_slice %72 {offsets = [0, 0], sizes = [1, 112], strides = [1, 1]} : vector<9x112xf32> to vector<1x112xf32>
    %222 = vector.broadcast %221 : vector<1x112xf32> to vector<7x112xf32>
    %223 = arith.mulf %5, %222 : vector<7x112xf32>
    %224 = vector.extract_strided_slice %72 {offsets = [1, 0], sizes = [1, 112], strides = [1, 1]} : vector<9x112xf32> to vector<1x112xf32>
    %225 = vector.broadcast %224 : vector<1x112xf32> to vector<7x112xf32>
    %226 = arith.mulf %7, %225 : vector<7x112xf32>
    %227 = arith.addf %223, %226 : vector<7x112xf32>
    %228 = vector.extract_strided_slice %72 {offsets = [2, 0], sizes = [1, 112], strides = [1, 1]} : vector<9x112xf32> to vector<1x112xf32>
    %229 = vector.broadcast %228 : vector<1x112xf32> to vector<7x112xf32>
    %230 = arith.mulf %9, %229 : vector<7x112xf32>
    %231 = arith.addf %227, %230 : vector<7x112xf32>
    %232 = vector.extract_strided_slice %72 {offsets = [3, 0], sizes = [1, 112], strides = [1, 1]} : vector<9x112xf32> to vector<1x112xf32>
    %233 = vector.broadcast %232 : vector<1x112xf32> to vector<7x112xf32>
    %234 = arith.mulf %17, %233 : vector<7x112xf32>
    %235 = arith.addf %231, %234 : vector<7x112xf32>
    %236 = vector.extract_strided_slice %72 {offsets = [4, 0], sizes = [1, 112], strides = [1, 1]} : vector<9x112xf32> to vector<1x112xf32>
    %237 = vector.broadcast %236 : vector<1x112xf32> to vector<7x112xf32>
    %238 = arith.mulf %19, %237 : vector<7x112xf32>
    %239 = arith.addf %235, %238 : vector<7x112xf32>
    %240 = vector.extract_strided_slice %72 {offsets = [5, 0], sizes = [1, 112], strides = [1, 1]} : vector<9x112xf32> to vector<1x112xf32>
    %241 = vector.broadcast %240 : vector<1x112xf32> to vector<7x112xf32>
    %242 = arith.mulf %21, %241 : vector<7x112xf32>
    %243 = arith.addf %239, %242 : vector<7x112xf32>
    %244 = vector.extract_strided_slice %72 {offsets = [6, 0], sizes = [1, 112], strides = [1, 1]} : vector<9x112xf32> to vector<1x112xf32>
    %245 = vector.broadcast %244 : vector<1x112xf32> to vector<7x112xf32>
    %246 = arith.mulf %29, %245 : vector<7x112xf32>
    %247 = arith.addf %243, %246 : vector<7x112xf32>
    %248 = vector.extract_strided_slice %72 {offsets = [7, 0], sizes = [1, 112], strides = [1, 1]} : vector<9x112xf32> to vector<1x112xf32>
    %249 = vector.broadcast %248 : vector<1x112xf32> to vector<7x112xf32>
    %250 = arith.mulf %31, %249 : vector<7x112xf32>
    %251 = arith.addf %247, %250 : vector<7x112xf32>
    %252 = vector.extract_strided_slice %72 {offsets = [8, 0], sizes = [1, 112], strides = [1, 1]} : vector<9x112xf32> to vector<1x112xf32>
    %253 = vector.broadcast %252 : vector<1x112xf32> to vector<7x112xf32>
    %254 = arith.mulf %33, %253 : vector<7x112xf32>
    %255 = arith.addf %251, %254 : vector<7x112xf32>
    %256 = vector.extract_strided_slice %72 {offsets = [0, 0], sizes = [1, 112], strides = [1, 1]} : vector<9x112xf32> to vector<1x112xf32>
    %257 = vector.broadcast %256 : vector<1x112xf32> to vector<7x112xf32>
    %258 = arith.mulf %7, %257 : vector<7x112xf32>
    %259 = vector.extract_strided_slice %72 {offsets = [1, 0], sizes = [1, 112], strides = [1, 1]} : vector<9x112xf32> to vector<1x112xf32>
    %260 = vector.broadcast %259 : vector<1x112xf32> to vector<7x112xf32>
    %261 = arith.mulf %9, %260 : vector<7x112xf32>
    %262 = arith.addf %258, %261 : vector<7x112xf32>
    %263 = vector.extract_strided_slice %72 {offsets = [2, 0], sizes = [1, 112], strides = [1, 1]} : vector<9x112xf32> to vector<1x112xf32>
    %264 = vector.broadcast %263 : vector<1x112xf32> to vector<7x112xf32>
    %265 = arith.mulf %11, %264 : vector<7x112xf32>
    %266 = arith.addf %262, %265 : vector<7x112xf32>
    %267 = vector.extract_strided_slice %72 {offsets = [3, 0], sizes = [1, 112], strides = [1, 1]} : vector<9x112xf32> to vector<1x112xf32>
    %268 = vector.broadcast %267 : vector<1x112xf32> to vector<7x112xf32>
    %269 = arith.mulf %19, %268 : vector<7x112xf32>
    %270 = arith.addf %266, %269 : vector<7x112xf32>
    %271 = vector.extract_strided_slice %72 {offsets = [4, 0], sizes = [1, 112], strides = [1, 1]} : vector<9x112xf32> to vector<1x112xf32>
    %272 = vector.broadcast %271 : vector<1x112xf32> to vector<7x112xf32>
    %273 = arith.mulf %21, %272 : vector<7x112xf32>
    %274 = arith.addf %270, %273 : vector<7x112xf32>
    %275 = vector.extract_strided_slice %72 {offsets = [5, 0], sizes = [1, 112], strides = [1, 1]} : vector<9x112xf32> to vector<1x112xf32>
    %276 = vector.broadcast %275 : vector<1x112xf32> to vector<7x112xf32>
    %277 = arith.mulf %23, %276 : vector<7x112xf32>
    %278 = arith.addf %274, %277 : vector<7x112xf32>
    %279 = vector.extract_strided_slice %72 {offsets = [6, 0], sizes = [1, 112], strides = [1, 1]} : vector<9x112xf32> to vector<1x112xf32>
    %280 = vector.broadcast %279 : vector<1x112xf32> to vector<7x112xf32>
    %281 = arith.mulf %31, %280 : vector<7x112xf32>
    %282 = arith.addf %278, %281 : vector<7x112xf32>
    %283 = vector.extract_strided_slice %72 {offsets = [7, 0], sizes = [1, 112], strides = [1, 1]} : vector<9x112xf32> to vector<1x112xf32>
    %284 = vector.broadcast %283 : vector<1x112xf32> to vector<7x112xf32>
    %285 = arith.mulf %33, %284 : vector<7x112xf32>
    %286 = arith.addf %282, %285 : vector<7x112xf32>
    %287 = vector.extract_strided_slice %72 {offsets = [8, 0], sizes = [1, 112], strides = [1, 1]} : vector<9x112xf32> to vector<1x112xf32>
    %288 = vector.broadcast %287 : vector<1x112xf32> to vector<7x112xf32>
    %289 = arith.mulf %35, %288 : vector<7x112xf32>
    %290 = arith.addf %286, %289 : vector<7x112xf32>
    %291 = arith.maximumf %255, %290 : vector<7x112xf32>
    %292 = vector.extract_strided_slice %72 {offsets = [0, 0], sizes = [1, 112], strides = [1, 1]} : vector<9x112xf32> to vector<1x112xf32>
    %293 = vector.broadcast %292 : vector<1x112xf32> to vector<7x112xf32>
    %294 = arith.mulf %17, %293 : vector<7x112xf32>
    %295 = vector.extract_strided_slice %72 {offsets = [1, 0], sizes = [1, 112], strides = [1, 1]} : vector<9x112xf32> to vector<1x112xf32>
    %296 = vector.broadcast %295 : vector<1x112xf32> to vector<7x112xf32>
    %297 = arith.mulf %19, %296 : vector<7x112xf32>
    %298 = arith.addf %294, %297 : vector<7x112xf32>
    %299 = vector.extract_strided_slice %72 {offsets = [2, 0], sizes = [1, 112], strides = [1, 1]} : vector<9x112xf32> to vector<1x112xf32>
    %300 = vector.broadcast %299 : vector<1x112xf32> to vector<7x112xf32>
    %301 = arith.mulf %21, %300 : vector<7x112xf32>
    %302 = arith.addf %298, %301 : vector<7x112xf32>
    %303 = vector.extract_strided_slice %72 {offsets = [3, 0], sizes = [1, 112], strides = [1, 1]} : vector<9x112xf32> to vector<1x112xf32>
    %304 = vector.broadcast %303 : vector<1x112xf32> to vector<7x112xf32>
    %305 = arith.mulf %29, %304 : vector<7x112xf32>
    %306 = arith.addf %302, %305 : vector<7x112xf32>
    %307 = vector.extract_strided_slice %72 {offsets = [4, 0], sizes = [1, 112], strides = [1, 1]} : vector<9x112xf32> to vector<1x112xf32>
    %308 = vector.broadcast %307 : vector<1x112xf32> to vector<7x112xf32>
    %309 = arith.mulf %31, %308 : vector<7x112xf32>
    %310 = arith.addf %306, %309 : vector<7x112xf32>
    %311 = vector.extract_strided_slice %72 {offsets = [5, 0], sizes = [1, 112], strides = [1, 1]} : vector<9x112xf32> to vector<1x112xf32>
    %312 = vector.broadcast %311 : vector<1x112xf32> to vector<7x112xf32>
    %313 = arith.mulf %33, %312 : vector<7x112xf32>
    %314 = arith.addf %310, %313 : vector<7x112xf32>
    %315 = vector.extract_strided_slice %72 {offsets = [6, 0], sizes = [1, 112], strides = [1, 1]} : vector<9x112xf32> to vector<1x112xf32>
    %316 = vector.broadcast %315 : vector<1x112xf32> to vector<7x112xf32>
    %317 = arith.mulf %41, %316 : vector<7x112xf32>
    %318 = arith.addf %314, %317 : vector<7x112xf32>
    %319 = vector.extract_strided_slice %72 {offsets = [7, 0], sizes = [1, 112], strides = [1, 1]} : vector<9x112xf32> to vector<1x112xf32>
    %320 = vector.broadcast %319 : vector<1x112xf32> to vector<7x112xf32>
    %321 = arith.mulf %43, %320 : vector<7x112xf32>
    %322 = arith.addf %318, %321 : vector<7x112xf32>
    %323 = vector.extract_strided_slice %72 {offsets = [8, 0], sizes = [1, 112], strides = [1, 1]} : vector<9x112xf32> to vector<1x112xf32>
    %324 = vector.broadcast %323 : vector<1x112xf32> to vector<7x112xf32>
    %325 = arith.mulf %45, %324 : vector<7x112xf32>
    %326 = arith.addf %322, %325 : vector<7x112xf32>
    %327 = arith.maximumf %291, %326 : vector<7x112xf32>
    %328 = vector.extract_strided_slice %72 {offsets = [0, 0], sizes = [1, 112], strides = [1, 1]} : vector<9x112xf32> to vector<1x112xf32>
    %329 = vector.broadcast %328 : vector<1x112xf32> to vector<7x112xf32>
    %330 = arith.mulf %19, %329 : vector<7x112xf32>
    %331 = vector.extract_strided_slice %72 {offsets = [1, 0], sizes = [1, 112], strides = [1, 1]} : vector<9x112xf32> to vector<1x112xf32>
    %332 = vector.broadcast %331 : vector<1x112xf32> to vector<7x112xf32>
    %333 = arith.mulf %21, %332 : vector<7x112xf32>
    %334 = arith.addf %330, %333 : vector<7x112xf32>
    %335 = vector.extract_strided_slice %72 {offsets = [2, 0], sizes = [1, 112], strides = [1, 1]} : vector<9x112xf32> to vector<1x112xf32>
    %336 = vector.broadcast %335 : vector<1x112xf32> to vector<7x112xf32>
    %337 = arith.mulf %23, %336 : vector<7x112xf32>
    %338 = arith.addf %334, %337 : vector<7x112xf32>
    %339 = vector.extract_strided_slice %72 {offsets = [3, 0], sizes = [1, 112], strides = [1, 1]} : vector<9x112xf32> to vector<1x112xf32>
    %340 = vector.broadcast %339 : vector<1x112xf32> to vector<7x112xf32>
    %341 = arith.mulf %31, %340 : vector<7x112xf32>
    %342 = arith.addf %338, %341 : vector<7x112xf32>
    %343 = vector.extract_strided_slice %72 {offsets = [4, 0], sizes = [1, 112], strides = [1, 1]} : vector<9x112xf32> to vector<1x112xf32>
    %344 = vector.broadcast %343 : vector<1x112xf32> to vector<7x112xf32>
    %345 = arith.mulf %33, %344 : vector<7x112xf32>
    %346 = arith.addf %342, %345 : vector<7x112xf32>
    %347 = vector.extract_strided_slice %72 {offsets = [5, 0], sizes = [1, 112], strides = [1, 1]} : vector<9x112xf32> to vector<1x112xf32>
    %348 = vector.broadcast %347 : vector<1x112xf32> to vector<7x112xf32>
    %349 = arith.mulf %35, %348 : vector<7x112xf32>
    %350 = arith.addf %346, %349 : vector<7x112xf32>
    %351 = vector.extract_strided_slice %72 {offsets = [6, 0], sizes = [1, 112], strides = [1, 1]} : vector<9x112xf32> to vector<1x112xf32>
    %352 = vector.broadcast %351 : vector<1x112xf32> to vector<7x112xf32>
    %353 = arith.mulf %43, %352 : vector<7x112xf32>
    %354 = arith.addf %350, %353 : vector<7x112xf32>
    %355 = vector.extract_strided_slice %72 {offsets = [7, 0], sizes = [1, 112], strides = [1, 1]} : vector<9x112xf32> to vector<1x112xf32>
    %356 = vector.broadcast %355 : vector<1x112xf32> to vector<7x112xf32>
    %357 = arith.mulf %45, %356 : vector<7x112xf32>
    %358 = arith.addf %354, %357 : vector<7x112xf32>
    %359 = vector.extract_strided_slice %72 {offsets = [8, 0], sizes = [1, 112], strides = [1, 1]} : vector<9x112xf32> to vector<1x112xf32>
    %360 = vector.broadcast %359 : vector<1x112xf32> to vector<7x112xf32>
    %361 = arith.mulf %47, %360 : vector<7x112xf32>
    %362 = arith.addf %358, %361 : vector<7x112xf32>
    %363 = arith.maximumf %327, %362 : vector<7x112xf32>
    %364 = vector.broadcast %73 : vector<1x112xf32> to vector<7x112xf32>
    %365 = arith.addf %363, %364 : vector<7x112xf32>
    %cst_131 = arith.constant 0.000000e+00 : f32
    %366 = vector.broadcast %cst_131 : f32 to vector<7x112xf32>
    %367 = arith.maximumf %365, %366 : vector<7x112xf32>
    %368 = vector.extract_strided_slice %72 {offsets = [0, 0], sizes = [1, 112], strides = [1, 1]} : vector<9x112xf32> to vector<1x112xf32>
    %369 = vector.broadcast %368 : vector<1x112xf32> to vector<7x112xf32>
    %370 = arith.mulf %25, %369 : vector<7x112xf32>
    %371 = vector.extract_strided_slice %72 {offsets = [1, 0], sizes = [1, 112], strides = [1, 1]} : vector<9x112xf32> to vector<1x112xf32>
    %372 = vector.broadcast %371 : vector<1x112xf32> to vector<7x112xf32>
    %373 = arith.mulf %27, %372 : vector<7x112xf32>
    %374 = arith.addf %370, %373 : vector<7x112xf32>
    %375 = vector.extract_strided_slice %72 {offsets = [2, 0], sizes = [1, 112], strides = [1, 1]} : vector<9x112xf32> to vector<1x112xf32>
    %376 = vector.broadcast %375 : vector<1x112xf32> to vector<7x112xf32>
    %377 = arith.mulf %29, %376 : vector<7x112xf32>
    %378 = arith.addf %374, %377 : vector<7x112xf32>
    %379 = vector.extract_strided_slice %72 {offsets = [3, 0], sizes = [1, 112], strides = [1, 1]} : vector<9x112xf32> to vector<1x112xf32>
    %380 = vector.broadcast %379 : vector<1x112xf32> to vector<7x112xf32>
    %381 = arith.mulf %37, %380 : vector<7x112xf32>
    %382 = arith.addf %378, %381 : vector<7x112xf32>
    %383 = vector.extract_strided_slice %72 {offsets = [4, 0], sizes = [1, 112], strides = [1, 1]} : vector<9x112xf32> to vector<1x112xf32>
    %384 = vector.broadcast %383 : vector<1x112xf32> to vector<7x112xf32>
    %385 = arith.mulf %39, %384 : vector<7x112xf32>
    %386 = arith.addf %382, %385 : vector<7x112xf32>
    %387 = vector.extract_strided_slice %72 {offsets = [5, 0], sizes = [1, 112], strides = [1, 1]} : vector<9x112xf32> to vector<1x112xf32>
    %388 = vector.broadcast %387 : vector<1x112xf32> to vector<7x112xf32>
    %389 = arith.mulf %41, %388 : vector<7x112xf32>
    %390 = arith.addf %386, %389 : vector<7x112xf32>
    %391 = vector.extract_strided_slice %72 {offsets = [6, 0], sizes = [1, 112], strides = [1, 1]} : vector<9x112xf32> to vector<1x112xf32>
    %392 = vector.broadcast %391 : vector<1x112xf32> to vector<7x112xf32>
    %393 = arith.mulf %49, %392 : vector<7x112xf32>
    %394 = arith.addf %390, %393 : vector<7x112xf32>
    %395 = vector.extract_strided_slice %72 {offsets = [7, 0], sizes = [1, 112], strides = [1, 1]} : vector<9x112xf32> to vector<1x112xf32>
    %396 = vector.broadcast %395 : vector<1x112xf32> to vector<7x112xf32>
    %397 = arith.mulf %51, %396 : vector<7x112xf32>
    %398 = arith.addf %394, %397 : vector<7x112xf32>
    %399 = vector.extract_strided_slice %72 {offsets = [8, 0], sizes = [1, 112], strides = [1, 1]} : vector<9x112xf32> to vector<1x112xf32>
    %400 = vector.broadcast %399 : vector<1x112xf32> to vector<7x112xf32>
    %401 = arith.mulf %53, %400 : vector<7x112xf32>
    %402 = arith.addf %398, %401 : vector<7x112xf32>
    %403 = vector.extract_strided_slice %72 {offsets = [0, 0], sizes = [1, 112], strides = [1, 1]} : vector<9x112xf32> to vector<1x112xf32>
    %404 = vector.broadcast %403 : vector<1x112xf32> to vector<7x112xf32>
    %405 = arith.mulf %27, %404 : vector<7x112xf32>
    %406 = vector.extract_strided_slice %72 {offsets = [1, 0], sizes = [1, 112], strides = [1, 1]} : vector<9x112xf32> to vector<1x112xf32>
    %407 = vector.broadcast %406 : vector<1x112xf32> to vector<7x112xf32>
    %408 = arith.mulf %29, %407 : vector<7x112xf32>
    %409 = arith.addf %405, %408 : vector<7x112xf32>
    %410 = vector.extract_strided_slice %72 {offsets = [2, 0], sizes = [1, 112], strides = [1, 1]} : vector<9x112xf32> to vector<1x112xf32>
    %411 = vector.broadcast %410 : vector<1x112xf32> to vector<7x112xf32>
    %412 = arith.mulf %31, %411 : vector<7x112xf32>
    %413 = arith.addf %409, %412 : vector<7x112xf32>
    %414 = vector.extract_strided_slice %72 {offsets = [3, 0], sizes = [1, 112], strides = [1, 1]} : vector<9x112xf32> to vector<1x112xf32>
    %415 = vector.broadcast %414 : vector<1x112xf32> to vector<7x112xf32>
    %416 = arith.mulf %39, %415 : vector<7x112xf32>
    %417 = arith.addf %413, %416 : vector<7x112xf32>
    %418 = vector.extract_strided_slice %72 {offsets = [4, 0], sizes = [1, 112], strides = [1, 1]} : vector<9x112xf32> to vector<1x112xf32>
    %419 = vector.broadcast %418 : vector<1x112xf32> to vector<7x112xf32>
    %420 = arith.mulf %41, %419 : vector<7x112xf32>
    %421 = arith.addf %417, %420 : vector<7x112xf32>
    %422 = vector.extract_strided_slice %72 {offsets = [5, 0], sizes = [1, 112], strides = [1, 1]} : vector<9x112xf32> to vector<1x112xf32>
    %423 = vector.broadcast %422 : vector<1x112xf32> to vector<7x112xf32>
    %424 = arith.mulf %43, %423 : vector<7x112xf32>
    %425 = arith.addf %421, %424 : vector<7x112xf32>
    %426 = vector.extract_strided_slice %72 {offsets = [6, 0], sizes = [1, 112], strides = [1, 1]} : vector<9x112xf32> to vector<1x112xf32>
    %427 = vector.broadcast %426 : vector<1x112xf32> to vector<7x112xf32>
    %428 = arith.mulf %51, %427 : vector<7x112xf32>
    %429 = arith.addf %425, %428 : vector<7x112xf32>
    %430 = vector.extract_strided_slice %72 {offsets = [7, 0], sizes = [1, 112], strides = [1, 1]} : vector<9x112xf32> to vector<1x112xf32>
    %431 = vector.broadcast %430 : vector<1x112xf32> to vector<7x112xf32>
    %432 = arith.mulf %53, %431 : vector<7x112xf32>
    %433 = arith.addf %429, %432 : vector<7x112xf32>
    %434 = vector.extract_strided_slice %72 {offsets = [8, 0], sizes = [1, 112], strides = [1, 1]} : vector<9x112xf32> to vector<1x112xf32>
    %435 = vector.broadcast %434 : vector<1x112xf32> to vector<7x112xf32>
    %436 = arith.mulf %55, %435 : vector<7x112xf32>
    %437 = arith.addf %433, %436 : vector<7x112xf32>
    %438 = arith.maximumf %402, %437 : vector<7x112xf32>
    %439 = vector.extract_strided_slice %72 {offsets = [0, 0], sizes = [1, 112], strides = [1, 1]} : vector<9x112xf32> to vector<1x112xf32>
    %440 = vector.broadcast %439 : vector<1x112xf32> to vector<7x112xf32>
    %441 = arith.mulf %37, %440 : vector<7x112xf32>
    %442 = vector.extract_strided_slice %72 {offsets = [1, 0], sizes = [1, 112], strides = [1, 1]} : vector<9x112xf32> to vector<1x112xf32>
    %443 = vector.broadcast %442 : vector<1x112xf32> to vector<7x112xf32>
    %444 = arith.mulf %39, %443 : vector<7x112xf32>
    %445 = arith.addf %441, %444 : vector<7x112xf32>
    %446 = vector.extract_strided_slice %72 {offsets = [2, 0], sizes = [1, 112], strides = [1, 1]} : vector<9x112xf32> to vector<1x112xf32>
    %447 = vector.broadcast %446 : vector<1x112xf32> to vector<7x112xf32>
    %448 = arith.mulf %41, %447 : vector<7x112xf32>
    %449 = arith.addf %445, %448 : vector<7x112xf32>
    %450 = vector.extract_strided_slice %72 {offsets = [3, 0], sizes = [1, 112], strides = [1, 1]} : vector<9x112xf32> to vector<1x112xf32>
    %451 = vector.broadcast %450 : vector<1x112xf32> to vector<7x112xf32>
    %452 = arith.mulf %49, %451 : vector<7x112xf32>
    %453 = arith.addf %449, %452 : vector<7x112xf32>
    %454 = vector.extract_strided_slice %72 {offsets = [4, 0], sizes = [1, 112], strides = [1, 1]} : vector<9x112xf32> to vector<1x112xf32>
    %455 = vector.broadcast %454 : vector<1x112xf32> to vector<7x112xf32>
    %456 = arith.mulf %51, %455 : vector<7x112xf32>
    %457 = arith.addf %453, %456 : vector<7x112xf32>
    %458 = vector.extract_strided_slice %72 {offsets = [5, 0], sizes = [1, 112], strides = [1, 1]} : vector<9x112xf32> to vector<1x112xf32>
    %459 = vector.broadcast %458 : vector<1x112xf32> to vector<7x112xf32>
    %460 = arith.mulf %53, %459 : vector<7x112xf32>
    %461 = arith.addf %457, %460 : vector<7x112xf32>
    %462 = vector.extract_strided_slice %72 {offsets = [6, 0], sizes = [1, 112], strides = [1, 1]} : vector<9x112xf32> to vector<1x112xf32>
    %463 = vector.broadcast %462 : vector<1x112xf32> to vector<7x112xf32>
    %464 = arith.mulf %61, %463 : vector<7x112xf32>
    %465 = arith.addf %461, %464 : vector<7x112xf32>
    %466 = vector.extract_strided_slice %72 {offsets = [7, 0], sizes = [1, 112], strides = [1, 1]} : vector<9x112xf32> to vector<1x112xf32>
    %467 = vector.broadcast %466 : vector<1x112xf32> to vector<7x112xf32>
    %468 = arith.mulf %63, %467 : vector<7x112xf32>
    %469 = arith.addf %465, %468 : vector<7x112xf32>
    %470 = vector.extract_strided_slice %72 {offsets = [8, 0], sizes = [1, 112], strides = [1, 1]} : vector<9x112xf32> to vector<1x112xf32>
    %471 = vector.broadcast %470 : vector<1x112xf32> to vector<7x112xf32>
    %472 = arith.mulf %65, %471 : vector<7x112xf32>
    %473 = arith.addf %469, %472 : vector<7x112xf32>
    %474 = arith.maximumf %438, %473 : vector<7x112xf32>
    %475 = vector.extract_strided_slice %72 {offsets = [0, 0], sizes = [1, 112], strides = [1, 1]} : vector<9x112xf32> to vector<1x112xf32>
    %476 = vector.broadcast %475 : vector<1x112xf32> to vector<7x112xf32>
    %477 = arith.mulf %39, %476 : vector<7x112xf32>
    %478 = vector.extract_strided_slice %72 {offsets = [1, 0], sizes = [1, 112], strides = [1, 1]} : vector<9x112xf32> to vector<1x112xf32>
    %479 = vector.broadcast %478 : vector<1x112xf32> to vector<7x112xf32>
    %480 = arith.mulf %41, %479 : vector<7x112xf32>
    %481 = arith.addf %477, %480 : vector<7x112xf32>
    %482 = vector.extract_strided_slice %72 {offsets = [2, 0], sizes = [1, 112], strides = [1, 1]} : vector<9x112xf32> to vector<1x112xf32>
    %483 = vector.broadcast %482 : vector<1x112xf32> to vector<7x112xf32>
    %484 = arith.mulf %43, %483 : vector<7x112xf32>
    %485 = arith.addf %481, %484 : vector<7x112xf32>
    %486 = vector.extract_strided_slice %72 {offsets = [3, 0], sizes = [1, 112], strides = [1, 1]} : vector<9x112xf32> to vector<1x112xf32>
    %487 = vector.broadcast %486 : vector<1x112xf32> to vector<7x112xf32>
    %488 = arith.mulf %51, %487 : vector<7x112xf32>
    %489 = arith.addf %485, %488 : vector<7x112xf32>
    %490 = vector.extract_strided_slice %72 {offsets = [4, 0], sizes = [1, 112], strides = [1, 1]} : vector<9x112xf32> to vector<1x112xf32>
    %491 = vector.broadcast %490 : vector<1x112xf32> to vector<7x112xf32>
    %492 = arith.mulf %53, %491 : vector<7x112xf32>
    %493 = arith.addf %489, %492 : vector<7x112xf32>
    %494 = vector.extract_strided_slice %72 {offsets = [5, 0], sizes = [1, 112], strides = [1, 1]} : vector<9x112xf32> to vector<1x112xf32>
    %495 = vector.broadcast %494 : vector<1x112xf32> to vector<7x112xf32>
    %496 = arith.mulf %55, %495 : vector<7x112xf32>
    %497 = arith.addf %493, %496 : vector<7x112xf32>
    %498 = vector.extract_strided_slice %72 {offsets = [6, 0], sizes = [1, 112], strides = [1, 1]} : vector<9x112xf32> to vector<1x112xf32>
    %499 = vector.broadcast %498 : vector<1x112xf32> to vector<7x112xf32>
    %500 = arith.mulf %63, %499 : vector<7x112xf32>
    %501 = arith.addf %497, %500 : vector<7x112xf32>
    %502 = vector.extract_strided_slice %72 {offsets = [7, 0], sizes = [1, 112], strides = [1, 1]} : vector<9x112xf32> to vector<1x112xf32>
    %503 = vector.broadcast %502 : vector<1x112xf32> to vector<7x112xf32>
    %504 = arith.mulf %65, %503 : vector<7x112xf32>
    %505 = arith.addf %501, %504 : vector<7x112xf32>
    %506 = vector.extract_strided_slice %72 {offsets = [8, 0], sizes = [1, 112], strides = [1, 1]} : vector<9x112xf32> to vector<1x112xf32>
    %507 = vector.broadcast %506 : vector<1x112xf32> to vector<7x112xf32>
    %508 = arith.mulf %67, %507 : vector<7x112xf32>
    %509 = arith.addf %505, %508 : vector<7x112xf32>
    %510 = arith.maximumf %474, %509 : vector<7x112xf32>
    %511 = vector.broadcast %73 : vector<1x112xf32> to vector<7x112xf32>
    %512 = arith.addf %510, %511 : vector<7x112xf32>
    %cst_132 = arith.constant 0.000000e+00 : f32
    %513 = vector.broadcast %cst_132 : f32 to vector<7x112xf32>
    %514 = arith.maximumf %512, %513 : vector<7x112xf32>
    %515 = vector.extract_strided_slice %72 {offsets = [0, 0], sizes = [1, 112], strides = [1, 1]} : vector<9x112xf32> to vector<1x112xf32>
    %516 = vector.broadcast %515 : vector<1x112xf32> to vector<7x112xf32>
    %517 = arith.mulf %29, %516 : vector<7x112xf32>
    %518 = vector.extract_strided_slice %72 {offsets = [1, 0], sizes = [1, 112], strides = [1, 1]} : vector<9x112xf32> to vector<1x112xf32>
    %519 = vector.broadcast %518 : vector<1x112xf32> to vector<7x112xf32>
    %520 = arith.mulf %31, %519 : vector<7x112xf32>
    %521 = arith.addf %517, %520 : vector<7x112xf32>
    %522 = vector.extract_strided_slice %72 {offsets = [2, 0], sizes = [1, 112], strides = [1, 1]} : vector<9x112xf32> to vector<1x112xf32>
    %523 = vector.broadcast %522 : vector<1x112xf32> to vector<7x112xf32>
    %524 = arith.mulf %33, %523 : vector<7x112xf32>
    %525 = arith.addf %521, %524 : vector<7x112xf32>
    %526 = vector.extract_strided_slice %72 {offsets = [3, 0], sizes = [1, 112], strides = [1, 1]} : vector<9x112xf32> to vector<1x112xf32>
    %527 = vector.broadcast %526 : vector<1x112xf32> to vector<7x112xf32>
    %528 = arith.mulf %41, %527 : vector<7x112xf32>
    %529 = arith.addf %525, %528 : vector<7x112xf32>
    %530 = vector.extract_strided_slice %72 {offsets = [4, 0], sizes = [1, 112], strides = [1, 1]} : vector<9x112xf32> to vector<1x112xf32>
    %531 = vector.broadcast %530 : vector<1x112xf32> to vector<7x112xf32>
    %532 = arith.mulf %43, %531 : vector<7x112xf32>
    %533 = arith.addf %529, %532 : vector<7x112xf32>
    %534 = vector.extract_strided_slice %72 {offsets = [5, 0], sizes = [1, 112], strides = [1, 1]} : vector<9x112xf32> to vector<1x112xf32>
    %535 = vector.broadcast %534 : vector<1x112xf32> to vector<7x112xf32>
    %536 = arith.mulf %45, %535 : vector<7x112xf32>
    %537 = arith.addf %533, %536 : vector<7x112xf32>
    %538 = vector.extract_strided_slice %72 {offsets = [6, 0], sizes = [1, 112], strides = [1, 1]} : vector<9x112xf32> to vector<1x112xf32>
    %539 = vector.broadcast %538 : vector<1x112xf32> to vector<7x112xf32>
    %540 = arith.mulf %53, %539 : vector<7x112xf32>
    %541 = arith.addf %537, %540 : vector<7x112xf32>
    %542 = vector.extract_strided_slice %72 {offsets = [7, 0], sizes = [1, 112], strides = [1, 1]} : vector<9x112xf32> to vector<1x112xf32>
    %543 = vector.broadcast %542 : vector<1x112xf32> to vector<7x112xf32>
    %544 = arith.mulf %55, %543 : vector<7x112xf32>
    %545 = arith.addf %541, %544 : vector<7x112xf32>
    %546 = vector.extract_strided_slice %72 {offsets = [8, 0], sizes = [1, 112], strides = [1, 1]} : vector<9x112xf32> to vector<1x112xf32>
    %547 = vector.broadcast %546 : vector<1x112xf32> to vector<7x112xf32>
    %548 = arith.mulf %57, %547 : vector<7x112xf32>
    %549 = arith.addf %545, %548 : vector<7x112xf32>
    %550 = vector.extract_strided_slice %72 {offsets = [0, 0], sizes = [1, 112], strides = [1, 1]} : vector<9x112xf32> to vector<1x112xf32>
    %551 = vector.broadcast %550 : vector<1x112xf32> to vector<7x112xf32>
    %552 = arith.mulf %31, %551 : vector<7x112xf32>
    %553 = vector.extract_strided_slice %72 {offsets = [1, 0], sizes = [1, 112], strides = [1, 1]} : vector<9x112xf32> to vector<1x112xf32>
    %554 = vector.broadcast %553 : vector<1x112xf32> to vector<7x112xf32>
    %555 = arith.mulf %33, %554 : vector<7x112xf32>
    %556 = arith.addf %552, %555 : vector<7x112xf32>
    %557 = vector.extract_strided_slice %72 {offsets = [2, 0], sizes = [1, 112], strides = [1, 1]} : vector<9x112xf32> to vector<1x112xf32>
    %558 = vector.broadcast %557 : vector<1x112xf32> to vector<7x112xf32>
    %559 = arith.mulf %35, %558 : vector<7x112xf32>
    %560 = arith.addf %556, %559 : vector<7x112xf32>
    %561 = vector.extract_strided_slice %72 {offsets = [3, 0], sizes = [1, 112], strides = [1, 1]} : vector<9x112xf32> to vector<1x112xf32>
    %562 = vector.broadcast %561 : vector<1x112xf32> to vector<7x112xf32>
    %563 = arith.mulf %43, %562 : vector<7x112xf32>
    %564 = arith.addf %560, %563 : vector<7x112xf32>
    %565 = vector.extract_strided_slice %72 {offsets = [4, 0], sizes = [1, 112], strides = [1, 1]} : vector<9x112xf32> to vector<1x112xf32>
    %566 = vector.broadcast %565 : vector<1x112xf32> to vector<7x112xf32>
    %567 = arith.mulf %45, %566 : vector<7x112xf32>
    %568 = arith.addf %564, %567 : vector<7x112xf32>
    %569 = vector.extract_strided_slice %72 {offsets = [5, 0], sizes = [1, 112], strides = [1, 1]} : vector<9x112xf32> to vector<1x112xf32>
    %570 = vector.broadcast %569 : vector<1x112xf32> to vector<7x112xf32>
    %571 = arith.mulf %47, %570 : vector<7x112xf32>
    %572 = arith.addf %568, %571 : vector<7x112xf32>
    %573 = vector.extract_strided_slice %72 {offsets = [6, 0], sizes = [1, 112], strides = [1, 1]} : vector<9x112xf32> to vector<1x112xf32>
    %574 = vector.broadcast %573 : vector<1x112xf32> to vector<7x112xf32>
    %575 = arith.mulf %55, %574 : vector<7x112xf32>
    %576 = arith.addf %572, %575 : vector<7x112xf32>
    %577 = vector.extract_strided_slice %72 {offsets = [7, 0], sizes = [1, 112], strides = [1, 1]} : vector<9x112xf32> to vector<1x112xf32>
    %578 = vector.broadcast %577 : vector<1x112xf32> to vector<7x112xf32>
    %579 = arith.mulf %57, %578 : vector<7x112xf32>
    %580 = arith.addf %576, %579 : vector<7x112xf32>
    %581 = vector.extract_strided_slice %72 {offsets = [8, 0], sizes = [1, 112], strides = [1, 1]} : vector<9x112xf32> to vector<1x112xf32>
    %582 = vector.broadcast %581 : vector<1x112xf32> to vector<7x112xf32>
    %583 = arith.mulf %59, %582 : vector<7x112xf32>
    %584 = arith.addf %580, %583 : vector<7x112xf32>
    %585 = arith.maximumf %549, %584 : vector<7x112xf32>
    %586 = vector.extract_strided_slice %72 {offsets = [0, 0], sizes = [1, 112], strides = [1, 1]} : vector<9x112xf32> to vector<1x112xf32>
    %587 = vector.broadcast %586 : vector<1x112xf32> to vector<7x112xf32>
    %588 = arith.mulf %41, %587 : vector<7x112xf32>
    %589 = vector.extract_strided_slice %72 {offsets = [1, 0], sizes = [1, 112], strides = [1, 1]} : vector<9x112xf32> to vector<1x112xf32>
    %590 = vector.broadcast %589 : vector<1x112xf32> to vector<7x112xf32>
    %591 = arith.mulf %43, %590 : vector<7x112xf32>
    %592 = arith.addf %588, %591 : vector<7x112xf32>
    %593 = vector.extract_strided_slice %72 {offsets = [2, 0], sizes = [1, 112], strides = [1, 1]} : vector<9x112xf32> to vector<1x112xf32>
    %594 = vector.broadcast %593 : vector<1x112xf32> to vector<7x112xf32>
    %595 = arith.mulf %45, %594 : vector<7x112xf32>
    %596 = arith.addf %592, %595 : vector<7x112xf32>
    %597 = vector.extract_strided_slice %72 {offsets = [3, 0], sizes = [1, 112], strides = [1, 1]} : vector<9x112xf32> to vector<1x112xf32>
    %598 = vector.broadcast %597 : vector<1x112xf32> to vector<7x112xf32>
    %599 = arith.mulf %53, %598 : vector<7x112xf32>
    %600 = arith.addf %596, %599 : vector<7x112xf32>
    %601 = vector.extract_strided_slice %72 {offsets = [4, 0], sizes = [1, 112], strides = [1, 1]} : vector<9x112xf32> to vector<1x112xf32>
    %602 = vector.broadcast %601 : vector<1x112xf32> to vector<7x112xf32>
    %603 = arith.mulf %55, %602 : vector<7x112xf32>
    %604 = arith.addf %600, %603 : vector<7x112xf32>
    %605 = vector.extract_strided_slice %72 {offsets = [5, 0], sizes = [1, 112], strides = [1, 1]} : vector<9x112xf32> to vector<1x112xf32>
    %606 = vector.broadcast %605 : vector<1x112xf32> to vector<7x112xf32>
    %607 = arith.mulf %57, %606 : vector<7x112xf32>
    %608 = arith.addf %604, %607 : vector<7x112xf32>
    %609 = vector.extract_strided_slice %72 {offsets = [6, 0], sizes = [1, 112], strides = [1, 1]} : vector<9x112xf32> to vector<1x112xf32>
    %610 = vector.broadcast %609 : vector<1x112xf32> to vector<7x112xf32>
    %611 = arith.mulf %65, %610 : vector<7x112xf32>
    %612 = arith.addf %608, %611 : vector<7x112xf32>
    %613 = vector.extract_strided_slice %72 {offsets = [7, 0], sizes = [1, 112], strides = [1, 1]} : vector<9x112xf32> to vector<1x112xf32>
    %614 = vector.broadcast %613 : vector<1x112xf32> to vector<7x112xf32>
    %615 = arith.mulf %67, %614 : vector<7x112xf32>
    %616 = arith.addf %612, %615 : vector<7x112xf32>
    %617 = vector.extract_strided_slice %72 {offsets = [8, 0], sizes = [1, 112], strides = [1, 1]} : vector<9x112xf32> to vector<1x112xf32>
    %618 = vector.broadcast %617 : vector<1x112xf32> to vector<7x112xf32>
    %619 = arith.mulf %69, %618 : vector<7x112xf32>
    %620 = arith.addf %616, %619 : vector<7x112xf32>
    %621 = arith.maximumf %585, %620 : vector<7x112xf32>
    %622 = vector.extract_strided_slice %72 {offsets = [0, 0], sizes = [1, 112], strides = [1, 1]} : vector<9x112xf32> to vector<1x112xf32>
    %623 = vector.broadcast %622 : vector<1x112xf32> to vector<7x112xf32>
    %624 = arith.mulf %43, %623 : vector<7x112xf32>
    %625 = vector.extract_strided_slice %72 {offsets = [1, 0], sizes = [1, 112], strides = [1, 1]} : vector<9x112xf32> to vector<1x112xf32>
    %626 = vector.broadcast %625 : vector<1x112xf32> to vector<7x112xf32>
    %627 = arith.mulf %45, %626 : vector<7x112xf32>
    %628 = arith.addf %624, %627 : vector<7x112xf32>
    %629 = vector.extract_strided_slice %72 {offsets = [2, 0], sizes = [1, 112], strides = [1, 1]} : vector<9x112xf32> to vector<1x112xf32>
    %630 = vector.broadcast %629 : vector<1x112xf32> to vector<7x112xf32>
    %631 = arith.mulf %47, %630 : vector<7x112xf32>
    %632 = arith.addf %628, %631 : vector<7x112xf32>
    %633 = vector.extract_strided_slice %72 {offsets = [3, 0], sizes = [1, 112], strides = [1, 1]} : vector<9x112xf32> to vector<1x112xf32>
    %634 = vector.broadcast %633 : vector<1x112xf32> to vector<7x112xf32>
    %635 = arith.mulf %55, %634 : vector<7x112xf32>
    %636 = arith.addf %632, %635 : vector<7x112xf32>
    %637 = vector.extract_strided_slice %72 {offsets = [4, 0], sizes = [1, 112], strides = [1, 1]} : vector<9x112xf32> to vector<1x112xf32>
    %638 = vector.broadcast %637 : vector<1x112xf32> to vector<7x112xf32>
    %639 = arith.mulf %57, %638 : vector<7x112xf32>
    %640 = arith.addf %636, %639 : vector<7x112xf32>
    %641 = vector.extract_strided_slice %72 {offsets = [5, 0], sizes = [1, 112], strides = [1, 1]} : vector<9x112xf32> to vector<1x112xf32>
    %642 = vector.broadcast %641 : vector<1x112xf32> to vector<7x112xf32>
    %643 = arith.mulf %59, %642 : vector<7x112xf32>
    %644 = arith.addf %640, %643 : vector<7x112xf32>
    %645 = vector.extract_strided_slice %72 {offsets = [6, 0], sizes = [1, 112], strides = [1, 1]} : vector<9x112xf32> to vector<1x112xf32>
    %646 = vector.broadcast %645 : vector<1x112xf32> to vector<7x112xf32>
    %647 = arith.mulf %67, %646 : vector<7x112xf32>
    %648 = arith.addf %644, %647 : vector<7x112xf32>
    %649 = vector.extract_strided_slice %72 {offsets = [7, 0], sizes = [1, 112], strides = [1, 1]} : vector<9x112xf32> to vector<1x112xf32>
    %650 = vector.broadcast %649 : vector<1x112xf32> to vector<7x112xf32>
    %651 = arith.mulf %69, %650 : vector<7x112xf32>
    %652 = arith.addf %648, %651 : vector<7x112xf32>
    %653 = vector.extract_strided_slice %72 {offsets = [8, 0], sizes = [1, 112], strides = [1, 1]} : vector<9x112xf32> to vector<1x112xf32>
    %654 = vector.broadcast %653 : vector<1x112xf32> to vector<7x112xf32>
    %655 = arith.mulf %71, %654 : vector<7x112xf32>
    %656 = arith.addf %652, %655 : vector<7x112xf32>
    %657 = arith.maximumf %621, %656 : vector<7x112xf32>
    %658 = vector.broadcast %73 : vector<1x112xf32> to vector<7x112xf32>
    %659 = arith.addf %657, %658 : vector<7x112xf32>
    %cst_133 = arith.constant 0.000000e+00 : f32
    %660 = vector.broadcast %cst_133 : f32 to vector<7x112xf32>
    %661 = arith.maximumf %659, %660 : vector<7x112xf32>
    %c0_134 = arith.constant 0 : index
    %c0_135 = arith.constant 0 : index
    %662 = vector.load %arg4[%c0_134, %c0_135] : memref<864x192xbf16, #tpu.memory_space<vmem>>, vector<864x192xbf16>
    %c0_136 = arith.constant 0 : index
    %c0_137 = arith.constant 0 : index
    %663 = vector.load %arg5[%c0_136, %c0_137] : memref<1x192xf32, #tpu.memory_space<vmem>>, vector<1x192xf32>
    %664 = vector.extract_strided_slice %220 {offsets = [0, 0], sizes = [6, 96], strides = [1, 1]} : vector<7x112xf32> to vector<6x96xf32>
    %665 = vector.extract_strided_slice %367 {offsets = [0, 0], sizes = [6, 96], strides = [1, 1]} : vector<7x112xf32> to vector<6x96xf32>
    %666 = vector.extract_strided_slice %220 {offsets = [0, 16], sizes = [6, 96], strides = [1, 1]} : vector<7x112xf32> to vector<6x96xf32>
    %667 = vector.extract_strided_slice %514 {offsets = [0, 0], sizes = [6, 96], strides = [1, 1]} : vector<7x112xf32> to vector<6x96xf32>
    %668 = vector.extract_strided_slice %661 {offsets = [0, 0], sizes = [6, 96], strides = [1, 1]} : vector<7x112xf32> to vector<6x96xf32>
    %669 = vector.extract_strided_slice %514 {offsets = [0, 16], sizes = [6, 96], strides = [1, 1]} : vector<7x112xf32> to vector<6x96xf32>
    %670 = vector.extract_strided_slice %220 {offsets = [1, 0], sizes = [6, 96], strides = [1, 1]} : vector<7x112xf32> to vector<6x96xf32>
    %671 = vector.extract_strided_slice %367 {offsets = [1, 0], sizes = [6, 96], strides = [1, 1]} : vector<7x112xf32> to vector<6x96xf32>
    %672 = vector.extract_strided_slice %220 {offsets = [1, 16], sizes = [6, 96], strides = [1, 1]} : vector<7x112xf32> to vector<6x96xf32>
    %673 = tpu.concatenate %664, %665, %666, %667, %668, %669, %670, %671, %672 in 1 : vector<6x96xf32>, vector<6x96xf32>, vector<6x96xf32>, vector<6x96xf32>, vector<6x96xf32>, vector<6x96xf32>, vector<6x96xf32>, vector<6x96xf32>, vector<6x96xf32> -> vector<6x864xf32>
    %674 = arith.truncf %673 : vector<6x864xf32> to vector<6x864xbf16>
    %cst_138 = arith.constant dense<0.000000e+00> : vector<6x192xf32>
    %675 = tpu.matmul %674, %662, %cst_138 {dimension_numbers = #tpu.dot_dimension_numbers<[1], [0], [0], [1], [0, 0, 1, 1], [], []>} : vector<6x864xbf16>, vector<864x192xbf16>, vector<6x192xf32> -> vector<6x192xf32>
    %676 = vector.extract_strided_slice %367 {offsets = [0, 0], sizes = [6, 96], strides = [1, 1]} : vector<7x112xf32> to vector<6x96xf32>
    %677 = vector.extract_strided_slice %220 {offsets = [0, 16], sizes = [6, 96], strides = [1, 1]} : vector<7x112xf32> to vector<6x96xf32>
    %678 = vector.extract_strided_slice %367 {offsets = [0, 16], sizes = [6, 96], strides = [1, 1]} : vector<7x112xf32> to vector<6x96xf32>
    %679 = vector.extract_strided_slice %661 {offsets = [0, 0], sizes = [6, 96], strides = [1, 1]} : vector<7x112xf32> to vector<6x96xf32>
    %680 = vector.extract_strided_slice %514 {offsets = [0, 16], sizes = [6, 96], strides = [1, 1]} : vector<7x112xf32> to vector<6x96xf32>
    %681 = vector.extract_strided_slice %661 {offsets = [0, 16], sizes = [6, 96], strides = [1, 1]} : vector<7x112xf32> to vector<6x96xf32>
    %682 = vector.extract_strided_slice %367 {offsets = [1, 0], sizes = [6, 96], strides = [1, 1]} : vector<7x112xf32> to vector<6x96xf32>
    %683 = vector.extract_strided_slice %220 {offsets = [1, 16], sizes = [6, 96], strides = [1, 1]} : vector<7x112xf32> to vector<6x96xf32>
    %684 = vector.extract_strided_slice %367 {offsets = [1, 16], sizes = [6, 96], strides = [1, 1]} : vector<7x112xf32> to vector<6x96xf32>
    %685 = tpu.concatenate %676, %677, %678, %679, %680, %681, %682, %683, %684 in 1 : vector<6x96xf32>, vector<6x96xf32>, vector<6x96xf32>, vector<6x96xf32>, vector<6x96xf32>, vector<6x96xf32>, vector<6x96xf32>, vector<6x96xf32>, vector<6x96xf32> -> vector<6x864xf32>
    %686 = arith.truncf %685 : vector<6x864xf32> to vector<6x864xbf16>
    %cst_139 = arith.constant dense<0.000000e+00> : vector<6x192xf32>
    %687 = tpu.matmul %686, %662, %cst_139 {dimension_numbers = #tpu.dot_dimension_numbers<[1], [0], [0], [1], [0, 0, 1, 1], [], []>} : vector<6x864xbf16>, vector<864x192xbf16>, vector<6x192xf32> -> vector<6x192xf32>
    %688 = arith.maximumf %675, %687 : vector<6x192xf32>
    %689 = vector.extract_strided_slice %514 {offsets = [0, 0], sizes = [6, 96], strides = [1, 1]} : vector<7x112xf32> to vector<6x96xf32>
    %690 = vector.extract_strided_slice %661 {offsets = [0, 0], sizes = [6, 96], strides = [1, 1]} : vector<7x112xf32> to vector<6x96xf32>
    %691 = vector.extract_strided_slice %514 {offsets = [0, 16], sizes = [6, 96], strides = [1, 1]} : vector<7x112xf32> to vector<6x96xf32>
    %692 = vector.extract_strided_slice %220 {offsets = [1, 0], sizes = [6, 96], strides = [1, 1]} : vector<7x112xf32> to vector<6x96xf32>
    %693 = vector.extract_strided_slice %367 {offsets = [1, 0], sizes = [6, 96], strides = [1, 1]} : vector<7x112xf32> to vector<6x96xf32>
    %694 = vector.extract_strided_slice %220 {offsets = [1, 16], sizes = [6, 96], strides = [1, 1]} : vector<7x112xf32> to vector<6x96xf32>
    %695 = vector.extract_strided_slice %514 {offsets = [1, 0], sizes = [6, 96], strides = [1, 1]} : vector<7x112xf32> to vector<6x96xf32>
    %696 = vector.extract_strided_slice %661 {offsets = [1, 0], sizes = [6, 96], strides = [1, 1]} : vector<7x112xf32> to vector<6x96xf32>
    %697 = vector.extract_strided_slice %514 {offsets = [1, 16], sizes = [6, 96], strides = [1, 1]} : vector<7x112xf32> to vector<6x96xf32>
    %698 = tpu.concatenate %689, %690, %691, %692, %693, %694, %695, %696, %697 in 1 : vector<6x96xf32>, vector<6x96xf32>, vector<6x96xf32>, vector<6x96xf32>, vector<6x96xf32>, vector<6x96xf32>, vector<6x96xf32>, vector<6x96xf32>, vector<6x96xf32> -> vector<6x864xf32>
    %699 = arith.truncf %698 : vector<6x864xf32> to vector<6x864xbf16>
    %cst_140 = arith.constant dense<0.000000e+00> : vector<6x192xf32>
    %700 = tpu.matmul %699, %662, %cst_140 {dimension_numbers = #tpu.dot_dimension_numbers<[1], [0], [0], [1], [0, 0, 1, 1], [], []>} : vector<6x864xbf16>, vector<864x192xbf16>, vector<6x192xf32> -> vector<6x192xf32>
    %701 = arith.maximumf %688, %700 : vector<6x192xf32>
    %702 = vector.extract_strided_slice %661 {offsets = [0, 0], sizes = [6, 96], strides = [1, 1]} : vector<7x112xf32> to vector<6x96xf32>
    %703 = vector.extract_strided_slice %514 {offsets = [0, 16], sizes = [6, 96], strides = [1, 1]} : vector<7x112xf32> to vector<6x96xf32>
    %704 = vector.extract_strided_slice %661 {offsets = [0, 16], sizes = [6, 96], strides = [1, 1]} : vector<7x112xf32> to vector<6x96xf32>
    %705 = vector.extract_strided_slice %367 {offsets = [1, 0], sizes = [6, 96], strides = [1, 1]} : vector<7x112xf32> to vector<6x96xf32>
    %706 = vector.extract_strided_slice %220 {offsets = [1, 16], sizes = [6, 96], strides = [1, 1]} : vector<7x112xf32> to vector<6x96xf32>
    %707 = vector.extract_strided_slice %367 {offsets = [1, 16], sizes = [6, 96], strides = [1, 1]} : vector<7x112xf32> to vector<6x96xf32>
    %708 = vector.extract_strided_slice %661 {offsets = [1, 0], sizes = [6, 96], strides = [1, 1]} : vector<7x112xf32> to vector<6x96xf32>
    %709 = vector.extract_strided_slice %514 {offsets = [1, 16], sizes = [6, 96], strides = [1, 1]} : vector<7x112xf32> to vector<6x96xf32>
    %710 = vector.extract_strided_slice %661 {offsets = [1, 16], sizes = [6, 96], strides = [1, 1]} : vector<7x112xf32> to vector<6x96xf32>
    %711 = tpu.concatenate %702, %703, %704, %705, %706, %707, %708, %709, %710 in 1 : vector<6x96xf32>, vector<6x96xf32>, vector<6x96xf32>, vector<6x96xf32>, vector<6x96xf32>, vector<6x96xf32>, vector<6x96xf32>, vector<6x96xf32>, vector<6x96xf32> -> vector<6x864xf32>
    %712 = arith.truncf %711 : vector<6x864xf32> to vector<6x864xbf16>
    %cst_141 = arith.constant dense<0.000000e+00> : vector<6x192xf32>
    %713 = tpu.matmul %712, %662, %cst_141 {dimension_numbers = #tpu.dot_dimension_numbers<[1], [0], [0], [1], [0, 0, 1, 1], [], []>} : vector<6x864xbf16>, vector<864x192xbf16>, vector<6x192xf32> -> vector<6x192xf32>
    %714 = arith.maximumf %701, %713 : vector<6x192xf32>
    %715 = vector.broadcast %663 : vector<1x192xf32> to vector<6x192xf32>
    %716 = arith.addf %714, %715 : vector<6x192xf32>
    %cst_142 = arith.constant 0.000000e+00 : f32
    %717 = vector.broadcast %cst_142 : f32 to vector<6x192xf32>
    %718 = arith.maximumf %716, %717 : vector<6x192xf32>
    %719 = vector.extract_strided_slice %718 {offsets = [0, 0], sizes = [1, 192], strides = [1, 1]} : vector<6x192xf32> to vector<1x192xf32>
    %720 = vector.extract_strided_slice %718 {offsets = [1, 0], sizes = [1, 192], strides = [1, 1]} : vector<6x192xf32> to vector<1x192xf32>
    %721 = vector.extract_strided_slice %718 {offsets = [2, 0], sizes = [1, 192], strides = [1, 1]} : vector<6x192xf32> to vector<1x192xf32>
    %722 = vector.extract_strided_slice %718 {offsets = [3, 0], sizes = [1, 192], strides = [1, 1]} : vector<6x192xf32> to vector<1x192xf32>
    %723 = vector.extract_strided_slice %718 {offsets = [4, 0], sizes = [1, 192], strides = [1, 1]} : vector<6x192xf32> to vector<1x192xf32>
    %724 = vector.extract_strided_slice %718 {offsets = [5, 0], sizes = [1, 192], strides = [1, 1]} : vector<6x192xf32> to vector<1x192xf32>
    %725 = tpu.concatenate %719, %720, %721, %722, %723, %724 in 1 : vector<1x192xf32>, vector<1x192xf32>, vector<1x192xf32>, vector<1x192xf32>, vector<1x192xf32>, vector<1x192xf32> -> vector<1x1152xf32>
    %726 = vector.shape_cast %725 : vector<1x1152xf32> to vector<1x1152xf32>
    %727 = vector.broadcast %726 : vector<1x1152xf32> to vector<8x1152xf32>
    %728 = arith.truncf %727 : vector<8x1152xf32> to vector<8x1152xbf16>
    %c0_143 = arith.constant 0 : index
    %c0_144 = arith.constant 0 : index
    %729 = vector.load %arg6[%c0_143, %c0_144] : memref<1152x1024xbf16, #tpu.memory_space<vmem>>, vector<1152x1024xbf16>
    %cst_145 = arith.constant dense<0.000000e+00> : vector<8x1024xf32>
    %730 = tpu.matmul %728, %729, %cst_145 {dimension_numbers = #tpu.dot_dimension_numbers<[1], [0], [0], [1], [0, 0, 1, 1], [], []>} : vector<8x1152xbf16>, vector<1152x1024xbf16>, vector<8x1024xf32> -> vector<8x1024xf32>
    %c0_146 = arith.constant 0 : index
    %c0_147 = arith.constant 0 : index
    %731 = vector.load %arg7[%c0_146, %c0_147] : memref<1x1024xf32, #tpu.memory_space<vmem>>, vector<1x1024xf32>
    %732 = vector.broadcast %731 : vector<1x1024xf32> to vector<8x1024xf32>
    %733 = arith.addf %730, %732 : vector<8x1024xf32>
    %cst_148 = arith.constant 0.000000e+00 : f32
    %734 = vector.broadcast %cst_148 : f32 to vector<8x1024xf32>
    %735 = arith.maximumf %733, %734 : vector<8x1024xf32>
    %736 = arith.truncf %735 : vector<8x1024xf32> to vector<8x1024xbf16>
    %c0_149 = arith.constant 0 : index
    %c0_150 = arith.constant 0 : index
    %737 = vector.load %arg8[%c0_149, %c0_150] : memref<1024x512xbf16, #tpu.memory_space<vmem>>, vector<1024x512xbf16>
    %cst_151 = arith.constant dense<0.000000e+00> : vector<8x512xf32>
    %738 = tpu.matmul %736, %737, %cst_151 {dimension_numbers = #tpu.dot_dimension_numbers<[1], [0], [0], [1], [0, 0, 1, 1], [], []>} : vector<8x1024xbf16>, vector<1024x512xbf16>, vector<8x512xf32> -> vector<8x512xf32>
    %c0_152 = arith.constant 0 : index
    %c0_153 = arith.constant 0 : index
    %739 = vector.load %arg9[%c0_152, %c0_153] : memref<1x512xf32, #tpu.memory_space<vmem>>, vector<1x512xf32>
    %740 = vector.broadcast %739 : vector<1x512xf32> to vector<8x512xf32>
    %741 = arith.addf %738, %740 : vector<8x512xf32>
    %cst_154 = arith.constant 0.000000e+00 : f32
    %742 = vector.broadcast %cst_154 : f32 to vector<8x512xf32>
    %743 = arith.maximumf %741, %742 : vector<8x512xf32>
    %744 = arith.truncf %743 : vector<8x512xf32> to vector<8x512xbf16>
    %c0_155 = arith.constant 0 : index
    %c0_156 = arith.constant 0 : index
    %745 = vector.load %arg10[%c0_155, %c0_156] : memref<512x128xbf16, #tpu.memory_space<vmem>>, vector<512x128xbf16>
    %cst_157 = arith.constant dense<0.000000e+00> : vector<8x128xf32>
    %746 = tpu.matmul %744, %745, %cst_157 {dimension_numbers = #tpu.dot_dimension_numbers<[1], [0], [0], [1], [0, 0, 1, 1], [], []>} : vector<8x512xbf16>, vector<512x128xbf16>, vector<8x128xf32> -> vector<8x128xf32>
    %c0_158 = arith.constant 0 : index
    %c0_159 = arith.constant 0 : index
    %747 = vector.load %arg11[%c0_158, %c0_159] : memref<1x128xf32, #tpu.memory_space<vmem>>, vector<1x128xf32>
    %748 = vector.broadcast %747 : vector<1x128xf32> to vector<8x128xf32>
    %749 = arith.addf %746, %748 : vector<8x128xf32>
    %cst_160 = arith.constant 0.000000e+00 : f32
    %750 = vector.broadcast %cst_160 : f32 to vector<8x128xf32>
    %751 = arith.maximumf %749, %750 : vector<8x128xf32>
    %752 = arith.truncf %751 : vector<8x128xf32> to vector<8x128xbf16>
    %c0_161 = arith.constant 0 : index
    %c0_162 = arith.constant 0 : index
    %753 = vector.load %arg12[%c0_161, %c0_162] : memref<128x128xbf16, #tpu.memory_space<vmem>>, vector<128x128xbf16>
    %cst_163 = arith.constant dense<0.000000e+00> : vector<8x128xf32>
    %754 = tpu.matmul %752, %753, %cst_163 {dimension_numbers = #tpu.dot_dimension_numbers<[1], [0], [0], [1], [0, 0, 1, 1], [], []>} : vector<8x128xbf16>, vector<128x128xbf16>, vector<8x128xf32> -> vector<8x128xf32>
    %c0_164 = arith.constant 0 : index
    %c0_165 = arith.constant 0 : index
    %755 = vector.load %arg13[%c0_164, %c0_165] : memref<1x128xf32, #tpu.memory_space<vmem>>, vector<1x128xf32>
    %756 = vector.broadcast %755 : vector<1x128xf32> to vector<8x128xf32>
    %757 = arith.addf %754, %756 : vector<8x128xf32>
    %cst_166 = arith.constant dense<0xFF800000> : vector<8xf32>
    %758 = vector.multi_reduction <maximumf>, %757, %cst_166 [1] : vector<8x128xf32> to vector<8xf32>
    %759 = vector.shape_cast %758 : vector<8xf32> to vector<8x1xf32>
    %760 = vector.broadcast %759 : vector<8x1xf32> to vector<8x128xf32>
    %761 = arith.subf %757, %760 : vector<8x128xf32>
    %762 = math.exp %761 : vector<8x128xf32>
    %cst_167 = arith.constant dense<0.000000e+00> : vector<8xf32>
    %763 = vector.multi_reduction <add>, %762, %cst_167 [1] : vector<8x128xf32> to vector<8xf32>
    %764 = vector.shape_cast %763 : vector<8xf32> to vector<8x1xf32>
    %765 = tpu.reciprocal %764 {approx = true} : vector<8x1xf32> -> vector<8x1xf32>
    %766 = vector.broadcast %765 : vector<8x1xf32> to vector<8x128xf32>
    %767 = arith.mulf %762, %766 : vector<8x128xf32>
    %c0_168 = arith.constant 0 : index
    %c0_169 = arith.constant 0 : index
    %c0_170 = arith.constant 0 : index
    %768 = vector.load %arg14[%c0_168, %c0_169, %c0_170] : memref<1x8x128xf32, #tpu.memory_space<vmem>>, vector<1x8x128xf32>
    %769 = vector.shape_cast %768 : vector<1x8x128xf32> to vector<8x128xf32>
    %770 = vector.shape_cast %767 : vector<8x128xf32> to vector<1x8x128xf32>
    tpu.vector_store %arg14[%c0_168, %c0_169, %c0_170], %770 {strides = array<i32>} : memref<1x8x128xf32, #tpu.memory_space<vmem>>, vector<1x8x128xf32>,
    return
  }
  func.func @transform_0(%arg0: i32) -> (i32, i32, i32, i32) {
    %c0_i32 = arith.constant 0 : i32
    %c0_i32_0 = arith.constant 0 : i32
    %c0_i32_1 = arith.constant 0 : i32
    %c0_i32_2 = arith.constant 0 : i32
    return %arg0, %c0_i32, %c0_i32_0, %c0_i32_1 : i32, i32, i32, i32
  }
  func.func @transform_1(%arg0: i32) -> (i32, i32) {
    %c0_i32 = arith.constant 0 : i32
    %c0_i32_0 = arith.constant 0 : i32
    %c0_i32_1 = arith.constant 0 : i32
    return %c0_i32, %c0_i32_0 : i32, i32
  }
  func.func @transform_2(%arg0: i32) -> (i32, i32) {
    %c0_i32 = arith.constant 0 : i32
    %c0_i32_0 = arith.constant 0 : i32
    %c0_i32_1 = arith.constant 0 : i32
    return %c0_i32, %c0_i32_0 : i32, i32
  }
  func.func @transform_3(%arg0: i32) -> (i32, i32) {
    %c0_i32 = arith.constant 0 : i32
    %c0_i32_0 = arith.constant 0 : i32
    %c0_i32_1 = arith.constant 0 : i32
    return %c0_i32, %c0_i32_0 : i32, i32
  }
  func.func @transform_4(%arg0: i32) -> (i32, i32) {
    %c0_i32 = arith.constant 0 : i32
    %c0_i32_0 = arith.constant 0 : i32
    %c0_i32_1 = arith.constant 0 : i32
    return %c0_i32, %c0_i32_0 : i32, i32
  }
  func.func @transform_5(%arg0: i32) -> (i32, i32) {
    %c0_i32 = arith.constant 0 : i32
    %c0_i32_0 = arith.constant 0 : i32
    %c0_i32_1 = arith.constant 0 : i32
    return %c0_i32, %c0_i32_0 : i32, i32
  }
  func.func @transform_6(%arg0: i32) -> (i32, i32) {
    %c0_i32 = arith.constant 0 : i32
    %c0_i32_0 = arith.constant 0 : i32
    %c0_i32_1 = arith.constant 0 : i32
    return %c0_i32, %c0_i32_0 : i32, i32
  }
  func.func @transform_7(%arg0: i32) -> (i32, i32) {
    %c0_i32 = arith.constant 0 : i32
    %c0_i32_0 = arith.constant 0 : i32
    %c0_i32_1 = arith.constant 0 : i32
    return %c0_i32, %c0_i32_0 : i32, i32
  }
  func.func @transform_8(%arg0: i32) -> (i32, i32) {
    %c0_i32 = arith.constant 0 : i32
    %c0_i32_0 = arith.constant 0 : i32
    %c0_i32_1 = arith.constant 0 : i32
    return %c0_i32, %c0_i32_0 : i32, i32
  }
  func.func @transform_9(%arg0: i32) -> (i32, i32) {
    %c0_i32 = arith.constant 0 : i32
    %c0_i32_0 = arith.constant 0 : i32
    %c0_i32_1 = arith.constant 0 : i32
    return %c0_i32, %c0_i32_0 : i32, i32
  }
  func.func @transform_10(%arg0: i32) -> (i32, i32) {
    %c0_i32 = arith.constant 0 : i32
    %c0_i32_0 = arith.constant 0 : i32
    %c0_i32_1 = arith.constant 0 : i32
    return %c0_i32, %c0_i32_0 : i32, i32
  }
  func.func @transform_11(%arg0: i32) -> (i32, i32) {
    %c0_i32 = arith.constant 0 : i32
    %c0_i32_0 = arith.constant 0 : i32
    %c0_i32_1 = arith.constant 0 : i32
    return %c0_i32, %c0_i32_0 : i32, i32
  }
  func.func @transform_12(%arg0: i32) -> (i32, i32) {
    %c0_i32 = arith.constant 0 : i32
    %c0_i32_0 = arith.constant 0 : i32
    %c0_i32_1 = arith.constant 0 : i32
    return %c0_i32, %c0_i32_0 : i32, i32
  }
  func.func @transform_13(%arg0: i32) -> (i32, i32, i32) {
    %c0_i32 = arith.constant 0 : i32
    %c0_i32_0 = arith.constant 0 : i32
    %c0_i32_1 = arith.constant 0 : i32
    return %arg0, %c0_i32, %c0_i32_0 : i32, i32, i32
  }
}

</mosaic_0001>

<bundles_post_ra>
// kernel: tile.17
= control target key start
LH: loop header
LB: loop body
LE: loop exit
PB: predicated region body
PF: predicated region fallthrough
CT: control target
= control target key end

     0   :  { %vm4_vm0 = vcmask 1047556   ;;  %s147_s14 = smov 80   ;;  %s148_s15 = smov 96   ;;  %vm6_vm1 = vcmask 130048   ;;  %vm21_vm2 = vcmask 917248   ;;  %vm38_vm3 = vcmask 786048   ;;  %s275_s0 = inlined_call_operand.vmem [shape: f32[9,7,16], index: 0, kind: input, shape index: {}]   ;;  %s276_s1 = inlined_call_operand.vmem [shape: f32[9,112], index: 1, kind: output, shape index: {}]  }
   0x1   :  { %v121_v0 = vld [vmem:[%s275_s0 + $0x5] ss:$8 sm:$0xf]   ;;  %v117_v3 = vld [vmem:[%s275_s0 + $0x6] ss:$8 sm:$0xf]  }
   0x2   :  { %v122_v1 = vld [vmem:[%s275_s0 + $0x5] ss:$8 sm:$0xf0]   ;;  %v118_v4 = vld [vmem:[%s275_s0 + $0x6] ss:$8 sm:$0xf0]  }
   0x3   :  { %v35_v2 = vsel %vm4_vm0, %v122_v1, %v121_v0  ;;  %v18_v5 = vsel %vm4_vm0, %v118_v4, %v117_v3  ;;  %v123_v6 = vld [vmem:[%s275_s0 + $0x45] sm:$0x1]   ;;  %v119_v7 = vld [vmem:[%s275_s0 + $0x46] sm:$0x1]   ;;  %v127_v10 = vld [vmem:[%s275_s0 + $0x44] sm:$0x1]  }
   0x4   :  { %36 = vrot.lane.b32.xlu1 %v35_v2, %s147_s14  ;;  %19 = vrot.lane.b32.xlu0 %v18_v5, %s148_s15  ;;  %v125_v8 = vld [vmem:[%s275_s0 + $0x4] ss:$8 sm:$0xf]   ;;  %v129_v12 = vld [vmem:[%s275_s0 + $0x3] ss:$8 sm:$0xf]  }
   0x5   :  { %v126_v9 = vld [vmem:[%s275_s0 + $0x4] ss:$8 sm:$0xf0]   ;;  %v130_v13 = vld [vmem:[%s275_s0 + $0x3] ss:$8 sm:$0xf0]  }
   0x6   :  { %v52_v11 = vsel %vm4_vm0, %v126_v9, %v125_v8  ;;  %v2_v14 = vld [vmem:[%s275_s0] ss:$8 sm:$0xf]   ;;  %s149_s5 = smov 64   ;;  %v131_v18 = vld [vmem:[%s275_s0 + $0x43] sm:$0x1]   ;;  %v69_v19 = vsel %vm4_vm0, %v130_v13, %v129_v12 }
   0x7   :  { %v3_v15 = vld [vmem:[%s275_s0] ss:$8 sm:$0xf0]   ;;  %v133_v20 = vld [vmem:[%s275_s0 + $0x2] ss:$8 sm:$0xf]  }
   0x8   :  { %42 = vrot.lane.b32.xlu1 %v123_v6, %s147_s14  ;;  %25 = vrot.lane.b32.xlu0 %v119_v7, %s148_s15  ;;  %v5_v16 = vsel %vm4_vm0, %v3_v15, %v2_v14  ;;  %v115_v17 = vld [vmem:[%s275_s0 + $0x40] sm:$0x1]   ;;  %v134_v21 = vld [vmem:[%s275_s0 + $0x2] ss:$8 sm:$0xf0]   ;;  %s150_s18 = smov 48  }
   0x9   :  { %7 = vst.msk [vmem:[%s276_s1] sm:$0xff] %vm6_vm1, %v5_v16   ;;  %116 = vst.msk [vmem:[%s276_s1 + $0x8] sm:$0x1] %vm6_vm1, %v115_v17   ;;  %v135_v22 = vld [vmem:[%s275_s0 + $0x42] sm:$0x1]   ;;  %v86_v23 = vsel %vm4_vm0, %v134_v21, %v133_v20  ;;  %s151_s25 = smov 32  }
   0xa   :  { %v137_v24 = vld [vmem:[%s275_s0 + $0x1] ss:$8 sm:$0xf]   ;;  %vm55_vm4 = vcmask 654848   ;;  %vm72_vm5 = vcmask 523648   ;;  %vm89_vm6 = vcmask 392448  }
   0xb   :  { %v138_v25 = vld [vmem:[%s275_s0 + $0x1] ss:$8 sm:$0xf0]   ;;  %vm106_vm7 = vcmask 261248  }
   0xc   :  { %59 = vrot.lane.b32.xlu1 %v127_v10, %s149_s5  ;;  %53 = vrot.lane.b32.xlu0 %v52_v11, %s149_s5  ;;  %v139_v26 = vld [vmem:[%s275_s0 + $0x41] sm:$0x1]   ;;  %v103_v27 = vsel %vm4_vm0, %v138_v25, %v137_v24  ;;  %s152_s0 = smov 16  }
  0x10   :  { %76 = vrot.lane.b32.xlu1 %v131_v18, %s150_s18  ;;  %70 = vrot.lane.b32.xlu0 %v69_v19, %s150_s18 }
  0x14   :  { %93 = vrot.lane.b32.xlu1 %v135_v22, %s151_s25  ;;  %87 = vrot.lane.b32.xlu0 %v86_v23, %s151_s25 }
  0x18   :  { %110 = vrot.lane.b32.xlu1 %v139_v26, %s152_s0  ;;  %104 = vrot.lane.b32.xlu0 %v103_v27, %s152_s0 }
  0x76   :  { %v37_v28 = vpop.permute.xlu1 %36   ;;  %v20_v29 = vpop.permute.xlu0 %19  }
  0x77   :  { %22 = vst.msk [vmem:[%s276_s1] sm:$0xff] %vm21_vm2, %v20_v29  }
  0x78   :  { %39 = vst.msk [vmem:[%s276_s1] sm:$0xff] %vm38_vm3, %v37_v28  }
  0x7a   :  { %v43_v30 = vpop.permute.xlu1 %42   ;;  %v26_v31 = vpop.permute.xlu0 %25  }
  0x7b   :  { %120 = vst.msk [vmem:[%s276_s1 + $0x8] sm:$0x1] %vm21_vm2, %v26_v31  }
  0x7c   :  { %124 = vst.msk [vmem:[%s276_s1 + $0x8] sm:$0x1] %vm38_vm3, %v43_v30  }
  0x7e   :  { %v60_v32 = vpop.permute.xlu1 %59   ;;  %v54_v33 = vpop.permute.xlu0 %53  }
  0x7f   :  { %128 = vst.msk [vmem:[%s276_s1 + $0x8] sm:$0x1] %vm55_vm4, %v60_v32   ;;  %56 = vst.msk [vmem:[%s276_s1] sm:$0xff] %vm55_vm4, %v54_v33  }
  0x82   :  { %v77_v34 = vpop.permute.xlu1 %76   ;;  %v71_v35 = vpop.permute.xlu0 %70  }
  0x83   :  { %132 = vst.msk [vmem:[%s276_s1 + $0x8] sm:$0x1] %vm72_vm5, %v77_v34   ;;  %73 = vst.msk [vmem:[%s276_s1] sm:$0xff] %vm72_vm5, %v71_v35  }
  0x86   :  { %v94_v36 = vpop.permute.xlu1 %93   ;;  %v88_v37 = vpop.permute.xlu0 %87  }
  0x87   :  { %136 = vst.msk [vmem:[%s276_s1 + $0x8] sm:$0x1] %vm89_vm6, %v94_v36   ;;  %90 = vst.msk [vmem:[%s276_s1] sm:$0xff] %vm89_vm6, %v88_v37  }
  0x8a   :  { %v111_v38 = vpop.permute.xlu1 %110   ;;  %v105_v39 = vpop.permute.xlu0 %104  }
  0x8b   :  { %140 = vst.msk [vmem:[%s276_s1 + $0x8] sm:$0x1] %vm106_vm7, %v111_v38   ;;  %107 = vst.msk [vmem:[%s276_s1] sm:$0xff] %vm106_vm7, %v105_v39  }

// kernel: cnn_forward.1
= control target key start
LH: loop header
LB: loop body
LE: loop exit
PB: predicated region body
PF: predicated region fallthrough
CT: control target
= control target key end

     0   :  { %s11290_s25 = smov 0   ;;  %s15840_s0 = inlined_call_operand.vmem [shape: f32[2,16,8,128], index: 0, kind: input, shape index: {}]   ;;  %s15841_s1 = inlined_call_operand.vmem [shape: f32[9,112], index: 1, kind: input, shape index: {}]   ;;  %s15842_s2 = inlined_call_operand.vmem [shape: f32[1,112], index: 2, kind: input, shape index: {}]   ;;  %s15843_s3 = inlined_call_operand.vmem [shape: bf16[864,192], index: 3, kind: input, shape index: {}]   ;;  %s15844_s4 = inlined_call_operand.vmem [shape: f32[1,192], index: 4, kind: input, shape index: {}]   ;;  %s15845_s5 = inlined_call_operand.vmem [shape: bf16[1152,1024], index: 5, kind: input, shape index: {}]   ;;  %s15846_s6 = inlined_call_operand.vmem [shape: f32[1,1024], index: 6, kind: input, shape index: {}]   ;;  %s15847_s7 = inlined_call_operand.vmem [shape: bf16[1024,512], index: 7, kind: input, shape index: {}]   ;;  %s15848_s8 = inlined_call_operand.vmem [shape: f32[1,512], index: 8, kind: input, shape index: {}]   ;;  %s15849_s9 = inlined_call_operand.vmem [shape: bf16[512,128], index: 9, kind: input, shape index: {}]   ;;  %s15850_s10 = inlined_call_operand.vmem [shape: f32[1,128], index: 10, kind: input, shape index: {}]   ;;  %s15851_s11 = inlined_call_operand.vmem [shape: bf16[128,128], index: 11, kind: input, shape index: {}]   ;;  %s15852_s12 = inlined_call_operand.vmem [shape: f32[1,128], index: 12, kind: input, shape index: {}]   ;;  %s15853_s13 = inlined_call_operand.vmem [shape: f32[2,8,128], index: 13, kind: output, shape index: {}]  }
   0x1 LB: > { %s9297_s26 = sadd.s32 4294967295, %s11208_s25   ;;  %p9301_p0 = scmp.ge.s32.totalorder %s11208_s25, 1  ;;  %s11208_s25 = sphi %s11290_s25, %s23_s25  }
   0x2   : > { %p387_p1 = scmp.lt.s32.totalorder %s11208_s25, 3 }
   0x4   : > { %p388_p2 = pnand %p9301_p0, %p387_p1 }
   0x6   : > { %391 = sbr.rel (%p388_p2) target bundleno = 2898 (0xb52), region = 72 }
   0xd   : > { %v482_v0 = vlaneseq  ;;  %v11301_v1 = vld [vmem:[%s15841_s1] sm:$0xff]  ;;  %s11210_s29 = smov 16   ;;  %v11339_v12 = vld [vmem:[%s15841_s1 + $0x8] ss:$0 sm:$0xff]  ;;  %p430_p3 = scmp.lt.s32.totalorder %s9297_s26, 1  ;;  %vm1119_vm0 = vcmask 785408  }
   0xe   : > { %s11211_s19 = smov 112   ;;  %s11213_s22 = smov 80   ;;  %vm1121_vm1 = vcmask 523264   ;;  %vm1123_vm2 = vcmask 261120   ;;  %vm11219_vm3 = vmmov 0  }
   0xf   : > { %v11303_v2 = vshrl.u32 %v482_v0, 7  ;;  %s16105_s26 = smov (!%p430_p3, %s9297_s26), 1  ;;  %s11214_s24 = smov 96  }
  0x10   : > { %s10317_s15 = sshll.u32 %s16105_s26, 7  ;;  %s11215_s27 = smov 48  }
  0x11   : > { %15968 = vst [vmem:[#allocation2_spill] sm:$0xff] %v11303_v2  ;;  %v15857_v3 = vsub.s32 4, %v11303_v2  ;;  %v15856_v4 = vsub.s32 5, %v11303_v2  ;;  %v11308_v5 = vsub.s32 1, %v11303_v2  ;;  %v11311_v6 = vsub.s32 2, %v11303_v2  ;;  %s11363_s18 = scalar_lea.vmem %s15840_s0, %s10317_s15  ;;  %s11216_s28 = smov 32  }
  0x12   : > { %v15855_v11 = vsub.s32 7, %v11303_v2  ;;  %v11358_v14 = vsub.s32 0, %v11303_v2  ;;  %v11366_v15 = vld [vmem:[%s11363_s18 + $0x10] sm:$0x7f]  ;;  %v11373_v17 = vld [vmem:[%s11363_s18 + $0x8] sm:$0x7f] }
  0x13   : > { %15969 = vst [vmem:[#allocation3_spill] sm:$0xff] %v11308_v5  ;;  %15970 = vst [vmem:[#allocation4_spill] sm:$0xff] %v11311_v6  ;;  %v11316_v7 = vrot.slane %v11301_v1, %v15857_v3  ;;  %v11320_v8 = vrot.slane %v11301_v1, %v11308_v5  ;;  %v11327_v9 = vrot.slane %v11301_v1, %v15856_v4  ;;  %v11376_v18 = vld [vmem:[%s11363_s18] sm:$0x7f]  ;;  %v11379_v19 = vld [vmem:[%s11363_s18 + $0x18] sm:$0x7f] }
  0x14   : > { %v11333_v10 = vrot.slane %v11301_v1, %v11311_v6  ;;  %v11348_v13 = vrot.slane %v11301_v1, %v15855_v11  ;;  %15971 = vst [vmem:[#allocation5_spill] sm:$0xff] %v11358_v14  ;;  %v11370_v16 = vrot.slane %v11301_v1, %v11358_v14  ;;  %v11382_v20 = vsub.s32 3, %v11303_v2  ;;  %v11393_v25 = vld [vmem:[%s11363_s18 + $0x20] sm:$0x7f]  ;;  %v11396_v26 = vld [vmem:[%s11363_s18 + $0x28] sm:$0x7f] }
  0x15   : > { %658 = vrot.lane.b32.xlu1 %v11316_v7, %s11210_s29  ;;  %640 = vrot.lane.b32.xlu0 %v11320_v8, %s11210_s29  ;;  %v536_v22 = vmul.f32 %v11366_v15, %v11320_v8  ;;  %v491_v24 = vmul.f32 %v11373_v17, %v11320_v8  ;;  %v11405_v30 = vld [vmem:[%s11363_s18 + $0x30] sm:$0x7f]  ;;  %v554_v34 = vmul.f32 %v11396_v26, %v11320_v8  ;;  %v11418_v39 = vld [vmem:[%s11363_s18 + $0x38] sm:$0x7f]  ;;  %v15854_v45 = vsub.s32 6, %v11303_v2  ;;  %s11217_s30 = smov 64  }
  0x16   : > { %15972 = vst [vmem:[#allocation6_spill] sm:$0xff] %v11382_v20  ;;  %v535_v21 = vmul.f32 %v11373_v17, %v11370_v16  ;;  %v486_v23 = vmul.f32 %v11370_v16, %v11376_v18  ;;  %v11400_v27 = vrot.slane %v11301_v1, %v11382_v20  ;;  %v538_v29 = vmul.f32 %v11379_v19, %v11333_v10  ;;  %v11423_v42 = vld [vmem:[%s11363_s18 + $0x40] sm:$0x7f]  ;;  %v11437_v52 = vld [vmem:[%s11363_s18 + $0x48] sm:$0x7f] }
  0x17   : > { %v497_v31 = vmul.f32 %v11366_v15, %v11333_v10  ;;  %v553_v33 = vmul.f32 %v11393_v25, %v11370_v16  ;;  %v556_v41 = vmul.f32 %v11405_v30, %v11333_v10  ;;  %v571_v43 = vmul.f32 %v11396_v26, %v11370_v16  ;;  %v11449_v57 = vld [vmem:[%s11363_s18 + $0x50] sm:$0x7f] }
  0x18   : > { %v537_v28 = vadd.f32 %v536_v22, %v535_v21  ;;  %v492_v32 = vadd.f32 %v491_v24, %v486_v23  ;;  %v540_v36 = vmul.f32 %v11396_v26, %v11400_v27  ;;  %v503_v38 = vmul.f32 %v11393_v25, %v11400_v27 }
  0x19   : > { %615 = vrot.lane.b32.xlu1 %v11327_v9, %s11210_s29  ;;  %601 = vrot.lane.b32.xlu0 %v11333_v10, %s11210_s29  ;;  %v555_v40 = vadd.f32 %v554_v34, %v553_v33  ;;  %v572_v44 = vmul.f32 %v11405_v30, %v11320_v8  ;;  %v542_v47 = vmul.f32 %v11405_v30, %v11316_v7  ;;  %v11470_v33 = vld [vmem:[%s11363_s18 + $0x58] sm:$0x7f] }
  0x1a   : > { %v539_v35 = vadd.f32 %v538_v29, %v537_v28  ;;  %v498_v37 = vadd.f32 %v497_v31, %v492_v32  ;;  %v509_v49 = vmul.f32 %v11396_v26, %v11316_v7  ;;  %v558_v51 = vmul.f32 %v11423_v42, %v11400_v27 }
  0x1b   : > { %v557_v50 = vadd.f32 %v556_v41, %v555_v40  ;;  %v573_v53 = vadd.f32 %v572_v44, %v571_v43  ;;  %v574_v54 = vmul.f32 %v11418_v39, %v11333_v10  ;;  %v11446_v56 = vrot.slane %v11301_v1, %v15854_v45 }
  0x1c   : > { %v541_v46 = vadd.f32 %v540_v36, %v539_v35  ;;  %v504_v48 = vadd.f32 %v503_v38, %v498_v37  ;;  %v544_v59 = vmul.f32 %v11418_v39, %v11327_v9  ;;  %v515_v61 = vmul.f32 %v11405_v30, %v11327_v9  ;;  %v11475_v36 = vld [vmem:[%s11363_s18 + $0x60] sm:$0x7f] }
  0x1d   : > { %629 = vrot.lane.b32.xlu1 %v11339_v12, %s11210_s29  ;;  %676 = vrot.lane.b32.xlu0 %v11348_v13, %s11210_s29  ;;  %v559_v62 = vadd.f32 %v558_v51, %v557_v50  ;;  %v560_v63 = vmul.f32 %v11437_v52, %v11316_v7  ;;  %v575_v1 = vadd.f32 %v574_v54, %v573_v53  ;;  %v11498_v54 = vld [vmem:[%s11363_s18 + $0x68] sm:$0x7f] }
  0x1e   : > { %v543_v58 = vadd.f32 %v542_v47, %v541_v46  ;;  %v510_v0 = vadd.f32 %v509_v49, %v504_v48  ;;  %v576_v21 = vmul.f32 %v11437_v52, %v11400_v27  ;;  %v546_v24 = vmul.f32 %v11437_v52, %v11446_v56 }
  0x1f   : > { %v521_v28 = vmul.f32 %v11423_v42, %v11446_v56  ;;  %v561_v29 = vadd.f32 %v560_v63, %v559_v62  ;;  %v562_v31 = vmul.f32 %v11449_v57, %v11327_v9  ;;  %v578_v35 = vmul.f32 %v11449_v57, %v11316_v7 }
  0x20   : > { %v545_v23 = vadd.f32 %v544_v59, %v543_v58  ;;  %v516_v32 = vadd.f32 %v515_v61, %v510_v0  ;;  %v577_v34 = vadd.f32 %v576_v21, %v575_v1  ;;  %v527_v43 = vmul.f32 %v11437_v52, %v11348_v13  ;;  %v11503_v59 = vld [vmem:[%s11363_s18 + $0x70] sm:$0x7f] }
  0x21   : > { %v563_v46 = vadd.f32 %v562_v31, %v561_v29  ;;  %v548_v48 = vmul.f32 %v11449_v57, %v11348_v13  ;;  %v564_v49 = vmul.f32 %v11475_v36, %v11446_v56  ;;  %v580_v53 = vmul.f32 %v11470_v33, %v11327_v9  ;;  %v11520_v29 = vld [vmem:[%s11363_s18 + $0x78] sm:$0x7f] }
  0x22   : > { %v547_v44 = vadd.f32 %v546_v24, %v545_v23  ;;  %v522_v47 = vadd.f32 %v521_v28, %v516_v32  ;;  %v579_v51 = vadd.f32 %v578_v35, %v577_v34  ;;  %v533_v61 = vmul.f32 %v11339_v12, %v11449_v57 }
  0x23   : > { %v550_v0 = vmul.f32 %v11339_v12, %v11470_v33  ;;  %v565_v1 = vadd.f32 %v564_v49, %v563_v46  ;;  %v566_v21 = vmul.f32 %v11498_v54, %v11348_v13  ;;  %v568_v32 = vmul.f32 %v11339_v12, %v11503_v59 }
  0x24   : > { %v528_v62 = vadd.f32 %v527_v43, %v522_v47  ;;  %v549_v63 = vadd.f32 %v548_v48, %v547_v44  ;;  %v581_v23 = vadd.f32 %v580_v53, %v579_v51  ;;  %v584_v34 = vmul.f32 %v11503_v59, %v11348_v13 }
  0x25   : > { %v586_v44 = vmul.f32 %v11339_v12, %v11520_v29  ;;  %v788_v45 = vmul.f32 %v11498_v54, %v11400_v27  ;;  %v775_v20 = vmul.f32 %v11503_v59, %v11327_v9 }
  0x26   : > { %v551_v31 = vadd.f32 %v550_v0, %v549_v63  ;;  %v534_v35 = vadd.f32 %v533_v61, %v528_v62  ;;  %v11551_v62 = vld [vmem:[%s15842_s2] ss:$0 sm:$0xff] }
  0x28   : > { %v552_v46 = vmax.f32 %v534_v35, %v551_v31 }
  0x87   : > { %v11441_v55 = vpop.permute.xlu1 %658  ;;  %v11453_v60 = vpop.permute.xlu0 %640 }
  0x88   : > { %v643_v58 = vmul.f32 %v11453_v60, %v11376_v18  ;;  %v661_v43 = vmul.f32 %v11393_v25, %v11441_v55  ;;  %v737_v0 = vmul.f32 %v11423_v42, %v11441_v55 }
  0x8b   : > { %v11461_v22 = vpop.permute.xlu1 %615  ;;  %v11479_v38 = vpop.permute.xlu0 %601 }
  0x8c   : > { %v604_v50 = vmul.f32 %v11479_v38, %v11376_v18  ;;  %v582_v18 = vmul.f32 %v11498_v54, %v11446_v56  ;;  %v649_v24 = vmul.f32 %v11373_v17, %v11479_v38  ;;  %v695_v28 = vmul.f32 %v11393_v25, %v11479_v38 }
  0x8d   : > { %v723_v17 = vmul.f32 %v11393_v25, %v11453_v60  ;;  %v729_v49 = vmul.f32 %v11396_v26, %v11479_v38  ;;  %v705_v61 = vmul.f32 %v11423_v42, %v11461_v22 }
  0x8f   : > { %v11477_v37 = vpop.permute.xlu1 %629  ;;  %v11542_v12 = vpop.permute.xlu0 %676 }
  0x90   : > { %v685_v40 = vmul.f32 %v11437_v52, %v11477_v37  ;;  %v632_v41 = vmul.f32 %v11423_v42, %v11477_v37  ;;  %v757_v35 = vmul.f32 %v11498_v54, %v11477_v37 }
  0x92   : > { %687 = vrot.lane.b32.xlu0 %v685_v40, %s11211_s19  ;;  %634 = vrot.lane.b32.xlu1 %v632_v41, %s11211_s19  ;;  %v567_v40 = vadd.f32 %v566_v21, %v565_v1  ;;  %v583_v41 = vadd.f32 %v582_v18, %v581_v23  ;;  %v10567_v21 = vld [vmem:[%s15843_s3 + $0x300] ss:$8 sps:$4 sm:$0xff]   ;;  %v743_v23 = vmul.f32 %v11437_v52, %v11461_v22 }
  0x93   : > { %v715_v18 = vmul.f32 %v11475_v36, %v11477_v37 }
  0x94   : > { %v569_v47 = vadd.f32 %v568_v32, %v567_v40  ;;  %v585_v48 = vadd.f32 %v584_v34, %v583_v41  ;;  %v10571_v32 = vld [vmem:[%s15843_s3 + $0x324] ss:$8 sps:$4 sm:$0xff]   ;;  %v751_v34 = vmul.f32 %v11475_v36, %v11542_v12  ;;  %v10573_v40 = vld [vmem:[%s15843_s3 + $0x320] ss:$8 sps:$4 sm:$0xff]  }
  0x96   : > { %645 = vrot.lane.b32.xlu0 %v643_v58, %s11211_s19  ;;  %606 = vrot.lane.b32.xlu1 %v604_v50, %s11211_s19  ;;  %v618_v50 = vmul.f32 %v11393_v25, %v11461_v22  ;;  %v570_v51 = vmax.f32 %v552_v46, %v569_v47  ;;  %v587_v53 = vadd.f32 %v586_v44, %v585_v48  ;;  %v10576_v46 = vld [vmem:[%s15843_s3 + $0x330] ss:$8 sps:$4 sm:$0xff]   ;;  %v11612_v47 = vld [vmem:[%s11363_s18 + $0x1] sm:$0x7f] }
  0x97   : > { %v667_v58 = vmul.f32 %v11396_v26, %v11461_v22  ;;  %v679_v25 = vmul.f32 %v11423_v42, %v11542_v12  ;;  %v10565_v26 = vld [vmem:[%s15843_s3 + $0x304] ss:$8 sps:$4 sm:$0xff]   ;;  %v806_v4 = vmul.f32 %v11400_v27, %v11612_v47 }
  0x98   : > { %v588_v63 = vmax.f32 %v570_v51, %v587_v53  ;;  %1801 = vmatprep.subr.bf16.mxu1 %v10565_v26  ;;  %v10577_v48 = vld [vmem:[%s15843_s3 + $0x344] ss:$8 sps:$4 sm:$0xff]   ;;  %v10579_v53 = vld [vmem:[%s15843_s3 + $0x340] ss:$8 sps:$4 sm:$0xff]   ;;  %v842_v26 = vmul.f32 %v11423_v42, %v11479_v38 }
  0x99   : > { %1802 = vmatpush1.bf16.msra.mxu1 %v10567_v21  ;;  %v11622_v51 = vld [vmem:[%s11363_s18 + $0x21] sm:$0x7f]  ;;  %v947_v21 = vmul.f32 %v11498_v54, %v11479_v38 }
  0x9a   : > { %651 = vrot.lane.b32.xlu0 %v649_v24, %s11211_s19  ;;  %697 = vrot.lane.b32.xlu1 %v695_v28, %s11211_s19  ;;  %v595_v1 = vadd.f32 %v11551_v62, %v588_v63  ;;  %v10568_v24 = vld [vmem:[%s15843_s3 + $0x314] ss:$8 sps:$4 sm:$0xff]   ;;  %v10570_v28 = vld [vmem:[%s15843_s3 + $0x310] ss:$8 sps:$4 sm:$0xff]  }
  0x9b   : > { %1803 = vmatprep.subr.bf16.mxu1 %v10568_v24  ;;  %v10582_v63 = vld [vmem:[%s15843_s3 + $0x350] ss:$8 sps:$4 sm:$0xff]   ;;  %v955_v24 = vmul.f32 %v11441_v55, %v11612_v47 }
  0x9c   : > { %v11580_v31 = vmax.f32 %v595_v1, 0.0  ;;  %v15858_v1 = vmov 0  }
  0x9d   : > { %1804 = vmatpush1.bf16.msra.mxu1 %v10570_v28  ;;  %1833 = vmatprep.mubr.bf16.mxu1 %v15858_v1  ;;  %v692_v1 = vmul.f32 %v11405_v30, %v11370_v16 }
  0x9e   : > { %725 = vrot.lane.b32.xlu0 %v723_v17, %s11211_s19  ;;  %663 = vrot.lane.b32.xlu1 %v661_v43, %s11211_s19  ;;  %v11595_v41 = vrot.slane %v11580_v31, 1  ;;  %v11598_v17 = vld [vmem:[%s11363_s18 + $0x9] sm:$0x7f]  ;;  %v10574_v43 = vld [vmem:[%s15843_s3 + $0x334] ss:$8 sps:$4 sm:$0xff]  }
  0x9f   : > { %1805 = vmatprep.subr.bf16.mxu1 %v10571_v32  ;;  %v903_v44 = vmul.f32 %v11598_v17, %v11477_v37  ;;  %v961_v28 = vmul.f32 %v11598_v17, %v11461_v22  ;;  %v923_v32 = vmul.f32 %v11461_v22, %v11612_v47 }
  0xa0   : > { %15973 = vst [vmem:[#allocation7_spill] sm:$0xff] %v11595_v41 }
  0xa1   : > { %1806 = vmatpush1.bf16.msra.mxu1 %v10573_v40 }
  0xa2   : > { %731 = vrot.lane.b32.xlu0 %v729_v49, %s11211_s19  ;;  %620 = vrot.lane.b32.xlu1 %v618_v50, %s11211_s19  ;;  %v869_v49 = vmul.f32 %v11423_v42, %v11453_v60  ;;  %v862_v50 = vmul.f32 %v11477_v37, %v11612_v47 }
  0xa3   : > { %1807 = vmatprep.subr.bf16.mxu1 %v10574_v43  ;;  %v11703_v43 = vld [vmem:[%s15843_s3 + $0x10] ss:$8 sps:$4 sm:$0xff]  }
  0xa5   : > { %1808 = vmatpush1.bf16.msra.mxu1 %v10576_v46  ;;  %v11715_v46 = vld [vmem:[%s15843_s3 + $0x20] ss:$8 sps:$4 sm:$0xff]  }
  0xa6   : > { %669 = vrot.lane.b32.xlu0 %v667_v58, %s11211_s19  ;;  %707 = vrot.lane.b32.xlu1 %v705_v61, %s11211_s19  ;;  %v10580_v58 = vld [vmem:[%s15843_s3 + $0x354] ss:$8 sps:$4 sm:$0xff]   ;;  %v875_v61 = vmul.f32 %v11437_v52, %v11479_v38 }
  0xa7   : > { %1809 = vmatprep.subr.bf16.mxu1 %v10577_v48  ;;  %v11722_v48 = vld [vmem:[%s15843_s3 + $0x34] ss:$8 sps:$4 sm:$0xff]  }
  0xa9   : > { %1810 = vmatpush1.bf16.msra.mxu1 %v10579_v53  ;;  %v11739_v53 = vld [vmem:[%s15843_s3 + $0x40] ss:$8 sps:$4 sm:$0xff]  }
  0xaa   : > { %739 = vrot.lane.b32.xlu0 %v737_v0, %s11211_s19  ;;  %681 = vrot.lane.b32.xlu1 %v679_v25, %s11211_s19  ;;  %v933_v25 = vmul.f32 %v11622_v51, %v11477_v37  ;;  %v941_v0 = vmul.f32 %v11475_v36, %v11453_v60  ;;  %v889_v60 = vmul.f32 %v11498_v54, %v11461_v22 }
  0xab   : > { %1811 = vmatprep.subr.bf16.mxu1 %v10580_v58  ;;  %v11746_v58 = vld [vmem:[%s15843_s3 + $0x54] ss:$8 sps:$4 sm:$0xff]  }
  0xad   : > { %1812 = vmatpush1.bf16.msra.mxu1 %v10582_v63  ;;  %v767_v63 = vmul.f32 %v11437_v52, %v11320_v8 }
  0xae   : > { %745 = vrot.lane.b32.xlu0 %v743_v23, %s11211_s19  ;;  %717 = vrot.lane.b32.xlu1 %v715_v18, %s11211_s19  ;;  %v913_v23 = vmul.f32 %v11475_v36, %v11479_v38  ;;  %v883_v18 = vmul.f32 %v11475_v36, %v11441_v55  ;;  %v852_v38 = vmul.f32 %v11475_v36, %v11461_v22  ;;  %v10583_v22 = vld [vmem:[%s15843_s3 + $0x4] ss:$8 sps:$4 sm:$0xff]  }
  0xaf   : > { %v969_v55 = vmul.f32 %v11622_v51, %v11542_v12  ;;  %1883 = vmatprep.subr.bf16.mxu1 %v10583_v22  ;;  %1678 = vmatprep.subr.bf16.mxu0 %v10583_v22  ;;  %v820_v22 = vmul.f32 %v11503_v59, %v11320_v8 }
  0xb2   : > { %753 = vrot.lane.b32.xlu0 %v751_v34, %s11211_s19  ;;  %759 = vrot.lane.b32.xlu1 %v757_v35, %s11211_s19  ;;  %v897_v34 = vmul.f32 %v11542_v12, %v11612_v47  ;;  %v11677_v35 = vld [vmem:[%s11363_s18 + $0x29] sm:$0x7f] }
  0xb3   : > { %v975_v40 = vmul.f32 %v11677_v35, %v11477_v37  ;;  %v11692_v12 = vld [vmem:[%s15843_s3] ss:$8 sps:$4 sm:$0xff]   ;;  %v11698_v37 = vld [vmem:[%s15843_s3 + $0x14] ss:$8 sps:$4 sm:$0xff]  }
  0xb4   : > { %1679 = vmatpush1.bf16.msra.mxu0 %v11692_v12 }
  0xb5   : > { %1680 = vmatprep.subr.bf16.mxu0 %v11698_v37 }
  0xb6   : > { %905 = vrot.lane.b32.xlu1 %v903_v44, %s11211_s19  ;;  %1116 = vrot.lane.b32.xlu0 %v11595_v41, %s11211_s19  ;;  %v11710_v44 = vld [vmem:[%s15843_s3 + $0x24] ss:$8 sps:$4 sm:$0xff]   ;;  %v794_v41 = vmul.f32 %v11598_v17, %v11446_v56 }
  0xb8   : > { %1681 = vmatpush1.bf16.msra.mxu0 %v11703_v43 }
  0xb9   : > { %1682 = vmatprep.subr.bf16.mxu0 %v11710_v44 }
  0xba   : > { %871 = vrot.lane.b32.xlu1 %v869_v49, %s11211_s19  ;;  %864 = vrot.lane.b32.xlu0 %v862_v50, %s11211_s19  ;;  %v11727_v49 = vld [vmem:[%s15843_s3 + $0x30] ss:$8 sps:$4 sm:$0xff]   ;;  %v11734_v50 = vld [vmem:[%s15843_s3 + $0x44] ss:$8 sps:$4 sm:$0xff]  }
  0xbc   : > { %1683 = vmatpush1.bf16.msra.mxu0 %v11715_v46 }
  0xbd   : > { %1684 = vmatprep.subr.bf16.mxu0 %v11722_v48 }
  0xbe   : > { %877 = vrot.lane.b32.xlu1 %v875_v61, %s11211_s19  ;;  %935 = vrot.lane.b32.xlu0 %v933_v25, %s11211_s19  ;;  %v11751_v61 = vld [vmem:[%s15843_s3 + $0x50] ss:$8 sps:$4 sm:$0xff]   ;;  %v766_v25 = vmul.f32 %v11423_v42, %v11370_v16  ;;  %v802_v42 = vmul.f32 %v11498_v54, %v11320_v8 }
  0xc0   : > { %1685 = vmatpush1.bf16.msra.mxu0 %v11727_v49 }
  0xc1   : > { %1686 = vmatprep.subr.bf16.mxu0 %v11734_v50 }
  0xc2   : > { %943 = vrot.lane.b32.xlu1 %v941_v0, %s11211_s19  ;;  %844 = vrot.lane.b32.xlu0 %v842_v26, %s11211_s19  ;;  %v783_v0 = vmul.f32 %v11437_v52, %v11370_v16  ;;  %v784_v26 = vmul.f32 %v11449_v57, %v11320_v8  ;;  %v11781_v52 = vld [vmem:[%s15843_s3 + $0x74] ss:$8 sps:$4 sm:$0xff]  }
  0xc3   : > { %15974 = vst [vmem:[#allocation8_spill] sm:$0xff] %v11781_v52 }
  0xc4   : > { %1687 = vmatpush1.bf16.msra.mxu0 %v11739_v53 }
  0xc5   : > { %1688 = vmatprep.subr.bf16.mxu0 %v11746_v58 }
  0xc6   : > { %949 = vrot.lane.b32.xlu1 %v947_v21, %s11211_s19  ;;  %915 = vrot.lane.b32.xlu0 %v913_v23, %s11211_s19  ;;  %v11766_v21 = vld [vmem:[%s15843_s3 + $0x64] ss:$8 sps:$4 sm:$0xff]   ;;  %v801_v23 = vmul.f32 %v11475_v36, %v11370_v16 }
  0xc8   : > { %1689 = vmatpush1.bf16.msra.mxu0 %v11751_v61 }
  0xc9   : > { %1690 = vmatprep.subr.bf16.mxu0 %v11766_v21 }
  0xca   : > { %891 = vrot.lane.b32.xlu1 %v889_v60, %s11211_s19  ;;  %885 = vrot.lane.b32.xlu0 %v883_v18, %s11211_s19  ;;  %v11775_v60 = vld [vmem:[%s15843_s3 + $0x60] ss:$8 sps:$4 sm:$0xff]   ;;  %v768_v18 = vadd.f32 %v767_v63, %v766_v25  ;;  %v11803_v25 = vld [vmem:[%s15843_s3 + $0x84] ss:$8 sps:$4 sm:$0xff]   ;;  %v597_v63 = vmul.f32 %v11366_v15, %v11370_v16 }
  0xcb   : > { %15976 = vst [vmem:[#allocation10_spill] sm:$0xff] %v11803_v25 }
  0xcc   : > { %1691 = vmatpush1.bf16.msra.mxu0 %v11775_v60 }
  0xcd   : > { %1692 = vmatprep.subr.bf16.mxu0 %v11781_v52 }
  0xce   : > { %957 = vrot.lane.b32.xlu1 %v955_v24, %s11211_s19  ;;  %854 = vrot.lane.b32.xlu0 %v852_v38, %s11211_s19  ;;  %v769_v24 = vmul.f32 %v11449_v57, %v11333_v10  ;;  %v785_v38 = vadd.f32 %v784_v26, %v783_v0  ;;  %v598_v0 = vmul.f32 %v11379_v19, %v11320_v8 }
  0xd0   : > { %v770_v26 = vadd.f32 %v769_v24, %v768_v18  ;;  %v822_v24 = vmul.f32 %v11520_v29, %v11333_v10 }
  0xd2   : > { %963 = vrot.lane.b32.xlu1 %v961_v28, %s11211_s19  ;;  %925 = vrot.lane.b32.xlu0 %v923_v32, %s11211_s19  ;;  %v786_v28 = vmul.f32 %v11470_v33, %v11333_v10  ;;  %v803_v32 = vadd.f32 %v802_v42, %v801_v23  ;;  %v771_v23 = vmul.f32 %v11475_v36, %v11400_v27  ;;  %v11824_v36 = vld [vmem:[%s15843_s3 + $0x80] ss:$8 sps:$4 sm:$0xff]  }
  0xd3   : > { %15977 = vst [vmem:[#allocation11_spill] sm:$0xff] %v11824_v36 }
  0xd4   : > { %v787_v42 = vadd.f32 %v786_v28, %v785_v38  ;;  %v11831_v38 = vld [vmem:[%s15843_s3 + $0x94] ss:$8 sps:$4 sm:$0xff]   ;;  %v599_v28 = vadd.f32 %v598_v0, %v597_v63  ;;  %v808_v0 = vmul.f32 %v11598_v17, %v11316_v7 }
  0xd5   : > { %15978 = vst [vmem:[#allocation12_spill] sm:$0xff] %v11831_v38 }
  0xd6   : > { %971 = vrot.lane.b32.xlu1 %v969_v55, %s11211_s19  ;;  %899 = vrot.lane.b32.xlu0 %v897_v34, %s11211_s19  ;;  %v804_v55 = vmul.f32 %v11503_v59, %v11333_v10  ;;  %v11794_v34 = vld [vmem:[%s15843_s3 + $0x70] ss:$8 sps:$4 sm:$0xff]   ;;  %v790_v10 = vmul.f32 %v11503_v59, %v11316_v7 }
  0xd7   : > { %15975 = vst [vmem:[#allocation9_spill] sm:$0xff] %v11794_v34  ;;  %1693 = vmatpush1.bf16.msra.mxu0 %v11794_v34 }
  0xd8   : > { %1694 = vmatprep.subr.bf16.mxu0 %v11803_v25  ;;  %v805_v11 = vadd.f32 %v804_v55, %v803_v32  ;;  %v772_v32 = vadd.f32 %v771_v23, %v770_v26  ;;  %v773_v55 = vmul.f32 %v11498_v54, %v11316_v7  ;;  %v11848_v23 = vld [vmem:[%s15843_s3 + $0x90] ss:$8 sps:$4 sm:$0xff]  }
  0xd9   : > { %15979 = vst [vmem:[#allocation13_spill] sm:$0xff] %v11848_v23  ;;  %v11899_v25 = vld [vmem:[%s11363_s18 + $0x19] sm:$0x7f] }
  0xda   : > { %1842 = vrot.lane.b32.xlu1 %v11580_v31, %s11213_s22  ;;  %977 = vrot.lane.b32.xlu0 %v975_v40, %s11211_s19  ;;  %v819_v40 = vmul.f32 %v11498_v54, %v11370_v16  ;;  %v807_v63 = vadd.f32 %v806_v4, %v805_v11  ;;  %v11857_v4 = vld [vmem:[%s15843_s3 + $0xa4] ss:$8 sps:$4 sm:$0xff]   ;;  %v610_v11 = vmul.f32 %v11405_v30, %v11400_v27 }
  0xdb   : > { %1695 = vmatpush1.bf16.msra.mxu0 %v11824_v36  ;;  %15980 = vst [vmem:[#allocation14_spill] sm:$0xff] %v11857_v4  ;;  %v774_v6 = vadd.f32 %v773_v55, %v772_v32  ;;  %v812_v36 = vmul.f32 %v11622_v51, %v11446_v56  ;;  %v11913_v51 = vld [vmem:[%s15843_s3 + $0xc4] ss:$8 sps:$4 sm:$0xff]  }
  0xdc   : > { %v821_v18 = vadd.f32 %v820_v22, %v819_v40  ;;  %v693_v40 = vmul.f32 %v11418_v39, %v11320_v8  ;;  %v789_v22 = vadd.f32 %v788_v45, %v787_v42  ;;  %1696 = vmatprep.subr.bf16.mxu0 %v11831_v38  ;;  %v824_v45 = vmul.f32 %v11598_v17, %v11400_v27 }
  0xdd   : > { %v638_v42 = vmul.f32 %v11379_v19, %v11370_v16  ;;  %v792_v19 = vmul.f32 %v11520_v29, %v11327_v9  ;;  %v809_v30 = vadd.f32 %v808_v0, %v807_v63  ;;  %v11886_v63 = vld [vmem:[%s15843_s3 + $0xb4] ss:$8 sps:$4 sm:$0xff]   ;;  %v701_v0 = vmul.f32 %v11449_v57, %v11400_v27  ;;  %15981 = vst [vmem:[#allocation15_spill] sm:$0xff] %v11913_v51 }
  0xde   : > { %v823_v2 = vadd.f32 %v822_v24, %v821_v18  ;;  %v11865_v18 = vld [vmem:[%s11363_s18 + $0x11] sm:$0x7f]  ;;  %v694_v5 = vadd.f32 %v693_v40, %v692_v1  ;;  %v791_v14 = vadd.f32 %v790_v10, %v789_v22  ;;  %v777_v1 = vmul.f32 %v11446_v56, %v11612_v47 }
  0xdf   : > { %1697 = vmatpush1.bf16.msra.mxu0 %v11848_v23  ;;  %v810_v32 = vmul.f32 %v11865_v18, %v11327_v9  ;;  %v826_v22 = vmul.f32 %v11865_v18, %v11316_v7  ;;  %v612_v47 = vmul.f32 %v11418_v39, %v11316_v7 }
  0xe0   : > { %1698 = vmatprep.subr.bf16.mxu0 %v11857_v4  ;;  %v825_v40 = vadd.f32 %v824_v45, %v823_v2  ;;  %v776_v2 = vadd.f32 %v775_v20, %v774_v6  ;;  %v11904_v6 = vld [vmem:[%s15843_s3 + $0xb0] ss:$8 sps:$4 sm:$0xff]  }
  0xe1   : > { %v811_v23 = vadd.f32 %v810_v32, %v809_v30 }
  0xe2   : > { %v827_v20 = vadd.f32 %v826_v22, %v825_v40  ;;  %v814_v40 = vmul.f32 %v11677_v35, %v11348_v13 }
 0x104   : > { %v11817_v15 = vpop.permute.xlu0 %687  ;;  %v11819_v3 = vpop.permute.xlu1 %634 }
 0x108   : > { %v646_v54 = vpop.permute.xlu0 %645  ;;  %v607_v26 = vpop.permute.xlu1 %606 }
 0x109   : > { %v609_v24 = vadd.f32 %v607_v26, %v599_v28  ;;  %v11877_v28 = vld [vmem:[%s15843_s3 + $0xa0] ss:$8 sps:$4 sm:$0xff]   ;;  %v648_v10 = vadd.f32 %v646_v54, %v638_v42  ;;  %v655_v26 = vmul.f32 %v11418_v39, %v11400_v27  ;;  %v793_v42 = vadd.f32 %v792_v19, %v791_v14 }
 0x10a   : > { %1699 = vmatpush1.bf16.msra.mxu0 %v11877_v28  ;;  %v722_v14 = vmul.f32 %v11418_v39, %v11370_v16  ;;  %v796_v19 = vmul.f32 %v11865_v18, %v11348_v13 }
 0x10b   : > { %v611_v45 = vadd.f32 %v610_v11, %v609_v24  ;;  %1700 = vmatprep.subr.bf16.mxu0 %v11886_v63  ;;  %v778_v11 = vadd.f32 %v777_v1, %v776_v2  ;;  %v779_v24 = vmul.f32 %v11598_v17, %v11348_v13  ;;  %v795_v32 = vadd.f32 %v794_v41, %v793_v42  ;;  %v11928_v17 = vld [vmem:[%s15843_s3 + $0xc0] ss:$8 sps:$4 sm:$0xff]  }
 0x10c   : > { %v652_v55 = vpop.permute.xlu0 %651  ;;  %v698_v38 = vpop.permute.xlu1 %697  ;;  %15982 = vst [vmem:[#allocation16_spill] sm:$0xff] %v11928_v17  ;;  %v624_v41 = vmul.f32 %v11449_v57, %v11446_v56 }
 0x10d   : > { %v654_v4 = vadd.f32 %v652_v55, %v648_v10  ;;  %v700_v54 = vadd.f32 %v698_v38, %v694_v5  ;;  %v828_v5 = vmul.f32 %v11899_v25, %v11327_v9  ;;  %v703_v38 = vmul.f32 %v11470_v33, %v11316_v7 }
 0x10e   : > { %1701 = vmatpush1.bf16.msra.mxu0 %v11904_v6  ;;  %v613_v39 = vadd.f32 %v612_v47, %v611_v45  ;;  %v813_v55 = vadd.f32 %v812_v36, %v811_v23  ;;  %v11937_v36 = vld [vmem:[%s15843_s3 + $0xd4] ss:$8 sps:$4 sm:$0xff]   ;;  %v673_v23 = vmul.f32 %v11470_v33, %v11446_v56  ;;  %v11155_v47 = vld [vmem:[%s15841_s1 + $0x8] ss:$0 sm:$0xff] }
 0x10f   : > { %v702_v9 = vadd.f32 %v701_v0, %v700_v54  ;;  %v656_v30 = vadd.f32 %v655_v26, %v654_v4  ;;  %1702 = vmatprep.subr.bf16.mxu0 %v11913_v51  ;;  %v829_v10 = vadd.f32 %v828_v5, %v827_v20  ;;  %v830_v0 = vmul.f32 %v11677_v35, %v11446_v56 }
 0x110   : > { %v726_v34 = vpop.permute.xlu0 %725  ;;  %v664_v52 = vpop.permute.xlu1 %663  ;;  %15983 = vst [vmem:[#allocation17_spill] sm:$0xff] %v11937_v36  ;;  %v780_v26 = vadd.f32 %v779_v24, %v778_v11  ;;  %v781_v2 = vmul.f32 %v11155_v47, %v11865_v18  ;;  %v798_v35 = vmul.f32 %v11155_v47, %v11899_v25  ;;  %v797_v20 = vadd.f32 %v796_v19, %v795_v32 }
 0x111   : > { %v728_v45 = vadd.f32 %v726_v34, %v722_v14  ;;  %v666_v54 = vadd.f32 %v664_v52, %v656_v30  ;;  %v704_v42 = vadd.f32 %v703_v38, %v702_v9  ;;  %v626_v5 = vmul.f32 %v11470_v33, %v11348_v13  ;;  %v11957_v34 = vld [vmem:[%s15843_s3 + $0xd0] ss:$8 sps:$4 sm:$0xff]   ;;  %v11965_v30 = vld [vmem:[%s15843_s3 + $0xe4] ss:$8 sps:$4 sm:$0xff]  }
 0x112   : > { %1703 = vmatpush1.bf16.msra.mxu0 %v11928_v17  ;;  %v711_v24 = vmul.f32 %v11503_v59, %v11446_v56  ;;  %15984 = vst [vmem:[#allocation18_spill] sm:$0xff] %v11957_v34  ;;  %v11960_v9 = vld [vmem:[%s11363_s18 + $0x31] sm:$0x7f]  ;;  %15985 = vst [vmem:[#allocation19_spill] sm:$0xff] %v11965_v30  ;;  %v815_v32 = vadd.f32 %v814_v40, %v813_v55  ;;  %v11977_v55 = vld [vmem:[%s15843_s3 + $0xe0] ss:$8 sps:$4 sm:$0xff]  }
 0x113   : > { %1704 = vmatprep.subr.bf16.mxu0 %v11937_v36  ;;  %v831_v36 = vadd.f32 %v830_v0, %v829_v10  ;;  %v832_v17 = vmul.f32 %v11960_v9, %v11348_v13 }
 0x114   : > { %v732_v22 = vpop.permute.xlu0 %731  ;;  %v621_v1 = vpop.permute.xlu1 %620 }
 0x115   : > { %v623_v4 = vadd.f32 %v621_v1, %v613_v39  ;;  %v735_v1 = vmul.f32 %v11470_v33, %v11400_v27  ;;  %v734_v52 = vadd.f32 %v732_v22, %v728_v45  ;;  %v782_v22 = vadd.f32 %v781_v2, %v780_v26  ;;  %v11980_v26 = vld [vmem:[%s11363_s18 + $0x39] sm:$0x7f] }
 0x116   : > { %1705 = vmatpush1.bf16.msra.mxu0 %v11957_v34  ;;  %v749_v2 = vmul.f32 %v11520_v29, %v11446_v56 }
 0x117   : > { %v625_v14 = vadd.f32 %v624_v41, %v623_v4  ;;  %v799_v41 = vadd.f32 %v798_v35, %v797_v20  ;;  %v816_v4 = vmul.f32 %v11155_v47, %v11960_v9  ;;  %1706 = vmatprep.subr.bf16.mxu0 %v11965_v30  ;;  %v736_v0 = vadd.f32 %v735_v1, %v734_v52 }
 0x118   : > { %v670_v11 = vpop.permute.xlu0 %669  ;;  %v708_v39 = vpop.permute.xlu1 %707  ;;  %v833_v35 = vadd.f32 %v832_v17, %v831_v36  ;;  %v834_v20 = vmul.f32 %v11155_v47, %v11980_v26  ;;  %v11991_v17 = vld [vmem:[%s15843_s3 + $0xf4] ss:$8 sps:$4 sm:$0xff]  }
 0x119   : > { %v672_v38 = vadd.f32 %v670_v11, %v666_v54  ;;  %v710_v19 = vadd.f32 %v708_v39, %v704_v42  ;;  %v713_v42 = vmul.f32 %v11520_v29, %v11348_v13  ;;  %v627_v40 = vadd.f32 %v626_v5, %v625_v14 }
 0x11a   : > { %1707 = vmatpush1.bf16.msra.mxu0 %v11977_v55  ;;  %v817_v30 = vadd.f32 %v816_v4, %v815_v32  ;;  %v835_v52 = vadd.f32 %v834_v20, %v833_v35  ;;  %v839_v20 = vmul.f32 %v11449_v57, %v11370_v16  ;;  %v910_v57 = vmul.f32 %v11503_v59, %v11370_v16 }
 0x11b   : > { %v674_v51 = vadd.f32 %v673_v23, %v672_v38  ;;  %v712_v10 = vadd.f32 %v711_v24, %v710_v19  ;;  %v800_v38 = vmax.f32 %v782_v22, %v799_v41  ;;  %1708 = vmatprep.subr.bf16.mxu0 %v11991_v17  ;;  %v12002_v22 = vld [vmem:[%s15843_s3 + $0x104] ss:$8 sps:$4 sm:$0xff]  }
 0x11c   : > { %v740_v45 = vpop.permute.xlu0 %739  ;;  %v682_v54 = vpop.permute.xlu1 %681 }
 0x11d   : > { %v684_v23 = vadd.f32 %v682_v54, %v674_v51  ;;  %v742_v11 = vadd.f32 %v740_v45, %v736_v0  ;;  %v637_v51 = vadd.f32 %v11819_v3, %v627_v40  ;;  %v714_v1 = vadd.f32 %v713_v42, %v712_v10 }
 0x11e   : > { %v818_v19 = vmax.f32 %v800_v38, %v817_v30 }
 0x11f   : > { %v690_v39 = vadd.f32 %v11817_v15, %v684_v23  ;;  %v11996_v15 = vld [vmem:[%s15843_s3 + $0xf0] ss:$8 sps:$4 sm:$0xff]  }
 0x120   : > { %v746_v34 = vpop.permute.xlu0 %745  ;;  %v718_v5 = vpop.permute.xlu1 %717  ;;  %1709 = vmatpush1.bf16.msra.mxu0 %v11996_v15  ;;  %v836_v30 = vmax.f32 %v818_v19, %v835_v52  ;;  %v881_v19 = vmul.f32 %v11520_v29, %v11400_v27 }
 0x121   : > { %v748_v24 = vadd.f32 %v746_v34, %v742_v11  ;;  %v691_v36 = vmax.f32 %v637_v51, %v690_v39  ;;  %v720_v47 = vadd.f32 %v718_v5, %v714_v1  ;;  %1719 = vmatprep.subr.bf16.mxu0 %v12002_v22  ;;  %v840_v11 = vmul.f32 %v11470_v33, %v11320_v8 }
 0x122   : > { %v837_v0 = vadd.f32 %v11551_v62, %v836_v30  ;;  %v848_v1 = vmul.f32 %v11503_v59, %v11400_v27  ;;  %v850_v59 = vmul.f32 %v11520_v29, %v11316_v7 }
 0x123   : > { %v750_v14 = vadd.f32 %v749_v2, %v748_v24  ;;  %v721_v41 = vmax.f32 %v691_v36, %v720_v47  ;;  %v841_v5 = vadd.f32 %v840_v11, %v839_v20  ;;  %v911_v24 = vmul.f32 %v11520_v29, %v11320_v8 }
 0x124   : > { %v754_v32 = vpop.permute.xlu0 %753  ;;  %v760_v34 = vpop.permute.xlu1 %759  ;;  %v12029_v39 = vmax.f32 %v837_v0, 0.0 }
 0x125   : > { %v756_v3 = vadd.f32 %v754_v32, %v750_v14  ;;  %v912_v36 = vadd.f32 %v911_v24, %v910_v57  ;;  %v967_v24 = vmul.f32 %v11980_v26, %v11446_v56 }
 0x127   : > { %v762_v4 = vadd.f32 %v760_v34, %v756_v3 }
 0x128   : > { %v12006_v45 = vpop.permute.xlu1 %905  ;;  %v12008_v54 = vpop.permute.xlu0 %1116 }
 0x129   : > { %v763_v42 = vmax.f32 %v721_v41, %v762_v4  ;;  %v1134_v40 = vpack.c.bf16 %v12008_v54, %v12008_v54  ;;  %v953_v4 = vmul.f32 %v11899_v25, %v11400_v27 }
 0x12b   : > { %v764_v10 = vadd.f32 %v11551_v62, %v763_v42  ;;  %9437 = vmatmul.mubr.msk.bf16.vlgmr.msra.gmra.mrb[0].mxu1 %vm1119_vm0, %v1134_v40 }
 0x12c   : > { %v872_v23 = vpop.permute.xlu1 %871  ;;  %v12015_v2 = vpop.permute.xlu0 %864  ;;  %1884 = vmatpush1.bf16.msra.mxu1 %v11692_v12 }
 0x12d   : > { %v12018_v35 = vmax.f32 %v764_v10, 0.0  ;;  %1885 = vmatprep.subr.bf16.mxu1 %v11698_v37  ;;  %v868_v37 = vmul.f32 %v11470_v33, %v11370_v16  ;;  %v940_v33 = vmul.f32 %v11520_v29, %v11370_v16  ;;  %v858_v29 = vmul.f32 %v11865_v18, %v11446_v56 }
 0x12f   : > { %1094 = vrot.lane.b32.xlu1 %v12018_v35, %s11214_s24  ;;  %1845 = vrot.lane.b32.xlu0 %v12018_v35, %s11215_s27 }
 0x130   : > { %v878_v12 = vpop.permute.xlu1 %877  ;;  %v12031_v38 = vpop.permute.xlu0 %935  ;;  %1886 = vmatpush1.bf16.msra.mxu1 %v11703_v43 }
 0x131   : > { %1887 = vmatprep.subr.bf16.mxu1 %v11710_v44  ;;  %v874_v44 = vadd.f32 %v872_v23, %v868_v37 }
 0x133   : > { %1098 = vrot.lane.b32.xlu0 %v11580_v31, %s11215_s27  ;;  %1852 = vrot.lane.b32.xlu1 %v12029_v39, %s11211_s19  ;;  %v880_v14 = vadd.f32 %v878_v12, %v874_v44  ;;  %v15987_v44 = vld [vmem:[#allocation9_spill] sm:$0xff] }
 0x134   : > { %v944_v51 = vpop.permute.xlu1 %943  ;;  %v845_v43 = vpop.permute.xlu0 %844  ;;  %1888 = vmatpush1.bf16.msra.mxu1 %v11715_v46  ;;  %v919_v46 = vmul.f32 %v11865_v18, %v11400_v27  ;;  %v860_v27 = vmul.f32 %v11899_v25, %v11348_v13 }
 0x135   : > { %1889 = vmatprep.subr.bf16.mxu1 %v11722_v48  ;;  %v847_v52 = vadd.f32 %v845_v43, %v841_v5  ;;  %v946_v16 = vadd.f32 %v944_v51, %v940_v33  ;;  %v882_v41 = vadd.f32 %v881_v19, %v880_v14 }
 0x137   : > { %v849_v48 = vadd.f32 %v848_v1, %v847_v52 }
 0x138   : > { %v950_v47 = vpop.permute.xlu1 %949  ;;  %v916_v8 = vpop.permute.xlu0 %915  ;;  %1890 = vmatpush1.bf16.msra.mxu1 %v11727_v49 }
 0x139   : > { %1891 = vmatprep.subr.bf16.mxu1 %v11734_v50  ;;  %v918_v32 = vadd.f32 %v916_v8, %v912_v36  ;;  %v952_v49 = vadd.f32 %v950_v47, %v946_v16  ;;  %v921_v50 = vmul.f32 %v11899_v25, %v11316_v7  ;;  %v851_v40 = vadd.f32 %v850_v59, %v849_v48  ;;  %v15990_v16 = vld [vmem:[#allocation12_spill] sm:$0xff]  ;;  %v15991_v59 = vld [vmem:[#allocation13_spill] sm:$0xff] }
 0x13a   : > { %v929_v7 = vmul.f32 %v11960_v9, %v11446_v56  ;;  %v15986_v9 = vld [vmem:[#allocation8_spill] sm:$0xff] }
 0x13b   : > { %v920_v30 = vadd.f32 %v919_v46, %v918_v32 }
 0x13c   : > { %v892_v34 = vpop.permute.xlu1 %891  ;;  %v886_v3 = vpop.permute.xlu0 %885  ;;  %1892 = vmatpush1.bf16.msra.mxu1 %v11739_v53  ;;  %v954_v53 = vadd.f32 %v953_v4, %v952_v49  ;;  %v15996_v49 = vld [vmem:[#allocation7_spill] sm:$0xff]  ;;  %v2062_v4 = vrot.slane %v12029_v39, 1 }
 0x13d   : > { %1893 = vmatprep.subr.bf16.mxu1 %v11746_v58  ;;  %v888_v42 = vadd.f32 %v886_v3, %v882_v41  ;;  %v895_v58 = vmul.f32 %v11899_v25, %v11446_v56  ;;  %v922_v12 = vadd.f32 %v921_v50, %v920_v30  ;;  %v15989_v56 = vld [vmem:[#allocation11_spill] sm:$0xff]  ;;  %v15992_v3 = vld [vmem:[#allocation14_spill] sm:$0xff] }
 0x13e   : > { %v15998_v41 = vld [vmem:[#allocation19_spill] sm:$0xff] }
 0x13f   : > { %v894_v20 = vadd.f32 %v892_v34, %v888_v42 }
 0x140   : > { %v958_v10 = vpop.permute.xlu1 %957  ;;  %v855_v0 = vpop.permute.xlu0 %854  ;;  %1894 = vmatpush1.bf16.msra.mxu1 %v11751_v61 }
 0x141   : > { %v857_v23 = vadd.f32 %v855_v0, %v851_v40  ;;  %1895 = vmatprep.subr.bf16.mxu1 %v11766_v21  ;;  %v960_v11 = vadd.f32 %v958_v10, %v954_v53  ;;  %v931_v21 = vmul.f32 %v11980_v26, %v11348_v13  ;;  %v896_v43 = vadd.f32 %v895_v58, %v894_v20 }
 0x143   : > { %v859_v18 = vadd.f32 %v858_v29, %v857_v23  ;;  %v12154_v23 = vld [vmem:[%s15843_s3 + $0x100] ss:$8 sps:$4 sm:$0xff]  }
 0x144   : > { %v964_v37 = vpop.permute.xlu1 %963  ;;  %v926_v5 = vpop.permute.xlu0 %925  ;;  %1896 = vmatpush1.bf16.msra.mxu1 %v11775_v60  ;;  %v15988_v60 = vld [vmem:[#allocation10_spill] sm:$0xff] }
 0x145   : > { %v966_v61 = vadd.f32 %v964_v37, %v960_v11  ;;  %v928_v57 = vadd.f32 %v926_v5, %v922_v12  ;;  %1897 = vmatprep.subr.bf16.mxu1 %v15986_v9  ;;  %v861_v51 = vadd.f32 %v860_v27, %v859_v18  ;;  %v12171_v18 = vld [vmem:[%s15843_s3 + $0x110] ss:$8 sps:$4 sm:$0xff]   ;;  %v12184_v37 = vld [vmem:[%s15843_s3 + $0x120] ss:$8 sps:$4 sm:$0xff]   ;;  %v12191_v5 = vld [vmem:[%s15843_s3 + $0x134] ss:$8 sps:$4 sm:$0xff]  }
 0x146   : > { %v12226_v9 = vld [vmem:[%s15843_s3 + $0x150] ss:$8 sps:$4 sm:$0xff]  }
 0x147   : > { %v930_v25 = vadd.f32 %v929_v7, %v928_v57  ;;  %v968_v52 = vadd.f32 %v967_v24, %v966_v61  ;;  %v867_v13 = vadd.f32 %v12015_v2, %v861_v51  ;;  %v12159_v7 = vld [vmem:[%s15843_s3 + $0x114] ss:$8 sps:$4 sm:$0xff]   ;;  %v12198_v61 = vld [vmem:[%s15843_s3 + $0x130] ss:$8 sps:$4 sm:$0xff]   ;;  %v12212_v57 = vld [vmem:[%s15843_s3 + $0x140] ss:$8 sps:$4 sm:$0xff]  }
 0x148   : > { %v900_v33 = vpop.permute.xlu0 %899  ;;  %1898 = vmatpush1.bf16.msra.mxu1 %v15987_v44  ;;  %v972_v47 = vpop.permute.xlu1 %971  ;;  %v12219_v24 = vld [vmem:[%s15843_s3 + $0x154] ss:$8 sps:$4 sm:$0xff]   ;;  %v12233_v51 = vld [vmem:[%s15843_s3 + $0x164] ss:$8 sps:$4 sm:$0xff]  }
 0x149   : > { %v932_v1 = vadd.f32 %v931_v21, %v930_v25  ;;  %v902_v36 = vadd.f32 %v900_v33, %v896_v43  ;;  %1899 = vmatprep.subr.bf16.mxu1 %v15988_v60  ;;  %v974_v26 = vadd.f32 %v972_v47, %v968_v52  ;;  %v12205_v21 = vld [vmem:[%s15843_s3 + $0x144] ss:$8 sps:$4 sm:$0xff]   ;;  %v12240_v25 = vld [vmem:[%s15843_s3 + $0x160] ss:$8 sps:$4 sm:$0xff]   ;;  %v12247_v43 = vld [vmem:[%s15843_s3 + $0x174] ss:$8 sps:$4 sm:$0xff]  }
 0x14a   : > { %v12254_v33 = vld [vmem:[%s15843_s3 + $0x170] ss:$8 sps:$4 sm:$0xff]   ;;  %v12261_v44 = vld [vmem:[%s15843_s3 + $0x184] ss:$8 sps:$4 sm:$0xff]   ;;  %v12268_v52 = vld [vmem:[%s15843_s3 + $0x180] ss:$8 sps:$4 sm:$0xff]  }
 0x14b   : > { %v908_v8 = vadd.f32 %v12006_v45, %v902_v36  ;;  %v938_v46 = vadd.f32 %v12031_v38, %v932_v1  ;;  %v15993_v38 = vld [vmem:[#allocation15_spill] sm:$0xff]  ;;  %v12275_v36 = vld [vmem:[%s15843_s3 + $0x194] ss:$8 sps:$4 sm:$0xff]   ;;  %v12282_v60 = vld [vmem:[%s15843_s3 + $0x190] ss:$8 sps:$4 sm:$0xff]  }
 0x14c   : > { %v978_v14 = vpop.permute.xlu0 %977  ;;  %1900 = vmatpush1.bf16.msra.mxu1 %v15989_v56  ;;  %v1843_v42 = vpop.permute.xlu1 %1842  ;;  %v12289_v47 = vld [vmem:[%s15843_s3 + $0x1a4] ss:$8 sps:$4 sm:$0xff]  }
 0x14d   : > { %v909_v19 = vmax.f32 %v867_v13, %v908_v8  ;;  %1901 = vmatprep.subr.bf16.mxu1 %v15990_v16  ;;  %v980_v32 = vadd.f32 %v978_v14, %v974_v26  ;;  %v1867_v40 = vsel %vm1119_vm0, %v12018_v35, %v1843_v42  ;;  %v12297_v26 = vld [vmem:[%s15843_s3 + $0x1a0] ss:$8 sps:$4 sm:$0xff]  }
 0x14e   : > { %v1873_v27 = vpack.c.bf16 %v1867_v40, %v1867_v40 }
 0x14f   : > { %v939_v48 = vmax.f32 %v909_v19, %v938_v46  ;;  %v12304_v19 = vld [vmem:[%s15843_s3 + $0x1b4] ss:$8 sps:$4 sm:$0xff]  }
 0x150   : > { %1902 = vmatpush1.bf16.msra.mxu1 %v15991_v59  ;;  %v12318_v59 = vld [vmem:[%s15843_s3 + $0x1b0] ss:$8 sps:$4 sm:$0xff]  }
 0x151   : > { %v981_v34 = vmax.f32 %v939_v48, %v980_v32  ;;  %1903 = vmatprep.subr.bf16.mxu1 %v15992_v3 }
 0x153   : > { %v982_v2 = vadd.f32 %v11551_v62, %v981_v34  ;;  %v15994_v62 = vld [vmem:[#allocation16_spill] sm:$0xff]  ;;  %v12325_v34 = vld [vmem:[%s15843_s3 + $0x1c4] ss:$8 sps:$4 sm:$0xff]  }
 0x154   : > { %1904 = vmatpush1.bf16.msra.mxu1 %v11877_v28  ;;  %v12107_v28 = vrot.slane %v12018_v35, 1 }
 0x155   : > { %v12092_v45 = vmax.f32 %v982_v2, 0.0  ;;  %1905 = vmatprep.subr.bf16.mxu1 %v11886_v63  ;;  %v15995_v63 = vld [vmem:[#allocation17_spill] sm:$0xff] }
 0x157   : > { %1849 = vrot.lane.b32.xlu1 %v12092_v45, %s11216_s28  ;;  %1855 = vrot.lane.b32.xlu0 %v12092_v45, %s11213_s22  ;;  %v2066_v50 = vrot.slane %v12092_v45, 1 }
 0x158   : > { %1906 = vmatpush1.bf16.msra.mxu1 %v11904_v6  ;;  %v15997_v6 = vld [vmem:[#allocation18_spill] sm:$0xff] }
 0x159   : > { %1907 = vmatprep.subr.bf16.mxu1 %v15993_v38  ;;  %v10555_v30 = vpack.i.bf16 %v2066_v50, %v2062_v4  ;;  %v12336_v38 = vld [vmem:[%s15843_s3 + $0x1c0] ss:$8 sps:$4 sm:$0xff]  }
 0x15b   : > { %1102 = vrot.lane.b32.xlu1 %v12029_v39, %s11216_s28  ;;  %1105 = vrot.lane.b32.xlu0 %v12029_v39, %s11213_s22 }
 0x15c   : > { %1908 = vmatpush1.bf16.msra.mxu1 %v15994_v62  ;;  %v12343_v62 = vld [vmem:[%s15843_s3 + $0x1d4] ss:$8 sps:$4 sm:$0xff]  }
 0x15d   : > { %1909 = vmatprep.subr.bf16.mxu1 %v15995_v63 }
 0x15f   : > { %1861 = vrot.lane.b32.xlu1 %v15996_v49, %s11210_s29  ;;  %1858 = vrot.lane.b32.xlu0 %v12107_v28, %s11217_s30 }
 0x160   : > { %1910 = vmatpush1.bf16.msra.mxu1 %v15997_v6  ;;  %v12352_v6 = vld [vmem:[%s15843_s3 + $0x1d0] ss:$8 sps:$4 sm:$0xff]  }
 0x161   : > { %1911 = vmatprep.subr.bf16.mxu1 %v15998_v41  ;;  %v12359_v41 = vld [vmem:[%s15843_s3 + $0x1e4] ss:$8 sps:$4 sm:$0xff]  }
 0x163   : > { %1113 = vrot.lane.b32.xlu1 %v12107_v28, %s11216_s28  ;;  %1109 = vrot.lane.b32.xlu0 %v15996_v49, %s11217_s30 }
 0x164   : > { %1912 = vmatpush1.bf16.msra.mxu1 %v11977_v55 }
 0x165   : > { %1913 = vmatprep.subr.bf16.mxu1 %v11991_v17 }
 0x167   : > { %2049 = vrot.lane.b32.xlu1 %v12092_v45, %s11214_s24  ;;  %1864 = vrot.lane.b32.xlu0 %v12107_v28, %s11211_s19 }
 0x168   : > { %1914 = vmatpush1.bf16.msra.mxu1 %v11996_v15 }
 0x169   : > { %1924 = vmatprep.subr.bf16.mxu1 %v12002_v22 }
 0x16b   : > { %2255 = vrot.lane.b32.xlu1 %v12092_v45, %s11215_s27  ;;  %2052 = vrot.lane.b32.xlu0 %v12029_v39, %s11215_s27 }
 0x16f   : > { %2055 = vrot.lane.b32.xlu1 %v15996_v49, %s11216_s28  ;;  %2059 = vrot.lane.b32.xlu0 %v15996_v49, %s11213_s22 }
 0x173   : > { %2258 = vrot.lane.b32.xlu0 %v12107_v28, %s11213_s22  ;;  %10556 = vrot.lane.b32.xlu1 %v10555_v30, %s11217_s30  ;;  %v12370_v30 = vld [vmem:[%s15843_s3 + $0x1e0] ss:$8 sps:$4 sm:$0xff]  }
 0x177   : > { %2067 = vrot.lane.b32.xlu0 %v2066_v50, %s11216_s28  ;;  %2264 = vrot.lane.b32.xlu1 %v2062_v4, %s11210_s29  ;;  %s9304_s29 = sshll.u32 %s16105_s26, 3 }
 0x178   : > { %s438_s18 = scalar_lea.vmem %s15853_s13, %s9304_s29 }
 0x17b   : > { %2267 = vrot.lane.b32.xlu1 %v2066_v50, %s11211_s19  ;;  %2070 = vrot.lane.b32.xlu0 %v2062_v4, %s11211_s19 }
 0x1a1   : > { %v12147_v29 = vpop.permute.xlu0 %1845  ;;  %v1095_v10 = vpop.permute.xlu1 %1094 }
 0x1a2   : > { %v1868_v0 = vsel %vm1121_vm1, %v1843_v42, %v12147_v29  ;;  %v1120_v35 = vsel %vm1119_vm0, %v11580_v31, %v1095_v10  ;;  %v12177_v31 = vld [vmem:[%s15843_s3 + $0x124] ss:$8 sps:$4 sm:$0xff]   ;;  %v12377_v42 = vld [vmem:[%s15843_s3 + $0x1f4] ss:$8 sps:$4 sm:$0xff]  }
 0x1a3   : > { %v1874_v53 = vpack.c.bf16 %v1868_v0, %v1868_v0  ;;  %v1128_v12 = vpack.c.bf16 %v1120_v35, %v1120_v35 }
 0x1a5   : > { %1915 = vmatprep.mubr.bf16.mxu1 %v1874_v53  ;;  %v12163_v58 = vpop.permute.xlu0 %1098  ;;  %v1853_v1 = vpop.permute.xlu1 %1852  ;;  %v12392_v53 = vld [vmem:[%s15843_s3 + $0x1f0] ss:$8 sps:$4 sm:$0xff]  }
 0x1a6   : > { %1916 = vmatmul.mubr.bf16.vlgmr.msra.gmra.mrb[4].mxu1 %v1873_v27  ;;  %v1122_v20 = vsel %vm1121_vm1, %v1095_v10, %v12163_v58  ;;  %v12399_v27 = vld [vmem:[%s15843_s3 + $0x204] ss:$8 sps:$4 sm:$0xff]  }
 0x1a7   : > { %1925 = vmatpush1.bf16.msra.mxu1 %v12154_v23  ;;  %v1129_v11 = vpack.c.bf16 %v1122_v20, %v1122_v20 }
 0x1a8   : > { %1926 = vmatprep.subr.bf16.mxu1 %v12159_v7 }
 0x1a9   : > { %1710 = vmatprep.mubr.bf16.mxu0 %v1129_v11 }
 0x1aa   : > { %1711 = vmatmul.mubr.bf16.vlgmr.msra.gmra.mrb[0].mxu0 %v1128_v12 }
 0x1ab   : > { %1720 = vmatpush1.bf16.msra.mxu0 %v12154_v23  ;;  %1927 = vmatpush1.bf16.msra.mxu1 %v12171_v18 }
 0x1ac   : > { %1721 = vmatprep.subr.bf16.mxu0 %v12159_v7  ;;  %1928 = vmatprep.subr.bf16.mxu1 %v12177_v31 }
 0x1af   : > { %1722 = vmatpush1.bf16.msra.mxu0 %v12171_v18  ;;  %1929 = vmatpush1.bf16.msra.mxu1 %v12184_v37 }
 0x1b0   : > { %1723 = vmatprep.subr.bf16.mxu0 %v12177_v31  ;;  %1930 = vmatprep.subr.bf16.mxu1 %v12191_v5 }
 0x1b3   : > { %1724 = vmatpush1.bf16.msra.mxu0 %v12184_v37  ;;  %1931 = vmatpush1.bf16.msra.mxu1 %v12198_v61 }
 0x1b4   : > { %1725 = vmatprep.subr.bf16.mxu0 %v12191_v5  ;;  %1932 = vmatprep.subr.bf16.mxu1 %v12205_v21 }
 0x1b7   : > { %1726 = vmatpush1.bf16.msra.mxu0 %v12198_v61  ;;  %1933 = vmatpush1.bf16.msra.mxu1 %v12212_v57 }
 0x1b8   : > { %1727 = vmatprep.subr.bf16.mxu0 %v12205_v21  ;;  %1934 = vmatprep.subr.bf16.mxu1 %v12219_v24 }
 0x1bb   : > { %1728 = vmatpush1.bf16.msra.mxu0 %v12212_v57  ;;  %1935 = vmatpush1.bf16.msra.mxu1 %v12226_v9 }
 0x1bc   : > { %1729 = vmatprep.subr.bf16.mxu0 %v12219_v24  ;;  %1936 = vmatprep.subr.bf16.mxu1 %v12233_v51 }
 0x1bf   : > { %1730 = vmatpush1.bf16.msra.mxu0 %v12226_v9  ;;  %1937 = vmatpush1.bf16.msra.mxu1 %v12240_v25 }
 0x1c0   : > { %1731 = vmatprep.subr.bf16.mxu0 %v12233_v51  ;;  %1938 = vmatprep.subr.bf16.mxu1 %v12247_v43 }
 0x1c3   : > { %1732 = vmatpush1.bf16.msra.mxu0 %v12240_v25  ;;  %1939 = vmatpush1.bf16.msra.mxu1 %v12254_v33 }
 0x1c4   : > { %1733 = vmatprep.subr.bf16.mxu0 %v12247_v43  ;;  %1940 = vmatprep.subr.bf16.mxu1 %v12261_v44 }
 0x1c7   : > { %1734 = vmatpush1.bf16.msra.mxu0 %v12254_v33  ;;  %1941 = vmatpush1.bf16.msra.mxu1 %v12268_v52 }
 0x1c8   : > { %1735 = vmatprep.subr.bf16.mxu0 %v12261_v44  ;;  %1942 = vmatprep.subr.bf16.mxu1 %v12275_v36 }
 0x1c9   : > { %v1850_v13 = vpop.permute.xlu1 %1849  ;;  %v1856_v8 = vpop.permute.xlu0 %1855 }
 0x1ca   : > { %v1870_v14 = vsel %vm1119_vm0, %v1853_v1, %v1856_v8  ;;  %v1869_v35 = vsel %vm1123_vm2, %v12147_v29, %v1850_v13 }
 0x1cb   : > { %v1876_v56 = vpack.c.bf16 %v1870_v14, %v1870_v14  ;;  %1736 = vmatpush1.bf16.msra.mxu0 %v12268_v52  ;;  %1943 = vmatpush1.bf16.msra.mxu1 %v12282_v60  ;;  %v1875_v14 = vpack.c.bf16 %v1869_v35, %v1869_v35 }
 0x1cc   : > { %1737 = vmatprep.subr.bf16.mxu0 %v12275_v36  ;;  %1944 = vmatprep.subr.bf16.mxu1 %v12289_v47 }
 0x1cd   : > { %v1103_v46 = vpop.permute.xlu1 %1102  ;;  %1956 = vmatprep.mubr.bf16.mxu1 %v1876_v56  ;;  %v12306_v16 = vpop.permute.xlu0 %1105  ;;  %v12426_v56 = vld [vmem:[%s15843_s3 + $0x214] ss:$8 sps:$4 sm:$0xff]  }
 0x1ce   : > { %v1125_v48 = vsel %vm1119_vm0, %v12092_v45, %v12306_v16  ;;  %v1124_v29 = vsel %vm1123_vm2, %v12163_v58, %v1103_v46 }
 0x1cf   : > { %v12311_v32 = vpack.c.bf16 %v1125_v48, %v1125_v48  ;;  %1738 = vmatpush1.bf16.msra.mxu0 %v12282_v60  ;;  %1945 = vmatpush1.bf16.msra.mxu1 %v12297_v26  ;;  %v1130_v58 = vpack.c.bf16 %v1124_v29, %v1124_v29  ;;  %v12458_v29 = vld [vmem:[%s15843_s3 + $0x224] ss:$8 sps:$4 sm:$0xff]  }
 0x1d0   : > { %1739 = vmatprep.subr.bf16.mxu0 %v12289_v47  ;;  %1946 = vmatprep.subr.bf16.mxu1 %v12304_v19  ;;  %16003 = vst [vmem:[#allocation12_spill] sm:$0xff] %v12458_v29 }
 0x1d1   : > { %v1862_v3 = vpop.permute.xlu1 %1861  ;;  %1751 = vmatprep.mubr.bf16.mxu0 %v12311_v32  ;;  %v1859_v2 = vpop.permute.xlu0 %1858 }
 0x1d2   : > { %v12329_v45 = vsel %vm1121_vm1, %v1856_v8, %v1859_v2  ;;  %v1872_v1 = vsel %vm1123_vm2, %v1859_v2, %v1862_v3  ;;  %v12415_v8 = vld [vmem:[%s15843_s3 + $0x200] ss:$8 sps:$4 sm:$0xff]  }
 0x1d3   : > { %1740 = vmatpush1.bf16.msra.mxu0 %v12297_v26  ;;  %1947 = vmatpush1.bf16.msra.mxu1 %v12318_v59  ;;  %v1878_v48 = vpack.c.bf16 %v1872_v1, %v1872_v1  ;;  %v12452_v1 = vld [vmem:[%s15843_s3 + $0x210] ss:$8 sps:$4 sm:$0xff]  }
 0x1d4   : > { %1741 = vmatprep.subr.bf16.mxu0 %v12304_v19  ;;  %1948 = vmatprep.subr.bf16.mxu1 %v12325_v34  ;;  %16002 = vst [vmem:[#allocation11_spill] sm:$0xff] %v12452_v1 }
 0x1d5   : > { %v1114_v63 = vpop.permute.xlu1 %1113  ;;  %v12345_v49 = vpop.permute.xlu0 %1109 }
 0x1d6   : > { %v1127_v3 = vsel %vm1123_vm2, %v12345_v49, %v1114_v63 }
 0x1d7   : > { %1742 = vmatpush1.bf16.msra.mxu0 %v12318_v59  ;;  %1949 = vmatpush1.bf16.msra.mxu1 %v12336_v38 }
 0x1d8   : > { %1743 = vmatprep.subr.bf16.mxu0 %v12325_v34  ;;  %1950 = vmatprep.subr.bf16.mxu1 %v12343_v62 }
 0x1d9   : > { %v12361_v4 = vpop.permute.xlu1 %2049  ;;  %v12363_v50 = vpop.permute.xlu0 %1864 }
 0x1db   : > { %1744 = vmatpush1.bf16.msra.mxu0 %v12336_v38  ;;  %1951 = vmatpush1.bf16.msra.mxu1 %v12352_v6 }
 0x1dc   : > { %1745 = vmatprep.subr.bf16.mxu0 %v12343_v62  ;;  %1952 = vmatprep.subr.bf16.mxu1 %v12359_v41 }
 0x1dd   : > { %v12379_v40 = vpop.permute.xlu1 %2255  ;;  %v12381_v10 = vpop.permute.xlu0 %2052 }
 0x1de   : > { %v12385_v0 = vsel %vm1123_vm2, %v12379_v40, %v1114_v63 }
 0x1df   : > { %15999 = vst [vmem:[#allocation8_spill] sm:$0xff] %v12385_v0  ;;  %1746 = vmatpush1.bf16.msra.mxu0 %v12352_v6  ;;  %1953 = vmatpush1.bf16.msra.mxu1 %v12370_v30  ;;  %v12522_v0 = vld [vmem:[%s15843_s3 + $0x260] ss:$8 sps:$4 sm:$0xff]  }
 0x1e0   : > { %1747 = vmatprep.subr.bf16.mxu0 %v12359_v41  ;;  %1954 = vmatprep.subr.bf16.mxu1 %v12377_v42  ;;  %16012 = vst [vmem:[#allocation20_spill] sm:$0xff] %v12522_v0 }
 0x1e1   : > { %v2056_v20 = vpop.permute.xlu1 %2055  ;;  %v12403_v11 = vpop.permute.xlu0 %2059 }
 0x1e2   : > { %v12407_v12 = vsel %vm1123_vm2, %v12381_v10, %v2056_v20 }
 0x1e3   : > { %1748 = vmatpush1.bf16.msra.mxu0 %v12370_v30  ;;  %1955 = vmatpush1.bf16.msra.mxu1 %v12392_v53 }
 0x1e4   : > { %1749 = vmatprep.subr.bf16.mxu0 %v12377_v42  ;;  %1965 = vmatprep.subr.bf16.mxu1 %v12399_v27 }
 0x1e5   : > { %v12421_v13 = vpop.permute.xlu1 %10556  ;;  %v12432_v20 = vpop.permute.xlu0 %2258 }
 0x1e6   : > { %v15884_v2 = vunpack.i.h.bf16 %v12421_v13  ;;  %v15885_v35 = vunpack.i.l.bf16 %v12421_v13  ;;  %1957 = vmatmul.mubr.bf16.vlgmr.msra.gmra.mrb[4].mxu1 %v1875_v14  ;;  %v1133_v14 = vpack.c.bf16 %v1127_v3, %v1127_v3  ;;  %v12472_v3 = vld [vmem:[%s15843_s3 + $0x234] ss:$8 sps:$4 sm:$0xff]  }
 0x1e7   : > { %1750 = vmatpush1.bf16.msra.mxu0 %v12392_v53  ;;  %1966 = vmatpush1.bf16.msra.mxu1 %v12415_v8  ;;  %16005 = vst [vmem:[#allocation14_spill] sm:$0xff] %v12472_v3 }
 0x1e8   : > { %v12440_v46 = vsel %vm1121_vm1, %v12403_v11, %v15885_v35  ;;  %v12446_v63 = vsel %vm1121_vm1, %v12432_v20, %v15884_v2  ;;  %1997 = vmatprep.mubr.bf16.mxu1 %v1878_v48  ;;  %1760 = vmatprep.subr.bf16.mxu0 %v12399_v27  ;;  %v12466_v48 = vld [vmem:[%s15843_s3 + $0x220] ss:$8 sps:$4 sm:$0xff]   ;;  %v12500_v35 = vld [vmem:[%s15843_s3 + $0x254] ss:$8 sps:$4 sm:$0xff]  }
 0x1e9   : > { %16000 = vst [vmem:[#allocation9_spill] sm:$0xff] %v12440_v46  ;;  %16001 = vst [vmem:[#allocation10_spill] sm:$0xff] %v12446_v63  ;;  %1967 = vmatprep.subr.bf16.mxu1 %v12426_v56  ;;  %v12494_v2 = vld [vmem:[%s15843_s3 + $0x240] ss:$8 sps:$4 sm:$0xff]   ;;  %v12508_v63 = vld [vmem:[%s15843_s3 + $0x250] ss:$8 sps:$4 sm:$0xff]  }
 0x1ea   : > { %1752 = vmatmul.mubr.bf16.vlgmr.msra.gmra.mrb[0].mxu0 %v1130_v58  ;;  %16004 = vst [vmem:[#allocation13_spill] sm:$0xff] %v12466_v48  ;;  %v12480_v58 = vld [vmem:[%s15843_s3 + $0x230] ss:$8 sps:$4 sm:$0xff]   ;;  %16008 = vst [vmem:[#allocation17_spill] sm:$0xff] %v12494_v2  ;;  %v12514_v46 = vld [vmem:[%s15843_s3 + $0x264] ss:$8 sps:$4 sm:$0xff]  }
 0x1eb   : > { %1761 = vmatpush1.bf16.msra.mxu0 %v12415_v8  ;;  %1792 = vmatprep.mubr.bf16.mxu0 %v1133_v14  ;;  %16006 = vst [vmem:[#allocation15_spill] sm:$0xff] %v12480_v58  ;;  %v12486_v14 = vld [vmem:[%s15843_s3 + $0x244] ss:$8 sps:$4 sm:$0xff]   ;;  %16009 = vst [vmem:[#allocation7_spill] sm:$0xff] %v12500_v35 }
 0x1ec   : > { %1968 = vmatpush1.bf16.msra.mxu1 %v12452_v1  ;;  %1762 = vmatprep.subr.bf16.mxu0 %v12426_v56  ;;  %16007 = vst [vmem:[#allocation16_spill] sm:$0xff] %v12486_v14  ;;  %16010 = vst [vmem:[#allocation18_spill] sm:$0xff] %v12508_v63 }
 0x1ed   : > { %1969 = vmatprep.subr.bf16.mxu1 %v12458_v29  ;;  %16011 = vst [vmem:[#allocation19_spill] sm:$0xff] %v12514_v46 }
 0x1ef   : > { %1763 = vmatpush1.bf16.msra.mxu0 %v12452_v1  ;;  %v11179_v1 = vld [vmem:[%s15843_s3 + $0x50] ss:$8 sps:$4 sm:$0xff]  }
 0x1f0   : > { %1970 = vmatpush1.bf16.msra.mxu1 %v12466_v48  ;;  %1764 = vmatprep.subr.bf16.mxu0 %v12458_v29  ;;  %v12770_v29 = vld [vmem:[%s15843_s3 + $0x350] ss:$8 sps:$4 sm:$0xff]  }
 0x1f1   : > { %1971 = vmatprep.subr.bf16.mxu1 %v12472_v3  ;;  %16045 = vst [vmem:[#allocation52_spill] sm:$0xff] %v12770_v29 }
 0x1f3   : > { %1765 = vmatpush1.bf16.msra.mxu0 %v12466_v48  ;;  %v2270_v48 = vsel %vm1121_vm1, %v12306_v16, %v12379_v40 }
 0x1f4   : > { %1972 = vmatpush1.bf16.msra.mxu1 %v12480_v58  ;;  %1766 = vmatprep.subr.bf16.mxu0 %v12472_v3  ;;  %v2275_v40 = vpack.c.bf16 %v2270_v48, %v2270_v48  ;;  %v11182_v48 = vld [vmem:[%s15843_s3 + $0x74] ss:$8 sps:$4 sm:$0xff]  }
 0x1f5   : > { %1973 = vmatprep.subr.bf16.mxu1 %v12486_v14 }
 0x1f7   : > { %1767 = vmatpush1.bf16.msra.mxu0 %v12480_v58 }
 0x1f8   : > { %1974 = vmatpush1.bf16.msra.mxu1 %v12494_v2  ;;  %1768 = vmatprep.subr.bf16.mxu0 %v12486_v14  ;;  %v12528_v14 = vld [vmem:[%s15843_s3 + $0x274] ss:$8 sps:$4 sm:$0xff]  }
 0x1f9   : > { %1975 = vmatprep.subr.bf16.mxu1 %v12500_v35  ;;  %16013 = vst [vmem:[#allocation21_spill] sm:$0xff] %v12528_v14 }
 0x1fb   : > { %1769 = vmatpush1.bf16.msra.mxu0 %v12494_v2 }
 0x1fc   : > { %1976 = vmatpush1.bf16.msra.mxu1 %v12508_v63  ;;  %1770 = vmatprep.subr.bf16.mxu0 %v12500_v35  ;;  %v12540_v35 = vld [vmem:[%s15843_s3 + $0x270] ss:$8 sps:$4 sm:$0xff]  }
 0x1fd   : > { %1977 = vmatprep.subr.bf16.mxu1 %v12514_v46  ;;  %16016 = vst [vmem:[#allocation24_spill] sm:$0xff] %v12540_v35 }
 0x1fe   : > { %v12530_v58 = vpop.f32.mrb[0].mxu1 }
 0x1ff   : > { %16014 = vst [vmem:[#allocation22_spill] sm:$0xff] %v12530_v58  ;;  %1771 = vmatpush1.bf16.msra.mxu0 %v12508_v63  ;;  %v12533_v2 = vpop.f32.mrb[1].mxu1  ;;  %v12546_v58 = vld [vmem:[%s15843_s3 + $0x284] ss:$8 sps:$4 sm:$0xff]  }
 0x200   : > { %16015 = vst [vmem:[#allocation23_spill] sm:$0xff] %v12533_v2  ;;  %1978 = vmatpush1.bf16.msra.mxu1 %v12522_v0  ;;  %1772 = vmatprep.subr.bf16.mxu0 %v12514_v46  ;;  %v1839_v3 = vpop.f32.mrb[2].mxu1  ;;  %16017 = vst [vmem:[#allocation25_spill] sm:$0xff] %v12546_v58  ;;  %v12554_v2 = vld [vmem:[%s15843_s3 + $0x280] ss:$8 sps:$4 sm:$0xff]  }
 0x201   : > { %1979 = vmatprep.subr.bf16.mxu1 %v12528_v14  ;;  %v1840_v63 = vpop.f32.mrb[3].mxu1  ;;  %16018 = vst [vmem:[#allocation26_spill] sm:$0xff] %v12554_v2  ;;  %v12560_v3 = vld [vmem:[%s15843_s3 + $0x294] ss:$8 sps:$4 sm:$0xff]   ;;  %v11174_v46 = vld [vmem:[%s15843_s3 + $0x44] ss:$8 sps:$4 sm:$0xff]  }
 0x202   : > { %16019 = vst [vmem:[#allocation27_spill] sm:$0xff] %v12560_v3  ;;  %v12568_v63 = vld [vmem:[%s15843_s3 + $0x290] ss:$8 sps:$4 sm:$0xff]  }
 0x203   : > { %1773 = vmatpush1.bf16.msra.mxu0 %v12522_v0  ;;  %16020 = vst [vmem:[#allocation28_spill] sm:$0xff] %v12568_v63  ;;  %v11172_v0 = vld [vmem:[%s15843_s3 + $0x30] ss:$8 sps:$4 sm:$0xff]  }
 0x204   : > { %1980 = vmatpush1.bf16.msra.mxu1 %v12540_v35  ;;  %1774 = vmatprep.subr.bf16.mxu0 %v12528_v14  ;;  %v12574_v14 = vld [vmem:[%s15843_s3 + $0x2a4] ss:$8 sps:$4 sm:$0xff]  }
 0x205   : > { %1981 = vmatprep.subr.bf16.mxu1 %v12546_v58  ;;  %16021 = vst [vmem:[#allocation29_spill] sm:$0xff] %v12574_v14 }
 0x207   : > { %1775 = vmatpush1.bf16.msra.mxu0 %v12540_v35  ;;  %v12588_v35 = vld [vmem:[%s15843_s3 + $0x2b4] ss:$8 sps:$4 sm:$0xff]  }
 0x208   : > { %1982 = vmatpush1.bf16.msra.mxu1 %v12554_v2  ;;  %1776 = vmatprep.subr.bf16.mxu0 %v12546_v58  ;;  %v12582_v58 = vld [vmem:[%s15843_s3 + $0x2a0] ss:$8 sps:$4 sm:$0xff]   ;;  %16023 = vst [vmem:[#allocation31_spill] sm:$0xff] %v12588_v35 }
 0x209   : > { %1983 = vmatprep.subr.bf16.mxu1 %v12560_v3  ;;  %16022 = vst [vmem:[#allocation30_spill] sm:$0xff] %v12582_v58 }
 0x20b   : > { %1777 = vmatpush1.bf16.msra.mxu0 %v12554_v2  ;;  %v12602_v2 = vld [vmem:[%s15843_s3 + $0x2c4] ss:$8 sps:$4 sm:$0xff]  }
 0x20c   : > { %1984 = vmatpush1.bf16.msra.mxu1 %v12568_v63  ;;  %1778 = vmatprep.subr.bf16.mxu0 %v12560_v3  ;;  %v12596_v3 = vld [vmem:[%s15843_s3 + $0x2b0] ss:$8 sps:$4 sm:$0xff]   ;;  %16025 = vst [vmem:[#allocation33_spill] sm:$0xff] %v12602_v2 }
 0x20d   : > { %1985 = vmatprep.subr.bf16.mxu1 %v12574_v14  ;;  %16024 = vst [vmem:[#allocation32_spill] sm:$0xff] %v12596_v3 }
 0x20f   : > { %1779 = vmatpush1.bf16.msra.mxu0 %v12568_v63  ;;  %v12616_v63 = vld [vmem:[%s15843_s3 + $0x2d4] ss:$8 sps:$4 sm:$0xff]  }
 0x210   : > { %1986 = vmatpush1.bf16.msra.mxu1 %v12582_v58  ;;  %1780 = vmatprep.subr.bf16.mxu0 %v12574_v14  ;;  %v12610_v14 = vld [vmem:[%s15843_s3 + $0x2c0] ss:$8 sps:$4 sm:$0xff]   ;;  %16027 = vst [vmem:[#allocation35_spill] sm:$0xff] %v12616_v63 }
 0x211   : > { %1987 = vmatprep.subr.bf16.mxu1 %v12588_v35  ;;  %16026 = vst [vmem:[#allocation34_spill] sm:$0xff] %v12610_v14 }
 0x213   : > { %1781 = vmatpush1.bf16.msra.mxu0 %v12582_v58  ;;  %v12630_v58 = vld [vmem:[%s15843_s3 + $0x2e4] ss:$8 sps:$4 sm:$0xff]  }
 0x214   : > { %1988 = vmatpush1.bf16.msra.mxu1 %v12596_v3  ;;  %1782 = vmatprep.subr.bf16.mxu0 %v12588_v35  ;;  %v12624_v35 = vld [vmem:[%s15843_s3 + $0x2d0] ss:$8 sps:$4 sm:$0xff]   ;;  %16029 = vst [vmem:[#allocation37_spill] sm:$0xff] %v12630_v58 }
 0x215   : > { %1989 = vmatprep.subr.bf16.mxu1 %v12602_v2  ;;  %16028 = vst [vmem:[#allocation36_spill] sm:$0xff] %v12624_v35 }
 0x217   : > { %1783 = vmatpush1.bf16.msra.mxu0 %v12596_v3  ;;  %v12644_v3 = vld [vmem:[%s15843_s3 + $0x2f4] ss:$8 sps:$4 sm:$0xff]  }
 0x218   : > { %1990 = vmatpush1.bf16.msra.mxu1 %v12610_v14  ;;  %1784 = vmatprep.subr.bf16.mxu0 %v12602_v2  ;;  %v12638_v2 = vld [vmem:[%s15843_s3 + $0x2e0] ss:$8 sps:$4 sm:$0xff]   ;;  %16031 = vst [vmem:[#allocation39_spill] sm:$0xff] %v12644_v3 }
 0x219   : > { %1991 = vmatprep.subr.bf16.mxu1 %v12616_v63  ;;  %16030 = vst [vmem:[#allocation38_spill] sm:$0xff] %v12638_v2 }
 0x21b   : > { %1785 = vmatpush1.bf16.msra.mxu0 %v12610_v14  ;;  %v12666_v14 = vld [vmem:[%s15843_s3 + $0x304] ss:$8 sps:$4 sm:$0xff]  }
 0x21c   : > { %1992 = vmatpush1.bf16.msra.mxu1 %v12624_v35  ;;  %1786 = vmatprep.subr.bf16.mxu0 %v12616_v63  ;;  %v12652_v63 = vld [vmem:[%s15843_s3 + $0x2f0] ss:$8 sps:$4 sm:$0xff]   ;;  %16033 = vst [vmem:[#allocation41_spill] sm:$0xff] %v12666_v14 }
 0x21d   : > { %1993 = vmatprep.subr.bf16.mxu1 %v12630_v58  ;;  %16032 = vst [vmem:[#allocation40_spill] sm:$0xff] %v12652_v63 }
 0x21f   : > { %1787 = vmatpush1.bf16.msra.mxu0 %v12624_v35  ;;  %v1877_v35 = vpack.c.bf16 %v12329_v45, %v12329_v45  ;;  %v12676_v45 = vld [vmem:[%s15843_s3 + $0x300] ss:$8 sps:$4 sm:$0xff]  }
 0x220   : > { %1994 = vmatpush1.bf16.msra.mxu1 %v12638_v2  ;;  %1788 = vmatprep.subr.bf16.mxu0 %v12630_v58  ;;  %v1126_v58 = vsel %vm1121_vm1, %v12306_v16, %v12345_v49  ;;  %16034 = vst [vmem:[#allocation42_spill] sm:$0xff] %v12676_v45  ;;  %v11158_v49 = vld [vmem:[%s15843_s3 + $0x4] ss:$8 sps:$4 sm:$0xff]   ;;  %v1879_v16 = vpack.c.bf16 %v12363_v50, %v12363_v50  ;;  %v11181_v50 = vld [vmem:[%s15843_s3 + $0x60] ss:$8 sps:$4 sm:$0xff]  }
 0x221   : > { %1995 = vmatprep.subr.bf16.mxu1 %v12644_v3 }
 0x223   : > { %1789 = vmatpush1.bf16.msra.mxu0 %v12638_v2  ;;  %v2074_v2 = vsel %vm1121_vm1, %v12361_v4, %v12381_v10  ;;  %v12685_v10 = vld [vmem:[%s15843_s3 + $0x314] ss:$8 sps:$4 sm:$0xff]  }
 0x224   : > { %1996 = vmatpush1.bf16.msra.mxu1 %v12652_v63  ;;  %1790 = vmatprep.subr.bf16.mxu0 %v12644_v3  ;;  %v1132_v3 = vpack.c.bf16 %v1126_v58, %v1126_v58  ;;  %16035 = vst [vmem:[#allocation43_spill] sm:$0xff] %v12685_v10  ;;  %v11160_v58 = vld [vmem:[%s15843_s3] ss:$8 sps:$4 sm:$0xff]  }
 0x225   : > { %2006 = vmatprep.subr.bf16.mxu1 %v12666_v14  ;;  %v2080_v14 = vpack.c.bf16 %v2074_v2, %v2074_v2  ;;  %v12695_v2 = vld [vmem:[%s15843_s3 + $0x310] ss:$8 sps:$4 sm:$0xff]  }
 0x226   : > { %16037 = vst [vmem:[#allocation44_spill] sm:$0xff] %v12695_v2 }
 0x227   : > { %1998 = vmatmul.mubr.bf16.vlgmr.msra.gmra.mrb[4].mxu1 %v1877_v35  ;;  %1791 = vmatpush1.bf16.msra.mxu0 %v12652_v63  ;;  %v16036_v35 = vmov 0   ;;  %v11170_v63 = vld [vmem:[%s15843_s3 + $0x34] ss:$8 sps:$4 sm:$0xff]  }
 0x228   : > { %2007 = vmatpush1.bf16.msra.mxu1 %v12676_v45  ;;  %2089 = vmatprep.subr.bf16.mxu0 %v11158_v49  ;;  %v11168_v45 = vld [vmem:[%s15843_s3 + $0x20] ss:$8 sps:$4 sm:$0xff]  }
 0x229   : > { %2008 = vmatprep.subr.bf16.mxu1 %v12685_v10  ;;  %2038 = vmatprep.mubr.bf16.mxu1 %v16036_v35  ;;  %v11162_v10 = vld [vmem:[%s15843_s3 + $0x14] ss:$8 sps:$4 sm:$0xff]   ;;  %v11166_v35 = vld [vmem:[%s15843_s3 + $0x24] ss:$8 sps:$4 sm:$0xff]  }
 0x22a   : > { %1793 = vmatmul.mubr.bf16.vlgmr.msra.gmra.mrb[0].mxu0 %v1132_v3  ;;  %v12704_v3 = vld [vmem:[%s15843_s3 + $0x324] ss:$8 sps:$4 sm:$0xff]  }
 0x22b   : > { %2090 = vmatpush1.bf16.msra.mxu0 %v11160_v58  ;;  %2121 = vmatprep.mubr.bf16.mxu0 %v2080_v14  ;;  %16038 = vst [vmem:[#allocation45_spill] sm:$0xff] %v12704_v3  ;;  %v11164_v14 = vld [vmem:[%s15843_s3 + $0x10] ss:$8 sps:$4 sm:$0xff]  }
 0x22c   : > { %2009 = vmatpush1.bf16.msra.mxu1 %v12695_v2  ;;  %2091 = vmatprep.subr.bf16.mxu0 %v11162_v10  ;;  %v12713_v2 = vld [vmem:[%s15843_s3 + $0x320] ss:$8 sps:$4 sm:$0xff]  }
 0x22d   : > { %2010 = vmatprep.subr.bf16.mxu1 %v12704_v3  ;;  %16039 = vst [vmem:[#allocation46_spill] sm:$0xff] %v12713_v2  ;;  %v12722_v3 = vld [vmem:[%s15843_s3 + $0x334] ss:$8 sps:$4 sm:$0xff]  }
 0x22e   : > { %16040 = vst [vmem:[#allocation47_spill] sm:$0xff] %v12722_v3 }
 0x22f   : > { %2092 = vmatpush1.bf16.msra.mxu0 %v11164_v14 }
 0x230   : > { %2011 = vmatpush1.bf16.msra.mxu1 %v12713_v2  ;;  %2093 = vmatprep.subr.bf16.mxu0 %v11166_v35  ;;  %v12731_v2 = vld [vmem:[%s15843_s3 + $0x330] ss:$8 sps:$4 sm:$0xff]  }
 0x231   : > { %2012 = vmatprep.subr.bf16.mxu1 %v12722_v3  ;;  %16041 = vst [vmem:[#allocation48_spill] sm:$0xff] %v12731_v2  ;;  %v12740_v3 = vld [vmem:[%s15843_s3 + $0x344] ss:$8 sps:$4 sm:$0xff]  }
 0x232   : > { %16042 = vst [vmem:[#allocation49_spill] sm:$0xff] %v12740_v3 }
 0x233   : > { %2094 = vmatpush1.bf16.msra.mxu0 %v11168_v45 }
 0x234   : > { %2013 = vmatpush1.bf16.msra.mxu1 %v12731_v2  ;;  %2095 = vmatprep.subr.bf16.mxu0 %v11170_v63  ;;  %v12749_v2 = vld [vmem:[%s15843_s3 + $0x340] ss:$8 sps:$4 sm:$0xff]  }
 0x235   : > { %2014 = vmatprep.subr.bf16.mxu1 %v12740_v3  ;;  %16043 = vst [vmem:[#allocation50_spill] sm:$0xff] %v12749_v2  ;;  %v12758_v3 = vld [vmem:[%s15843_s3 + $0x354] ss:$8 sps:$4 sm:$0xff]  }
 0x236   : > { %16044 = vst [vmem:[#allocation51_spill] sm:$0xff] %v12758_v3 }
 0x237   : > { %2096 = vmatpush1.bf16.msra.mxu0 %v11172_v0 }
 0x238   : > { %2015 = vmatpush1.bf16.msra.mxu1 %v12749_v2  ;;  %2097 = vmatprep.subr.bf16.mxu0 %v11174_v46  ;;  %v11176_v2 = vld [vmem:[%s15843_s3 + $0x40] ss:$8 sps:$4 sm:$0xff]  }
 0x239   : > { %2016 = vmatprep.subr.bf16.mxu1 %v12758_v3  ;;  %v11178_v3 = vld [vmem:[%s15843_s3 + $0x54] ss:$8 sps:$4 sm:$0xff]  }
 0x23b   : > { %2098 = vmatpush1.bf16.msra.mxu0 %v11176_v2 }
 0x23c   : > { %2017 = vmatpush1.bf16.msra.mxu1 %v12770_v29  ;;  %2099 = vmatprep.subr.bf16.mxu0 %v11178_v3  ;;  %v11180_v29 = vld [vmem:[%s15843_s3 + $0x64] ss:$8 sps:$4 sm:$0xff]  }
 0x23d   : > { %2284 = vmatprep.subr.bf16.mxu1 %v11158_v49  ;;  %v11183_v49 = vld [vmem:[%s15843_s3 + $0x70] ss:$8 sps:$4 sm:$0xff]  }
 0x23f   : > { %9438 = vmatmul.mubr.msk.bf16.vlgmr.msra.gmra.mrb[4].mxu1 %vm1119_vm0, %v1879_v16  ;;  %2100 = vmatpush1.bf16.msra.mxu0 %v11179_v1  ;;  %v11196_v16 = vld [vmem:[%s15843_s3 + $0xe4] ss:$8 sps:$4 sm:$0xff]  }
 0x240   : > { %2285 = vmatpush1.bf16.msra.mxu1 %v11160_v58  ;;  %2316 = vmatprep.mubr.bf16.mxu1 %v2275_v40  ;;  %v11185_v58 = vld [vmem:[%s15843_s3 + $0x80] ss:$8 sps:$4 sm:$0xff]   ;;  %v2073_v40 = vsel %vm1119_vm0, %v12029_v39, %v12361_v4  ;;  %v11200_v39 = vld [vmem:[%s15843_s3 + $0x104] ss:$8 sps:$4 sm:$0xff]  }
 0x241   : > { %2101 = vmatprep.subr.bf16.mxu0 %v11180_v29  ;;  %2286 = vmatprep.subr.bf16.mxu1 %v11162_v10  ;;  %v11184_v10 = vld [vmem:[%s15843_s3 + $0x84] ss:$8 sps:$4 sm:$0xff]  }
 0x242   : > { %v16068_v4 = vld [vmem:[#allocation31_spill] sm:$0xff] }
 0x243   : > { %2102 = vmatpush1.bf16.msra.mxu0 %v11181_v50 }
 0x244   : > { %2287 = vmatpush1.bf16.msra.mxu1 %v11164_v14  ;;  %2103 = vmatprep.subr.bf16.mxu0 %v11182_v48  ;;  %v11195_v14 = vld [vmem:[%s15843_s3 + $0xd0] ss:$8 sps:$4 sm:$0xff]  }
 0x245   : > { %2288 = vmatprep.subr.bf16.mxu1 %v11166_v35  ;;  %v11186_v35 = vld [vmem:[%s15843_s3 + $0x94] ss:$8 sps:$4 sm:$0xff]  }
 0x247   : > { %2104 = vmatpush1.bf16.msra.mxu0 %v11183_v49 }
 0x248   : > { %2289 = vmatpush1.bf16.msra.mxu1 %v11168_v45  ;;  %2105 = vmatprep.subr.bf16.mxu0 %v11184_v10  ;;  %v11187_v45 = vld [vmem:[%s15843_s3 + $0x90] ss:$8 sps:$4 sm:$0xff]  }
 0x249   : > { %2290 = vmatprep.subr.bf16.mxu1 %v11170_v63  ;;  %v11188_v63 = vld [vmem:[%s15843_s3 + $0xa4] ss:$8 sps:$4 sm:$0xff]  }
 0x24b   : > { %2106 = vmatpush1.bf16.msra.mxu0 %v11185_v58 }
 0x24c   : > { %2291 = vmatpush1.bf16.msra.mxu1 %v11172_v0  ;;  %2107 = vmatprep.subr.bf16.mxu0 %v11186_v35  ;;  %v11189_v0 = vld [vmem:[%s15843_s3 + $0xa0] ss:$8 sps:$4 sm:$0xff]  }
 0x24d   : > { %2292 = vmatprep.subr.bf16.mxu1 %v11174_v46  ;;  %v11190_v46 = vld [vmem:[%s15843_s3 + $0xb4] ss:$8 sps:$4 sm:$0xff]  }
 0x24f   : > { %2108 = vmatpush1.bf16.msra.mxu0 %v11187_v45 }
 0x250   : > { %2293 = vmatpush1.bf16.msra.mxu1 %v11176_v2  ;;  %2109 = vmatprep.subr.bf16.mxu0 %v11188_v63  ;;  %v11191_v2 = vld [vmem:[%s15843_s3 + $0xb0] ss:$8 sps:$4 sm:$0xff]  }
 0x251   : > { %2294 = vmatprep.subr.bf16.mxu1 %v11178_v3  ;;  %v11192_v3 = vld [vmem:[%s15843_s3 + $0xc4] ss:$8 sps:$4 sm:$0xff]  }
 0x253   : > { %2110 = vmatpush1.bf16.msra.mxu0 %v11189_v0 }
 0x254   : > { %2295 = vmatpush1.bf16.msra.mxu1 %v11179_v1  ;;  %2111 = vmatprep.subr.bf16.mxu0 %v11190_v46  ;;  %v11193_v1 = vld [vmem:[%s15843_s3 + $0xc0] ss:$8 sps:$4 sm:$0xff]  }
 0x255   : > { %2296 = vmatprep.subr.bf16.mxu1 %v11180_v29  ;;  %v11194_v29 = vld [vmem:[%s15843_s3 + $0xd4] ss:$8 sps:$4 sm:$0xff]  }
 0x257   : > { %2112 = vmatpush1.bf16.msra.mxu0 %v11191_v2 }
 0x258   : > { %2297 = vmatpush1.bf16.msra.mxu1 %v11181_v50  ;;  %2113 = vmatprep.subr.bf16.mxu0 %v11192_v3  ;;  %v2076_v50 = vsel %vm1119_vm0, %v12107_v28, %v12403_v11  ;;  %v16073_v11 = vld [vmem:[#allocation36_spill] sm:$0xff] }
 0x259   : > { %2298 = vmatprep.subr.bf16.mxu1 %v11182_v48  ;;  %v2079_v48 = vpack.c.bf16 %v2073_v40, %v2073_v40  ;;  %v16090_v40 = vld [vmem:[#allocation51_spill] sm:$0xff] }
 0x25b   : > { %2114 = vmatpush1.bf16.msra.mxu0 %v11193_v1 }
 0x25c   : > { %2299 = vmatpush1.bf16.msra.mxu1 %v11183_v49  ;;  %2115 = vmatprep.subr.bf16.mxu0 %v11194_v29  ;;  %v2082_v49 = vpack.c.bf16 %v2076_v50, %v2076_v50  ;;  %v16091_v50 = vld [vmem:[#allocation10_spill] sm:$0xff] }
 0x25d   : > { %2300 = vmatprep.subr.bf16.mxu1 %v11184_v10 }
 0x25f   : > { %2116 = vmatpush1.bf16.msra.mxu0 %v11195_v14 }
 0x260   : > { %2301 = vmatpush1.bf16.msra.mxu1 %v11185_v58  ;;  %2117 = vmatprep.subr.bf16.mxu0 %v11196_v16  ;;  %v16079_v58 = vld [vmem:[#allocation41_spill] sm:$0xff] }
 0x261   : > { %2302 = vmatprep.subr.bf16.mxu1 %v11186_v35  ;;  %v16080_v35 = vld [vmem:[#allocation42_spill] sm:$0xff] }
 0x263   : > { %2118 = vmatpush1.bf16.msra.mxu0 %v11977_v55  ;;  %v11197_v55 = vld [vmem:[%s15843_s3 + $0xe0] ss:$8 sps:$4 sm:$0xff]  }
 0x264   : > { %2303 = vmatpush1.bf16.msra.mxu1 %v11187_v45  ;;  %2119 = vmatprep.subr.bf16.mxu0 %v11991_v17  ;;  %v11198_v17 = vld [vmem:[%s15843_s3 + $0xf4] ss:$8 sps:$4 sm:$0xff]   ;;  %v16081_v45 = vmov 0  }
 0x265   : > { %2304 = vmatprep.subr.bf16.mxu1 %v11188_v63  ;;  %v16082_v63 = vld [vmem:[#allocation43_spill] sm:$0xff] }
 0x267   : > { %2120 = vmatpush1.bf16.msra.mxu0 %v11996_v15  ;;  %v2272_v15 = vsel %vm1119_vm0, %v12008_v54, %v12432_v20  ;;  %v2068_v54 = vpop.permute.xlu0 %2067  ;;  %v16078_v20 = vld [vmem:[#allocation9_spill] sm:$0xff] }
 0x268   : > { %2305 = vmatpush1.bf16.msra.mxu1 %v11189_v0  ;;  %2130 = vmatprep.subr.bf16.mxu0 %v12002_v22  ;;  %v11199_v22 = vld [vmem:[%s15843_s3 + $0xf0] ss:$8 sps:$4 sm:$0xff]   ;;  %v2277_v28 = vpack.c.bf16 %v2272_v15, %v2272_v15  ;;  %v2083_v10 = vpack.c.bf16 %v16078_v20, %v16078_v20 }
 0x269   : > { %2306 = vmatprep.subr.bf16.mxu1 %v11190_v46  ;;  %v16083_v0 = vld [vmem:[#allocation44_spill] sm:$0xff]  ;;  %v16084_v46 = vld [vmem:[#allocation45_spill] sm:$0xff] }
 0x26a   : > { %2122 = vmatmul.mubr.bf16.vlgmr.msra.gmra.mrb[4].mxu0 %v2079_v48  ;;  %v2278_v48 = vpack.c.bf16 %v16091_v50, %v16091_v50 }
 0x26b   : > { %2131 = vmatpush1.bf16.msra.mxu0 %v12154_v23  ;;  %2162 = vmatprep.mubr.bf16.mxu0 %v2082_v49 }
 0x26c   : > { %2307 = vmatpush1.bf16.msra.mxu1 %v11191_v2  ;;  %2132 = vmatprep.subr.bf16.mxu0 %v12159_v7  ;;  %v16085_v2 = vld [vmem:[#allocation46_spill] sm:$0xff] }
 0x26d   : > { %2308 = vmatprep.subr.bf16.mxu1 %v11192_v3  ;;  %v16086_v3 = vld [vmem:[#allocation47_spill] sm:$0xff] }
 0x26f   : > { %2133 = vmatpush1.bf16.msra.mxu0 %v12171_v18 }
 0x270   : > { %2309 = vmatpush1.bf16.msra.mxu1 %v11193_v1  ;;  %2134 = vmatprep.subr.bf16.mxu0 %v12177_v31  ;;  %v16087_v1 = vld [vmem:[#allocation48_spill] sm:$0xff] }
 0x271   : > { %2310 = vmatprep.subr.bf16.mxu1 %v11194_v29  ;;  %v16088_v29 = vld [vmem:[#allocation49_spill] sm:$0xff] }
 0x273   : > { %2135 = vmatpush1.bf16.msra.mxu0 %v12184_v37 }
 0x274   : > { %2311 = vmatpush1.bf16.msra.mxu1 %v11195_v14  ;;  %2136 = vmatprep.subr.bf16.mxu0 %v12191_v5  ;;  %v16089_v14 = vld [vmem:[#allocation50_spill] sm:$0xff] }
 0x275   : > { %2312 = vmatprep.subr.bf16.mxu1 %v11196_v16  ;;  %v2071_v16 = vpop.permute.xlu0 %2070 }
 0x277   : > { %2137 = vmatpush1.bf16.msra.mxu0 %v12198_v61 }
 0x278   : > { %2313 = vmatpush1.bf16.msra.mxu1 %v11197_v55  ;;  %2138 = vmatprep.subr.bf16.mxu0 %v12205_v21  ;;  %v16092_v55 = vld [vmem:[#allocation22_spill] sm:$0xff] }
 0x279   : > { %2314 = vmatprep.subr.bf16.mxu1 %v11198_v17 }
 0x27b   : > { %2139 = vmatpush1.bf16.msra.mxu0 %v12212_v57 }
 0x27c   : > { %2315 = vmatpush1.bf16.msra.mxu1 %v11199_v22  ;;  %2140 = vmatprep.subr.bf16.mxu0 %v12219_v24  ;;  %v2085_v22 = vpack.c.bf16 %v2071_v16, %v2071_v16  ;;  %v2595_v16 = vld [vmem:[%s15845_s5 + $0x168] sm:$0xff] }
 0x27d   : > { %2325 = vmatprep.subr.bf16.mxu1 %v11200_v39  ;;  %v16093_v39 = vld [vmem:[#allocation23_spill] sm:$0xff] }
 0x27f   : > { %2317 = vmatmul.mubr.bf16.vlgmr.msra.gmra.mrb[8].mxu1 %v12311_v32  ;;  %2141 = vmatpush1.bf16.msra.mxu0 %v12226_v9  ;;  %v16061_v32 = vld [vmem:[#allocation24_spill] sm:$0xff] }
 0x280   : > { %2326 = vmatpush1.bf16.msra.mxu1 %v12154_v23  ;;  %2357 = vmatprep.mubr.bf16.mxu1 %v2277_v28  ;;  %v16046_v23 = vunpack.i.l.bf16 %v12421_v13 }
 0x281   : > { %2142 = vmatprep.subr.bf16.mxu0 %v12233_v51  ;;  %2327 = vmatprep.subr.bf16.mxu1 %v12159_v7 }
 0x282   : > { %v2078_v7 = vsel %vm1123_vm2, %v16046_v23, %v2068_v54  ;;  %v16094_v23 = vld [vmem:[#allocation52_spill] sm:$0xff] }
 0x283   : > { %2143 = vmatpush1.bf16.msra.mxu0 %v12240_v25 }
 0x284   : > { %2328 = vmatpush1.bf16.msra.mxu1 %v12171_v18  ;;  %2144 = vmatprep.subr.bf16.mxu0 %v12247_v43  ;;  %v2081_v18 = vpack.c.bf16 %v12407_v12, %v12407_v12  ;;  %v16074_v12 = vld [vmem:[#allocation37_spill] sm:$0xff] }
 0x285   : > { %2329 = vmatprep.subr.bf16.mxu1 %v12177_v31  ;;  %v2084_v31 = vpack.c.bf16 %v2078_v7, %v2078_v7 }
 0x287   : > { %2145 = vmatpush1.bf16.msra.mxu0 %v12254_v33 }
 0x288   : > { %2330 = vmatpush1.bf16.msra.mxu1 %v12184_v37  ;;  %2146 = vmatprep.subr.bf16.mxu0 %v12261_v44  ;;  %v16047_v37 = vld [vmem:[#allocation11_spill] sm:$0xff] }
 0x289   : > { %2331 = vmatprep.subr.bf16.mxu1 %v12191_v5  ;;  %v16048_v5 = vld [vmem:[#allocation12_spill] sm:$0xff] }
 0x28b   : > { %2147 = vmatpush1.bf16.msra.mxu0 %v12268_v52 }
 0x28c   : > { %2332 = vmatpush1.bf16.msra.mxu1 %v12198_v61  ;;  %2148 = vmatprep.subr.bf16.mxu0 %v12275_v36  ;;  %v16049_v61 = vld [vmem:[#allocation13_spill] sm:$0xff] }
 0x28d   : > { %2333 = vmatprep.subr.bf16.mxu1 %v12205_v21  ;;  %v16050_v21 = vld [vmem:[#allocation14_spill] sm:$0xff] }
 0x28f   : > { %2149 = vmatpush1.bf16.msra.mxu0 %v12282_v60 }
 0x290   : > { %2334 = vmatpush1.bf16.msra.mxu1 %v12212_v57  ;;  %2150 = vmatprep.subr.bf16.mxu0 %v12289_v47  ;;  %v16051_v57 = vld [vmem:[#allocation15_spill] sm:$0xff] }
 0x291   : > { %2335 = vmatprep.subr.bf16.mxu1 %v12219_v24  ;;  %v2265_v24 = vpop.permute.xlu1 %2264 }
 0x293   : > { %2151 = vmatpush1.bf16.msra.mxu0 %v12297_v26 }
 0x294   : > { %2336 = vmatpush1.bf16.msra.mxu1 %v12226_v9  ;;  %2152 = vmatprep.subr.bf16.mxu0 %v12304_v19  ;;  %v16052_v9 = vld [vmem:[#allocation16_spill] sm:$0xff] }
 0x295   : > { %2337 = vmatprep.subr.bf16.mxu1 %v12233_v51  ;;  %v16053_v51 = vunpack.i.h.bf16 %v12421_v13  ;;  %v16076_v13 = vld [vmem:[#allocation39_spill] sm:$0xff] }
 0x297   : > { %2153 = vmatpush1.bf16.msra.mxu0 %v12318_v59 }
 0x298   : > { %2338 = vmatpush1.bf16.msra.mxu1 %v12240_v25  ;;  %2154 = vmatprep.subr.bf16.mxu0 %v12325_v34  ;;  %v2274_v25 = vsel %vm1123_vm2, %v16053_v51, %v2265_v24  ;;  %v2554_v51 = vld [vmem:[%s15845_s5 + $0x20] sm:$0xff] }
 0x299   : > { %2339 = vmatprep.subr.bf16.mxu1 %v12247_v43  ;;  %v16054_v43 = vld [vmem:[#allocation17_spill] sm:$0xff] }
 0x29b   : > { %2155 = vmatpush1.bf16.msra.mxu0 %v12336_v38 }
 0x29c   : > { %2340 = vmatpush1.bf16.msra.mxu1 %v12254_v33  ;;  %2156 = vmatprep.subr.bf16.mxu0 %v12343_v62  ;;  %v16055_v33 = vld [vmem:[#allocation7_spill] sm:$0xff] }
 0x29d   : > { %2341 = vmatprep.subr.bf16.mxu1 %v12261_v44  ;;  %v16056_v44 = vld [vmem:[#allocation8_spill] sm:$0xff] }
 0x29f   : > { %2157 = vmatpush1.bf16.msra.mxu0 %v12352_v6 }
 0x2a0   : > { %2342 = vmatpush1.bf16.msra.mxu1 %v12268_v52  ;;  %2158 = vmatprep.subr.bf16.mxu0 %v12359_v41  ;;  %v2276_v52 = vpack.c.bf16 %v16056_v44, %v16056_v44  ;;  %v2555_v44 = vld [vmem:[%s15845_s5 + $0x28] sm:$0xff] }
 0x2a1   : > { %2343 = vmatprep.subr.bf16.mxu1 %v12275_v36  ;;  %v2279_v36 = vpack.c.bf16 %v2274_v25, %v2274_v25  ;;  %v2551_v25 = vld [vmem:[%s15845_s5 + $0x8] sm:$0xff] }
 0x2a3   : > { %2159 = vmatpush1.bf16.msra.mxu0 %v12370_v30 }
 0x2a4   : > { %2344 = vmatpush1.bf16.msra.mxu1 %v12282_v60  ;;  %2160 = vmatprep.subr.bf16.mxu0 %v12377_v42  ;;  %v16057_v60 = vld [vmem:[#allocation18_spill] sm:$0xff] }
 0x2a5   : > { %2345 = vmatprep.subr.bf16.mxu1 %v12289_v47  ;;  %v16058_v47 = vld [vmem:[#allocation19_spill] sm:$0xff] }
 0x2a7   : > { %2161 = vmatpush1.bf16.msra.mxu0 %v12392_v53 }
 0x2a8   : > { %2346 = vmatpush1.bf16.msra.mxu1 %v12297_v26  ;;  %2171 = vmatprep.subr.bf16.mxu0 %v12399_v27  ;;  %v16059_v26 = vld [vmem:[#allocation20_spill] sm:$0xff] }
 0x2a9   : > { %2347 = vmatprep.subr.bf16.mxu1 %v12304_v19  ;;  %v16060_v19 = vld [vmem:[#allocation21_spill] sm:$0xff] }
 0x2aa   : > { %2163 = vmatmul.mubr.bf16.vlgmr.msra.gmra.mrb[4].mxu0 %v2081_v18  ;;  %v2268_v18 = vpop.permute.xlu1 %2267 }
 0x2ab   : > { %2172 = vmatpush1.bf16.msra.mxu0 %v12415_v8  ;;  %2203 = vmatprep.mubr.bf16.mxu0 %v2084_v31 }
 0x2ac   : > { %2348 = vmatpush1.bf16.msra.mxu1 %v12318_v59  ;;  %2173 = vmatprep.subr.bf16.mxu0 %v12426_v56  ;;  %v16062_v59 = vld [vmem:[#allocation25_spill] sm:$0xff] }
 0x2ad   : > { %2349 = vmatprep.subr.bf16.mxu1 %v12325_v34  ;;  %v16063_v34 = vld [vmem:[#allocation26_spill] sm:$0xff] }
 0x2af   : > { %2174 = vmatpush1.bf16.msra.mxu0 %v16047_v37 }
 0x2b0   : > { %2350 = vmatpush1.bf16.msra.mxu1 %v12336_v38  ;;  %2175 = vmatprep.subr.bf16.mxu0 %v16048_v5  ;;  %v16064_v38 = vld [vmem:[#allocation27_spill] sm:$0xff] }
 0x2b1   : > { %2351 = vmatprep.subr.bf16.mxu1 %v12343_v62  ;;  %v16065_v62 = vld [vmem:[#allocation28_spill] sm:$0xff] }
 0x2b3   : > { %2176 = vmatpush1.bf16.msra.mxu0 %v16049_v61 }
 0x2b4   : > { %2352 = vmatpush1.bf16.msra.mxu1 %v12352_v6  ;;  %2177 = vmatprep.subr.bf16.mxu0 %v16050_v21  ;;  %v16066_v6 = vld [vmem:[#allocation29_spill] sm:$0xff] }
 0x2b5   : > { %2353 = vmatprep.subr.bf16.mxu1 %v12359_v41  ;;  %v16067_v41 = vld [vmem:[#allocation30_spill] sm:$0xff] }
 0x2b7   : > { %2178 = vmatpush1.bf16.msra.mxu0 %v16051_v57 }
 0x2b8   : > { %2354 = vmatpush1.bf16.msra.mxu1 %v12370_v30  ;;  %2179 = vmatprep.subr.bf16.mxu0 %v16052_v9  ;;  %v16069_v30 = vld [vmem:[#allocation32_spill] sm:$0xff] }
 0x2b9   : > { %2355 = vmatprep.subr.bf16.mxu1 %v12377_v42  ;;  %v16070_v42 = vld [vmem:[#allocation33_spill] sm:$0xff] }
 0x2bb   : > { %2180 = vmatpush1.bf16.msra.mxu0 %v16054_v43 }
 0x2bc   : > { %2356 = vmatpush1.bf16.msra.mxu1 %v12392_v53  ;;  %2181 = vmatprep.subr.bf16.mxu0 %v16055_v33  ;;  %v16071_v53 = vld [vmem:[#allocation34_spill] sm:$0xff] }
 0x2bd   : > { %2366 = vmatprep.subr.bf16.mxu1 %v12399_v27  ;;  %v16072_v27 = vld [vmem:[#allocation35_spill] sm:$0xff] }
 0x2bf   : > { %2358 = vmatmul.mubr.bf16.vlgmr.msra.gmra.mrb[8].mxu1 %v2276_v52  ;;  %2182 = vmatpush1.bf16.msra.mxu0 %v16057_v60  ;;  %v2558_v52 = vld [vmem:[%s15845_s5 + $0x40] sm:$0xff] }
 0x2c0   : > { %2367 = vmatpush1.bf16.msra.mxu1 %v12415_v8  ;;  %2398 = vmatprep.mubr.bf16.mxu1 %v2279_v36  ;;  %v16075_v8 = vld [vmem:[#allocation38_spill] sm:$0xff] }
 0x2c1   : > { %2183 = vmatprep.subr.bf16.mxu0 %v16058_v47  ;;  %2368 = vmatprep.subr.bf16.mxu1 %v12426_v56  ;;  %v16077_v56 = vld [vmem:[#allocation40_spill] sm:$0xff]  ;;  %v2562_v36 = vld [vmem:[%s15845_s5 + $0x60] sm:$0xff] }
 0x2c3   : > { %2184 = vmatpush1.bf16.msra.mxu0 %v16059_v26 }
 0x2c4   : > { %2369 = vmatpush1.bf16.msra.mxu1 %v16047_v37  ;;  %2185 = vmatprep.subr.bf16.mxu0 %v16060_v19 }
 0x2c5   : > { %2370 = vmatprep.subr.bf16.mxu1 %v16048_v5 }
 0x2c7   : > { %2186 = vmatpush1.bf16.msra.mxu0 %v16061_v32 }
 0x2c8   : > { %2371 = vmatpush1.bf16.msra.mxu1 %v16049_v61  ;;  %2187 = vmatprep.subr.bf16.mxu0 %v16062_v59 }
 0x2c9   : > { %2372 = vmatprep.subr.bf16.mxu1 %v16050_v21 }
 0x2cb   : > { %2188 = vmatpush1.bf16.msra.mxu0 %v16063_v34 }
 0x2cc   : > { %2373 = vmatpush1.bf16.msra.mxu1 %v16051_v57  ;;  %2189 = vmatprep.subr.bf16.mxu0 %v16064_v38  ;;  %v2280_v57 = vpack.c.bf16 %v2268_v18, %v2268_v18 }
 0x2cd   : > { %2374 = vmatprep.subr.bf16.mxu1 %v16052_v9  ;;  %v2550_v9 = vld [vmem:[%s15845_s5] sm:$0xff] }
 0x2cf   : > { %2190 = vmatpush1.bf16.msra.mxu0 %v16065_v62 }
 0x2d0   : > { %2375 = vmatpush1.bf16.msra.mxu1 %v16054_v43  ;;  %2191 = vmatprep.subr.bf16.mxu0 %v16066_v6  ;;  %v9441_v43 = vcombine.low %v2550_v9, %v2554_v51 }
 0x2d1   : > { %2376 = vmatprep.subr.bf16.mxu1 %v16055_v33  ;;  %v9442_v33 = vcombine.high %v2550_v9, %v2554_v51  ;;  %v2611_v9 = vld [vmem:[%s15845_s5 + $0x1e8] sm:$0xff] }
 0x2d3   : > { %2192 = vmatpush1.bf16.msra.mxu0 %v16067_v41 }
 0x2d4   : > { %2377 = vmatpush1.bf16.msra.mxu1 %v16057_v60  ;;  %2193 = vmatprep.subr.bf16.mxu0 %v16068_v4  ;;  %v9443_v60 = vcombine.low %v2551_v25, %v2555_v44 }
 0x2d5   : > { %2378 = vmatprep.subr.bf16.mxu1 %v16058_v47  ;;  %v9444_v47 = vcombine.high %v2551_v25, %v2555_v44  ;;  %v2614_v44 = vld [vmem:[%s15845_s5 + $0x200] sm:$0xff] }
 0x2d7   : > { %2194 = vmatpush1.bf16.msra.mxu0 %v16069_v30 }
 0x2d8   : > { %2379 = vmatpush1.bf16.msra.mxu1 %v16059_v26  ;;  %2195 = vmatprep.subr.bf16.mxu0 %v16070_v42  ;;  %v9450_v26 = vcombine.high %v2558_v52, %v2562_v36 }
 0x2d9   : > { %2380 = vmatprep.subr.bf16.mxu1 %v16060_v19  ;;  %v2559_v19 = vld [vmem:[%s15845_s5 + $0x48] sm:$0xff] }
 0x2db   : > { %2196 = vmatpush1.bf16.msra.mxu0 %v16071_v53 }
 0x2dc   : > { %2381 = vmatpush1.bf16.msra.mxu1 %v16061_v32  ;;  %2197 = vmatprep.subr.bf16.mxu0 %v16072_v27  ;;  %v2563_v32 = vld [vmem:[%s15845_s5 + $0x68] sm:$0xff] }
 0x2dd   : > { %2382 = vmatprep.subr.bf16.mxu1 %v16062_v59  ;;  %v2566_v59 = vld [vmem:[%s15845_s5 + $0x80] sm:$0xff] }
 0x2df   : > { %2198 = vmatpush1.bf16.msra.mxu0 %v16073_v11 }
 0x2e0   : > { %2383 = vmatpush1.bf16.msra.mxu1 %v16063_v34  ;;  %2199 = vmatprep.subr.bf16.mxu0 %v16074_v12  ;;  %v9452_v34 = vcombine.high %v2559_v19, %v2563_v32 }
 0x2e1   : > { %2384 = vmatprep.subr.bf16.mxu1 %v16064_v38  ;;  %v2570_v38 = vld [vmem:[%s15845_s5 + $0xa0] sm:$0xff] }
 0x2e3   : > { %2200 = vmatpush1.bf16.msra.mxu0 %v16075_v8 }
 0x2e4   : > { %2385 = vmatpush1.bf16.msra.mxu1 %v16065_v62  ;;  %2201 = vmatprep.subr.bf16.mxu0 %v16076_v13  ;;  %v2567_v62 = vld [vmem:[%s15845_s5 + $0x88] sm:$0xff] }
 0x2e5   : > { %2386 = vmatprep.subr.bf16.mxu1 %v16066_v6  ;;  %v2571_v6 = vld [vmem:[%s15845_s5 + $0xa8] sm:$0xff] }
 0x2e7   : > { %2202 = vmatpush1.bf16.msra.mxu0 %v16077_v56 }
 0x2e8   : > { %2387 = vmatpush1.bf16.msra.mxu1 %v16067_v41  ;;  %2212 = vmatprep.subr.bf16.mxu0 %v16079_v58  ;;  %v9449_v41 = vcombine.low %v2558_v52, %v2562_v36  ;;  %v2618_v52 = vld [vmem:[%s15845_s5 + $0x220] sm:$0xff]  ;;  %v2615_v36 = vld [vmem:[%s15845_s5 + $0x208] sm:$0xff] }
 0x2e9   : > { %2388 = vmatprep.subr.bf16.mxu1 %v16068_v4  ;;  %v9451_v4 = vcombine.low %v2559_v19, %v2563_v32  ;;  %v9506_v19 = vcombine.high %v2614_v44, %v2618_v52 }
 0x2ea   : > { %2204 = vmatmul.mubr.bf16.vlgmr.msra.gmra.mrb[4].mxu0 %v2083_v10  ;;  %v2582_v10 = vld [vmem:[%s15845_s5 + $0x100] sm:$0xff] }
 0x2eb   : > { %2213 = vmatpush1.bf16.msra.mxu0 %v16080_v35  ;;  %2244 = vmatprep.mubr.bf16.mxu0 %v16081_v45 }
 0x2ec   : > { %2389 = vmatpush1.bf16.msra.mxu1 %v16069_v30  ;;  %2214 = vmatprep.subr.bf16.mxu0 %v16082_v63  ;;  %v9458_v30 = vcombine.high %v2566_v59, %v2570_v38 }
 0x2ed   : > { %2390 = vmatprep.subr.bf16.mxu1 %v16070_v42  ;;  %v9460_v42 = vcombine.high %v2567_v62, %v2571_v6 }
 0x2ef   : > { %2215 = vmatpush1.bf16.msra.mxu0 %v16083_v0 }
 0x2f0   : > { %2391 = vmatpush1.bf16.msra.mxu1 %v16071_v53  ;;  %2216 = vmatprep.subr.bf16.mxu0 %v16084_v46  ;;  %v2574_v53 = vld [vmem:[%s15845_s5 + $0xc0] sm:$0xff] }
 0x2f1   : > { %2392 = vmatprep.subr.bf16.mxu1 %v16072_v27  ;;  %v2578_v27 = vld [vmem:[%s15845_s5 + $0xe0] sm:$0xff] }
 0x2f3   : > { %2217 = vmatpush1.bf16.msra.mxu0 %v16085_v2 }
 0x2f4   : > { %2393 = vmatpush1.bf16.msra.mxu1 %v16073_v11  ;;  %2218 = vmatprep.subr.bf16.mxu0 %v16086_v3  ;;  %v2575_v11 = vld [vmem:[%s15845_s5 + $0xc8] sm:$0xff] }
 0x2f5   : > { %2394 = vmatprep.subr.bf16.mxu1 %v16074_v12  ;;  %v2579_v12 = vld [vmem:[%s15845_s5 + $0xe8] sm:$0xff] }
 0x2f6   : > { %v9468_v20 = vcombine.high %v2575_v11, %v2579_v12 }
 0x2f7   : > { %2219 = vmatpush1.bf16.msra.mxu0 %v16087_v1 }
 0x2f8   : > { %2395 = vmatpush1.bf16.msra.mxu1 %v16075_v8  ;;  %2220 = vmatprep.subr.bf16.mxu0 %v16088_v29  ;;  %v9457_v8 = vcombine.low %v2566_v59, %v2570_v38  ;;  %v2622_v59 = vld [vmem:[%s15845_s5 + $0x240] sm:$0xff]  ;;  %v2623_v38 = vld [vmem:[%s15845_s5 + $0x248] sm:$0xff] }
 0x2f9   : > { %2396 = vmatprep.subr.bf16.mxu1 %v16076_v13  ;;  %v9459_v13 = vcombine.low %v2567_v62, %v2571_v6  ;;  %v2627_v62 = vld [vmem:[%s15845_s5 + $0x268] sm:$0xff]  ;;  %v9505_v6 = vcombine.low %v2614_v44, %v2618_v52 }
 0x2fb   : > { %2221 = vmatpush1.bf16.msra.mxu0 %v16089_v14 }
 0x2fc   : > { %2397 = vmatpush1.bf16.msra.mxu1 %v16077_v56  ;;  %2222 = vmatprep.subr.bf16.mxu0 %v16090_v40  ;;  %v9466_v56 = vcombine.high %v2574_v53, %v2578_v27 }
 0x2fd   : > { %v1794_v49 = vpop.f32.mrb[0].mxu0  ;;  %2407 = vmatprep.subr.bf16.mxu1 %v16079_v58  ;;  %v2586_v58 = vld [vmem:[%s15845_s5 + $0x120] sm:$0xff] }
 0x2fe   : > { %v13013_v17 = vadd.f32 %v16092_v55, %v1794_v49  ;;  %v1796_v15 = vpop.f32.mrb[1].mxu0  ;;  %v2598_v55 = vld [vmem:[%s15845_s5 + $0x180] sm:$0xff] }
 0x2ff   : > { %v13016_v28 = vadd.f32 %v16093_v39, %v1796_v15  ;;  %2399 = vmatmul.mubr.bf16.vlgmr.msra.gmra.mrb[8].mxu1 %v2278_v48  ;;  %v1798_v54 = vpop.f32.mrb[2].mxu0  ;;  %2223 = vmatpush1.bf16.msra.mxu0 %v16094_v23  ;;  %v2602_v15 = vld [vmem:[%s15845_s5 + $0x1a0] sm:$0xff]  ;;  %v2603_v39 = vld [vmem:[%s15845_s5 + $0x1a8] sm:$0xff] }
 0x300   : > { %2408 = vmatpush1.bf16.msra.mxu1 %v16080_v35  ;;  %v1799_v7 = vpop.f32.mrb[3].mxu0  ;;  %2439 = vmatprep.mubr.bf16.mxu1 %v16081_v45  ;;  %v2583_v35 = vld [vmem:[%s15845_s5 + $0x108] sm:$0xff]  ;;  %v9489_v51 = vcombine.low %v2598_v55, %v2602_v15 }
 0x301   : > { %2409 = vmatprep.subr.bf16.mxu1 %v16082_v63  ;;  %6048 = vmatprep.subr.bf16.mxu0 %v9442_v33  ;;  %v2587_v63 = vld [vmem:[%s15845_s5 + $0x128] sm:$0xff]  ;;  %v9490_v7 = vcombine.high %v2598_v55, %v2602_v15  ;;  %v2658_v55 = vld [vmem:[%s15845_s5 + $0x360] sm:$0xff] }
 0x302   : > { %9439 = vmatmul.mubr.msk.bf16.vlgmr.msra.gmra.mrb[4].mxu0 %vm1119_vm0, %v2085_v22  ;;  %v9475_v50 = vcombine.low %v2583_v35, %v2587_v63  ;;  %v2599_v22 = vld [vmem:[%s15845_s5 + $0x188] sm:$0xff] }
 0x303   : > { %6049 = vmatpush1.bf16.msra.mxu0 %v9441_v43  ;;  %v9492_v18 = vcombine.high %v2599_v22, %v2603_v39  ;;  %v9491_v25 = vcombine.low %v2599_v22, %v2603_v39  ;;  %v2655_v15 = vld [vmem:[%s15845_s5 + $0x348] sm:$0xff] }
 0x304   : > { %2410 = vmatpush1.bf16.msra.mxu1 %v16083_v0  ;;  %6050 = vmatprep.subr.bf16.mxu0 %v9450_v26  ;;  %v9465_v0 = vcombine.low %v2574_v53, %v2578_v27  ;;  %v2634_v53 = vld [vmem:[%s15845_s5 + $0x2a0] sm:$0xff]  ;;  %v2631_v27 = vld [vmem:[%s15845_s5 + $0x288] sm:$0xff] }
 0x305   : > { %2411 = vmatprep.subr.bf16.mxu1 %v16084_v46  ;;  %v9467_v46 = vcombine.low %v2575_v11, %v2579_v12  ;;  %v2635_v11 = vld [vmem:[%s15845_s5 + $0x2a8] sm:$0xff] }
 0x306   : > { %v2659_v22 = vld [vmem:[%s15845_s5 + $0x368] sm:$0xff] }
 0x307   : > { %6051 = vmatpush1.bf16.msra.mxu0 %v9449_v41 }
 0x308   : > { %2412 = vmatpush1.bf16.msra.mxu1 %v16085_v2  ;;  %6052 = vmatprep.subr.bf16.mxu0 %v9458_v30  ;;  %v9474_v2 = vcombine.high %v2582_v10, %v2586_v58  ;;  %v9516_v30 = vcombine.high %v2623_v38, %v2627_v62 }
 0x309   : > { %2413 = vmatprep.subr.bf16.mxu1 %v16086_v3  ;;  %v9476_v3 = vcombine.high %v2583_v35, %v2587_v63  ;;  %v2643_v35 = vld [vmem:[%s15845_s5 + $0x2e8] sm:$0xff] }
 0x30b   : > { %6053 = vmatpush1.bf16.msra.mxu0 %v9457_v8  ;;  %v9515_v8 = vcombine.low %v2623_v38, %v2627_v62  ;;  %v16095_v38 = vld [vmem:[#allocation5_spill] sm:$0xff] }
 0x30c   : > { %2414 = vmatpush1.bf16.msra.mxu1 %v16087_v1  ;;  %6054 = vmatprep.subr.bf16.mxu0 %v9466_v56  ;;  %v2590_v1 = vld [vmem:[%s15845_s5 + $0x140] sm:$0xff]  ;;  %v9524_v56 = vcombine.high %v2631_v27, %v2635_v11 }
 0x30d   : > { %2415 = vmatprep.subr.bf16.mxu1 %v16088_v29  ;;  %v2594_v29 = vld [vmem:[%s15845_s5 + $0x160] sm:$0xff] }
 0x30e   : > { %v9482_v48 = vcombine.high %v2590_v1, %v2594_v29  ;;  %v9481_v54 = vcombine.low %v2590_v1, %v2594_v29  ;;  %v2650_v1 = vld [vmem:[%s15845_s5 + $0x320] sm:$0xff]  ;;  %v2647_v29 = vld [vmem:[%s15845_s5 + $0x308] sm:$0xff] }
 0x30f   : > { %6055 = vmatpush1.bf16.msra.mxu0 %v9465_v0  ;;  %v9523_v0 = vcombine.low %v2631_v27, %v2635_v11  ;;  %v2683_v11 = vld [vmem:[%s15845_s5 + $0x428] sm:$0xff] }
 0x310   : > { %2416 = vmatpush1.bf16.msra.mxu1 %v16089_v14  ;;  %v2591_v14 = vld [vmem:[%s15845_s5 + $0x148] sm:$0xff]  ;;  %6056 = vmatprep.subr.bf16.mxu0 %v9474_v2 }
 0x311   : > { %2417 = vmatprep.subr.bf16.mxu1 %v16090_v40  ;;  %v9473_v40 = vcombine.low %v2582_v10, %v2586_v58  ;;  %v9484_v49 = vcombine.high %v2591_v14, %v2595_v16  ;;  %v2642_v10 = vld [vmem:[%s15845_s5 + $0x2e0] sm:$0xff]  ;;  %v2639_v58 = vld [vmem:[%s15845_s5 + $0x2c8] sm:$0xff] }
 0x312   : > { %v13031_v31 = vpop.f32.mrb[4].mxu1  ;;  %v9532_v2 = vcombine.high %v2639_v58, %v2643_v35 }
 0x313   : > { %v2047_v37 = vmax.f32 %v13013_v17, %v13031_v31  ;;  %v13035_v5 = vpop.f32.mrb[5].mxu1  ;;  %6057 = vmatpush1.bf16.msra.mxu0 %v9473_v40  ;;  %v9531_v40 = vcombine.low %v2639_v58, %v2643_v35  ;;  %v2671_v17 = vld [vmem:[%s15845_s5 + $0x3c8] sm:$0xff]  ;;  %v1092_v31 = vld [vmem:[%s15844_s4] sm:$0x3] }
 0x314   : > { %v2048_v61 = vmax.f32 %v13016_v28, %v13035_v5  ;;  %v2044_v21 = vpop.f32.mrb[6].mxu1  ;;  %2418 = vmatpush1.bf16.msra.mxu1 %v16094_v23  ;;  %6058 = vmatprep.subr.bf16.mxu0 %v9482_v48  ;;  %v9483_v23 = vcombine.low %v2591_v14, %v2595_v16  ;;  %v2651_v14 = vld [vmem:[%s15845_s5 + $0x328] sm:$0xff]  ;;  %v2454_v62 = vrot.slane %v1092_v31, %v16095_v38 }
 0x315   : > { %v2045_v24 = vpop.f32.mrb[7].mxu1  ;;  %6253 = vmatprep.subr.bf16.mxu1 %v9444_v47  ;;  %v2606_v21 = vld [vmem:[%s15845_s5 + $0x1c0] sm:$0xff]  ;;  %v9540_v48 = vcombine.high %v2647_v29, %v2651_v14 }
 0x316   : > { %v2607_v24 = vld [vmem:[%s15845_s5 + $0x1c8] sm:$0xff] }
 0x317   : > { %9440 = vmatmul.mubr.msk.bf16.vlgmr.msra.gmra.mrb[8].mxu1 %vm1119_vm0, %v2280_v57  ;;  %v2610_v57 = vld [vmem:[%s15845_s5 + $0x1e0] sm:$0xff]  ;;  %6059 = vmatpush1.bf16.msra.mxu0 %v9481_v54  ;;  %v9500_v33 = vcombine.high %v2607_v24, %v2611_v9  ;;  %v9499_v26 = vcombine.low %v2607_v24, %v2611_v9  ;;  %v9539_v54 = vcombine.low %v2647_v29, %v2651_v14  ;;  %v2667_v24 = vld [vmem:[%s15845_s5 + $0x3a8] sm:$0xff] }
 0x318   : > { %6254 = vmatpush1.bf16.msra.mxu1 %v9443_v60  ;;  %6060 = vmatprep.subr.bf16.mxu0 %v9490_v7  ;;  %v9498_v43 = vcombine.high %v2606_v21, %v2610_v57  ;;  %v2619_v60 = vld [vmem:[%s15845_s5 + $0x228] sm:$0xff]  ;;  %v9497_v47 = vcombine.low %v2606_v21, %v2610_v57  ;;  %v9548_v7 = vcombine.high %v2655_v15, %v2659_v22  ;;  %v2666_v21 = vld [vmem:[%s15845_s5 + $0x3a0] sm:$0xff] }
 0x319   : > { %6255 = vmatprep.subr.bf16.mxu1 %v9452_v34  ;;  %v9508_v32 = vcombine.high %v2615_v36, %v2619_v60  ;;  %v2626_v34 = vld [vmem:[%s15845_s5 + $0x260] sm:$0xff]  ;;  %v9507_v41 = vcombine.low %v2615_v36, %v2619_v60  ;;  %v2663_v57 = vld [vmem:[%s15845_s5 + $0x388] sm:$0xff] }
 0x31a   : > { %v9513_v12 = vcombine.low %v2622_v59, %v2626_v34  ;;  %v9555_v44 = vcombine.low %v2663_v57, %v2667_v24 }
 0x31b   : > { %6061 = vmatpush1.bf16.msra.mxu0 %v9489_v51  ;;  %v9547_v51 = vcombine.low %v2655_v15, %v2659_v22 }
 0x31c   : > { %6256 = vmatpush1.bf16.msra.mxu1 %v9451_v4  ;;  %6062 = vmatprep.subr.bf16.mxu0 %v9498_v43  ;;  %v9514_v4 = vcombine.high %v2622_v59, %v2626_v34  ;;  %v9556_v43 = vcombine.high %v2663_v57, %v2667_v24  ;;  %v2674_v59 = vld [vmem:[%s15845_s5 + $0x3e0] sm:$0xff] }
 0x31d   : > { %6257 = vmatprep.subr.bf16.mxu1 %v9460_v42  ;;  %v2630_v42 = vld [vmem:[%s15845_s5 + $0x280] sm:$0xff] }
 0x31e   : > { %v9521_v63 = vcombine.low %v2630_v42, %v2634_v53  ;;  %v2694_v24 = vld [vmem:[%s15845_s5 + $0x480] sm:$0xff] }
 0x31f   : > { %6063 = vmatpush1.bf16.msra.mxu0 %v9497_v47 }
 0x320   : > { %6258 = vmatpush1.bf16.msra.mxu1 %v9459_v13  ;;  %6064 = vmatprep.subr.bf16.mxu0 %v9506_v19  ;;  %v9522_v13 = vcombine.high %v2630_v42, %v2634_v53  ;;  %v16096_v42 = vld [vmem:[#allocation3_spill] sm:$0xff] }
 0x321   : > { %6259 = vmatprep.subr.bf16.mxu1 %v9468_v20  ;;  %v2638_v20 = vld [vmem:[%s15845_s5 + $0x2c0] sm:$0xff]  ;;  %v2458_v53 = vrot.slane %v1092_v31, %v16096_v42 }
 0x322   : > { %v9529_v16 = vcombine.low %v2638_v20, %v2642_v10 }
 0x323   : > { %6065 = vmatpush1.bf16.msra.mxu0 %v9505_v6  ;;  %v2678_v6 = vld [vmem:[%s15845_s5 + $0x400] sm:$0xff] }
 0x324   : > { %6260 = vmatpush1.bf16.msra.mxu1 %v9467_v46  ;;  %6066 = vmatprep.subr.bf16.mxu0 %v9514_v4  ;;  %v9530_v46 = vcombine.high %v2638_v20, %v2642_v10  ;;  %v2679_v4 = vld [vmem:[%s15845_s5 + $0x408] sm:$0xff] }
 0x325   : > { %6261 = vmatprep.subr.bf16.mxu1 %v9476_v3  ;;  %v2646_v3 = vld [vmem:[%s15845_s5 + $0x300] sm:$0xff]  ;;  %v9572_v20 = vcombine.high %v2679_v4, %v2683_v11 }
 0x326   : > { %v9537_v39 = vcombine.low %v2646_v3, %v2650_v1 }
 0x327   : > { %6067 = vmatpush1.bf16.msra.mxu0 %v9513_v12 }
 0x328   : > { %6262 = vmatpush1.bf16.msra.mxu1 %v9475_v50  ;;  %6068 = vmatprep.subr.bf16.mxu0 %v9522_v13  ;;  %v9538_v50 = vcombine.high %v2646_v3, %v2650_v1 }
 0x329   : > { %6263 = vmatprep.subr.bf16.mxu1 %v9484_v49  ;;  %v2654_v49 = vld [vmem:[%s15845_s5 + $0x340] sm:$0xff] }
 0x32a   : > { %v9545_v9 = vcombine.low %v2654_v49, %v2658_v55 }
 0x32b   : > { %6069 = vmatpush1.bf16.msra.mxu0 %v9521_v63 }
 0x32c   : > { %6264 = vmatpush1.bf16.msra.mxu1 %v9483_v23  ;;  %6070 = vmatprep.subr.bf16.mxu0 %v9530_v46  ;;  %v9546_v23 = vcombine.high %v2654_v49, %v2658_v55 }
 0x32d   : > { %6265 = vmatprep.subr.bf16.mxu1 %v9492_v18  ;;  %v2662_v18 = vld [vmem:[%s15845_s5 + $0x380] sm:$0xff] }
 0x32f   : > { %6071 = vmatpush1.bf16.msra.mxu0 %v9529_v16 }
 0x330   : > { %6266 = vmatpush1.bf16.msra.mxu1 %v9491_v25  ;;  %6072 = vmatprep.subr.bf16.mxu0 %v9538_v50  ;;  %v9554_v25 = vcombine.high %v2662_v18, %v2666_v21 }
 0x331   : > { %6267 = vmatprep.subr.bf16.mxu1 %v9500_v33  ;;  %v9553_v33 = vcombine.low %v2662_v18, %v2666_v21  ;;  %v2691_v18 = vld [vmem:[%s15845_s5 + $0x468] sm:$0xff] }
 0x333   : > { %6073 = vmatpush1.bf16.msra.mxu0 %v9537_v39  ;;  %v2686_v39 = vld [vmem:[%s15845_s5 + $0x440] sm:$0xff] }
 0x334   : > { %6268 = vmatpush1.bf16.msra.mxu1 %v9499_v26  ;;  %6074 = vmatprep.subr.bf16.mxu0 %v9546_v23  ;;  %v2690_v23 = vld [vmem:[%s15845_s5 + $0x460] sm:$0xff] }
 0x335   : > { %6269 = vmatprep.subr.bf16.mxu1 %v9508_v32  ;;  %v2670_v32 = vld [vmem:[%s15845_s5 + $0x3c0] sm:$0xff] }
 0x336   : > { %v9562_v28 = vcombine.high %v2670_v32, %v2674_v59  ;;  %v9561_v5 = vcombine.low %v2670_v32, %v2674_v59  ;;  %v2703_v32 = vld [vmem:[%s15845_s5 + $0x4c8] sm:$0xff] }
 0x337   : > { %6075 = vmatpush1.bf16.msra.mxu0 %v9545_v9  ;;  %v9578_v9 = vcombine.high %v2686_v39, %v2690_v23  ;;  %v2707_v59 = vld [vmem:[%s15845_s5 + $0x4e8] sm:$0xff] }
 0x338   : > { %6270 = vmatpush1.bf16.msra.mxu1 %v9507_v41  ;;  %6076 = vmatprep.subr.bf16.mxu0 %v9554_v25  ;;  %v2682_v41 = vld [vmem:[%s15845_s5 + $0x420] sm:$0xff] }
 0x339   : > { %6271 = vmatprep.subr.bf16.mxu1 %v9516_v30  ;;  %v9570_v27 = vcombine.high %v2678_v6, %v2682_v41  ;;  %v9569_v13 = vcombine.low %v2678_v6, %v2682_v41  ;;  %v2698_v25 = vld [vmem:[%s15845_s5 + $0x4a0] sm:$0xff]  ;;  %v9595_v41 = vcombine.low %v2703_v32, %v2707_v59 }
 0x33b   : > { %6077 = vmatpush1.bf16.msra.mxu0 %v9553_v33  ;;  %v2699_v33 = vld [vmem:[%s15845_s5 + $0x4a8] sm:$0xff] }
 0x33c   : > { %6272 = vmatpush1.bf16.msra.mxu1 %v9515_v8  ;;  %6078 = vmatprep.subr.bf16.mxu0 %v9562_v28 }
 0x33d   : > { %6273 = vmatprep.subr.bf16.mxu1 %v9524_v56  ;;  %v9571_v56 = vcombine.low %v2679_v4, %v2683_v11  ;;  %v2719_v11 = vld [vmem:[%s15845_s5 + $0x548] sm:$0xff] }
 0x33f   : > { %6079 = vmatpush1.bf16.msra.mxu0 %v9561_v5  ;;  %v2710_v5 = vld [vmem:[%s15845_s5 + $0x500] sm:$0xff] }
 0x340   : > { %6274 = vmatpush1.bf16.msra.mxu1 %v9523_v0  ;;  %6089 = vmatprep.subr.bf16.mxu0 %v9570_v27  ;;  %v2722_v27 = vld [vmem:[%s15845_s5 + $0x560] sm:$0xff] }
 0x341   : > { %6275 = vmatprep.subr.bf16.mxu1 %v9532_v2 }
 0x344   : > { %6276 = vmatpush1.bf16.msra.mxu1 %v9531_v40 }
 0x345   : > { %6277 = vmatprep.subr.bf16.mxu1 %v9540_v48 }
 0x348   : > { %6278 = vmatpush1.bf16.msra.mxu1 %v9539_v54 }
 0x349   : > { %6279 = vmatprep.subr.bf16.mxu1 %v9548_v7  ;;  %v2687_v7 = vld [vmem:[%s15845_s5 + $0x448] sm:$0xff] }
 0x34c   : > { %6280 = vmatpush1.bf16.msra.mxu1 %v9547_v51  ;;  %v9580_v51 = vcombine.high %v2687_v7, %v2691_v18 }
 0x34d   : > { %6281 = vmatprep.subr.bf16.mxu1 %v9556_v43  ;;  %v2695_v43 = vld [vmem:[%s15845_s5 + $0x488] sm:$0xff] }
 0x34e   : > { %v9587_v31 = vcombine.low %v2695_v43, %v2699_v33 }
 0x350   : > { %6282 = vmatpush1.bf16.msra.mxu1 %v9555_v44 }
 0x3d5   : > { %v2246_v52 = vpop.f32.mrb[4].mxu0 }
 0x3d6   : > { %v2253_v36 = vmax.f32 %v2047_v37, %v2246_v52  ;;  %v2248_v60 = vpop.f32.mrb[5].mxu0  ;;  %v2675_v37 = vld [vmem:[%s15845_s5 + $0x3e8] sm:$0xff]  ;;  %v9577_v52 = vcombine.low %v2686_v39, %v2690_v23  ;;  %v2742_v39 = vld [vmem:[%s15845_s5 + $0x600] sm:$0xff] }
 0x3d7   : > { %v2254_v47 = vmax.f32 %v2048_v61, %v2248_v60  ;;  %v2250_v26 = vpop.f32.mrb[6].mxu0  ;;  %v9563_v61 = vcombine.low %v2671_v17, %v2675_v37  ;;  %v9564_v34 = vcombine.high %v2671_v17, %v2675_v37  ;;  %v9586_v60 = vcombine.high %v2694_v24, %v2698_v25  ;;  %v2743_v23 = vld [vmem:[%s15845_s5 + $0x608] sm:$0xff] }
 0x3d8   : > { %v2251_v19 = vpop.f32.mrb[7].mxu0  ;;  %v2702_v26 = vld [vmem:[%s15845_s5 + $0x4c0] sm:$0xff]  ;;  %v9585_v17 = vcombine.low %v2694_v24, %v2698_v25  ;;  %v9596_v37 = vcombine.high %v2703_v32, %v2707_v59  ;;  %v2759_v59 = vld [vmem:[%s15845_s5 + $0x688] sm:$0xff] }
 0x3d9   : > { %6283 = vmatprep.subr.bf16.mxu1 %v9564_v34  ;;  %v2706_v19 = vld [vmem:[%s15845_s5 + $0x4e0] sm:$0xff]  ;;  %v2711_v34 = vld [vmem:[%s15845_s5 + $0x508] sm:$0xff] }
 0x3da   : > { %6284 = vmatpush1.bf16.msra.mxu1 %v9563_v61  ;;  %v9594_v28 = vcombine.high %v2702_v26, %v2706_v19  ;;  %v2714_v61 = vld [vmem:[%s15845_s5 + $0x520] sm:$0xff]  ;;  %v9593_v6 = vcombine.low %v2702_v26, %v2706_v19 }
 0x3db   : > { %6294 = vmatprep.subr.bf16.mxu1 %v9572_v20  ;;  %v9602_v4 = vcombine.high %v2710_v5, %v2714_v61  ;;  %v2750_v25 = vld [vmem:[%s15845_s5 + $0x640] sm:$0xff] }
 0x3dc   : > { %v2758_v19 = vld [vmem:[%s15845_s5 + $0x680] sm:$0xff] }
 0x3dd   : > { %v2762_v32 = vld [vmem:[%s15845_s5 + $0x6a0] sm:$0xff] }
 0x3ea   : > { %v2441_v30 = vpop.f32.mrb[8].mxu1 }
 0x3eb   : > { %v2448_v12 = vmax.f32 %v2253_v36, %v2441_v30  ;;  %v2443_v8 = vpop.f32.mrb[9].mxu1  ;;  %v9579_v36 = vcombine.low %v2687_v7, %v2691_v18  ;;  %v2747_v7 = vld [vmem:[%s15845_s5 + $0x628] sm:$0xff] }
 0x3ec   : > { %v2449_v10 = vmax.f32 %v2254_v47, %v2443_v8  ;;  %v2445_v58 = vpop.f32.mrb[10].mxu1  ;;  %v9588_v47 = vcombine.high %v2695_v43, %v2699_v33  ;;  %v9601_v8 = vcombine.low %v2710_v5, %v2714_v61  ;;  %v2754_v43 = vld [vmem:[%s15845_s5 + $0x660] sm:$0xff]  ;;  %v2751_v33 = vld [vmem:[%s15845_s5 + $0x648] sm:$0xff] }
 0x3ed   : > { %v2461_v35 = vadd.f32 %v2454_v62, %v2448_v12  ;;  %v2446_v63 = vpop.f32.mrb[11].mxu1  ;;  %v2715_v62 = vld [vmem:[%s15845_s5 + $0x528] sm:$0xff]  ;;  %v2730_v58 = vld [vmem:[%s15845_s5 + $0x5a0] sm:$0xff] }
 0x3ee   : > { %v2462_v0 = vadd.f32 %v2458_v53, %v2449_v10  ;;  %v9604_v30 = vcombine.high %v2711_v34, %v2715_v62  ;;  %v2718_v53 = vld [vmem:[%s15845_s5 + $0x540] sm:$0xff]  ;;  %v2723_v12 = vld [vmem:[%s15845_s5 + $0x568] sm:$0xff] }
 0x3ef   : > { %v13256_v46 = vmax.f32 %v2461_v35, 0.0  ;;  %v9612_v20 = vcombine.high %v2719_v11, %v2723_v12  ;;  %v2726_v10 = vld [vmem:[%s15845_s5 + $0x580] sm:$0xff]  ;;  %v2727_v35 = vld [vmem:[%s15845_s5 + $0x588] sm:$0xff] }
 0x3f0   : > { %v13258_v2 = vmax.f32 %v2462_v0, 0.0  ;;  %v2731_v63 = vld [vmem:[%s15845_s5 + $0x5a8] sm:$0xff]  ;;  %v9609_v0 = vcombine.low %v2718_v53, %v2722_v27  ;;  %v2766_v61 = vld [vmem:[%s15845_s5 + $0x6c0] sm:$0xff] }
 0x3f1   : > { %v2467_v3 = vrot.slane %v13256_v46, 1  ;;  %v2480_v1 = vrot.slane %v13256_v46, 3  ;;  %v2493_v40 = vrot.slane %v13256_v46, 5  ;;  %v2476_v48 = vrot.slane %v13256_v46, 2 }
 0x3f2   : > { %v2468_v29 = vrot.slane %v13258_v2, 1  ;;  %v2481_v14 = vrot.slane %v13258_v2, 3  ;;  %v2494_v50 = vrot.slane %v13258_v2, 5  ;;  %v2508_v15 = vrot.slane %v13256_v46, %v16095_v38 }
 0x3f3   : > { %2469 = vrot.lane.b32.xlu0 %v2467_v3, %s11217_s30  ;;  %v2520_v54 = vrot.slane %v2476_v48, %v16095_v38  ;;  %v9611_v3 = vcombine.low %v2719_v11, %v2723_v12  ;;  %v9617_v48 = vcombine.low %v2726_v10, %v2730_v58  ;;  %v2778_v11 = vld [vmem:[%s15845_s5 + $0x720] sm:$0xff]  ;;  %v2775_v12 = vld [vmem:[%s15845_s5 + $0x708] sm:$0xff] }
 0x3f4   : > { %2471 = vrot.lane.b32.xlu1 %v2468_v29, %s11217_s30  ;;  %v10560_v16 = vpack.i.bf16 %v2481_v14, %v2480_v1  ;;  %v13295_v57 = vpack.c.bf16 %v2508_v15, %v2508_v15  ;;  %v9618_v1 = vcombine.high %v2726_v10, %v2730_v58  ;;  %v9620_v29 = vcombine.high %v2727_v35, %v2731_v63  ;;  %v2734_v14 = vld [vmem:[%s15845_s5 + $0x5c0] sm:$0xff] }
 0x3f5   : > { %v13313_v44 = vpack.c.bf16 %v2520_v54, %v2520_v54  ;;  %v2746_v54 = vld [vmem:[%s15845_s5 + $0x620] sm:$0xff] }
 0x3f6   : > { %v2782_v58 = vld [vmem:[%s15845_s5 + $0x740] sm:$0xff] }
 0x3f7   : > { %10561 = vrot.lane.b32.xlu0 %v10560_v16, %s11217_s30  ;;  %v2738_v16 = vld [vmem:[%s15845_s5 + $0x5e0] sm:$0xff] }
 0x3f8   : > { %2495 = vrot.lane.b32.xlu1 %v2493_v40, %s11217_s30  ;;  %v2735_v40 = vld [vmem:[%s15845_s5 + $0x5c8] sm:$0xff]  ;;  %v9626_v15 = vcombine.high %v2734_v14, %v2738_v16  ;;  %v9625_v18 = vcombine.low %v2734_v14, %v2738_v16  ;;  %v2790_v16 = vld [vmem:[%s15845_s5 + $0x780] sm:$0xff] }
 0x3fb   : > { %2497 = vrot.lane.b32.xlu0 %v2494_v50, %s11217_s30  ;;  %v2739_v50 = vld [vmem:[%s15845_s5 + $0x5e8] sm:$0xff] }
 0x3fc   : > { %v9627_v24 = vcombine.low %v2735_v40, %v2739_v50 }
 0x465   : > { %v13272_v49 = vpop.permute.xlu0 %2469 }
 0x466   : > { %v2502_v55 = vsel %vm1121_vm1, %v13258_v2, %v13272_v49 }
 0x467   : > { %v2512_v22 = vrot.slane %v2502_v55, %v16095_v38  ;;  %v9619_v55 = vcombine.low %v2727_v35, %v2731_v63  ;;  %v2786_v35 = vld [vmem:[%s15845_s5 + $0x760] sm:$0xff]  ;;  %v2783_v63 = vld [vmem:[%s15845_s5 + $0x748] sm:$0xff] }
 0x469   : > { %v13293_v21 = vpack.c.bf16 %v2512_v22, %v2512_v22  ;;  %v9628_v22 = vcombine.high %v2735_v40, %v2739_v50  ;;  %v2794_v40 = vld [vmem:[%s15845_s5 + $0x7a0] sm:$0xff]  ;;  %v2791_v50 = vld [vmem:[%s15845_s5 + $0x788] sm:$0xff] }
 0x46b   : > { %6080 = vmatprep.mubr.bf16.mxu0 %v13293_v21  ;;  %6285 = vmatprep.mubr.bf16.mxu1 %v13293_v21 }
 0x46c   : > { %6081 = vmatmul.mubr.bf16.vlgmr.msra.gmra.mrb[8].mxu0 %v13295_v57  ;;  %6286 = vmatmul.mubr.bf16.vlgmr.msra.gmra.mrb[12].mxu1 %v13295_v57 }
 0x46d   : > { %6090 = vmatpush1.bf16.msra.mxu0 %v9569_v13  ;;  %6295 = vmatpush1.bf16.msra.mxu1 %v9571_v56  ;;  %v9603_v13 = vcombine.low %v2711_v34, %v2715_v62  ;;  %v9610_v56 = vcombine.high %v2718_v53, %v2722_v27  ;;  %v2770_v34 = vld [vmem:[%s15845_s5 + $0x6e0] sm:$0xff]  ;;  %v2767_v62 = vld [vmem:[%s15845_s5 + $0x6c8] sm:$0xff] }
 0x46e   : > { %6121 = vmatprep.mubr.bf16.mxu0 %v13313_v44  ;;  %6326 = vmatprep.mubr.bf16.mxu1 %v13313_v44  ;;  %v2774_v27 = vld [vmem:[%s15845_s5 + $0x700] sm:$0xff] }
 0x46f   : > { %6091 = vmatprep.subr.bf16.mxu0 %v9578_v9  ;;  %6296 = vmatprep.subr.bf16.mxu1 %v9580_v51  ;;  %v9634_v9 = vcombine.high %v2742_v39, %v2746_v54  ;;  %v9636_v51 = vcombine.high %v2743_v23, %v2747_v7 }
 0x471   : > { %6092 = vmatpush1.bf16.msra.mxu0 %v9577_v52  ;;  %6297 = vmatpush1.bf16.msra.mxu1 %v9579_v36  ;;  %v2755_v52 = vld [vmem:[%s15845_s5 + $0x668] sm:$0xff]  ;;  %v9633_v36 = vcombine.low %v2742_v39, %v2746_v54  ;;  %v9682_v39 = vcombine.high %v2790_v16, %v2794_v40 }
 0x472   : > { %6093 = vmatprep.subr.bf16.mxu0 %v9586_v60  ;;  %6298 = vmatprep.subr.bf16.mxu1 %v9588_v47  ;;  %v9635_v60 = vcombine.low %v2743_v23, %v2747_v7  ;;  %v9642_v47 = vcombine.high %v2750_v25, %v2754_v43  ;;  %v9644_v26 = vcombine.high %v2751_v33, %v2755_v52  ;;  %v2798_v23 = vld [vmem:[%s15845_s5 + $0x7c0] sm:$0xff] }
 0x473   : > { %v2802_v7 = vld [vmem:[%s15845_s5 + $0x7e0] sm:$0xff] }
 0x475   : > { %6094 = vmatpush1.bf16.msra.mxu0 %v9585_v17  ;;  %6299 = vmatpush1.bf16.msra.mxu1 %v9587_v31  ;;  %v2763_v17 = vld [vmem:[%s15845_s5 + $0x6a8] sm:$0xff]  ;;  %v9641_v31 = vcombine.low %v2750_v25, %v2754_v43  ;;  %v9681_v43 = vcombine.low %v2790_v16, %v2794_v40 }
 0x476   : > { %6095 = vmatprep.subr.bf16.mxu0 %v9594_v28  ;;  %6300 = vmatprep.subr.bf16.mxu1 %v9596_v37  ;;  %v9643_v28 = vcombine.low %v2751_v33, %v2755_v52  ;;  %v9650_v37 = vcombine.high %v2758_v19, %v2762_v32  ;;  %v9652_v5 = vcombine.high %v2759_v59, %v2763_v17 }
 0x477   : > { %v9690_v52 = vcombine.high %v2798_v23, %v2802_v7 }
 0x479   : > { %6096 = vmatpush1.bf16.msra.mxu0 %v9593_v6  ;;  %6301 = vmatpush1.bf16.msra.mxu1 %v9595_v41  ;;  %v2771_v6 = vld [vmem:[%s15845_s5 + $0x6e8] sm:$0xff]  ;;  %v9649_v41 = vcombine.low %v2758_v19, %v2762_v32 }
 0x47a   : > { %6097 = vmatprep.subr.bf16.mxu0 %v9602_v4  ;;  %6302 = vmatprep.subr.bf16.mxu1 %v9604_v30  ;;  %v9651_v4 = vcombine.low %v2759_v59, %v2763_v17  ;;  %v9658_v30 = vcombine.high %v2766_v61, %v2770_v34  ;;  %v9660_v53 = vcombine.high %v2767_v62, %v2771_v6  ;;  %v2807_v19 = vld [vmem:[%s15845_s5 + $0x808] sm:$0xff] }
 0x47b   : > { %v2811_v32 = vld [vmem:[%s15845_s5 + $0x828] sm:$0xff]  ;;  %v9689_v17 = vcombine.low %v2798_v23, %v2802_v7 }
 0x47d   : > { %6098 = vmatpush1.bf16.msra.mxu0 %v9601_v8  ;;  %6303 = vmatpush1.bf16.msra.mxu1 %v9603_v13  ;;  %v2779_v8 = vld [vmem:[%s15845_s5 + $0x728] sm:$0xff]  ;;  %v9657_v13 = vcombine.low %v2766_v61, %v2770_v34  ;;  %v2814_v61 = vld [vmem:[%s15845_s5 + $0x840] sm:$0xff] }
 0x47e   : > { %6099 = vmatprep.subr.bf16.mxu0 %v9610_v56  ;;  %6304 = vmatprep.subr.bf16.mxu1 %v9612_v20  ;;  %v9659_v56 = vcombine.low %v2767_v62, %v2771_v6  ;;  %v9666_v20 = vcombine.high %v2774_v27, %v2778_v11  ;;  %v9668_v10 = vcombine.high %v2775_v12, %v2779_v8  ;;  %v2818_v34 = vld [vmem:[%s15845_s5 + $0x860] sm:$0xff]  ;;  %v2815_v62 = vld [vmem:[%s15845_s5 + $0x848] sm:$0xff] }
 0x47f   : > { %v2819_v6 = vld [vmem:[%s15845_s5 + $0x868] sm:$0xff] }
 0x481   : > { %6100 = vmatpush1.bf16.msra.mxu0 %v9609_v0  ;;  %6305 = vmatpush1.bf16.msra.mxu1 %v9611_v3  ;;  %v2787_v0 = vld [vmem:[%s15845_s5 + $0x768] sm:$0xff]  ;;  %v9665_v3 = vcombine.low %v2774_v27, %v2778_v11  ;;  %v9706_v27 = vcombine.high %v2814_v61, %v2818_v34  ;;  %v9708_v11 = vcombine.high %v2815_v62, %v2819_v6 }
 0x482   : > { %6101 = vmatprep.subr.bf16.mxu0 %v9618_v1  ;;  %6306 = vmatprep.subr.bf16.mxu1 %v9620_v29  ;;  %v9667_v1 = vcombine.low %v2775_v12, %v2779_v8  ;;  %v9674_v29 = vcombine.high %v2782_v58, %v2786_v35  ;;  %v9676_v14 = vcombine.high %v2783_v63, %v2787_v0  ;;  %v2822_v12 = vld [vmem:[%s15845_s5 + $0x880] sm:$0xff] }
 0x483   : > { %v2826_v8 = vld [vmem:[%s15845_s5 + $0x8a0] sm:$0xff] }
 0x485   : > { %6102 = vmatpush1.bf16.msra.mxu0 %v9617_v48  ;;  %6307 = vmatpush1.bf16.msra.mxu1 %v9619_v55  ;;  %v2795_v48 = vld [vmem:[%s15845_s5 + $0x7a8] sm:$0xff]  ;;  %v13461_v55 = vpop.permute.xlu0 %10561 }
 0x486   : > { %6103 = vmatprep.subr.bf16.mxu0 %v9626_v15  ;;  %6308 = vmatprep.subr.bf16.mxu1 %v9628_v22  ;;  %v9673_v15 = vcombine.low %v2782_v58, %v2786_v35  ;;  %v9675_v22 = vcombine.low %v2783_v63, %v2787_v0  ;;  %v9684_v54 = vcombine.high %v2791_v50, %v2795_v48  ;;  %v10563_v25 = vunpack.i.l.bf16 %v13461_v55  ;;  %v2830_v63 = vld [vmem:[%s15845_s5 + $0x8c0] sm:$0xff] }
 0x487   : > { %v9683_v33 = vcombine.low %v2791_v50, %v2795_v48  ;;  %v9714_v58 = vcombine.high %v2822_v12, %v2826_v8  ;;  %v2834_v0 = vld [vmem:[%s15845_s5 + $0x8e0] sm:$0xff] }
 0x488   : > { %v9722_v16 = vcombine.high %v2830_v63, %v2834_v0  ;;  %v2838_v50 = vld [vmem:[%s15845_s5 + $0x900] sm:$0xff] }
 0x489   : > { %6104 = vmatpush1.bf16.msra.mxu0 %v9625_v18  ;;  %6309 = vmatpush1.bf16.msra.mxu1 %v9627_v24  ;;  %v2799_v18 = vld [vmem:[%s15845_s5 + $0x7c8] sm:$0xff]  ;;  %v2842_v48 = vld [vmem:[%s15845_s5 + $0x920] sm:$0xff] }
 0x48a   : > { %6105 = vmatprep.subr.bf16.mxu0 %v9634_v9  ;;  %6310 = vmatprep.subr.bf16.mxu1 %v9636_v51  ;;  %v2803_v24 = vld [vmem:[%s15845_s5 + $0x7e8] sm:$0xff]  ;;  %v2472_v9 = vpop.permute.xlu1 %2471  ;;  %v10564_v51 = vunpack.i.h.bf16 %v13461_v55  ;;  %v9730_v23 = vcombine.high %v2838_v50, %v2842_v48 }
 0x48b   : > { %v2939_v55 = vld [vmem:[%s15845_s5 + $0xc28] sm:$0xff] }
 0x48c   : > { %v2486_v59 = vsel %vm1121_vm1, %v10563_v25, %v10564_v51  ;;  %v2851_v51 = vld [vmem:[%s15845_s5 + $0x968] sm:$0xff] }
 0x48d   : > { %6106 = vmatpush1.bf16.msra.mxu0 %v9633_v36  ;;  %6311 = vmatpush1.bf16.msra.mxu1 %v9635_v60  ;;  %v9692_v36 = vcombine.high %v2799_v18, %v2803_v24  ;;  %v2806_v60 = vld [vmem:[%s15845_s5 + $0x800] sm:$0xff] }
 0x48e   : > { %6107 = vmatprep.subr.bf16.mxu0 %v9642_v47  ;;  %6312 = vmatprep.subr.bf16.mxu1 %v9644_v26  ;;  %v2473_v47 = vsel %vm1121_vm1, %v13272_v49, %v2472_v9  ;;  %v2810_v26 = vld [vmem:[%s15845_s5 + $0x820] sm:$0xff]  ;;  %v9691_v49 = vcombine.low %v2799_v18, %v2803_v24  ;;  %v2847_v9 = vld [vmem:[%s15845_s5 + $0x948] sm:$0xff] }
 0x48f   : > { %v2846_v18 = vld [vmem:[%s15845_s5 + $0x940] sm:$0xff] }
 0x490   : > { %v2850_v24 = vld [vmem:[%s15845_s5 + $0x960] sm:$0xff] }
 0x491   : > { %6108 = vmatpush1.bf16.msra.mxu0 %v9641_v31  ;;  %6313 = vmatpush1.bf16.msra.mxu1 %v9643_v28  ;;  %v2516_v31 = vrot.slane %v2473_v47, %v16095_v38  ;;  %v9698_v28 = vcombine.high %v2806_v60, %v2810_v26  ;;  %v2858_v47 = vld [vmem:[%s15845_s5 + $0x9a0] sm:$0xff] }
 0x492   : > { %6109 = vmatprep.subr.bf16.mxu0 %v9650_v37  ;;  %6314 = vmatprep.subr.bf16.mxu1 %v9652_v5  ;;  %v9700_v37 = vcombine.high %v2807_v19, %v2811_v32  ;;  %v2528_v5 = vrot.slane %v2486_v59, %v16095_v38  ;;  %v9739_v59 = vcombine.low %v2847_v9, %v2851_v51 }
 0x495   : > { %6110 = vmatpush1.bf16.msra.mxu0 %v9649_v41  ;;  %6315 = vmatpush1.bf16.msra.mxu1 %v9651_v4  ;;  %v9697_v41 = vcombine.low %v2806_v60, %v2810_v26  ;;  %v13508_v4 = vpack.c.bf16 %v2516_v31, %v2516_v31  ;;  %v2854_v60 = vld [vmem:[%s15845_s5 + $0x980] sm:$0xff]  ;;  %v2855_v26 = vld [vmem:[%s15845_s5 + $0x988] sm:$0xff] }
 0x496   : > { %6111 = vmatprep.subr.bf16.mxu0 %v9658_v30  ;;  %6316 = vmatprep.subr.bf16.mxu1 %v9660_v53  ;;  %v9699_v30 = vcombine.low %v2807_v19, %v2811_v32  ;;  %v13510_v53 = vpack.c.bf16 %v2528_v5, %v2528_v5  ;;  %v2859_v19 = vld [vmem:[%s15845_s5 + $0x9a8] sm:$0xff]  ;;  %v9737_v32 = vcombine.low %v2846_v18, %v2850_v24  ;;  %v2862_v31 = vld [vmem:[%s15845_s5 + $0x9c0] sm:$0xff] }
 0x497   : > { %v2867_v5 = vld [vmem:[%s15845_s5 + $0x9e8] sm:$0xff] }
 0x499   : > { %6112 = vmatpush1.bf16.msra.mxu0 %v9657_v13  ;;  %6317 = vmatpush1.bf16.msra.mxu1 %v9659_v56  ;;  %v2823_v13 = vld [vmem:[%s15845_s5 + $0x888] sm:$0xff] }
 0x49a   : > { %6113 = vmatprep.subr.bf16.mxu0 %v9666_v20  ;;  %6318 = vmatprep.subr.bf16.mxu1 %v9668_v10  ;;  %v2827_v56 = vld [vmem:[%s15845_s5 + $0x8a8] sm:$0xff]  ;;  %v9705_v20 = vcombine.low %v2814_v61, %v2818_v34  ;;  %v9707_v10 = vcombine.low %v2815_v62, %v2819_v6  ;;  %v9745_v61 = vcombine.low %v2854_v60, %v2858_v47 }
 0x49b   : > { %v9716_v35 = vcombine.high %v2823_v13, %v2827_v56  ;;  %v9747_v34 = vcombine.low %v2855_v26, %v2859_v19 }
 0x49d   : > { %6114 = vmatpush1.bf16.msra.mxu0 %v9665_v3  ;;  %6319 = vmatpush1.bf16.msra.mxu1 %v9667_v1  ;;  %v2831_v3 = vld [vmem:[%s15845_s5 + $0x8c8] sm:$0xff] }
 0x49e   : > { %6115 = vmatprep.subr.bf16.mxu0 %v9674_v29  ;;  %6320 = vmatprep.subr.bf16.mxu1 %v9676_v14  ;;  %v2835_v1 = vld [vmem:[%s15845_s5 + $0x8e8] sm:$0xff]  ;;  %v9713_v29 = vcombine.low %v2822_v12, %v2826_v8  ;;  %v9715_v14 = vcombine.low %v2823_v13, %v2827_v56 }
 0x49f   : > { %v9724_v40 = vcombine.high %v2831_v3, %v2835_v1 }
 0x4a1   : > { %6116 = vmatpush1.bf16.msra.mxu0 %v9673_v15  ;;  %6321 = vmatpush1.bf16.msra.mxu1 %v9675_v22  ;;  %v2839_v15 = vld [vmem:[%s15845_s5 + $0x908] sm:$0xff] }
 0x4a2   : > { %6117 = vmatprep.subr.bf16.mxu0 %v9682_v39  ;;  %6322 = vmatprep.subr.bf16.mxu1 %v9684_v54  ;;  %v2843_v22 = vld [vmem:[%s15845_s5 + $0x928] sm:$0xff]  ;;  %v9721_v39 = vcombine.low %v2830_v63, %v2834_v0  ;;  %v9723_v54 = vcombine.low %v2831_v3, %v2835_v1 }
 0x4a3   : > { %v9732_v7 = vcombine.high %v2839_v15, %v2843_v22 }
 0x4a5   : > { %6118 = vmatpush1.bf16.msra.mxu0 %v9681_v43  ;;  %6323 = vmatpush1.bf16.msra.mxu1 %v9683_v33  ;;  %v9729_v43 = vcombine.low %v2838_v50, %v2842_v48  ;;  %v9731_v33 = vcombine.low %v2839_v15, %v2843_v22 }
 0x4a6   : > { %6119 = vmatprep.subr.bf16.mxu0 %v9690_v52  ;;  %6324 = vmatprep.subr.bf16.mxu1 %v9692_v36  ;;  %v9738_v52 = vcombine.high %v2846_v18, %v2850_v24  ;;  %v9740_v36 = vcombine.high %v2847_v9, %v2851_v51 }
 0x4a9   : > { %6120 = vmatpush1.bf16.msra.mxu0 %v9689_v17  ;;  %6325 = vmatpush1.bf16.msra.mxu1 %v9691_v49  ;;  %v9746_v17 = vcombine.high %v2854_v60, %v2858_v47  ;;  %v9748_v49 = vcombine.high %v2855_v26, %v2859_v19 }
 0x4aa   : > { %6130 = vmatprep.subr.bf16.mxu0 %v9698_v28  ;;  %6335 = vmatprep.subr.bf16.mxu1 %v9700_v37  ;;  %v2866_v28 = vld [vmem:[%s15845_s5 + $0x9e0] sm:$0xff]  ;;  %v2863_v37 = vld [vmem:[%s15845_s5 + $0x9c8] sm:$0xff] }
 0x4ab   : > { %v9754_v62 = vcombine.high %v2862_v31, %v2866_v28  ;;  %v9756_v6 = vcombine.high %v2863_v37, %v2867_v5  ;;  %v9753_v12 = vcombine.low %v2862_v31, %v2866_v28  ;;  %v9755_v8 = vcombine.low %v2863_v37, %v2867_v5 }
 0x4ac   : > { %6122 = vmatmul.mubr.bf16.vlgmr.msra.gmra.mrb[8].mxu0 %v13508_v4  ;;  %6327 = vmatmul.mubr.bf16.vlgmr.msra.gmra.mrb[12].mxu1 %v13508_v4 }
 0x4ad   : > { %6131 = vmatpush1.bf16.msra.mxu0 %v9697_v41  ;;  %6162 = vmatprep.mubr.bf16.mxu0 %v13510_v53  ;;  %v2870_v41 = vld [vmem:[%s15845_s5 + $0xa00] sm:$0xff] }
 0x4ae   : > { %6336 = vmatpush1.bf16.msra.mxu1 %v9699_v30  ;;  %6367 = vmatprep.mubr.bf16.mxu1 %v13510_v53  ;;  %v2874_v30 = vld [vmem:[%s15845_s5 + $0xa20] sm:$0xff] }
 0x4af   : > { %6132 = vmatprep.subr.bf16.mxu0 %v9706_v27  ;;  %6337 = vmatprep.subr.bf16.mxu1 %v9708_v11  ;;  %v2871_v27 = vld [vmem:[%s15845_s5 + $0xa08] sm:$0xff]  ;;  %v9762_v13 = vcombine.high %v2870_v41, %v2874_v30  ;;  %v9761_v63 = vcombine.low %v2870_v41, %v2874_v30 }
 0x4b0   : > { %v2875_v11 = vld [vmem:[%s15845_s5 + $0xa28] sm:$0xff] }
 0x4b1   : > { %6133 = vmatpush1.bf16.msra.mxu0 %v9705_v20  ;;  %v9764_v56 = vcombine.high %v2871_v27, %v2875_v11  ;;  %v2878_v20 = vld [vmem:[%s15845_s5 + $0xa40] sm:$0xff]  ;;  %v9763_v0 = vcombine.low %v2871_v27, %v2875_v11 }
 0x4b2   : > { %6338 = vmatpush1.bf16.msra.mxu1 %v9707_v10  ;;  %6134 = vmatprep.subr.bf16.mxu0 %v9714_v58  ;;  %v2882_v10 = vld [vmem:[%s15845_s5 + $0xa60] sm:$0xff]  ;;  %v2879_v58 = vld [vmem:[%s15845_s5 + $0xa48] sm:$0xff] }
 0x4b3   : > { %6339 = vmatprep.subr.bf16.mxu1 %v9716_v35  ;;  %v2883_v35 = vld [vmem:[%s15845_s5 + $0xa68] sm:$0xff]  ;;  %v9770_v3 = vcombine.high %v2878_v20, %v2882_v10  ;;  %v9769_v50 = vcombine.low %v2878_v20, %v2882_v10  ;;  %v2477_v20 = vrot.slane %v13258_v2, 2 }
 0x4b4   : > { %v9772_v1 = vcombine.high %v2879_v58, %v2883_v35  ;;  %v9771_v48 = vcombine.low %v2879_v58, %v2883_v35  ;;  %v13685_v58 = vpop.permute.xlu1 %2495 }
 0x4b5   : > { %6135 = vmatpush1.bf16.msra.mxu0 %v9713_v29  ;;  %v2886_v29 = vld [vmem:[%s15845_s5 + $0xa80] sm:$0xff] }
 0x4b6   : > { %6340 = vmatpush1.bf16.msra.mxu1 %v9715_v14  ;;  %6136 = vmatprep.subr.bf16.mxu0 %v9722_v16  ;;  %v2890_v14 = vld [vmem:[%s15845_s5 + $0xaa0] sm:$0xff]  ;;  %v2887_v16 = vld [vmem:[%s15845_s5 + $0xa88] sm:$0xff] }
 0x4b7   : > { %6341 = vmatprep.subr.bf16.mxu1 %v9724_v40  ;;  %v2891_v40 = vld [vmem:[%s15845_s5 + $0xaa8] sm:$0xff]  ;;  %v9778_v15 = vcombine.high %v2886_v29, %v2890_v14  ;;  %v9777_v18 = vcombine.low %v2886_v29, %v2890_v14  ;;  %v2934_v29 = vld [vmem:[%s15845_s5 + $0xc00] sm:$0xff] }
 0x4b8   : > { %v9780_v22 = vcombine.high %v2887_v16, %v2891_v40  ;;  %v9779_v24 = vcombine.low %v2887_v16, %v2891_v40  ;;  %v2938_v14 = vld [vmem:[%s15845_s5 + $0xc20] sm:$0xff]  ;;  %v2935_v16 = vld [vmem:[%s15845_s5 + $0xc08] sm:$0xff] }
 0x4b9   : > { %6137 = vmatpush1.bf16.msra.mxu0 %v9721_v39  ;;  %v2894_v39 = vld [vmem:[%s15845_s5 + $0xac0] sm:$0xff] }
 0x4ba   : > { %6342 = vmatpush1.bf16.msra.mxu1 %v9723_v54  ;;  %6138 = vmatprep.subr.bf16.mxu0 %v9730_v23  ;;  %v2898_v54 = vld [vmem:[%s15845_s5 + $0xae0] sm:$0xff]  ;;  %v2895_v23 = vld [vmem:[%s15845_s5 + $0xac8] sm:$0xff] }
 0x4bb   : > { %6343 = vmatprep.subr.bf16.mxu1 %v9732_v7  ;;  %v2899_v7 = vld [vmem:[%s15845_s5 + $0xae8] sm:$0xff]  ;;  %v9786_v9 = vcombine.high %v2894_v39, %v2898_v54  ;;  %v9785_v60 = vcombine.low %v2894_v39, %v2898_v54  ;;  %v2942_v39 = vld [vmem:[%s15845_s5 + $0xc40] sm:$0xff] }
 0x4bc   : > { %v9788_v51 = vcombine.high %v2895_v23, %v2899_v7  ;;  %v9787_v47 = vcombine.low %v2895_v23, %v2899_v7  ;;  %v2946_v54 = vld [vmem:[%s15845_s5 + $0xc60] sm:$0xff]  ;;  %v9825_v23 = vcombine.low %v2934_v29, %v2938_v14  ;;  %v2943_v7 = vld [vmem:[%s15845_s5 + $0xc48] sm:$0xff] }
 0x4bd   : > { %6139 = vmatpush1.bf16.msra.mxu0 %v9729_v43  ;;  %v2902_v43 = vld [vmem:[%s15845_s5 + $0xb00] sm:$0xff] }
 0x4be   : > { %6344 = vmatpush1.bf16.msra.mxu1 %v9731_v33  ;;  %6140 = vmatprep.subr.bf16.mxu0 %v9738_v52  ;;  %v2906_v33 = vld [vmem:[%s15845_s5 + $0xb20] sm:$0xff]  ;;  %v2903_v52 = vld [vmem:[%s15845_s5 + $0xb08] sm:$0xff] }
 0x4bf   : > { %6345 = vmatprep.subr.bf16.mxu1 %v9740_v36  ;;  %v2907_v36 = vld [vmem:[%s15845_s5 + $0xb28] sm:$0xff]  ;;  %v9794_v26 = vcombine.high %v2902_v43, %v2906_v33  ;;  %v9793_v31 = vcombine.low %v2902_v43, %v2906_v33  ;;  %v2950_v43 = vld [vmem:[%s15845_s5 + $0xc80] sm:$0xff] }
 0x4c0   : > { %v9796_v19 = vcombine.high %v2903_v52, %v2907_v36  ;;  %v9795_v28 = vcombine.low %v2903_v52, %v2907_v36  ;;  %v2954_v33 = vld [vmem:[%s15845_s5 + $0xca0] sm:$0xff] }
 0x4c1   : > { %6141 = vmatpush1.bf16.msra.mxu0 %v9737_v32  ;;  %v2910_v32 = vld [vmem:[%s15845_s5 + $0xb40] sm:$0xff] }
 0x4c2   : > { %6346 = vmatpush1.bf16.msra.mxu1 %v9739_v59  ;;  %6142 = vmatprep.subr.bf16.mxu0 %v9746_v17  ;;  %v2914_v59 = vld [vmem:[%s15845_s5 + $0xb60] sm:$0xff]  ;;  %v2911_v17 = vld [vmem:[%s15845_s5 + $0xb48] sm:$0xff] }
 0x4c3   : > { %6347 = vmatprep.subr.bf16.mxu1 %v9748_v49  ;;  %v2915_v49 = vld [vmem:[%s15845_s5 + $0xb68] sm:$0xff]  ;;  %v9802_v37 = vcombine.high %v2910_v32, %v2914_v59  ;;  %v9801_v41 = vcombine.low %v2910_v32, %v2914_v59  ;;  %v9842_v32 = vcombine.high %v2950_v43, %v2954_v33 }
 0x4c4   : > { %v9804_v5 = vcombine.high %v2911_v17, %v2915_v49  ;;  %v9803_v30 = vcombine.low %v2911_v17, %v2915_v49  ;;  %v2958_v17 = vld [vmem:[%s15845_s5 + $0xcc0] sm:$0xff] }
 0x4c5   : > { %6143 = vmatpush1.bf16.msra.mxu0 %v9745_v61  ;;  %v2918_v61 = vld [vmem:[%s15845_s5 + $0xb80] sm:$0xff] }
 0x4c6   : > { %6348 = vmatpush1.bf16.msra.mxu1 %v9747_v34  ;;  %6144 = vmatprep.subr.bf16.mxu0 %v9754_v62  ;;  %v2922_v34 = vld [vmem:[%s15845_s5 + $0xba0] sm:$0xff]  ;;  %v2919_v62 = vld [vmem:[%s15845_s5 + $0xb88] sm:$0xff] }
 0x4c7   : > { %6349 = vmatprep.subr.bf16.mxu1 %v9756_v6  ;;  %v2923_v6 = vld [vmem:[%s15845_s5 + $0xba8] sm:$0xff]  ;;  %v9810_v27 = vcombine.high %v2918_v61, %v2922_v34  ;;  %v9809_v10 = vcombine.low %v2918_v61, %v2922_v34  ;;  %v2962_v49 = vld [vmem:[%s15845_s5 + $0xce0] sm:$0xff] }
 0x4c8   : > { %v9812_v11 = vcombine.high %v2919_v62, %v2923_v6  ;;  %v9811_v35 = vcombine.low %v2919_v62, %v2923_v6  ;;  %v9850_v61 = vcombine.high %v2958_v17, %v2962_v49  ;;  %v2966_v62 = vld [vmem:[%s15845_s5 + $0xd00] sm:$0xff] }
 0x4c9   : > { %6145 = vmatpush1.bf16.msra.mxu0 %v9753_v12  ;;  %v2926_v12 = vld [vmem:[%s15845_s5 + $0xbc0] sm:$0xff] }
 0x4ca   : > { %6350 = vmatpush1.bf16.msra.mxu1 %v9755_v8  ;;  %6146 = vmatprep.subr.bf16.mxu0 %v9762_v13  ;;  %v2930_v8 = vld [vmem:[%s15845_s5 + $0xbe0] sm:$0xff]  ;;  %v2927_v13 = vld [vmem:[%s15845_s5 + $0xbc8] sm:$0xff] }
 0x4cb   : > { %6351 = vmatprep.subr.bf16.mxu1 %v9764_v56  ;;  %v2931_v56 = vld [vmem:[%s15845_s5 + $0xbe8] sm:$0xff]  ;;  %v2970_v6 = vld [vmem:[%s15845_s5 + $0xd20] sm:$0xff] }
 0x4cd   : > { %6147 = vmatpush1.bf16.msra.mxu0 %v9761_v63  ;;  %v9818_v63 = vcombine.high %v2926_v12, %v2930_v8 }
 0x4ce   : > { %6352 = vmatpush1.bf16.msra.mxu1 %v9763_v0  ;;  %6148 = vmatprep.subr.bf16.mxu0 %v9770_v3  ;;  %v2503_v0 = vsel %vm1121_vm1, %v2477_v20, %v10563_v25  ;;  %v2490_v3 = vrot.slane %v13258_v2, 4  ;;  %v9817_v25 = vcombine.low %v2926_v12, %v2930_v8  ;;  %v9858_v12 = vcombine.high %v2966_v62, %v2970_v6  ;;  %v2975_v20 = vld [vmem:[%s15845_s5 + $0xd48] sm:$0xff] }
 0x4cf   : > { %6353 = vmatprep.subr.bf16.mxu1 %v9772_v1  ;;  %v9820_v1 = vcombine.high %v2927_v13, %v2931_v56  ;;  %v2524_v40 = vrot.slane %v2503_v0, %v16095_v38 }
 0x4d0   : > { %v2504_v2 = vsel %vm1121_vm1, %v2490_v3, %v13685_v58 }
 0x4d1   : > { %6149 = vmatpush1.bf16.msra.mxu0 %v9769_v50  ;;  %v9819_v50 = vcombine.low %v2927_v13, %v2931_v56  ;;  %v2974_v13 = vld [vmem:[%s15845_s5 + $0xd40] sm:$0xff] }
 0x4d2   : > { %6354 = vmatpush1.bf16.msra.mxu1 %v9771_v48  ;;  %6150 = vmatprep.subr.bf16.mxu0 %v9778_v15  ;;  %v9826_v48 = vcombine.high %v2934_v29, %v2938_v14  ;;  %v9828_v15 = vcombine.high %v2935_v16, %v2939_v55  ;;  %v2978_v56 = vld [vmem:[%s15845_s5 + $0xd60] sm:$0xff]  ;;  %v2983_v14 = vld [vmem:[%s15845_s5 + $0xd88] sm:$0xff] }
 0x4d3   : > { %6355 = vmatprep.subr.bf16.mxu1 %v9780_v22  ;;  %v2536_v22 = vrot.slane %v2504_v2, %v16095_v38  ;;  %v9866_v0 = vcombine.high %v2974_v13, %v2978_v56  ;;  %v2986_v29 = vld [vmem:[%s15845_s5 + $0xda0] sm:$0xff] }
 0x4d5   : > { %6151 = vmatpush1.bf16.msra.mxu0 %v9777_v18  ;;  %v2947_v18 = vld [vmem:[%s15845_s5 + $0xc68] sm:$0xff]  ;;  %v13727_v52 = vpack.c.bf16 %v2536_v22, %v2536_v22 }
 0x4d6   : > { %6356 = vmatpush1.bf16.msra.mxu1 %v9779_v24  ;;  %6152 = vmatprep.subr.bf16.mxu0 %v9786_v9  ;;  %v13719_v24 = vpack.c.bf16 %v2524_v40, %v2524_v40  ;;  %v9827_v9 = vcombine.low %v2935_v16, %v2939_v55  ;;  %v9836_v36 = vcombine.high %v2943_v7, %v2947_v18  ;;  %v2987_v16 = vld [vmem:[%s15845_s5 + $0xda8] sm:$0xff] }
 0x4d7   : > { %6357 = vmatprep.subr.bf16.mxu1 %v9788_v51  ;;  %v9834_v51 = vcombine.high %v2942_v39, %v2946_v54  ;;  %v9865_v55 = vcombine.low %v2974_v13, %v2978_v56  ;;  %v9876_v40 = vcombine.high %v2983_v14, %v2987_v16  ;;  %v2995_v22 = vld [vmem:[%s15845_s5 + $0xde8] sm:$0xff] }
 0x4d9   : > { %6153 = vmatpush1.bf16.msra.mxu0 %v9785_v60  ;;  %v2951_v60 = vld [vmem:[%s15845_s5 + $0xc88] sm:$0xff] }
 0x4da   : > { %6358 = vmatpush1.bf16.msra.mxu1 %v9787_v47  ;;  %6154 = vmatprep.subr.bf16.mxu0 %v9794_v26  ;;  %v2955_v47 = vld [vmem:[%s15845_s5 + $0xca8] sm:$0xff]  ;;  %v9833_v26 = vcombine.low %v2942_v39, %v2946_v54  ;;  %v9875_v54 = vcombine.low %v2983_v14, %v2987_v16 }
 0x4db   : > { %6359 = vmatprep.subr.bf16.mxu1 %v9796_v19  ;;  %v9835_v19 = vcombine.low %v2943_v7, %v2947_v18  ;;  %v9844_v59 = vcombine.high %v2951_v60, %v2955_v47  ;;  %v2998_v18 = vld [vmem:[%s15845_s5 + $0xe00] sm:$0xff] }
 0x4dd   : > { %6155 = vmatpush1.bf16.msra.mxu0 %v9793_v31  ;;  %v2959_v31 = vld [vmem:[%s15845_s5 + $0xcc8] sm:$0xff] }
 0x4de   : > { %6360 = vmatpush1.bf16.msra.mxu1 %v9795_v28  ;;  %6156 = vmatprep.subr.bf16.mxu0 %v9802_v37  ;;  %v2963_v28 = vld [vmem:[%s15845_s5 + $0xce8] sm:$0xff]  ;;  %v9841_v37 = vcombine.low %v2950_v43, %v2954_v33 }
 0x4df   : > { %6361 = vmatprep.subr.bf16.mxu1 %v9804_v5  ;;  %v9843_v5 = vcombine.low %v2951_v60, %v2955_v47  ;;  %v9852_v34 = vcombine.high %v2959_v31, %v2963_v28  ;;  %v3003_v43 = vld [vmem:[%s15845_s5 + $0xe28] sm:$0xff] }
 0x4e1   : > { %6157 = vmatpush1.bf16.msra.mxu0 %v9801_v41  ;;  %v2967_v41 = vld [vmem:[%s15845_s5 + $0xd08] sm:$0xff] }
 0x4e2   : > { %6362 = vmatpush1.bf16.msra.mxu1 %v9803_v30  ;;  %6158 = vmatprep.subr.bf16.mxu0 %v9810_v27  ;;  %v2971_v30 = vld [vmem:[%s15845_s5 + $0xd28] sm:$0xff]  ;;  %v9849_v27 = vcombine.low %v2958_v17, %v2962_v49 }
 0x4e3   : > { %6363 = vmatprep.subr.bf16.mxu1 %v9812_v11  ;;  %v9851_v11 = vcombine.low %v2959_v31, %v2963_v28  ;;  %v9860_v8 = vcombine.high %v2967_v41, %v2971_v30 }
 0x4e5   : > { %6159 = vmatpush1.bf16.msra.mxu0 %v9809_v10  ;;  %v2979_v10 = vld [vmem:[%s15845_s5 + $0xd68] sm:$0xff] }
 0x4e6   : > { %6364 = vmatpush1.bf16.msra.mxu1 %v9811_v35  ;;  %6160 = vmatprep.subr.bf16.mxu0 %v9818_v63  ;;  %v9857_v35 = vcombine.low %v2966_v62, %v2970_v6  ;;  %v9859_v63 = vcombine.low %v2967_v41, %v2971_v30  ;;  %v9868_v3 = vcombine.high %v2975_v20, %v2979_v10 }
 0x4e7   : > { %6365 = vmatprep.subr.bf16.mxu1 %v9820_v1  ;;  %v2982_v1 = vld [vmem:[%s15845_s5 + $0xd80] sm:$0xff]  ;;  %v9867_v2 = vcombine.low %v2975_v20, %v2979_v10 }
 0x4e8   : > { %v9873_v39 = vcombine.low %v2982_v1, %v2986_v29 }
 0x4e9   : > { %6161 = vmatpush1.bf16.msra.mxu0 %v9817_v25  ;;  %v9874_v25 = vcombine.high %v2982_v1, %v2986_v29 }
 0x4ea   : > { %6366 = vmatpush1.bf16.msra.mxu1 %v9819_v50  ;;  %6171 = vmatprep.subr.bf16.mxu0 %v9826_v48  ;;  %v2990_v50 = vld [vmem:[%s15845_s5 + $0xdc0] sm:$0xff] }
 0x4eb   : > { %6376 = vmatprep.subr.bf16.mxu1 %v9828_v15  ;;  %v2994_v48 = vld [vmem:[%s15845_s5 + $0xde0] sm:$0xff]  ;;  %v2991_v15 = vld [vmem:[%s15845_s5 + $0xdc8] sm:$0xff] }
 0x4ec   : > { %6163 = vmatmul.mubr.bf16.vlgmr.msra.gmra.mrb[8].mxu0 %v13719_v24  ;;  %v9884_v7 = vcombine.high %v2991_v15, %v2995_v22  ;;  %v9881_v33 = vcombine.low %v2990_v50, %v2994_v48 }
 0x4ed   : > { %6368 = vmatmul.mubr.bf16.vlgmr.msra.gmra.mrb[12].mxu1 %v13719_v24  ;;  %6172 = vmatpush1.bf16.msra.mxu0 %v9825_v23  ;;  %v9882_v23 = vcombine.high %v2990_v50, %v2994_v48 }
 0x4ee   : > { %6203 = vmatprep.mubr.bf16.mxu0 %v13727_v52  ;;  %6377 = vmatpush1.bf16.msra.mxu1 %v9827_v9  ;;  %v3002_v9 = vld [vmem:[%s15845_s5 + $0xe20] sm:$0xff] }
 0x4ef   : > { %6408 = vmatprep.mubr.bf16.mxu1 %v13727_v52  ;;  %6173 = vmatprep.subr.bf16.mxu0 %v9834_v51  ;;  %v2999_v51 = vld [vmem:[%s15845_s5 + $0xe08] sm:$0xff]  ;;  %v9890_v60 = vcombine.high %v2998_v18, %v3002_v9  ;;  %v9889_v17 = vcombine.low %v2998_v18, %v3002_v9 }
 0x4f0   : > { %6378 = vmatprep.subr.bf16.mxu1 %v9836_v36  ;;  %v9883_v36 = vcombine.low %v2991_v15, %v2995_v22  ;;  %v9892_v47 = vcombine.high %v2999_v51, %v3003_v43  ;;  %v9891_v49 = vcombine.low %v2999_v51, %v3003_v43 }
 0x4f1   : > { %6174 = vmatpush1.bf16.msra.mxu0 %v9833_v26  ;;  %v3006_v26 = vld [vmem:[%s15845_s5 + $0xe40] sm:$0xff] }
 0x4f2   : > { %6379 = vmatpush1.bf16.msra.mxu1 %v9835_v19  ;;  %6175 = vmatprep.subr.bf16.mxu0 %v9842_v32  ;;  %v3010_v19 = vld [vmem:[%s15845_s5 + $0xe60] sm:$0xff]  ;;  %v3007_v32 = vld [vmem:[%s15845_s5 + $0xe48] sm:$0xff] }
 0x4f3   : > { %6380 = vmatprep.subr.bf16.mxu1 %v9844_v59  ;;  %v3011_v59 = vld [vmem:[%s15845_s5 + $0xe68] sm:$0xff]  ;;  %v9898_v31 = vcombine.high %v3006_v26, %v3010_v19  ;;  %v9897_v62 = vcombine.low %v3006_v26, %v3010_v19 }
 0x4f4   : > { %v9900_v28 = vcombine.high %v3007_v32, %v3011_v59  ;;  %v9899_v6 = vcombine.low %v3007_v32, %v3011_v59  ;;  %v2489_v59 = vrot.slane %v13256_v46, 4 }
 0x4f5   : > { %6176 = vmatpush1.bf16.msra.mxu0 %v9841_v37  ;;  %v3014_v37 = vld [vmem:[%s15845_s5 + $0xe80] sm:$0xff] }
 0x4f6   : > { %6381 = vmatpush1.bf16.msra.mxu1 %v9843_v5  ;;  %6177 = vmatprep.subr.bf16.mxu0 %v9850_v61  ;;  %v3018_v5 = vld [vmem:[%s15845_s5 + $0xea0] sm:$0xff]  ;;  %v3015_v61 = vld [vmem:[%s15845_s5 + $0xe88] sm:$0xff] }
 0x4f7   : > { %6382 = vmatprep.subr.bf16.mxu1 %v9852_v34  ;;  %v3019_v34 = vld [vmem:[%s15845_s5 + $0xea8] sm:$0xff]  ;;  %v9906_v41 = vcombine.high %v3014_v37, %v3018_v5  ;;  %v9905_v13 = vcombine.low %v3014_v37, %v3018_v5 }
 0x4f8   : > { %v9908_v30 = vcombine.high %v3015_v61, %v3019_v34  ;;  %v9907_v56 = vcombine.low %v3015_v61, %v3019_v34  ;;  %v3067_v37 = vld [vmem:[%s15845_s5 + $0x1028] sm:$0xff]  ;;  %v2532_v61 = vrot.slane %v2489_v59, %v16095_v38  ;;  %v3114_v59 = vld [vmem:[%s15845_s5 + $0x11a0] sm:$0xff] }
 0x4f9   : > { %6178 = vmatpush1.bf16.msra.mxu0 %v9849_v27  ;;  %v3022_v27 = vld [vmem:[%s15845_s5 + $0xec0] sm:$0xff] }
 0x4fa   : > { %6383 = vmatpush1.bf16.msra.mxu1 %v9851_v11  ;;  %6179 = vmatprep.subr.bf16.mxu0 %v9858_v12  ;;  %v3026_v11 = vld [vmem:[%s15845_s5 + $0xee0] sm:$0xff]  ;;  %v3023_v12 = vld [vmem:[%s15845_s5 + $0xec8] sm:$0xff] }
 0x4fb   : > { %6384 = vmatprep.subr.bf16.mxu1 %v9860_v8  ;;  %v3027_v8 = vld [vmem:[%s15845_s5 + $0xee8] sm:$0xff]  ;;  %v9914_v20 = vcombine.high %v3022_v27, %v3026_v11  ;;  %v9913_v1 = vcombine.low %v3022_v27, %v3026_v11 }
 0x4fc   : > { %v9916_v10 = vcombine.high %v3023_v12, %v3027_v8  ;;  %v9915_v29 = vcombine.low %v3023_v12, %v3027_v8  ;;  %v3075_v27 = vld [vmem:[%s15845_s5 + $0x1068] sm:$0xff]  ;;  %v13921_v12 = vpack.c.bf16 %v2532_v61, %v2532_v61  ;;  %v3122_v61 = vld [vmem:[%s15845_s5 + $0x11e0] sm:$0xff] }
 0x4fd   : > { %6180 = vmatpush1.bf16.msra.mxu0 %v9857_v35  ;;  %v3030_v35 = vld [vmem:[%s15845_s5 + $0xf00] sm:$0xff] }
 0x4fe   : > { %6385 = vmatpush1.bf16.msra.mxu1 %v9859_v63  ;;  %6181 = vmatprep.subr.bf16.mxu0 %v9866_v0  ;;  %v3034_v63 = vld [vmem:[%s15845_s5 + $0xf20] sm:$0xff]  ;;  %v3031_v0 = vld [vmem:[%s15845_s5 + $0xf08] sm:$0xff] }
 0x4ff   : > { %6386 = vmatprep.subr.bf16.mxu1 %v9868_v3  ;;  %v3035_v3 = vld [vmem:[%s15845_s5 + $0xf28] sm:$0xff]  ;;  %v9922_v14 = vcombine.high %v3030_v35, %v3034_v63  ;;  %v9921_v50 = vcombine.low %v3030_v35, %v3034_v63 }
 0x500   : > { %v9924_v16 = vcombine.high %v3031_v0, %v3035_v3  ;;  %v9923_v48 = vcombine.low %v3031_v0, %v3035_v3  ;;  %v3079_v35 = vld [vmem:[%s15845_s5 + $0x1088] sm:$0xff] }
 0x501   : > { %6182 = vmatpush1.bf16.msra.mxu0 %v9865_v55  ;;  %v3038_v55 = vld [vmem:[%s15845_s5 + $0xf40] sm:$0xff]  ;;  %v3083_v63 = vld [vmem:[%s15845_s5 + $0x10a8] sm:$0xff] }
 0x502   : > { %6387 = vmatpush1.bf16.msra.mxu1 %v9867_v2  ;;  %6183 = vmatprep.subr.bf16.mxu0 %v9874_v25  ;;  %v3042_v2 = vld [vmem:[%s15845_s5 + $0xf60] sm:$0xff]  ;;  %v3039_v25 = vld [vmem:[%s15845_s5 + $0xf48] sm:$0xff] }
 0x503   : > { %6388 = vmatprep.subr.bf16.mxu1 %v9876_v40  ;;  %v3043_v40 = vld [vmem:[%s15845_s5 + $0xf68] sm:$0xff]  ;;  %v9930_v15 = vcombine.high %v3038_v55, %v3042_v2  ;;  %v9929_v18 = vcombine.low %v3038_v55, %v3042_v2 }
 0x504   : > { %v9932_v22 = vcombine.high %v3039_v25, %v3043_v40  ;;  %v9931_v9 = vcombine.low %v3039_v25, %v3043_v40  ;;  %v3087_v55 = vld [vmem:[%s15845_s5 + $0x10c8] sm:$0xff]  ;;  %v9971_v40 = vcombine.low %v3079_v35, %v3083_v63 }
 0x505   : > { %6184 = vmatpush1.bf16.msra.mxu0 %v9873_v39  ;;  %v3046_v39 = vld [vmem:[%s15845_s5 + $0xf80] sm:$0xff]  ;;  %v3091_v2 = vld [vmem:[%s15845_s5 + $0x10e8] sm:$0xff] }
 0x506   : > { %6389 = vmatpush1.bf16.msra.mxu1 %v9875_v54  ;;  %6185 = vmatprep.subr.bf16.mxu0 %v9882_v23  ;;  %v3050_v54 = vld [vmem:[%s15845_s5 + $0xfa0] sm:$0xff]  ;;  %v3047_v23 = vld [vmem:[%s15845_s5 + $0xf88] sm:$0xff] }
 0x507   : > { %6390 = vmatprep.subr.bf16.mxu1 %v9884_v7  ;;  %v3051_v7 = vld [vmem:[%s15845_s5 + $0xfa8] sm:$0xff]  ;;  %v9938_v51 = vcombine.high %v3046_v39, %v3050_v54  ;;  %v9937_v26 = vcombine.low %v3046_v39, %v3050_v54 }
 0x508   : > { %v9940_v43 = vcombine.high %v3047_v23, %v3051_v7  ;;  %v9939_v19 = vcombine.low %v3047_v23, %v3051_v7  ;;  %v3095_v39 = vld [vmem:[%s15845_s5 + $0x1108] sm:$0xff]  ;;  %v9979_v7 = vcombine.low %v3087_v55, %v3091_v2 }
 0x509   : > { %6186 = vmatpush1.bf16.msra.mxu0 %v9881_v33  ;;  %v3054_v33 = vld [vmem:[%s15845_s5 + $0xfc0] sm:$0xff]  ;;  %v3099_v54 = vld [vmem:[%s15845_s5 + $0x1128] sm:$0xff] }
 0x50a   : > { %6391 = vmatpush1.bf16.msra.mxu1 %v9883_v36  ;;  %6187 = vmatprep.subr.bf16.mxu0 %v9890_v60  ;;  %v3058_v36 = vld [vmem:[%s15845_s5 + $0xfe0] sm:$0xff]  ;;  %v3055_v60 = vld [vmem:[%s15845_s5 + $0xfc8] sm:$0xff] }
 0x50b   : > { %6392 = vmatprep.subr.bf16.mxu1 %v9892_v47  ;;  %v3059_v47 = vld [vmem:[%s15845_s5 + $0xfe8] sm:$0xff]  ;;  %v9946_v32 = vcombine.high %v3054_v33, %v3058_v36  ;;  %v9945_v46 = vcombine.low %v3054_v33, %v3058_v36 }
 0x50c   : > { %v9947_v5 = vcombine.low %v3055_v60, %v3059_v47  ;;  %v3103_v33 = vld [vmem:[%s15845_s5 + $0x1148] sm:$0xff] }
 0x50d   : > { %6188 = vmatpush1.bf16.msra.mxu0 %v9889_v17  ;;  %v9948_v17 = vcombine.high %v3055_v60, %v3059_v47  ;;  %v3107_v36 = vld [vmem:[%s15845_s5 + $0x1168] sm:$0xff]  ;;  %v9987_v47 = vcombine.low %v3095_v39, %v3099_v54 }
 0x50e   : > { %6393 = vmatpush1.bf16.msra.mxu1 %v9891_v49  ;;  %6189 = vmatprep.subr.bf16.mxu0 %v9898_v31  ;;  %v3062_v49 = vld [vmem:[%s15845_s5 + $0x1000] sm:$0xff] }
 0x50f   : > { %6394 = vmatprep.subr.bf16.mxu1 %v9900_v28  ;;  %v3066_v31 = vld [vmem:[%s15845_s5 + $0x1020] sm:$0xff]  ;;  %v3063_v28 = vld [vmem:[%s15845_s5 + $0x1008] sm:$0xff] }
 0x510   : > { %v9954_v34 = vcombine.high %v3062_v49, %v3066_v31  ;;  %v9953_v11 = vcombine.low %v3062_v49, %v3066_v31  ;;  %v9955_v8 = vcombine.low %v3063_v28, %v3067_v37  ;;  %v3115_v49 = vld [vmem:[%s15845_s5 + $0x11a8] sm:$0xff] }
 0x511   : > { %6190 = vmatpush1.bf16.msra.mxu0 %v9897_v62  ;;  %v9956_v62 = vcombine.high %v3063_v28, %v3067_v37  ;;  %v9995_v28 = vcombine.low %v3103_v33, %v3107_v36 }
 0x512   : > { %6395 = vmatpush1.bf16.msra.mxu1 %v9899_v6  ;;  %6191 = vmatprep.subr.bf16.mxu0 %v9906_v41  ;;  %v3070_v6 = vld [vmem:[%s15845_s5 + $0x1040] sm:$0xff] }
 0x513   : > { %6396 = vmatprep.subr.bf16.mxu1 %v9908_v30  ;;  %v3074_v41 = vld [vmem:[%s15845_s5 + $0x1060] sm:$0xff]  ;;  %v3071_v30 = vld [vmem:[%s15845_s5 + $0x1048] sm:$0xff] }
 0x514   : > { %v9961_v0 = vcombine.low %v3070_v6, %v3074_v41  ;;  %v9963_v3 = vcombine.low %v3071_v30, %v3075_v27 }
 0x515   : > { %6192 = vmatpush1.bf16.msra.mxu0 %v9905_v13  ;;  %v9962_v13 = vcombine.high %v3070_v6, %v3074_v41  ;;  %v3123_v6 = vld [vmem:[%s15845_s5 + $0x11e8] sm:$0xff] }
 0x516   : > { %6397 = vmatpush1.bf16.msra.mxu1 %v9907_v56  ;;  %6193 = vmatprep.subr.bf16.mxu0 %v9914_v20  ;;  %v9964_v56 = vcombine.high %v3071_v30, %v3075_v27  ;;  %v3078_v20 = vld [vmem:[%s15845_s5 + $0x1080] sm:$0xff] }
 0x517   : > { %6398 = vmatprep.subr.bf16.mxu1 %v9916_v10  ;;  %v3082_v10 = vld [vmem:[%s15845_s5 + $0x10a0] sm:$0xff] }
 0x518   : > { %v9969_v25 = vcombine.low %v3078_v20, %v3082_v10 }
 0x519   : > { %6194 = vmatpush1.bf16.msra.mxu0 %v9913_v1  ;;  %v9970_v1 = vcombine.high %v3078_v20, %v3082_v10  ;;  %v2553_v20 = vld [vmem:[%s15845_s5 + $0x18] sm:$0xff] }
 0x51a   : > { %6399 = vmatpush1.bf16.msra.mxu1 %v9915_v29  ;;  %6195 = vmatprep.subr.bf16.mxu0 %v9922_v14  ;;  %v9972_v29 = vcombine.high %v3079_v35, %v3083_v63  ;;  %v3086_v14 = vld [vmem:[%s15845_s5 + $0x10c0] sm:$0xff]  ;;  %v2557_v10 = vld [vmem:[%s15845_s5 + $0x38] sm:$0xff] }
 0x51b   : > { %6400 = vmatprep.subr.bf16.mxu1 %v9924_v16  ;;  %v3090_v16 = vld [vmem:[%s15845_s5 + $0x10e0] sm:$0xff] }
 0x51c   : > { %v9977_v23 = vcombine.low %v3086_v14, %v3090_v16 }
 0x51d   : > { %6196 = vmatpush1.bf16.msra.mxu0 %v9921_v50  ;;  %v9978_v50 = vcombine.high %v3086_v14, %v3090_v16  ;;  %v2561_v16 = vld [vmem:[%s15845_s5 + $0x58] sm:$0xff] }
 0x51e   : > { %6401 = vmatpush1.bf16.msra.mxu1 %v9923_v48  ;;  %6197 = vmatprep.subr.bf16.mxu0 %v9930_v15  ;;  %v9980_v48 = vcombine.high %v3087_v55, %v3091_v2  ;;  %v3094_v15 = vld [vmem:[%s15845_s5 + $0x1100] sm:$0xff]  ;;  %v2565_v55 = vld [vmem:[%s15845_s5 + $0x78] sm:$0xff] }
 0x51f   : > { %6402 = vmatprep.subr.bf16.mxu1 %v9932_v22  ;;  %v3098_v22 = vld [vmem:[%s15845_s5 + $0x1120] sm:$0xff] }
 0x520   : > { %v9985_v60 = vcombine.low %v3094_v15, %v3098_v22 }
 0x521   : > { %6198 = vmatpush1.bf16.msra.mxu0 %v9929_v18  ;;  %v9986_v18 = vcombine.high %v3094_v15, %v3098_v22  ;;  %v9456_v15 = vcombine.high %v2561_v16, %v2565_v55  ;;  %v2569_v22 = vld [vmem:[%s15845_s5 + $0x98] sm:$0xff] }
 0x522   : > { %6403 = vmatpush1.bf16.msra.mxu1 %v9931_v9  ;;  %6199 = vmatprep.subr.bf16.mxu0 %v9938_v51  ;;  %v9988_v9 = vcombine.high %v3095_v39, %v3099_v54  ;;  %v3102_v51 = vld [vmem:[%s15845_s5 + $0x1140] sm:$0xff]  ;;  %v2573_v39 = vld [vmem:[%s15845_s5 + $0xb8] sm:$0xff] }
 0x523   : > { %6404 = vmatprep.subr.bf16.mxu1 %v9940_v43  ;;  %v3106_v43 = vld [vmem:[%s15845_s5 + $0x1160] sm:$0xff] }
 0x524   : > { %v9993_v31 = vcombine.low %v3102_v51, %v3106_v43 }
 0x525   : > { %6200 = vmatpush1.bf16.msra.mxu0 %v9937_v26  ;;  %v9994_v26 = vcombine.high %v3102_v51, %v3106_v43  ;;  %v2580_v51 = vld [vmem:[%s15845_s5 + $0xf0] sm:$0xff]  ;;  %v2577_v43 = vld [vmem:[%s15845_s5 + $0xd8] sm:$0xff] }
 0x526   : > { %6405 = vmatpush1.bf16.msra.mxu1 %v9939_v19  ;;  %6201 = vmatprep.subr.bf16.mxu0 %v9946_v32  ;;  %v9996_v19 = vcombine.high %v3103_v33, %v3107_v36  ;;  %v3110_v32 = vld [vmem:[%s15845_s5 + $0x1180] sm:$0xff]  ;;  %v2581_v33 = vld [vmem:[%s15845_s5 + $0xf8] sm:$0xff]  ;;  %v9463_v36 = vcombine.low %v2569_v22, %v2573_v39 }
 0x527   : > { %6406 = vmatprep.subr.bf16.mxu1 %v9948_v17  ;;  %v3111_v17 = vld [vmem:[%s15845_s5 + $0x1188] sm:$0xff]  ;;  %v10002_v37 = vcombine.high %v3110_v32, %v3114_v59  ;;  %v10001_v41 = vcombine.low %v3110_v32, %v3114_v59  ;;  %v2585_v32 = vld [vmem:[%s15845_s5 + $0x118] sm:$0xff] }
 0x528   : > { %v10003_v30 = vcombine.low %v3111_v17, %v3115_v49  ;;  %v2589_v59 = vld [vmem:[%s15845_s5 + $0x138] sm:$0xff] }
 0x529   : > { %6202 = vmatpush1.bf16.msra.mxu0 %v9945_v46  ;;  %v10004_v46 = vcombine.high %v3111_v17, %v3115_v49  ;;  %v9471_v49 = vcombine.low %v2577_v43, %v2581_v33 }
 0x52a   : > { %6407 = vmatpush1.bf16.msra.mxu1 %v9947_v5  ;;  %6212 = vmatprep.subr.bf16.mxu0 %v9954_v34  ;;  %v3118_v5 = vld [vmem:[%s15845_s5 + $0x11c0] sm:$0xff]  ;;  %v2498_v34 = vpop.permute.xlu0 %2497 }
 0x52b   : > { %6417 = vmatprep.subr.bf16.mxu1 %v9956_v62  ;;  %v3119_v62 = vld [vmem:[%s15845_s5 + $0x11c8] sm:$0xff]  ;;  %v10010_v27 = vcombine.high %v3118_v5, %v3122_v61 }
 0x52c   : > { %6204 = vmatmul.mubr.bf16.vlgmr.msra.gmra.mrb[8].mxu0 %v13921_v12  ;;  %v10011_v63 = vcombine.low %v3119_v62, %v3123_v6 }
 0x52d   : > { %6409 = vmatmul.mubr.bf16.vlgmr.msra.gmra.mrb[12].mxu1 %v13921_v12  ;;  %6213 = vmatpush1.bf16.msra.mxu0 %v9953_v11  ;;  %v2499_v11 = vsel %vm1121_vm1, %v13685_v58, %v2498_v34  ;;  %v10009_v58 = vcombine.low %v3118_v5, %v3122_v61  ;;  %v2593_v5 = vld [vmem:[%s15845_s5 + $0x158] sm:$0xff] }
 0x52e   : > { %6418 = vmatpush1.bf16.msra.mxu1 %v9955_v8  ;;  %6214 = vmatprep.subr.bf16.mxu0 %v9962_v13  ;;  %v10012_v8 = vcombine.high %v3119_v62, %v3123_v6  ;;  %v2552_v13 = vld [vmem:[%s15845_s5 + $0x10] sm:$0xff]  ;;  %v2540_v35 = vrot.slane %v2499_v11, %v16095_v38  ;;  %v2597_v61 = vld [vmem:[%s15845_s5 + $0x178] sm:$0xff]  ;;  %v9479_v62 = vcombine.low %v2585_v32, %v2589_v59 }
 0x52f   : > { %6419 = vmatprep.subr.bf16.mxu1 %v9964_v56  ;;  %6244 = vmatprep.mubr.bf16.mxu0 %v16081_v45  ;;  %v2556_v56 = vld [vmem:[%s15845_s5 + $0x30] sm:$0xff]  ;;  %v2601_v11 = vld [vmem:[%s15845_s5 + $0x198] sm:$0xff] }
 0x530   : > { %6449 = vmatprep.mubr.bf16.mxu1 %v16081_v45  ;;  %v9445_v14 = vcombine.low %v2552_v13, %v2556_v56  ;;  %v14026_v2 = vpack.c.bf16 %v2540_v35, %v2540_v35  ;;  %v2612_v35 = vld [vmem:[%s15845_s5 + $0x1f0] sm:$0xff] }
 0x531   : > { %6215 = vmatpush1.bf16.msra.mxu0 %v9961_v0  ;;  %v9446_v0 = vcombine.high %v2552_v13, %v2556_v56  ;;  %v9487_v56 = vcombine.low %v2593_v5, %v2597_v61 }
 0x532   : > { %6420 = vmatpush1.bf16.msra.mxu1 %v9963_v3  ;;  %6216 = vmatprep.subr.bf16.mxu0 %v9970_v1  ;;  %v9448_v3 = vcombine.high %v2553_v20, %v2557_v10  ;;  %v2560_v1 = vld [vmem:[%s15845_s5 + $0x50] sm:$0xff] }
 0x533   : > { %6421 = vmatprep.subr.bf16.mxu1 %v9972_v29  ;;  %v2564_v29 = vld [vmem:[%s15845_s5 + $0x70] sm:$0xff] }
 0x534   : > { %v9453_v54 = vcombine.low %v2560_v1, %v2564_v29 }
 0x535   : > { %6217 = vmatpush1.bf16.msra.mxu0 %v9969_v25  ;;  %v9447_v25 = vcombine.low %v2553_v20, %v2557_v10 }
 0x536   : > { %6422 = vmatpush1.bf16.msra.mxu1 %v9971_v40  ;;  %6218 = vmatprep.subr.bf16.mxu0 %v9978_v50  ;;  %v9454_v40 = vcombine.high %v2560_v1, %v2564_v29  ;;  %v2568_v50 = vld [vmem:[%s15845_s5 + $0x90] sm:$0xff] }
 0x537   : > { %6423 = vmatprep.subr.bf16.mxu1 %v9980_v48  ;;  %v2572_v48 = vld [vmem:[%s15845_s5 + $0xb0] sm:$0xff] }
 0x539   : > { %6219 = vmatpush1.bf16.msra.mxu0 %v9977_v23  ;;  %v9455_v23 = vcombine.low %v2561_v16, %v2565_v55  ;;  %v2616_v16 = vld [vmem:[%s15845_s5 + $0x210] sm:$0xff] }
 0x53a   : > { %6424 = vmatpush1.bf16.msra.mxu1 %v9979_v7  ;;  %6220 = vmatprep.subr.bf16.mxu0 %v9986_v18  ;;  %v9462_v7 = vcombine.high %v2568_v50, %v2572_v48  ;;  %v9464_v18 = vcombine.high %v2569_v22, %v2573_v39  ;;  %v2620_v55 = vld [vmem:[%s15845_s5 + $0x230] sm:$0xff] }
 0x53b   : > { %6425 = vmatprep.subr.bf16.mxu1 %v9988_v9  ;;  %v2576_v9 = vld [vmem:[%s15845_s5 + $0xd0] sm:$0xff] }
 0x53c   : > { %v9469_v17 = vcombine.low %v2576_v9, %v2580_v51  ;;  %v2624_v39 = vld [vmem:[%s15845_s5 + $0x250] sm:$0xff] }
 0x53d   : > { %6221 = vmatpush1.bf16.msra.mxu0 %v9985_v60  ;;  %v9470_v60 = vcombine.high %v2576_v9, %v2580_v51 }
 0x53e   : > { %6426 = vmatpush1.bf16.msra.mxu1 %v9987_v47  ;;  %6222 = vmatprep.subr.bf16.mxu0 %v9994_v26  ;;  %v9472_v47 = vcombine.high %v2577_v43, %v2581_v33  ;;  %v2584_v26 = vld [vmem:[%s15845_s5 + $0x110] sm:$0xff] }
 0x53f   : > { %6427 = vmatprep.subr.bf16.mxu1 %v9996_v19  ;;  %v2588_v19 = vld [vmem:[%s15845_s5 + $0x130] sm:$0xff] }
 0x540   : > { %v9477_v34 = vcombine.low %v2584_v26, %v2588_v19  ;;  %v2632_v33 = vld [vmem:[%s15845_s5 + $0x290] sm:$0xff] }
 0x541   : > { %6223 = vmatpush1.bf16.msra.mxu0 %v9993_v31  ;;  %v9478_v31 = vcombine.high %v2584_v26, %v2588_v19 }
 0x542   : > { %6428 = vmatpush1.bf16.msra.mxu1 %v9995_v28  ;;  %6224 = vmatprep.subr.bf16.mxu0 %v10002_v37  ;;  %v9480_v28 = vcombine.high %v2585_v32, %v2589_v59  ;;  %v2592_v37 = vld [vmem:[%s15845_s5 + $0x150] sm:$0xff] }
 0x543   : > { %6429 = vmatprep.subr.bf16.mxu1 %v10004_v46  ;;  %v2596_v46 = vld [vmem:[%s15845_s5 + $0x170] sm:$0xff] }
 0x544   : > { %v9486_v6 = vcombine.high %v2592_v37, %v2596_v46  ;;  %v9485_v13 = vcombine.low %v2592_v37, %v2596_v46  ;;  %v2640_v59 = vld [vmem:[%s15845_s5 + $0x2d0] sm:$0xff] }
 0x545   : > { %6225 = vmatpush1.bf16.msra.mxu0 %v10001_v41  ;;  %v9488_v41 = vcombine.high %v2593_v5, %v2597_v61  ;;  %v2648_v61 = vld [vmem:[%s15845_s5 + $0x310] sm:$0xff] }
 0x546   : > { %6430 = vmatpush1.bf16.msra.mxu1 %v10003_v30  ;;  %6226 = vmatprep.subr.bf16.mxu0 %v10010_v27  ;;  %v2600_v30 = vld [vmem:[%s15845_s5 + $0x190] sm:$0xff] }
 0x547   : > { %6431 = vmatprep.subr.bf16.mxu1 %v10012_v8  ;;  %v2604_v27 = vld [vmem:[%s15845_s5 + $0x1b0] sm:$0xff]  ;;  %v2605_v8 = vld [vmem:[%s15845_s5 + $0x1b8] sm:$0xff] }
 0x548   : > { %v9494_v20 = vcombine.high %v2600_v30, %v2604_v27  ;;  %v9496_v10 = vcombine.high %v2601_v11, %v2605_v8  ;;  %v9495_v1 = vcombine.low %v2601_v11, %v2605_v8  ;;  %v2656_v8 = vld [vmem:[%s15845_s5 + $0x350] sm:$0xff] }
 0x549   : > { %6227 = vmatpush1.bf16.msra.mxu0 %v10009_v58  ;;  %v2608_v58 = vld [vmem:[%s15845_s5 + $0x1d0] sm:$0xff] }
 0x54a   : > { %6432 = vmatpush1.bf16.msra.mxu1 %v10011_v63  ;;  %6458 = vmatprep.subr.bf16.mxu0 %v9446_v0  ;;  %v2609_v63 = vld [vmem:[%s15845_s5 + $0x1d8] sm:$0xff]  ;;  %v9502_v29 = vcombine.high %v2608_v58, %v2612_v35 }
 0x54b   : > { %6663 = vmatprep.subr.bf16.mxu1 %v9448_v3  ;;  %v2613_v0 = vld [vmem:[%s15845_s5 + $0x1f8] sm:$0xff]  ;;  %v9493_v3 = vcombine.low %v2600_v30, %v2604_v27 }
 0x54c   : > { %6245 = vmatmul.mubr.bf16.vlgmr.msra.gmra.mrb[8].mxu0 %v14026_v2 }
 0x54d   : > { %6450 = vmatmul.mubr.bf16.vlgmr.msra.gmra.mrb[12].mxu1 %v14026_v2  ;;  %6459 = vmatpush1.bf16.msra.mxu0 %v9445_v14  ;;  %v9504_v14 = vcombine.high %v2609_v63, %v2613_v0 }
 0x54e   : > { %6490 = vmatprep.mubr.bf16.mxu0 %v13293_v21  ;;  %6664 = vmatpush1.bf16.msra.mxu1 %v9447_v25  ;;  %v2617_v25 = vld [vmem:[%s15845_s5 + $0x218] sm:$0xff] }
 0x54f   : > { %6695 = vmatprep.mubr.bf16.mxu1 %v13293_v21  ;;  %6460 = vmatprep.subr.bf16.mxu0 %v9454_v40  ;;  %v9461_v21 = vcombine.low %v2568_v50, %v2572_v48  ;;  %v2621_v40 = vld [vmem:[%s15845_s5 + $0x238] sm:$0xff]  ;;  %v9501_v50 = vcombine.low %v2608_v58, %v2612_v35  ;;  %v9503_v48 = vcombine.low %v2609_v63, %v2613_v0  ;;  %v2664_v0 = vld [vmem:[%s15845_s5 + $0x390] sm:$0xff] }
 0x550   : > { %6665 = vmatprep.subr.bf16.mxu1 %v9456_v15  ;;  %v9510_v15 = vcombine.high %v2616_v16, %v2620_v55  ;;  %v9512_v22 = vcombine.high %v2617_v25, %v2621_v40  ;;  %v9511_v9 = vcombine.low %v2617_v25, %v2621_v40  ;;  %v2672_v40 = vld [vmem:[%s15845_s5 + $0x3d0] sm:$0xff] }
 0x551   : > { %6461 = vmatpush1.bf16.msra.mxu0 %v9453_v54  ;;  %v2628_v54 = vld [vmem:[%s15845_s5 + $0x270] sm:$0xff] }
 0x552   : > { %6666 = vmatpush1.bf16.msra.mxu1 %v9455_v23  ;;  %6462 = vmatprep.subr.bf16.mxu0 %v9462_v7  ;;  %v2625_v23 = vld [vmem:[%s15845_s5 + $0x258] sm:$0xff]  ;;  %v9518_v51 = vcombine.high %v2624_v39, %v2628_v54 }
 0x553   : > { %6667 = vmatprep.subr.bf16.mxu1 %v9464_v18  ;;  %v2629_v7 = vld [vmem:[%s15845_s5 + $0x278] sm:$0xff]  ;;  %v9509_v18 = vcombine.low %v2616_v16, %v2620_v55 }
 0x554   : > { %v9520_v43 = vcombine.high %v2625_v23, %v2629_v7  ;;  %v9519_v26 = vcombine.low %v2625_v23, %v2629_v7  ;;  %v2680_v7 = vld [vmem:[%s15845_s5 + $0x410] sm:$0xff] }
 0x555   : > { %6463 = vmatpush1.bf16.msra.mxu0 %v9461_v21  ;;  %v2636_v21 = vld [vmem:[%s15845_s5 + $0x2b0] sm:$0xff] }
 0x556   : > { %6668 = vmatpush1.bf16.msra.mxu1 %v9463_v36  ;;  %6464 = vmatprep.subr.bf16.mxu0 %v9470_v60  ;;  %v2633_v36 = vld [vmem:[%s15845_s5 + $0x298] sm:$0xff]  ;;  %v9526_v19 = vcombine.high %v2632_v33, %v2636_v21 }
 0x557   : > { %6669 = vmatprep.subr.bf16.mxu1 %v9472_v47  ;;  %v2637_v60 = vld [vmem:[%s15845_s5 + $0x2b8] sm:$0xff]  ;;  %v9517_v47 = vcombine.low %v2624_v39, %v2628_v54 }
 0x558   : > { %v9528_v32 = vcombine.high %v2633_v36, %v2637_v60  ;;  %v9527_v37 = vcombine.low %v2633_v36, %v2637_v60  ;;  %v2688_v60 = vld [vmem:[%s15845_s5 + $0x450] sm:$0xff] }
 0x559   : > { %6465 = vmatpush1.bf16.msra.mxu0 %v9469_v17  ;;  %v2644_v17 = vld [vmem:[%s15845_s5 + $0x2f0] sm:$0xff] }
 0x55a   : > { %6670 = vmatpush1.bf16.msra.mxu1 %v9471_v49  ;;  %6466 = vmatprep.subr.bf16.mxu0 %v9478_v31  ;;  %v2641_v49 = vld [vmem:[%s15845_s5 + $0x2d8] sm:$0xff]  ;;  %v9534_v46 = vcombine.high %v2640_v59, %v2644_v17 }
 0x55b   : > { %6671 = vmatprep.subr.bf16.mxu1 %v9480_v28  ;;  %v2645_v31 = vld [vmem:[%s15845_s5 + $0x2f8] sm:$0xff]  ;;  %v9525_v28 = vcombine.low %v2632_v33, %v2636_v21 }
 0x55c   : > { %v9536_v5 = vcombine.high %v2641_v49, %v2645_v31  ;;  %v9535_v30 = vcombine.low %v2641_v49, %v2645_v31  ;;  %v2696_v49 = vld [vmem:[%s15845_s5 + $0x490] sm:$0xff] }
 0x55d   : > { %6467 = vmatpush1.bf16.msra.mxu0 %v9477_v34  ;;  %v2652_v34 = vld [vmem:[%s15845_s5 + $0x330] sm:$0xff] }
 0x55e   : > { %6672 = vmatpush1.bf16.msra.mxu1 %v9479_v62  ;;  %6468 = vmatprep.subr.bf16.mxu0 %v9486_v6  ;;  %v2649_v62 = vld [vmem:[%s15845_s5 + $0x318] sm:$0xff]  ;;  %v9542_v27 = vcombine.high %v2648_v61, %v2652_v34  ;;  %v2700_v31 = vld [vmem:[%s15845_s5 + $0x4b0] sm:$0xff] }
 0x55f   : > { %6673 = vmatprep.subr.bf16.mxu1 %v9488_v41  ;;  %v2653_v6 = vld [vmem:[%s15845_s5 + $0x338] sm:$0xff]  ;;  %v9533_v41 = vcombine.low %v2640_v59, %v2644_v17 }
 0x560   : > { %v9544_v11 = vcombine.high %v2649_v62, %v2653_v6  ;;  %v9543_v58 = vcombine.low %v2649_v62, %v2653_v6  ;;  %v2704_v6 = vld [vmem:[%s15845_s5 + $0x4d0] sm:$0xff] }
 0x561   : > { %6469 = vmatpush1.bf16.msra.mxu0 %v9485_v13  ;;  %v2660_v13 = vld [vmem:[%s15845_s5 + $0x370] sm:$0xff] }
 0x562   : > { %6674 = vmatpush1.bf16.msra.mxu1 %v9487_v56  ;;  %6470 = vmatprep.subr.bf16.mxu0 %v9494_v20  ;;  %v2657_v56 = vld [vmem:[%s15845_s5 + $0x358] sm:$0xff]  ;;  %v9550_v35 = vcombine.high %v2656_v8, %v2660_v13 }
 0x563   : > { %6675 = vmatprep.subr.bf16.mxu1 %v9496_v10  ;;  %v2661_v20 = vld [vmem:[%s15845_s5 + $0x378] sm:$0xff]  ;;  %v9541_v10 = vcombine.low %v2648_v61, %v2652_v34  ;;  %v9590_v34 = vcombine.high %v2696_v49, %v2700_v31 }
 0x564   : > { %v9552_v63 = vcombine.high %v2657_v56, %v2661_v20  ;;  %v9551_v16 = vcombine.low %v2657_v56, %v2661_v20  ;;  %v2716_v56 = vld [vmem:[%s15845_s5 + $0x530] sm:$0xff]  ;;  %v2713_v20 = vld [vmem:[%s15845_s5 + $0x518] sm:$0xff] }
 0x565   : > { %6471 = vmatpush1.bf16.msra.mxu0 %v9493_v3  ;;  %v2668_v3 = vld [vmem:[%s15845_s5 + $0x3b0] sm:$0xff] }
 0x566   : > { %6676 = vmatpush1.bf16.msra.mxu1 %v9495_v1  ;;  %6472 = vmatprep.subr.bf16.mxu0 %v9502_v29  ;;  %v2665_v1 = vld [vmem:[%s15845_s5 + $0x398] sm:$0xff]  ;;  %v9558_v55 = vcombine.high %v2664_v0, %v2668_v3 }
 0x567   : > { %6677 = vmatprep.subr.bf16.mxu1 %v9504_v14  ;;  %v2669_v29 = vld [vmem:[%s15845_s5 + $0x3b8] sm:$0xff]  ;;  %v9549_v14 = vcombine.low %v2656_v8, %v2660_v13  ;;  %v2712_v13 = vld [vmem:[%s15845_s5 + $0x510] sm:$0xff] }
 0x568   : > { %v9560_v25 = vcombine.high %v2665_v1, %v2669_v29  ;;  %v9559_v39 = vcombine.low %v2665_v1, %v2669_v29  ;;  %v2724_v1 = vld [vmem:[%s15845_s5 + $0x570] sm:$0xff]  ;;  %v2721_v29 = vld [vmem:[%s15845_s5 + $0x558] sm:$0xff] }
 0x569   : > { %6473 = vmatpush1.bf16.msra.mxu0 %v9501_v50  ;;  %v2676_v50 = vld [vmem:[%s15845_s5 + $0x3f0] sm:$0xff] }
 0x56a   : > { %6678 = vmatpush1.bf16.msra.mxu1 %v9503_v48  ;;  %6474 = vmatprep.subr.bf16.mxu0 %v9510_v15  ;;  %v2673_v48 = vld [vmem:[%s15845_s5 + $0x3d8] sm:$0xff]  ;;  %v9566_v54 = vcombine.high %v2672_v40, %v2676_v50 }
 0x56b   : > { %6679 = vmatprep.subr.bf16.mxu1 %v9512_v22  ;;  %v2677_v15 = vld [vmem:[%s15845_s5 + $0x3f8] sm:$0xff]  ;;  %v9557_v22 = vcombine.low %v2664_v0, %v2668_v3  ;;  %v2720_v3 = vld [vmem:[%s15845_s5 + $0x550] sm:$0xff] }
 0x56c   : > { %v9568_v23 = vcombine.high %v2673_v48, %v2677_v15  ;;  %v9567_v33 = vcombine.low %v2673_v48, %v2677_v15  ;;  %v2732_v48 = vld [vmem:[%s15845_s5 + $0x5b0] sm:$0xff]  ;;  %v2729_v15 = vld [vmem:[%s15845_s5 + $0x598] sm:$0xff] }
 0x56d   : > { %6475 = vmatpush1.bf16.msra.mxu0 %v9509_v18  ;;  %v2684_v18 = vld [vmem:[%s15845_s5 + $0x430] sm:$0xff] }
 0x56e   : > { %6680 = vmatpush1.bf16.msra.mxu1 %v9511_v9  ;;  %6476 = vmatprep.subr.bf16.mxu0 %v9518_v51  ;;  %v2681_v9 = vld [vmem:[%s15845_s5 + $0x418] sm:$0xff]  ;;  %v9574_v21 = vcombine.high %v2680_v7, %v2684_v18 }
 0x56f   : > { %6681 = vmatprep.subr.bf16.mxu1 %v9520_v43  ;;  %v2685_v51 = vld [vmem:[%s15845_s5 + $0x438] sm:$0xff]  ;;  %v9565_v43 = vcombine.low %v2672_v40, %v2676_v50  ;;  %v2728_v50 = vld [vmem:[%s15845_s5 + $0x590] sm:$0xff] }
 0x570   : > { %v9576_v36 = vcombine.high %v2681_v9, %v2685_v51  ;;  %v9575_v59 = vcombine.low %v2681_v9, %v2685_v51  ;;  %v2740_v9 = vld [vmem:[%s15845_s5 + $0x5f0] sm:$0xff]  ;;  %v2737_v51 = vld [vmem:[%s15845_s5 + $0x5d8] sm:$0xff] }
 0x571   : > { %6477 = vmatpush1.bf16.msra.mxu0 %v9517_v47  ;;  %v2692_v47 = vld [vmem:[%s15845_s5 + $0x470] sm:$0xff] }
 0x572   : > { %6682 = vmatpush1.bf16.msra.mxu1 %v9519_v26  ;;  %6478 = vmatprep.subr.bf16.mxu0 %v9526_v19  ;;  %v9573_v26 = vcombine.low %v2680_v7, %v2684_v18  ;;  %v2689_v19 = vld [vmem:[%s15845_s5 + $0x458] sm:$0xff]  ;;  %v9582_v17 = vcombine.high %v2688_v60, %v2692_v47  ;;  %v2736_v18 = vld [vmem:[%s15845_s5 + $0x5d0] sm:$0xff] }
 0x573   : > { %6683 = vmatprep.subr.bf16.mxu1 %v9528_v32  ;;  %v2693_v32 = vld [vmem:[%s15845_s5 + $0x478] sm:$0xff] }
 0x574   : > { %v9583_v61 = vcombine.low %v2689_v19, %v2693_v32 }
 0x575   : > { %6479 = vmatpush1.bf16.msra.mxu0 %v9525_v28  ;;  %v9584_v28 = vcombine.high %v2689_v19, %v2693_v32  ;;  %v2745_v19 = vld [vmem:[%s15845_s5 + $0x618] sm:$0xff] }
 0x576   : > { %6684 = vmatpush1.bf16.msra.mxu1 %v9527_v37  ;;  %6480 = vmatprep.subr.bf16.mxu0 %v9534_v46  ;;  %v2697_v37 = vld [vmem:[%s15845_s5 + $0x498] sm:$0xff] }
 0x577   : > { %6685 = vmatprep.subr.bf16.mxu1 %v9536_v5  ;;  %v2701_v46 = vld [vmem:[%s15845_s5 + $0x4b8] sm:$0xff]  ;;  %v9581_v5 = vcombine.low %v2688_v60, %v2692_v47  ;;  %v2744_v47 = vld [vmem:[%s15845_s5 + $0x610] sm:$0xff] }
 0x578   : > { %v9592_v62 = vcombine.high %v2697_v37, %v2701_v46  ;;  %v2749_v32 = vld [vmem:[%s15845_s5 + $0x638] sm:$0xff] }
 0x579   : > { %6481 = vmatpush1.bf16.msra.mxu0 %v9533_v41  ;;  %v2708_v41 = vld [vmem:[%s15845_s5 + $0x4f0] sm:$0xff] }
 0x57a   : > { %6686 = vmatpush1.bf16.msra.mxu1 %v9535_v30  ;;  %6482 = vmatprep.subr.bf16.mxu0 %v9542_v27  ;;  %v2709_v30 = vld [vmem:[%s15845_s5 + $0x4f8] sm:$0xff]  ;;  %v9591_v27 = vcombine.low %v2697_v37, %v2701_v46  ;;  %v2756_v37 = vld [vmem:[%s15845_s5 + $0x670] sm:$0xff] }
 0x57b   : > { %6687 = vmatprep.subr.bf16.mxu1 %v9544_v11  ;;  %v9598_v11 = vcombine.high %v2704_v6, %v2708_v41  ;;  %v2753_v46 = vld [vmem:[%s15845_s5 + $0x658] sm:$0xff] }
 0x57d   : > { %6483 = vmatpush1.bf16.msra.mxu0 %v9541_v10  ;;  %v2717_v10 = vld [vmem:[%s15845_s5 + $0x538] sm:$0xff] }
 0x57e   : > { %6688 = vmatpush1.bf16.msra.mxu1 %v9543_v58  ;;  %6484 = vmatprep.subr.bf16.mxu0 %v9550_v35  ;;  %v9597_v58 = vcombine.low %v2704_v6, %v2708_v41  ;;  %v9608_v0 = vcombine.high %v2713_v20, %v2717_v10  ;;  %v2760_v41 = vld [vmem:[%s15845_s5 + $0x690] sm:$0xff] }
 0x57f   : > { %6689 = vmatprep.subr.bf16.mxu1 %v9552_v63  ;;  %v9606_v63 = vcombine.high %v2712_v13, %v2716_v56 }
 0x581   : > { %6485 = vmatpush1.bf16.msra.mxu0 %v9549_v14  ;;  %v2725_v14 = vld [vmem:[%s15845_s5 + $0x578] sm:$0xff] }
 0x582   : > { %6690 = vmatpush1.bf16.msra.mxu1 %v9551_v16  ;;  %6486 = vmatprep.subr.bf16.mxu0 %v9558_v55  ;;  %v9605_v16 = vcombine.low %v2712_v13, %v2716_v56  ;;  %v9607_v55 = vcombine.low %v2713_v20, %v2717_v10  ;;  %v9616_v40 = vcombine.high %v2721_v29, %v2725_v14  ;;  %v2768_v56 = vld [vmem:[%s15845_s5 + $0x6d0] sm:$0xff]  ;;  %v2769_v10 = vld [vmem:[%s15845_s5 + $0x6d8] sm:$0xff] }
 0x583   : > { %6691 = vmatprep.subr.bf16.mxu1 %v9560_v25  ;;  %v9614_v25 = vcombine.high %v2720_v3, %v2724_v1  ;;  %v2772_v20 = vld [vmem:[%s15845_s5 + $0x6f0] sm:$0xff] }
 0x585   : > { %6487 = vmatpush1.bf16.msra.mxu0 %v9557_v22  ;;  %v2733_v22 = vld [vmem:[%s15845_s5 + $0x5b8] sm:$0xff] }
 0x586   : > { %6692 = vmatpush1.bf16.msra.mxu1 %v9559_v39  ;;  %6488 = vmatprep.subr.bf16.mxu0 %v9566_v54  ;;  %v9613_v39 = vcombine.low %v2720_v3, %v2724_v1  ;;  %v9615_v54 = vcombine.low %v2721_v29, %v2725_v14  ;;  %v9624_v7 = vcombine.high %v2729_v15, %v2733_v22  ;;  %v2776_v1 = vld [vmem:[%s15845_s5 + $0x710] sm:$0xff]  ;;  %v2777_v14 = vld [vmem:[%s15845_s5 + $0x718] sm:$0xff] }
 0x587   : > { %6693 = vmatprep.subr.bf16.mxu1 %v9568_v23  ;;  %v9622_v23 = vcombine.high %v2728_v50, %v2732_v48  ;;  %v2780_v29 = vld [vmem:[%s15845_s5 + $0x730] sm:$0xff] }
 0x589   : > { %6489 = vmatpush1.bf16.msra.mxu0 %v9565_v43  ;;  %v2741_v43 = vld [vmem:[%s15845_s5 + $0x5f8] sm:$0xff] }
 0x58a   : > { %6694 = vmatpush1.bf16.msra.mxu1 %v9567_v33  ;;  %6499 = vmatprep.subr.bf16.mxu0 %v9574_v21  ;;  %v9621_v33 = vcombine.low %v2728_v50, %v2732_v48  ;;  %v9623_v21 = vcombine.low %v2729_v15, %v2733_v22  ;;  %v9632_v60 = vcombine.high %v2737_v51, %v2741_v43  ;;  %v2784_v48 = vld [vmem:[%s15845_s5 + $0x750] sm:$0xff]  ;;  %v2785_v22 = vld [vmem:[%s15845_s5 + $0x758] sm:$0xff] }
 0x58b   : > { %6704 = vmatprep.subr.bf16.mxu1 %v9576_v36  ;;  %v9630_v36 = vcombine.high %v2736_v18, %v2740_v9  ;;  %v2788_v15 = vld [vmem:[%s15845_s5 + $0x770] sm:$0xff] }
 0x58c   : > { %6491 = vmatmul.mubr.bf16.vlgmr.msra.gmra.mrb[12].mxu0 %v13295_v57 }
 0x58d   : > { %6696 = vmatmul.mubr.bf16.vlgmr.msra.gmra.mrb[16].mxu1 %v13295_v57  ;;  %6500 = vmatpush1.bf16.msra.mxu0 %v9573_v26  ;;  %v2705_v57 = vld [vmem:[%s15845_s5 + $0x4d8] sm:$0xff]  ;;  %v2748_v26 = vld [vmem:[%s15845_s5 + $0x630] sm:$0xff] }
 0x58e   : > { %6531 = vmatprep.mubr.bf16.mxu0 %v13313_v44  ;;  %6705 = vmatpush1.bf16.msra.mxu1 %v9575_v59  ;;  %v9600_v8 = vcombine.high %v2705_v57, %v2709_v30  ;;  %v9599_v35 = vcombine.low %v2705_v57, %v2709_v30  ;;  %v9629_v59 = vcombine.low %v2736_v18, %v2740_v9  ;;  %v2764_v57 = vld [vmem:[%s15845_s5 + $0x6b0] sm:$0xff]  ;;  %v2761_v30 = vld [vmem:[%s15845_s5 + $0x698] sm:$0xff] }
 0x58f   : > { %6736 = vmatprep.mubr.bf16.mxu1 %v13313_v44  ;;  %6501 = vmatprep.subr.bf16.mxu0 %v9582_v17  ;;  %v9589_v44 = vcombine.low %v2696_v49, %v2700_v31  ;;  %v9631_v17 = vcombine.low %v2737_v51, %v2741_v43  ;;  %v9638_v49 = vcombine.high %v2744_v47, %v2748_v26  ;;  %v2792_v9 = vld [vmem:[%s15845_s5 + $0x790] sm:$0xff]  ;;  %v2793_v43 = vld [vmem:[%s15845_s5 + $0x798] sm:$0xff] }
 0x590   : > { %6706 = vmatprep.subr.bf16.mxu1 %v9584_v28  ;;  %v9640_v31 = vcombine.high %v2745_v19, %v2749_v32  ;;  %v2752_v28 = vld [vmem:[%s15845_s5 + $0x650] sm:$0xff] }
 0x591   : > { %6502 = vmatpush1.bf16.msra.mxu0 %v9581_v5  ;;  %v2757_v5 = vld [vmem:[%s15845_s5 + $0x678] sm:$0xff]  ;;  %v2796_v51 = vld [vmem:[%s15845_s5 + $0x7b0] sm:$0xff] }
 0x592   : > { %6707 = vmatpush1.bf16.msra.mxu1 %v9583_v61  ;;  %6503 = vmatprep.subr.bf16.mxu0 %v9590_v34  ;;  %v9637_v61 = vcombine.low %v2744_v47, %v2748_v26  ;;  %v9639_v34 = vcombine.low %v2745_v19, %v2749_v32  ;;  %v9648_v6 = vcombine.high %v2753_v46, %v2757_v5  ;;  %v2800_v26 = vld [vmem:[%s15845_s5 + $0x7d0] sm:$0xff]  ;;  %v2801_v32 = vld [vmem:[%s15845_s5 + $0x7d8] sm:$0xff] }
 0x593   : > { %6708 = vmatprep.subr.bf16.mxu1 %v9592_v62  ;;  %v9646_v62 = vcombine.high %v2752_v28, %v2756_v37  ;;  %v2804_v19 = vld [vmem:[%s15845_s5 + $0x7f0] sm:$0xff] }
 0x595   : > { %6504 = vmatpush1.bf16.msra.mxu0 %v9589_v44  ;;  %v2765_v44 = vld [vmem:[%s15845_s5 + $0x6b8] sm:$0xff] }
 0x596   : > { %6709 = vmatpush1.bf16.msra.mxu1 %v9591_v27  ;;  %6505 = vmatprep.subr.bf16.mxu0 %v9598_v11  ;;  %v9645_v27 = vcombine.low %v2752_v28, %v2756_v37  ;;  %v9647_v11 = vcombine.low %v2753_v46, %v2757_v5  ;;  %v9656_v13 = vcombine.high %v2761_v30, %v2765_v44  ;;  %v2808_v37 = vld [vmem:[%s15845_s5 + $0x810] sm:$0xff]  ;;  %v2809_v5 = vld [vmem:[%s15845_s5 + $0x818] sm:$0xff] }
 0x597   : > { %6710 = vmatprep.subr.bf16.mxu1 %v9600_v8  ;;  %v9654_v8 = vcombine.high %v2760_v41, %v2764_v57  ;;  %v2812_v46 = vld [vmem:[%s15845_s5 + $0x830] sm:$0xff] }
 0x599   : > { %6506 = vmatpush1.bf16.msra.mxu0 %v9597_v58  ;;  %v2773_v58 = vld [vmem:[%s15845_s5 + $0x6f8] sm:$0xff] }
 0x59a   : > { %6711 = vmatpush1.bf16.msra.mxu1 %v9599_v35  ;;  %6507 = vmatprep.subr.bf16.mxu0 %v9606_v63  ;;  %v9653_v35 = vcombine.low %v2760_v41, %v2764_v57  ;;  %v9655_v63 = vcombine.low %v2761_v30, %v2765_v44  ;;  %v9664_v3 = vcombine.high %v2769_v10, %v2773_v58  ;;  %v2816_v57 = vld [vmem:[%s15845_s5 + $0x850] sm:$0xff] }
 0x59b   : > { %6712 = vmatprep.subr.bf16.mxu1 %v9608_v0  ;;  %v9662_v0 = vcombine.high %v2768_v56, %v2772_v20  ;;  %v2820_v30 = vld [vmem:[%s15845_s5 + $0x870] sm:$0xff]  ;;  %v9701_v44 = vcombine.low %v2808_v37, %v2812_v46 }
 0x59d   : > { %6508 = vmatpush1.bf16.msra.mxu0 %v9605_v16  ;;  %v2781_v16 = vld [vmem:[%s15845_s5 + $0x738] sm:$0xff] }
 0x59e   : > { %6713 = vmatpush1.bf16.msra.mxu1 %v9607_v55  ;;  %6509 = vmatprep.subr.bf16.mxu0 %v9614_v25  ;;  %v9661_v55 = vcombine.low %v2768_v56, %v2772_v20  ;;  %v9663_v25 = vcombine.low %v2769_v10, %v2773_v58  ;;  %v9672_v50 = vcombine.high %v2777_v14, %v2781_v16  ;;  %v2824_v56 = vld [vmem:[%s15845_s5 + $0x890] sm:$0xff]  ;;  %v2825_v58 = vld [vmem:[%s15845_s5 + $0x898] sm:$0xff] }
 0x59f   : > { %6714 = vmatprep.subr.bf16.mxu1 %v9616_v40  ;;  %v9670_v40 = vcombine.high %v2776_v1, %v2780_v29  ;;  %v2828_v20 = vld [vmem:[%s15845_s5 + $0x8b0] sm:$0xff] }
 0x5a1   : > { %6510 = vmatpush1.bf16.msra.mxu0 %v9613_v39  ;;  %v2789_v39 = vld [vmem:[%s15845_s5 + $0x778] sm:$0xff] }
 0x5a2   : > { %6715 = vmatpush1.bf16.msra.mxu1 %v9615_v54  ;;  %6511 = vmatprep.subr.bf16.mxu0 %v9622_v23  ;;  %v9669_v54 = vcombine.low %v2776_v1, %v2780_v29  ;;  %v9671_v23 = vcombine.low %v2777_v14, %v2781_v16  ;;  %v9680_v18 = vcombine.high %v2785_v22, %v2789_v39  ;;  %v2832_v29 = vld [vmem:[%s15845_s5 + $0x8d0] sm:$0xff]  ;;  %v2837_v16 = vld [vmem:[%s15845_s5 + $0x8f8] sm:$0xff] }
 0x5a3   : > { %6716 = vmatprep.subr.bf16.mxu1 %v9624_v7  ;;  %v9678_v7 = vcombine.high %v2784_v48, %v2788_v15  ;;  %v2836_v14 = vld [vmem:[%s15845_s5 + $0x8f0] sm:$0xff] }
 0x5a5   : > { %6512 = vmatpush1.bf16.msra.mxu0 %v9621_v33  ;;  %v2797_v33 = vld [vmem:[%s15845_s5 + $0x7b8] sm:$0xff] }
 0x5a6   : > { %6717 = vmatpush1.bf16.msra.mxu1 %v9623_v21  ;;  %6513 = vmatprep.subr.bf16.mxu0 %v9630_v36  ;;  %v9677_v21 = vcombine.low %v2784_v48, %v2788_v15  ;;  %v9679_v36 = vcombine.low %v2785_v22, %v2789_v39  ;;  %v9688_v47 = vcombine.high %v2793_v43, %v2797_v33  ;;  %v2844_v48 = vld [vmem:[%s15845_s5 + $0x930] sm:$0xff]  ;;  %v2841_v15 = vld [vmem:[%s15845_s5 + $0x918] sm:$0xff] }
 0x5a7   : > { %6718 = vmatprep.subr.bf16.mxu1 %v9632_v60  ;;  %v9686_v60 = vcombine.high %v2792_v9, %v2796_v51  ;;  %v2845_v22 = vld [vmem:[%s15845_s5 + $0x938] sm:$0xff]  ;;  %v9725_v39 = vcombine.low %v2832_v29, %v2836_v14 }
 0x5a9   : > { %6514 = vmatpush1.bf16.msra.mxu0 %v9629_v59  ;;  %v2805_v59 = vld [vmem:[%s15845_s5 + $0x7f8] sm:$0xff] }
 0x5aa   : > { %6719 = vmatpush1.bf16.msra.mxu1 %v9631_v17  ;;  %6515 = vmatprep.subr.bf16.mxu0 %v9638_v49  ;;  %v9685_v17 = vcombine.low %v2792_v9, %v2796_v51  ;;  %v9687_v49 = vcombine.low %v2793_v43, %v2797_v33  ;;  %v9696_v28 = vcombine.high %v2801_v32, %v2805_v59  ;;  %v2852_v9 = vld [vmem:[%s15845_s5 + $0x970] sm:$0xff]  ;;  %v2849_v51 = vld [vmem:[%s15845_s5 + $0x958] sm:$0xff] }
 0x5ab   : > { %6720 = vmatprep.subr.bf16.mxu1 %v9640_v31  ;;  %v9694_v31 = vcombine.high %v2800_v26, %v2804_v19  ;;  %v2853_v43 = vld [vmem:[%s15845_s5 + $0x978] sm:$0xff] }
 0x5ad   : > { %6516 = vmatpush1.bf16.msra.mxu0 %v9637_v61  ;;  %v2813_v61 = vld [vmem:[%s15845_s5 + $0x838] sm:$0xff] }
 0x5ae   : > { %6721 = vmatpush1.bf16.msra.mxu1 %v9639_v34  ;;  %6517 = vmatprep.subr.bf16.mxu0 %v9646_v62  ;;  %v9693_v34 = vcombine.low %v2800_v26, %v2804_v19  ;;  %v9695_v62 = vcombine.low %v2801_v32, %v2805_v59  ;;  %v9704_v41 = vcombine.high %v2809_v5, %v2813_v61  ;;  %v2860_v26 = vld [vmem:[%s15845_s5 + $0x9b0] sm:$0xff]  ;;  %v2857_v19 = vld [vmem:[%s15845_s5 + $0x998] sm:$0xff] }
 0x5af   : > { %6722 = vmatprep.subr.bf16.mxu1 %v9648_v6  ;;  %v9702_v6 = vcombine.high %v2808_v37, %v2812_v46  ;;  %v2861_v32 = vld [vmem:[%s15845_s5 + $0x9b8] sm:$0xff]  ;;  %v2868_v37 = vld [vmem:[%s15845_s5 + $0x9f0] sm:$0xff] }
 0x5b0   : > { %v2865_v46 = vld [vmem:[%s15845_s5 + $0x9d8] sm:$0xff] }
 0x5b1   : > { %6518 = vmatpush1.bf16.msra.mxu0 %v9645_v27  ;;  %v2817_v27 = vld [vmem:[%s15845_s5 + $0x858] sm:$0xff] }
 0x5b2   : > { %6723 = vmatpush1.bf16.msra.mxu1 %v9647_v11  ;;  %6519 = vmatprep.subr.bf16.mxu0 %v9654_v8  ;;  %v2821_v11 = vld [vmem:[%s15845_s5 + $0x878] sm:$0xff]  ;;  %v9703_v8 = vcombine.low %v2809_v5, %v2813_v61 }
 0x5b3   : > { %6724 = vmatprep.subr.bf16.mxu1 %v9656_v13  ;;  %v9710_v13 = vcombine.high %v2816_v57, %v2820_v30  ;;  %v9712_v10 = vcombine.high %v2817_v27, %v2821_v11  ;;  %v2869_v5 = vld [vmem:[%s15845_s5 + $0x9f8] sm:$0xff] }
 0x5b5   : > { %6520 = vmatpush1.bf16.msra.mxu0 %v9653_v35  ;;  %v2829_v35 = vld [vmem:[%s15845_s5 + $0x8b8] sm:$0xff] }
 0x5b6   : > { %6725 = vmatpush1.bf16.msra.mxu1 %v9655_v63  ;;  %6521 = vmatprep.subr.bf16.mxu0 %v9662_v0  ;;  %v9709_v63 = vcombine.low %v2816_v57, %v2820_v30  ;;  %v9711_v0 = vcombine.low %v2817_v27, %v2821_v11  ;;  %v9720_v1 = vcombine.high %v2825_v58, %v2829_v35  ;;  %v2876_v57 = vld [vmem:[%s15845_s5 + $0xa30] sm:$0xff]  ;;  %v2873_v30 = vld [vmem:[%s15845_s5 + $0xa18] sm:$0xff] }
 0x5b7   : > { %6726 = vmatprep.subr.bf16.mxu1 %v9664_v3  ;;  %v9718_v3 = vcombine.high %v2824_v56, %v2828_v20  ;;  %v9759_v11 = vcombine.low %v2865_v46, %v2869_v5 }
 0x5b9   : > { %6522 = vmatpush1.bf16.msra.mxu0 %v9661_v55  ;;  %v9719_v55 = vcombine.low %v2825_v58, %v2829_v35  ;;  %v2885_v58 = vld [vmem:[%s15845_s5 + $0xa78] sm:$0xff] }
 0x5ba   : > { %6727 = vmatpush1.bf16.msra.mxu1 %v9663_v25  ;;  %6523 = vmatprep.subr.bf16.mxu0 %v9670_v40  ;;  %v9726_v25 = vcombine.high %v2832_v29, %v2836_v14  ;;  %v2892_v29 = vld [vmem:[%s15845_s5 + $0xab0] sm:$0xff]  ;;  %v2889_v14 = vld [vmem:[%s15845_s5 + $0xa98] sm:$0xff] }
 0x5bb   : > { %6728 = vmatprep.subr.bf16.mxu1 %v9672_v50  ;;  %v2840_v50 = vld [vmem:[%s15845_s5 + $0x910] sm:$0xff] }
 0x5bc   : > { %v9733_v33 = vcombine.low %v2840_v50, %v2844_v48 }
 0x5bd   : > { %6524 = vmatpush1.bf16.msra.mxu0 %v9669_v54 }
 0x5be   : > { %6729 = vmatpush1.bf16.msra.mxu1 %v9671_v23  ;;  %6525 = vmatprep.subr.bf16.mxu0 %v9678_v7  ;;  %v9734_v23 = vcombine.high %v2840_v50, %v2844_v48  ;;  %v9736_v7 = vcombine.high %v2841_v15, %v2845_v22  ;;  %v2900_v50 = vld [vmem:[%s15845_s5 + $0xaf0] sm:$0xff]  ;;  %v2897_v48 = vld [vmem:[%s15845_s5 + $0xad8] sm:$0xff] }
 0x5bf   : > { %6730 = vmatprep.subr.bf16.mxu1 %v9680_v18  ;;  %v2848_v18 = vld [vmem:[%s15845_s5 + $0x950] sm:$0xff] }
 0x5c0   : > { %v9741_v59 = vcombine.low %v2848_v18, %v2852_v9 }
 0x5c1   : > { %6526 = vmatpush1.bf16.msra.mxu0 %v9677_v21  ;;  %v9735_v21 = vcombine.low %v2841_v15, %v2845_v22  ;;  %v2901_v15 = vld [vmem:[%s15845_s5 + $0xaf8] sm:$0xff] }
 0x5c2   : > { %6731 = vmatpush1.bf16.msra.mxu1 %v9679_v36  ;;  %6527 = vmatprep.subr.bf16.mxu0 %v9686_v60  ;;  %v9742_v36 = vcombine.high %v2848_v18, %v2852_v9  ;;  %v9744_v60 = vcombine.high %v2849_v51, %v2853_v43  ;;  %v2908_v18 = vld [vmem:[%s15845_s5 + $0xb30] sm:$0xff]  ;;  %v2905_v9 = vld [vmem:[%s15845_s5 + $0xb18] sm:$0xff] }
 0x5c3   : > { %6732 = vmatprep.subr.bf16.mxu1 %v9688_v47  ;;  %v2856_v47 = vld [vmem:[%s15845_s5 + $0x990] sm:$0xff] }
 0x5c4   : > { %v9749_v61 = vcombine.low %v2856_v47, %v2860_v26 }
 0x5c5   : > { %6528 = vmatpush1.bf16.msra.mxu0 %v9685_v17  ;;  %v9743_v17 = vcombine.low %v2849_v51, %v2853_v43  ;;  %v2909_v51 = vld [vmem:[%s15845_s5 + $0xb38] sm:$0xff] }
 0x5c6   : > { %6733 = vmatpush1.bf16.msra.mxu1 %v9687_v49  ;;  %6529 = vmatprep.subr.bf16.mxu0 %v9694_v31  ;;  %v9750_v49 = vcombine.high %v2856_v47, %v2860_v26  ;;  %v9752_v31 = vcombine.high %v2857_v19, %v2861_v32  ;;  %v2916_v47 = vld [vmem:[%s15845_s5 + $0xb70] sm:$0xff]  ;;  %v2913_v26 = vld [vmem:[%s15845_s5 + $0xb58] sm:$0xff] }
 0x5c7   : > { %6734 = vmatprep.subr.bf16.mxu1 %v9696_v28  ;;  %v2864_v28 = vld [vmem:[%s15845_s5 + $0x9d0] sm:$0xff] }
 0x5c8   : > { %v9757_v27 = vcombine.low %v2864_v28, %v2868_v37 }
 0x5c9   : > { %6530 = vmatpush1.bf16.msra.mxu0 %v9693_v34  ;;  %v9751_v34 = vcombine.low %v2857_v19, %v2861_v32  ;;  %v2917_v19 = vld [vmem:[%s15845_s5 + $0xb78] sm:$0xff] }
 0x5ca   : > { %6735 = vmatpush1.bf16.msra.mxu1 %v9695_v62  ;;  %6540 = vmatprep.subr.bf16.mxu0 %v9702_v6  ;;  %v9758_v62 = vcombine.high %v2864_v28, %v2868_v37  ;;  %v9760_v6 = vcombine.high %v2865_v46, %v2869_v5  ;;  %v2924_v28 = vld [vmem:[%s15845_s5 + $0xbb0] sm:$0xff]  ;;  %v2921_v37 = vld [vmem:[%s15845_s5 + $0xb98] sm:$0xff] }
 0x5cb   : > { %6745 = vmatprep.subr.bf16.mxu1 %v9704_v41  ;;  %v2872_v41 = vld [vmem:[%s15845_s5 + $0xa10] sm:$0xff]  ;;  %v2925_v46 = vld [vmem:[%s15845_s5 + $0xbb8] sm:$0xff] }
 0x5cc   : > { %6532 = vmatmul.mubr.bf16.vlgmr.msra.gmra.mrb[12].mxu0 %v13508_v4  ;;  %v9765_v35 = vcombine.low %v2872_v41, %v2876_v57 }
 0x5cd   : > { %6737 = vmatmul.mubr.bf16.vlgmr.msra.gmra.mrb[16].mxu1 %v13508_v4  ;;  %6541 = vmatpush1.bf16.msra.mxu0 %v9701_v44  ;;  %v2833_v4 = vld [vmem:[%s15845_s5 + $0x8d8] sm:$0xff] }
 0x5ce   : > { %6572 = vmatprep.mubr.bf16.mxu0 %v13510_v53  ;;  %6746 = vmatpush1.bf16.msra.mxu1 %v9703_v8  ;;  %v9728_v40 = vcombine.high %v2833_v4, %v2837_v16  ;;  %v9727_v54 = vcombine.low %v2833_v4, %v2837_v16  ;;  %v2877_v44 = vld [vmem:[%s15845_s5 + $0xa38] sm:$0xff]  ;;  %v9766_v8 = vcombine.high %v2872_v41, %v2876_v57  ;;  %v2932_v41 = vld [vmem:[%s15845_s5 + $0xbf0] sm:$0xff] }
 0x5cf   : > { %6777 = vmatprep.mubr.bf16.mxu1 %v13510_v53  ;;  %6542 = vmatprep.subr.bf16.mxu0 %v9710_v13  ;;  %v9717_v53 = vcombine.low %v2824_v56, %v2828_v20  ;;  %v9768_v13 = vcombine.high %v2873_v30, %v2877_v44  ;;  %v2880_v56 = vld [vmem:[%s15845_s5 + $0xa50] sm:$0xff]  ;;  %v2893_v4 = vld [vmem:[%s15845_s5 + $0xab8] sm:$0xff] }
 0x5d0   : > { %6747 = vmatprep.subr.bf16.mxu1 %v9712_v10  ;;  %v2884_v20 = vld [vmem:[%s15845_s5 + $0xa70] sm:$0xff]  ;;  %v2881_v10 = vld [vmem:[%s15845_s5 + $0xa58] sm:$0xff] }
 0x5d1   : > { %6543 = vmatpush1.bf16.msra.mxu0 %v9709_v63  ;;  %v9767_v63 = vcombine.low %v2873_v30, %v2877_v44  ;;  %v9773_v16 = vcombine.low %v2880_v56, %v2884_v20  ;;  %v2929_v57 = vld [vmem:[%s15845_s5 + $0xbd8] sm:$0xff] }
 0x5d2   : > { %6748 = vmatpush1.bf16.msra.mxu1 %v9711_v0  ;;  %6544 = vmatprep.subr.bf16.mxu0 %v9718_v3  ;;  %v9774_v0 = vcombine.high %v2880_v56, %v2884_v20  ;;  %v9776_v3 = vcombine.high %v2881_v10, %v2885_v58  ;;  %v2933_v30 = vld [vmem:[%s15845_s5 + $0xbf8] sm:$0xff]  ;;  %v2940_v56 = vld [vmem:[%s15845_s5 + $0xc30] sm:$0xff] }
 0x5d3   : > { %6749 = vmatprep.subr.bf16.mxu1 %v9720_v1  ;;  %v2888_v1 = vld [vmem:[%s15845_s5 + $0xa90] sm:$0xff]  ;;  %v2937_v20 = vld [vmem:[%s15845_s5 + $0xc18] sm:$0xff] }
 0x5d4   : > { %v9781_v22 = vcombine.low %v2888_v1, %v2892_v29 }
 0x5d5   : > { %6545 = vmatpush1.bf16.msra.mxu0 %v9717_v53  ;;  %v9775_v53 = vcombine.low %v2881_v10, %v2885_v58  ;;  %v2941_v10 = vld [vmem:[%s15845_s5 + $0xc38] sm:$0xff] }
 0x5d6   : > { %6750 = vmatpush1.bf16.msra.mxu1 %v9719_v55  ;;  %6546 = vmatprep.subr.bf16.mxu0 %v9726_v25  ;;  %v9782_v55 = vcombine.high %v2888_v1, %v2892_v29  ;;  %v9784_v25 = vcombine.high %v2889_v14, %v2893_v4  ;;  %v2948_v1 = vld [vmem:[%s15845_s5 + $0xc70] sm:$0xff] }
 0x5d7   : > { %6751 = vmatprep.subr.bf16.mxu1 %v9728_v40  ;;  %v2896_v40 = vld [vmem:[%s15845_s5 + $0xad0] sm:$0xff] }
 0x5d8   : > { %v9789_v43 = vcombine.low %v2896_v40, %v2900_v50 }
 0x5d9   : > { %6547 = vmatpush1.bf16.msra.mxu0 %v9725_v39  ;;  %v9783_v39 = vcombine.low %v2889_v14, %v2893_v4  ;;  %v2945_v14 = vld [vmem:[%s15845_s5 + $0xc58] sm:$0xff] }
 0x5da   : > { %6752 = vmatpush1.bf16.msra.mxu1 %v9727_v54  ;;  %6548 = vmatprep.subr.bf16.mxu0 %v9734_v23  ;;  %v9790_v54 = vcombine.high %v2896_v40, %v2900_v50  ;;  %v9792_v23 = vcombine.high %v2897_v48, %v2901_v15  ;;  %v2949_v4 = vld [vmem:[%s15845_s5 + $0xc78] sm:$0xff] }
 0x5db   : > { %6753 = vmatprep.subr.bf16.mxu1 %v9736_v7  ;;  %v2904_v7 = vld [vmem:[%s15845_s5 + $0xb10] sm:$0xff]  ;;  %v9840_v40 = vcombine.high %v2945_v14, %v2949_v4  ;;  %v2953_v50 = vld [vmem:[%s15845_s5 + $0xc98] sm:$0xff] }
 0x5dc   : > { %v9797_v32 = vcombine.low %v2904_v7, %v2908_v18 }
 0x5dd   : > { %6549 = vmatpush1.bf16.msra.mxu0 %v9733_v33  ;;  %v9791_v33 = vcombine.low %v2897_v48, %v2901_v15  ;;  %v2957_v48 = vld [vmem:[%s15845_s5 + $0xcb8] sm:$0xff] }
 0x5de   : > { %6754 = vmatpush1.bf16.msra.mxu1 %v9735_v21  ;;  %6550 = vmatprep.subr.bf16.mxu0 %v9742_v36  ;;  %v9798_v21 = vcombine.high %v2904_v7, %v2908_v18  ;;  %v9800_v36 = vcombine.high %v2905_v9, %v2909_v51  ;;  %v2964_v7 = vld [vmem:[%s15845_s5 + $0xcf0] sm:$0xff]  ;;  %v2965_v18 = vld [vmem:[%s15845_s5 + $0xcf8] sm:$0xff] }
 0x5df   : > { %6755 = vmatprep.subr.bf16.mxu1 %v9744_v60  ;;  %v2912_v60 = vld [vmem:[%s15845_s5 + $0xb50] sm:$0xff] }
 0x5e0   : > { %v9805_v5 = vcombine.low %v2912_v60, %v2916_v47 }
 0x5e1   : > { %6551 = vmatpush1.bf16.msra.mxu0 %v9741_v59  ;;  %v9799_v59 = vcombine.low %v2905_v9, %v2909_v51  ;;  %v9847_v9 = vcombine.low %v2953_v50, %v2957_v48 }
 0x5e2   : > { %6756 = vmatpush1.bf16.msra.mxu1 %v9743_v17  ;;  %6552 = vmatprep.subr.bf16.mxu0 %v9750_v49  ;;  %v9806_v17 = vcombine.high %v2912_v60, %v2916_v47  ;;  %v9808_v49 = vcombine.high %v2913_v26, %v2917_v19  ;;  %v2973_v60 = vld [vmem:[%s15845_s5 + $0xd38] sm:$0xff] }
 0x5e3   : > { %6757 = vmatprep.subr.bf16.mxu1 %v9752_v31  ;;  %v2920_v31 = vld [vmem:[%s15845_s5 + $0xb90] sm:$0xff] }
 0x5e4   : > { %v9813_v44 = vcombine.low %v2920_v31, %v2924_v28 }
 0x5e5   : > { %6553 = vmatpush1.bf16.msra.mxu0 %v9749_v61  ;;  %v9807_v61 = vcombine.low %v2913_v26, %v2917_v19 }
 0x5e6   : > { %6758 = vmatpush1.bf16.msra.mxu1 %v9751_v34  ;;  %6554 = vmatprep.subr.bf16.mxu0 %v9758_v62  ;;  %v9814_v34 = vcombine.high %v2920_v31, %v2924_v28  ;;  %v9816_v62 = vcombine.high %v2921_v37, %v2925_v46  ;;  %v2981_v31 = vld [vmem:[%s15845_s5 + $0xd78] sm:$0xff] }
 0x5e7   : > { %6759 = vmatprep.subr.bf16.mxu1 %v9760_v6  ;;  %v2928_v6 = vld [vmem:[%s15845_s5 + $0xbd0] sm:$0xff] }
 0x5e8   : > { %v9821_v58 = vcombine.low %v2928_v6, %v2932_v41 }
 0x5e9   : > { %6555 = vmatpush1.bf16.msra.mxu0 %v9757_v27  ;;  %v9815_v27 = vcombine.low %v2921_v37, %v2925_v46 }
 0x5ea   : > { %6760 = vmatpush1.bf16.msra.mxu1 %v9759_v11  ;;  %6556 = vmatprep.subr.bf16.mxu0 %v9766_v8  ;;  %v9822_v11 = vcombine.high %v2928_v6, %v2932_v41  ;;  %v9824_v8 = vcombine.high %v2929_v57, %v2933_v30  ;;  %v2989_v6 = vld [vmem:[%s15845_s5 + $0xdb8] sm:$0xff] }
 0x5eb   : > { %6761 = vmatprep.subr.bf16.mxu1 %v9768_v13  ;;  %v2936_v13 = vld [vmem:[%s15845_s5 + $0xc10] sm:$0xff] }
 0x5ec   : > { %v9829_v29 = vcombine.low %v2936_v13, %v2940_v56 }
 0x5ed   : > { %6557 = vmatpush1.bf16.msra.mxu0 %v9765_v35  ;;  %v9823_v35 = vcombine.low %v2929_v57, %v2933_v30 }
 0x5ee   : > { %6762 = vmatpush1.bf16.msra.mxu1 %v9767_v63  ;;  %6558 = vmatprep.subr.bf16.mxu0 %v9774_v0  ;;  %v9830_v63 = vcombine.high %v2936_v13, %v2940_v56  ;;  %v9832_v0 = vcombine.high %v2937_v20, %v2941_v10 }
 0x5ef   : > { %6763 = vmatprep.subr.bf16.mxu1 %v9776_v3  ;;  %v2944_v3 = vld [vmem:[%s15845_s5 + $0xc50] sm:$0xff] }
 0x5f0   : > { %v9837_v15 = vcombine.low %v2944_v3, %v2948_v1 }
 0x5f1   : > { %6559 = vmatpush1.bf16.msra.mxu0 %v9773_v16  ;;  %v9831_v16 = vcombine.low %v2937_v20, %v2941_v10  ;;  %v2993_v20 = vld [vmem:[%s15845_s5 + $0xdd8] sm:$0xff] }
 0x5f2   : > { %6764 = vmatpush1.bf16.msra.mxu1 %v9775_v53  ;;  %6560 = vmatprep.subr.bf16.mxu0 %v9782_v55  ;;  %v9838_v53 = vcombine.high %v2944_v3, %v2948_v1  ;;  %v2952_v55 = vld [vmem:[%s15845_s5 + $0xc90] sm:$0xff]  ;;  %v2997_v10 = vld [vmem:[%s15845_s5 + $0xdf8] sm:$0xff] }
 0x5f3   : > { %6765 = vmatprep.subr.bf16.mxu1 %v9784_v25  ;;  %v2956_v25 = vld [vmem:[%s15845_s5 + $0xcb0] sm:$0xff] }
 0x5f5   : > { %6561 = vmatpush1.bf16.msra.mxu0 %v9781_v22  ;;  %v9839_v22 = vcombine.low %v2945_v14, %v2949_v4  ;;  %v9888_v4 = vcombine.high %v2993_v20, %v2997_v10 }
 0x5f6   : > { %6766 = vmatpush1.bf16.msra.mxu1 %v9783_v39  ;;  %6562 = vmatprep.subr.bf16.mxu0 %v9790_v54  ;;  %v9846_v39 = vcombine.high %v2952_v55, %v2956_v25  ;;  %v9848_v54 = vcombine.high %v2953_v50, %v2957_v48  ;;  %v9887_v50 = vcombine.low %v2993_v20, %v2997_v10 }
 0x5f7   : > { %6767 = vmatprep.subr.bf16.mxu1 %v9792_v23  ;;  %v2960_v23 = vld [vmem:[%s15845_s5 + $0xcd0] sm:$0xff] }
 0x5f8   : > { %v9854_v51 = vcombine.high %v2960_v23, %v2964_v7  ;;  %v9853_v47 = vcombine.low %v2960_v23, %v2964_v7  ;;  %v3013_v23 = vld [vmem:[%s15845_s5 + $0xe78] sm:$0xff] }
 0x5f9   : > { %6563 = vmatpush1.bf16.msra.mxu0 %v9789_v43 }
 0x5fa   : > { %6768 = vmatpush1.bf16.msra.mxu1 %v9791_v33  ;;  %6564 = vmatprep.subr.bf16.mxu0 %v9798_v21  ;;  %v2968_v33 = vld [vmem:[%s15845_s5 + $0xd10] sm:$0xff] }
 0x5fb   : > { %6769 = vmatprep.subr.bf16.mxu1 %v9800_v36  ;;  %v2972_v21 = vld [vmem:[%s15845_s5 + $0xd30] sm:$0xff]  ;;  %v2969_v36 = vld [vmem:[%s15845_s5 + $0xd18] sm:$0xff] }
 0x5fc   : > { %v9862_v19 = vcombine.high %v2968_v33, %v2972_v21  ;;  %v9861_v28 = vcombine.low %v2968_v33, %v2972_v21  ;;  %v9863_v37 = vcombine.low %v2969_v36, %v2973_v60  ;;  %v3021_v33 = vld [vmem:[%s15845_s5 + $0xeb8] sm:$0xff] }
 0x5fd   : > { %6565 = vmatpush1.bf16.msra.mxu0 %v9797_v32  ;;  %v9864_v32 = vcombine.high %v2969_v36, %v2973_v60 }
 0x5fe   : > { %6770 = vmatpush1.bf16.msra.mxu1 %v9799_v59  ;;  %6566 = vmatprep.subr.bf16.mxu0 %v9806_v17  ;;  %v2976_v59 = vld [vmem:[%s15845_s5 + $0xd50] sm:$0xff] }
 0x5ff   : > { %6771 = vmatprep.subr.bf16.mxu1 %v9808_v49  ;;  %v2980_v17 = vld [vmem:[%s15845_s5 + $0xd70] sm:$0xff]  ;;  %v2977_v49 = vld [vmem:[%s15845_s5 + $0xd58] sm:$0xff] }
 0x600   : > { %v9870_v46 = vcombine.high %v2976_v59, %v2980_v17  ;;  %v9869_v41 = vcombine.low %v2976_v59, %v2980_v17  ;;  %v9871_v57 = vcombine.low %v2977_v49, %v2981_v31  ;;  %v3029_v59 = vld [vmem:[%s15845_s5 + $0xef8] sm:$0xff] }
 0x601   : > { %6567 = vmatpush1.bf16.msra.mxu0 %v9805_v5  ;;  %v9872_v5 = vcombine.high %v2977_v49, %v2981_v31 }
 0x602   : > { %6772 = vmatpush1.bf16.msra.mxu1 %v9807_v61  ;;  %6568 = vmatprep.subr.bf16.mxu0 %v9814_v34  ;;  %v2984_v61 = vld [vmem:[%s15845_s5 + $0xd90] sm:$0xff] }
 0x603   : > { %6773 = vmatprep.subr.bf16.mxu1 %v9816_v62  ;;  %v2988_v34 = vld [vmem:[%s15845_s5 + $0xdb0] sm:$0xff]  ;;  %v2985_v62 = vld [vmem:[%s15845_s5 + $0xd98] sm:$0xff] }
 0x604   : > { %v9878_v30 = vcombine.high %v2984_v61, %v2988_v34  ;;  %v9879_v1 = vcombine.low %v2985_v62, %v2989_v6 }
 0x605   : > { %6569 = vmatpush1.bf16.msra.mxu0 %v9813_v44 }
 0x606   : > { %6774 = vmatpush1.bf16.msra.mxu1 %v9815_v27  ;;  %6570 = vmatprep.subr.bf16.mxu0 %v9822_v11  ;;  %v9880_v27 = vcombine.high %v2985_v62, %v2989_v6  ;;  %v2992_v11 = vld [vmem:[%s15845_s5 + $0xdd0] sm:$0xff] }
 0x607   : > { %6775 = vmatprep.subr.bf16.mxu1 %v9824_v8  ;;  %v2996_v8 = vld [vmem:[%s15845_s5 + $0xdf0] sm:$0xff] }
 0x609   : > { %6571 = vmatpush1.bf16.msra.mxu0 %v9821_v58 }
 0x60a   : > { %6776 = vmatpush1.bf16.msra.mxu1 %v9823_v35  ;;  %6581 = vmatprep.subr.bf16.mxu0 %v9830_v63  ;;  %v9877_v63 = vcombine.low %v2984_v61, %v2988_v34  ;;  %v3037_v61 = vld [vmem:[%s15845_s5 + $0xf38] sm:$0xff] }
 0x60b   : > { %6786 = vmatprep.subr.bf16.mxu1 %v9832_v0 }
 0x60c   : > { %6573 = vmatmul.mubr.bf16.vlgmr.msra.gmra.mrb[12].mxu0 %v13719_v24 }
 0x60d   : > { %6778 = vmatmul.mubr.bf16.vlgmr.msra.gmra.mrb[16].mxu1 %v13719_v24  ;;  %6582 = vmatpush1.bf16.msra.mxu0 %v9829_v29  ;;  %v2961_v24 = vld [vmem:[%s15845_s5 + $0xcd8] sm:$0xff]  ;;  %v9886_v29 = vcombine.high %v2992_v11, %v2996_v8 }
 0x60e   : > { %6613 = vmatprep.mubr.bf16.mxu0 %v13727_v52  ;;  %6787 = vmatpush1.bf16.msra.mxu1 %v9831_v16  ;;  %v9856_v43 = vcombine.high %v2961_v24, %v2965_v18  ;;  %v9855_v26 = vcombine.low %v2961_v24, %v2965_v18  ;;  %v3000_v16 = vld [vmem:[%s15845_s5 + $0xe10] sm:$0xff] }
 0x60f   : > { %6818 = vmatprep.mubr.bf16.mxu1 %v13727_v52  ;;  %6583 = vmatprep.subr.bf16.mxu0 %v9838_v53  ;;  %v9845_v52 = vcombine.low %v2952_v55, %v2956_v25  ;;  %v3004_v53 = vld [vmem:[%s15845_s5 + $0xe30] sm:$0xff]  ;;  %v3001_v55 = vld [vmem:[%s15845_s5 + $0xe18] sm:$0xff] }
 0x610   : > { %6788 = vmatprep.subr.bf16.mxu1 %v9840_v40  ;;  %v3005_v25 = vld [vmem:[%s15845_s5 + $0xe38] sm:$0xff]  ;;  %v9885_v40 = vcombine.low %v2992_v11, %v2996_v8  ;;  %v9894_v48 = vcombine.high %v3000_v16, %v3004_v53  ;;  %v9893_v7 = vcombine.low %v3000_v16, %v3004_v53  ;;  %v3056_v53 = vld [vmem:[%s15845_s5 + $0xfd0] sm:$0xff] }
 0x611   : > { %6584 = vmatpush1.bf16.msra.mxu0 %v9837_v15  ;;  %v9896_v15 = vcombine.high %v3001_v55, %v3005_v25  ;;  %v9895_v24 = vcombine.low %v3001_v55, %v3005_v25  ;;  %v3045_v11 = vld [vmem:[%s15845_s5 + $0xf78] sm:$0xff]  ;;  %v3060_v55 = vld [vmem:[%s15845_s5 + $0xff0] sm:$0xff] }
 0x612   : > { %6789 = vmatpush1.bf16.msra.mxu1 %v9839_v22  ;;  %6585 = vmatprep.subr.bf16.mxu0 %v9846_v39  ;;  %v3008_v22 = vld [vmem:[%s15845_s5 + $0xe50] sm:$0xff]  ;;  %v3057_v25 = vld [vmem:[%s15845_s5 + $0xfd8] sm:$0xff] }
 0x613   : > { %6790 = vmatprep.subr.bf16.mxu1 %v9848_v54  ;;  %v3012_v39 = vld [vmem:[%s15845_s5 + $0xe70] sm:$0xff]  ;;  %v3009_v54 = vld [vmem:[%s15845_s5 + $0xe58] sm:$0xff] }
 0x614   : > { %v9902_v18 = vcombine.high %v3008_v22, %v3012_v39  ;;  %v9901_v21 = vcombine.low %v3008_v22, %v3012_v39  ;;  %v9903_v36 = vcombine.low %v3009_v54, %v3013_v23  ;;  %v3064_v39 = vld [vmem:[%s15845_s5 + $0x1010] sm:$0xff] }
 0x615   : > { %6586 = vmatpush1.bf16.msra.mxu0 %v9845_v52  ;;  %v9904_v52 = vcombine.high %v3009_v54, %v3013_v23  ;;  %v3068_v54 = vld [vmem:[%s15845_s5 + $0x1030] sm:$0xff]  ;;  %v3065_v23 = vld [vmem:[%s15845_s5 + $0x1018] sm:$0xff] }
 0x616   : > { %6791 = vmatpush1.bf16.msra.mxu1 %v9847_v9  ;;  %6587 = vmatprep.subr.bf16.mxu0 %v9854_v51  ;;  %v3016_v9 = vld [vmem:[%s15845_s5 + $0xe90] sm:$0xff] }
 0x617   : > { %6792 = vmatprep.subr.bf16.mxu1 %v9856_v43  ;;  %v3020_v51 = vld [vmem:[%s15845_s5 + $0xeb0] sm:$0xff]  ;;  %v3017_v43 = vld [vmem:[%s15845_s5 + $0xe98] sm:$0xff] }
 0x618   : > { %v9910_v60 = vcombine.high %v3016_v9, %v3020_v51  ;;  %v9909_v17 = vcombine.low %v3016_v9, %v3020_v51  ;;  %v9911_v49 = vcombine.low %v3017_v43, %v3021_v33  ;;  %v3072_v51 = vld [vmem:[%s15845_s5 + $0x1050] sm:$0xff] }
 0x619   : > { %6588 = vmatpush1.bf16.msra.mxu0 %v9853_v47  ;;  %v9912_v47 = vcombine.high %v3017_v43, %v3021_v33  ;;  %v3076_v43 = vld [vmem:[%s15845_s5 + $0x1070] sm:$0xff]  ;;  %v3073_v33 = vld [vmem:[%s15845_s5 + $0x1058] sm:$0xff] }
 0x61a   : > { %6793 = vmatpush1.bf16.msra.mxu1 %v9855_v26  ;;  %6589 = vmatprep.subr.bf16.mxu0 %v9862_v19  ;;  %v3024_v26 = vld [vmem:[%s15845_s5 + $0xed0] sm:$0xff] }
 0x61b   : > { %6794 = vmatprep.subr.bf16.mxu1 %v9864_v32  ;;  %v3028_v19 = vld [vmem:[%s15845_s5 + $0xef0] sm:$0xff]  ;;  %v3025_v32 = vld [vmem:[%s15845_s5 + $0xed8] sm:$0xff] }
 0x61c   : > { %v9918_v31 = vcombine.high %v3024_v26, %v3028_v19  ;;  %v9917_v34 = vcombine.low %v3024_v26, %v3028_v19  ;;  %v9919_v62 = vcombine.low %v3025_v32, %v3029_v59  ;;  %v3080_v19 = vld [vmem:[%s15845_s5 + $0x1090] sm:$0xff] }
 0x61d   : > { %6590 = vmatpush1.bf16.msra.mxu0 %v9861_v28  ;;  %v9920_v28 = vcombine.high %v3025_v32, %v3029_v59  ;;  %v3084_v32 = vld [vmem:[%s15845_s5 + $0x10b0] sm:$0xff]  ;;  %v3081_v59 = vld [vmem:[%s15845_s5 + $0x1098] sm:$0xff] }
 0x61e   : > { %6795 = vmatpush1.bf16.msra.mxu1 %v9863_v37  ;;  %6591 = vmatprep.subr.bf16.mxu0 %v9870_v46  ;;  %v3032_v37 = vld [vmem:[%s15845_s5 + $0xf10] sm:$0xff] }
 0x61f   : > { %v14680_v44 = vpop.f32.mrb[8].mxu0  ;;  %6796 = vmatprep.subr.bf16.mxu1 %v9872_v5  ;;  %v3036_v46 = vld [vmem:[%s15845_s5 + $0xf30] sm:$0xff]  ;;  %v3033_v5 = vld [vmem:[%s15845_s5 + $0xf18] sm:$0xff] }
 0x620   : > { %v14688_v13 = vpop.f32.mrb[12].mxu1  ;;  %v14690_v56 = vpop.f32.mrb[9].mxu0  ;;  %v9926_v6 = vcombine.high %v3032_v37, %v3036_v46  ;;  %v9925_v8 = vcombine.low %v3032_v37, %v3036_v46  ;;  %v9927_v20 = vcombine.low %v3033_v5, %v3037_v61  ;;  %v3088_v46 = vld [vmem:[%s15845_s5 + $0x10d0] sm:$0xff] }
 0x621   : > { %v14698_v58 = vpop.f32.mrb[13].mxu1  ;;  %v6250_v35 = vpop.f32.mrb[10].mxu0  ;;  %6592 = vmatpush1.bf16.msra.mxu0 %v9869_v41  ;;  %v9928_v41 = vcombine.high %v3033_v5, %v3037_v61  ;;  %v3092_v5 = vld [vmem:[%s15845_s5 + $0x10f0] sm:$0xff]  ;;  %v3093_v61 = vld [vmem:[%s15845_s5 + $0x10f8] sm:$0xff] }
 0x622   : > { %v6455_v0 = vpop.f32.mrb[14].mxu1  ;;  %6797 = vmatpush1.bf16.msra.mxu1 %v9871_v57  ;;  %v6251_v3 = vpop.f32.mrb[11].mxu0  ;;  %6593 = vmatprep.subr.bf16.mxu0 %v9878_v30  ;;  %v3040_v57 = vld [vmem:[%s15845_s5 + $0xf50] sm:$0xff] }
 0x623   : > { %v6456_v14 = vpop.f32.mrb[15].mxu1  ;;  %6798 = vmatprep.subr.bf16.mxu1 %v9880_v27  ;;  %v3044_v30 = vld [vmem:[%s15845_s5 + $0xf70] sm:$0xff]  ;;  %v3041_v27 = vld [vmem:[%s15845_s5 + $0xf58] sm:$0xff] }
 0x624   : > { %v9934_v10 = vcombine.high %v3040_v57, %v3044_v30  ;;  %v9936_v35 = vcombine.high %v3041_v27, %v3045_v11  ;;  %v3052_v0 = vld [vmem:[%s15845_s5 + $0xfb0] sm:$0xff]  ;;  %v3049_v3 = vld [vmem:[%s15845_s5 + $0xf98] sm:$0xff]  ;;  %v9935_v14 = vcombine.low %v3041_v27, %v3045_v11  ;;  %v9981_v11 = vcombine.low %v3088_v46, %v3092_v5 }
 0x625   : > { %6594 = vmatpush1.bf16.msra.mxu0 %v9877_v63  ;;  %v3048_v63 = vld [vmem:[%s15845_s5 + $0xf90] sm:$0xff]  ;;  %v3101_v27 = vld [vmem:[%s15845_s5 + $0x1138] sm:$0xff] }
 0x626   : > { %6799 = vmatpush1.bf16.msra.mxu1 %v9879_v1  ;;  %6595 = vmatprep.subr.bf16.mxu0 %v9886_v29  ;;  %v3053_v1 = vld [vmem:[%s15845_s5 + $0xfb8] sm:$0xff]  ;;  %v9933_v29 = vcombine.low %v3040_v57, %v3044_v30  ;;  %v3096_v57 = vld [vmem:[%s15845_s5 + $0x1110] sm:$0xff] }
 0x627   : > { %6800 = vmatprep.subr.bf16.mxu1 %v9888_v4  ;;  %v9942_v4 = vcombine.high %v3048_v63, %v3052_v0  ;;  %v9944_v16 = vcombine.high %v3049_v3, %v3053_v1  ;;  %v3100_v30 = vld [vmem:[%s15845_s5 + $0x1130] sm:$0xff] }
 0x629   : > { %6596 = vmatpush1.bf16.msra.mxu0 %v9885_v40  ;;  %v3061_v40 = vld [vmem:[%s15845_s5 + $0xff8] sm:$0xff] }
 0x62a   : > { %6801 = vmatpush1.bf16.msra.mxu1 %v9887_v50  ;;  %6597 = vmatprep.subr.bf16.mxu0 %v9894_v48  ;;  %v9941_v50 = vcombine.low %v3048_v63, %v3052_v0  ;;  %v9943_v48 = vcombine.low %v3049_v3, %v3053_v1  ;;  %v9952_v22 = vcombine.high %v3057_v25, %v3061_v40  ;;  %v3108_v63 = vld [vmem:[%s15845_s5 + $0x1170] sm:$0xff]  ;;  %v3105_v0 = vld [vmem:[%s15845_s5 + $0x1158] sm:$0xff] }
 0x62b   : > { %6802 = vmatprep.subr.bf16.mxu1 %v9896_v15  ;;  %v9950_v15 = vcombine.high %v3056_v53, %v3060_v55  ;;  %v3109_v3 = vld [vmem:[%s15845_s5 + $0x1178] sm:$0xff]  ;;  %v9989_v1 = vcombine.low %v3096_v57, %v3100_v30 }
 0x62d   : > { %6598 = vmatpush1.bf16.msra.mxu0 %v9893_v7  ;;  %v3069_v7 = vld [vmem:[%s15845_s5 + $0x1038] sm:$0xff] }
 0x62e   : > { %6803 = vmatpush1.bf16.msra.mxu1 %v9895_v24  ;;  %6599 = vmatprep.subr.bf16.mxu0 %v9902_v18  ;;  %v9949_v24 = vcombine.low %v3056_v53, %v3060_v55  ;;  %v9951_v18 = vcombine.low %v3057_v25, %v3061_v40  ;;  %v9960_v9 = vcombine.high %v3065_v23, %v3069_v7  ;;  %v3116_v53 = vld [vmem:[%s15845_s5 + $0x11b0] sm:$0xff]  ;;  %v3113_v55 = vld [vmem:[%s15845_s5 + $0x1198] sm:$0xff]  ;;  %v14887_v40 = vld [vmem:[%s15846_s6] sm:$0xff] }
 0x62f   : > { %6804 = vmatprep.subr.bf16.mxu1 %v9904_v52  ;;  %v9958_v52 = vcombine.high %v3064_v39, %v3068_v54  ;;  %v3117_v25 = vld [vmem:[%s15845_s5 + $0x11b8] sm:$0xff] }
 0x631   : > { %6600 = vmatpush1.bf16.msra.mxu0 %v9901_v21  ;;  %v3077_v21 = vld [vmem:[%s15845_s5 + $0x1078] sm:$0xff] }
 0x632   : > { %6805 = vmatpush1.bf16.msra.mxu1 %v9903_v36  ;;  %6601 = vmatprep.subr.bf16.mxu0 %v9910_v60  ;;  %v9957_v36 = vcombine.low %v3064_v39, %v3068_v54  ;;  %v9959_v60 = vcombine.low %v3065_v23, %v3069_v7  ;;  %v9968_v26 = vcombine.high %v3073_v33, %v3077_v21  ;;  %v3120_v39 = vld [vmem:[%s15845_s5 + $0x11d0] sm:$0xff]  ;;  %v3121_v7 = vld [vmem:[%s15845_s5 + $0x11d8] sm:$0xff] }
 0x633   : > { %6806 = vmatprep.subr.bf16.mxu1 %v9912_v47  ;;  %v9966_v47 = vcombine.high %v3072_v51, %v3076_v43  ;;  %v3124_v54 = vld [vmem:[%s15845_s5 + $0x11f0] sm:$0xff]  ;;  %v3135_v23 = vrot.slane %v14887_v40, %v16096_v42 }
 0x635   : > { %6602 = vmatpush1.bf16.msra.mxu0 %v9909_v17  ;;  %v3085_v17 = vld [vmem:[%s15845_s5 + $0x10b8] sm:$0xff] }
 0x636   : > { %6807 = vmatpush1.bf16.msra.mxu1 %v9911_v49  ;;  %6603 = vmatprep.subr.bf16.mxu0 %v9918_v31  ;;  %v9965_v49 = vcombine.low %v3072_v51, %v3076_v43  ;;  %v9967_v31 = vcombine.low %v3073_v33, %v3077_v21  ;;  %v9976_v37 = vcombine.high %v3081_v59, %v3085_v17 }
 0x637   : > { %6808 = vmatprep.subr.bf16.mxu1 %v9920_v28  ;;  %v9974_v28 = vcombine.high %v3080_v19, %v3084_v32  ;;  %v10394_v43 = vadd.f32 %v14690_v56, %v3135_v23  ;;  %v10013_v33 = vcombine.low %v3120_v39, %v3124_v54  ;;  %v10727_v56 = vld [vmem:[%s15847_s7] ss:$16 sps:$4 sm:$0xff]  }
 0x638   : > { %v10793_v23 = vld [vmem:[%s15847_s7 + $0x160] ss:$16 sps:$4 sm:$0xff]  }
 0x639   : > { %6604 = vmatpush1.bf16.msra.mxu0 %v9917_v34  ;;  %v9973_v34 = vcombine.low %v3080_v19, %v3084_v32  ;;  %v10735_v19 = vld [vmem:[%s15847_s7 + $0x24] ss:$16 sps:$4 sm:$0xff]  }
 0x63a   : > { %6809 = vmatpush1.bf16.msra.mxu1 %v9919_v62  ;;  %6605 = vmatprep.subr.bf16.mxu0 %v9926_v6  ;;  %v9975_v62 = vcombine.low %v3081_v59, %v3085_v17  ;;  %v9982_v6 = vcombine.high %v3088_v46, %v3092_v5  ;;  %v10738_v59 = vld [vmem:[%s15847_s7 + $0x2c] ss:$16 sps:$4 sm:$0xff]   ;;  %v10733_v17 = vld [vmem:[%s15847_s7 + $0x20] ss:$16 sps:$4 sm:$0xff]   ;;  %v10747_v46 = vld [vmem:[%s15847_s7 + $0x64] ss:$16 sps:$4 sm:$0xff]  }
 0x63b   : > { %6810 = vmatprep.subr.bf16.mxu1 %v9928_v41  ;;  %v10750_v5 = vld [vmem:[%s15847_s7 + $0x6c] ss:$16 sps:$4 sm:$0xff]  }
 0x63d   : > { %6606 = vmatpush1.bf16.msra.mxu0 %v9925_v8 }
 0x63e   : > { %6811 = vmatpush1.bf16.msra.mxu1 %v9927_v20  ;;  %6607 = vmatprep.subr.bf16.mxu0 %v9934_v10  ;;  %v9990_v20 = vcombine.high %v3096_v57, %v3100_v30  ;;  %v10759_v57 = vld [vmem:[%s15847_s7 + $0xa4] ss:$16 sps:$4 sm:$0xff]   ;;  %v10762_v30 = vld [vmem:[%s15847_s7 + $0xac] ss:$16 sps:$4 sm:$0xff]  }
 0x63f   : > { %6812 = vmatprep.subr.bf16.mxu1 %v9936_v35  ;;  %v3104_v35 = vld [vmem:[%s15845_s5 + $0x1150] sm:$0xff] }
 0x641   : > { %6608 = vmatpush1.bf16.msra.mxu0 %v9933_v29 }
 0x642   : > { %6813 = vmatpush1.bf16.msra.mxu1 %v9935_v14  ;;  %6609 = vmatprep.subr.bf16.mxu0 %v9942_v4  ;;  %v9998_v14 = vcombine.high %v3104_v35, %v3108_v63  ;;  %v10000_v4 = vcombine.high %v3105_v0, %v3109_v3 }
 0x643   : > { %6814 = vmatprep.subr.bf16.mxu1 %v9944_v16  ;;  %v3112_v16 = vld [vmem:[%s15845_s5 + $0x1190] sm:$0xff] }
 0x645   : > { %6610 = vmatpush1.bf16.msra.mxu0 %v9941_v50  ;;  %v9997_v50 = vcombine.low %v3104_v35, %v3108_v63  ;;  %v10771_v35 = vld [vmem:[%s15847_s7 + $0xe4] ss:$16 sps:$4 sm:$0xff]   ;;  %v10774_v63 = vld [vmem:[%s15847_s7 + $0xec] ss:$16 sps:$4 sm:$0xff]  }
 0x646   : > { %6815 = vmatpush1.bf16.msra.mxu1 %v9943_v48  ;;  %6611 = vmatprep.subr.bf16.mxu0 %v9950_v15  ;;  %v9999_v48 = vcombine.low %v3105_v0, %v3109_v3  ;;  %v10006_v15 = vcombine.high %v3112_v16, %v3116_v53  ;;  %v10769_v0 = vld [vmem:[%s15847_s7 + $0xe0] ss:$16 sps:$4 sm:$0xff]   ;;  %v10772_v3 = vld [vmem:[%s15847_s7 + $0xe8] ss:$16 sps:$4 sm:$0xff]  }
 0x647   : > { %6816 = vmatprep.subr.bf16.mxu1 %v9952_v22  ;;  %v10008_v22 = vcombine.high %v3113_v55, %v3117_v25 }
 0x649   : > { %6612 = vmatpush1.bf16.msra.mxu0 %v9949_v24  ;;  %v3125_v24 = vld [vmem:[%s15845_s5 + $0x11f8] sm:$0xff] }
 0x64a   : > { %6817 = vmatpush1.bf16.msra.mxu1 %v9951_v18  ;;  %6622 = vmatprep.subr.bf16.mxu0 %v9958_v52  ;;  %v10005_v18 = vcombine.low %v3112_v16, %v3116_v53  ;;  %v10007_v52 = vcombine.low %v3113_v55, %v3117_v25  ;;  %v10016_v51 = vcombine.high %v3121_v7, %v3125_v24  ;;  %v10783_v16 = vld [vmem:[%s15847_s7 + $0x124] ss:$16 sps:$4 sm:$0xff]   ;;  %v10786_v53 = vld [vmem:[%s15847_s7 + $0x12c] ss:$16 sps:$4 sm:$0xff]   ;;  %v10781_v55 = vld [vmem:[%s15847_s7 + $0x120] ss:$16 sps:$4 sm:$0xff]  }
 0x64b   : > { %6827 = vmatprep.subr.bf16.mxu1 %v9960_v9  ;;  %v10014_v9 = vcombine.high %v3120_v39, %v3124_v54  ;;  %v10015_v21 = vcombine.low %v3121_v7, %v3125_v24  ;;  %v10784_v25 = vld [vmem:[%s15847_s7 + $0x128] ss:$16 sps:$4 sm:$0xff]   ;;  %v10795_v39 = vld [vmem:[%s15847_s7 + $0x164] ss:$16 sps:$4 sm:$0xff]   ;;  %v10798_v54 = vld [vmem:[%s15847_s7 + $0x16c] ss:$16 sps:$4 sm:$0xff]  }
 0x64c   : > { %6614 = vmatmul.mubr.bf16.vlgmr.msra.gmra.mrb[12].mxu0 %v13921_v12  ;;  %v10796_v7 = vld [vmem:[%s15847_s7 + $0x168] ss:$16 sps:$4 sm:$0xff]   ;;  %v10801_v24 = vld [vmem:[%s15847_s7 + $0x184] ss:$16 sps:$4 sm:$0xff]  }
 0x64d   : > { %6819 = vmatmul.mubr.bf16.vlgmr.msra.gmra.mrb[16].mxu1 %v13921_v12  ;;  %6623 = vmatpush1.bf16.msra.mxu0 %v9957_v36  ;;  %v3089_v12 = vld [vmem:[%s15845_s5 + $0x10d8] sm:$0xff]  ;;  %v10729_v36 = vld [vmem:[%s15847_s7 + $0x4] ss:$16 sps:$4 sm:$0xff]  }
 0x64e   : > { %6828 = vmatpush1.bf16.msra.mxu1 %v9959_v60  ;;  %6624 = vmatprep.subr.bf16.mxu0 %v9966_v47  ;;  %v9984_v41 = vcombine.high %v3089_v12, %v3093_v61  ;;  %v9983_v8 = vcombine.low %v3089_v12, %v3093_v61  ;;  %v10732_v60 = vld [vmem:[%s15847_s7 + $0xc] ss:$16 sps:$4 sm:$0xff]   ;;  %v6869_v47 = vmax.f32 %v10394_v43, 0.0  ;;  %v10745_v12 = vld [vmem:[%s15847_s7 + $0x60] ss:$16 sps:$4 sm:$0xff]  }
 0x64f   : > { %6829 = vmatprep.subr.bf16.mxu1 %v9968_v26  ;;  %6654 = vmatprep.mubr.bf16.mxu0 %v16081_v45  ;;  %v10730_v26 = vld [vmem:[%s15847_s7 + $0x8] ss:$16 sps:$4 sm:$0xff]   ;;  %v10810_v43 = vld [vmem:[%s15847_s7 + $0x1ac] ss:$16 sps:$4 sm:$0xff]  }
 0x650   : > { %6859 = vmatprep.mubr.bf16.mxu1 %v16081_v45  ;;  %v3097_v45 = vld [vmem:[%s15845_s5 + $0x1118] sm:$0xff]  ;;  %v6877_v32 = vpack.c.bf16 %v6869_v47, %v6869_v47 }
 0x651   : > { %6625 = vmatpush1.bf16.msra.mxu0 %v9965_v49  ;;  %v9992_v10 = vcombine.high %v3097_v45, %v3101_v27  ;;  %v9991_v29 = vcombine.low %v3097_v45, %v3101_v27  ;;  %v10736_v49 = vld [vmem:[%s15847_s7 + $0x28] ss:$16 sps:$4 sm:$0xff]   ;;  %v10757_v45 = vld [vmem:[%s15847_s7 + $0xa0] ss:$16 sps:$4 sm:$0xff]   ;;  %v10816_v47 = vld [vmem:[%s15847_s7 + $0x1cc] ss:$16 sps:$4 sm:$0xff]  }
 0x652   : > { %6830 = vmatpush1.bf16.msra.mxu1 %v9967_v31  ;;  %6626 = vmatprep.subr.bf16.mxu0 %v9974_v28  ;;  %v10741_v31 = vld [vmem:[%s15847_s7 + $0x44] ss:$16 sps:$4 sm:$0xff]   ;;  %v10739_v28 = vld [vmem:[%s15847_s7 + $0x40] ss:$16 sps:$4 sm:$0xff]   ;;  %v10748_v61 = vld [vmem:[%s15847_s7 + $0x68] ss:$16 sps:$4 sm:$0xff]  }
 0x653   : > { %6831 = vmatprep.subr.bf16.mxu1 %v9976_v37  ;;  %v10742_v37 = vld [vmem:[%s15847_s7 + $0x48] ss:$16 sps:$4 sm:$0xff]  }
 0x654   : > { %v10760_v27 = vld [vmem:[%s15847_s7 + $0xa8] ss:$16 sps:$4 sm:$0xff]  }
 0x655   : > { %6627 = vmatpush1.bf16.msra.mxu0 %v9973_v34  ;;  %v10753_v34 = vld [vmem:[%s15847_s7 + $0x84] ss:$16 sps:$4 sm:$0xff]  }
 0x656   : > { %6832 = vmatpush1.bf16.msra.mxu1 %v9975_v62  ;;  %6628 = vmatprep.subr.bf16.mxu0 %v9982_v6  ;;  %v10756_v62 = vld [vmem:[%s15847_s7 + $0x8c] ss:$16 sps:$4 sm:$0xff]   ;;  %v10751_v6 = vld [vmem:[%s15847_s7 + $0x80] ss:$16 sps:$4 sm:$0xff]  }
 0x657   : > { %6833 = vmatprep.subr.bf16.mxu1 %v9984_v41  ;;  %v10754_v41 = vld [vmem:[%s15847_s7 + $0x88] ss:$16 sps:$4 sm:$0xff]  }
 0x659   : > { %6629 = vmatpush1.bf16.msra.mxu0 %v9981_v11  ;;  %v10765_v11 = vld [vmem:[%s15847_s7 + $0xc4] ss:$16 sps:$4 sm:$0xff]  }
 0x65a   : > { %6834 = vmatpush1.bf16.msra.mxu1 %v9983_v8  ;;  %6630 = vmatprep.subr.bf16.mxu0 %v9990_v20  ;;  %v10768_v8 = vld [vmem:[%s15847_s7 + $0xcc] ss:$16 sps:$4 sm:$0xff]   ;;  %v10763_v20 = vld [vmem:[%s15847_s7 + $0xc0] ss:$16 sps:$4 sm:$0xff]  }
 0x65b   : > { %6835 = vmatprep.subr.bf16.mxu1 %v9992_v10  ;;  %v10766_v10 = vld [vmem:[%s15847_s7 + $0xc8] ss:$16 sps:$4 sm:$0xff]  }
 0x65d   : > { %6631 = vmatpush1.bf16.msra.mxu0 %v9989_v1  ;;  %v10777_v1 = vld [vmem:[%s15847_s7 + $0x104] ss:$16 sps:$4 sm:$0xff]  }
 0x65e   : > { %6836 = vmatpush1.bf16.msra.mxu1 %v9991_v29  ;;  %6632 = vmatprep.subr.bf16.mxu0 %v9998_v14  ;;  %v10780_v29 = vld [vmem:[%s15847_s7 + $0x10c] ss:$16 sps:$4 sm:$0xff]   ;;  %v10775_v14 = vld [vmem:[%s15847_s7 + $0x100] ss:$16 sps:$4 sm:$0xff]  }
 0x65f   : > { %6837 = vmatprep.subr.bf16.mxu1 %v10000_v4  ;;  %v10778_v4 = vld [vmem:[%s15847_s7 + $0x108] ss:$16 sps:$4 sm:$0xff]  }
 0x661   : > { %6633 = vmatpush1.bf16.msra.mxu0 %v9997_v50  ;;  %v10789_v50 = vld [vmem:[%s15847_s7 + $0x144] ss:$16 sps:$4 sm:$0xff]  }
 0x662   : > { %6838 = vmatpush1.bf16.msra.mxu1 %v9999_v48  ;;  %6634 = vmatprep.subr.bf16.mxu0 %v10006_v15  ;;  %v10792_v48 = vld [vmem:[%s15847_s7 + $0x14c] ss:$16 sps:$4 sm:$0xff]   ;;  %v10787_v15 = vld [vmem:[%s15847_s7 + $0x140] ss:$16 sps:$4 sm:$0xff]  }
 0x663   : > { %6839 = vmatprep.subr.bf16.mxu1 %v10008_v22  ;;  %v10790_v22 = vld [vmem:[%s15847_s7 + $0x148] ss:$16 sps:$4 sm:$0xff]  }
 0x665   : > { %6635 = vmatpush1.bf16.msra.mxu0 %v10005_v18  ;;  %v10804_v18 = vld [vmem:[%s15847_s7 + $0x18c] ss:$16 sps:$4 sm:$0xff]  }
 0x666   : > { %6840 = vmatpush1.bf16.msra.mxu1 %v10007_v52  ;;  %6636 = vmatprep.subr.bf16.mxu0 %v10014_v9  ;;  %v10799_v52 = vld [vmem:[%s15847_s7 + $0x180] ss:$16 sps:$4 sm:$0xff]   ;;  %v10802_v9 = vld [vmem:[%s15847_s7 + $0x188] ss:$16 sps:$4 sm:$0xff]  }
 0x667   : > { %6841 = vmatprep.subr.bf16.mxu1 %v10016_v51  ;;  %v10807_v51 = vld [vmem:[%s15847_s7 + $0x1a4] ss:$16 sps:$4 sm:$0xff]  }
 0x669   : > { %6637 = vmatpush1.bf16.msra.mxu0 %v10013_v33  ;;  %v10805_v33 = vld [vmem:[%s15847_s7 + $0x1a0] ss:$16 sps:$4 sm:$0xff]  }
 0x66a   : > { %6842 = vmatpush1.bf16.msra.mxu1 %v10015_v21  ;;  %8442 = vmatprep.subr.bf16.mxu0 %v10729_v36  ;;  %v3131_v21 = vrot.slane %v14887_v40, %v16095_v38  ;;  %v10808_v36 = vld [vmem:[%s15847_s7 + $0x1a8] ss:$16 sps:$4 sm:$0xff]  }
 0x66b   : > { %8606 = vmatprep.subr.bf16.mxu1 %v10732_v60  ;;  %v10813_v60 = vld [vmem:[%s15847_s7 + $0x1c4] ss:$16 sps:$4 sm:$0xff]  }
 0x66c   : > { %6655 = vmatmul.mubr.bf16.vlgmr.msra.gmra.mrb[12].mxu0 %v14026_v2 }
 0x66d   : > { %6860 = vmatmul.mubr.bf16.vlgmr.msra.gmra.mrb[16].mxu1 %v14026_v2  ;;  %8443 = vmatpush1.bf16.msra.mxu0 %v10727_v56  ;;  %v10744_v2 = vld [vmem:[%s15847_s7 + $0x4c] ss:$16 sps:$4 sm:$0xff]   ;;  %v16097_v56 = vld [vmem:[#allocation6_spill] sm:$0xff] }
 0x66e   : > { %8474 = vmatprep.mubr.bf16.mxu0 %v6877_v32  ;;  %8607 = vmatpush1.bf16.msra.mxu1 %v10730_v26  ;;  %v3143_v26 = vrot.slane %v14887_v40, %v16097_v56 }
 0x66f   : > { %8638 = vmatprep.mubr.bf16.mxu1 %v6877_v32  ;;  %8444 = vmatprep.subr.bf16.mxu0 %v10735_v19  ;;  %v10811_v19 = vld [vmem:[%s15847_s7 + $0x1c0] ss:$16 sps:$4 sm:$0xff]   ;;  %v10393_v32 = vadd.f32 %v14680_v44, %v3131_v21 }
 0x670   : > { %8608 = vmatprep.subr.bf16.mxu1 %v10738_v59  ;;  %v10814_v59 = vld [vmem:[%s15847_s7 + $0x1c8] ss:$16 sps:$4 sm:$0xff]   ;;  %v10817_v44 = vld [vmem:[%s15847_s7 + $0x1e0] ss:$16 sps:$4 sm:$0xff]  }
 0x671   : > { %8445 = vmatpush1.bf16.msra.mxu0 %v10733_v17  ;;  %v10819_v17 = vld [vmem:[%s15847_s7 + $0x1e4] ss:$16 sps:$4 sm:$0xff]   ;;  %v10883_v21 = vld [vmem:[%s15847_s7 + $0x340] ss:$16 sps:$4 sm:$0xff]  }
 0x672   : > { %8609 = vmatpush1.bf16.msra.mxu1 %v10736_v49  ;;  %8446 = vmatprep.subr.bf16.mxu0 %v10741_v31  ;;  %v10822_v49 = vld [vmem:[%s15847_s7 + $0x1ec] ss:$16 sps:$4 sm:$0xff]   ;;  %v10396_v31 = vadd.f32 %v14698_v58, %v3143_v26  ;;  %v10889_v26 = vld [vmem:[%s15847_s7 + $0x360] ss:$16 sps:$4 sm:$0xff]  }
 0x673   : > { %8610 = vmatprep.subr.bf16.mxu1 %v10744_v2  ;;  %v6868_v2 = vmax.f32 %v10393_v32, 0.0  ;;  %v10828_v58 = vld [vmem:[%s15847_s7 + $0x20c] ss:$16 sps:$4 sm:$0xff]   ;;  %v10897_v32 = vld [vmem:[%s15847_s7 + $0x384] ss:$16 sps:$4 sm:$0xff]  }
 0x675   : > { %8447 = vmatpush1.bf16.msra.mxu0 %v10739_v28  ;;  %v10820_v28 = vld [vmem:[%s15847_s7 + $0x1e8] ss:$16 sps:$4 sm:$0xff]  }
 0x676   : > { %8611 = vmatpush1.bf16.msra.mxu1 %v10742_v37  ;;  %8448 = vmatprep.subr.bf16.mxu0 %v10747_v46  ;;  %v10825_v37 = vld [vmem:[%s15847_s7 + $0x204] ss:$16 sps:$4 sm:$0xff]   ;;  %v6871_v46 = vmax.f32 %v10396_v31, 0.0 }
 0x677   : > { %8612 = vmatprep.subr.bf16.mxu1 %v10750_v5  ;;  %v10823_v5 = vld [vmem:[%s15847_s7 + $0x200] ss:$16 sps:$4 sm:$0xff]   ;;  %v10903_v31 = vld [vmem:[%s15847_s7 + $0x3a4] ss:$16 sps:$4 sm:$0xff]  }
 0x679   : > { %8449 = vmatpush1.bf16.msra.mxu0 %v10745_v12  ;;  %v6876_v12 = vpack.c.bf16 %v6868_v2, %v6868_v2  ;;  %v10901_v2 = vld [vmem:[%s15847_s7 + $0x3a0] ss:$16 sps:$4 sm:$0xff]  }
 0x67a   : > { %8613 = vmatpush1.bf16.msra.mxu1 %v10748_v61  ;;  %8450 = vmatprep.subr.bf16.mxu0 %v10753_v34  ;;  %v10826_v61 = vld [vmem:[%s15847_s7 + $0x208] ss:$16 sps:$4 sm:$0xff]   ;;  %v10831_v34 = vld [vmem:[%s15847_s7 + $0x224] ss:$16 sps:$4 sm:$0xff]  }
 0x67b   : > { %8614 = vmatprep.subr.bf16.mxu1 %v10756_v62  ;;  %v6879_v62 = vpack.c.bf16 %v6871_v46, %v6871_v46  ;;  %v10909_v46 = vld [vmem:[%s15847_s7 + $0x3c4] ss:$16 sps:$4 sm:$0xff]  }
 0x67d   : > { %8451 = vmatpush1.bf16.msra.mxu0 %v10751_v6  ;;  %v10834_v6 = vld [vmem:[%s15847_s7 + $0x22c] ss:$16 sps:$4 sm:$0xff]  }
 0x67e   : > { %8615 = vmatpush1.bf16.msra.mxu1 %v10754_v41  ;;  %8452 = vmatprep.subr.bf16.mxu0 %v10759_v57  ;;  %v10829_v41 = vld [vmem:[%s15847_s7 + $0x220] ss:$16 sps:$4 sm:$0xff]   ;;  %v10832_v57 = vld [vmem:[%s15847_s7 + $0x228] ss:$16 sps:$4 sm:$0xff]  }
 0x67f   : > { %8616 = vmatprep.subr.bf16.mxu1 %v10762_v30  ;;  %v10837_v30 = vld [vmem:[%s15847_s7 + $0x244] ss:$16 sps:$4 sm:$0xff]  }
 0x681   : > { %8453 = vmatpush1.bf16.msra.mxu0 %v10757_v45  ;;  %v10840_v45 = vld [vmem:[%s15847_s7 + $0x24c] ss:$16 sps:$4 sm:$0xff]  }
 0x682   : > { %8617 = vmatpush1.bf16.msra.mxu1 %v10760_v27  ;;  %8454 = vmatprep.subr.bf16.mxu0 %v10765_v11  ;;  %v10835_v27 = vld [vmem:[%s15847_s7 + $0x240] ss:$16 sps:$4 sm:$0xff]   ;;  %v10838_v11 = vld [vmem:[%s15847_s7 + $0x248] ss:$16 sps:$4 sm:$0xff]  }
 0x683   : > { %8618 = vmatprep.subr.bf16.mxu1 %v10768_v8  ;;  %v10843_v8 = vld [vmem:[%s15847_s7 + $0x264] ss:$16 sps:$4 sm:$0xff]  }
 0x685   : > { %8455 = vmatpush1.bf16.msra.mxu0 %v10763_v20  ;;  %v10846_v20 = vld [vmem:[%s15847_s7 + $0x26c] ss:$16 sps:$4 sm:$0xff]  }
 0x686   : > { %8619 = vmatpush1.bf16.msra.mxu1 %v10766_v10  ;;  %8456 = vmatprep.subr.bf16.mxu0 %v10771_v35  ;;  %v10841_v10 = vld [vmem:[%s15847_s7 + $0x260] ss:$16 sps:$4 sm:$0xff]   ;;  %v10844_v35 = vld [vmem:[%s15847_s7 + $0x268] ss:$16 sps:$4 sm:$0xff]  }
 0x687   : > { %8620 = vmatprep.subr.bf16.mxu1 %v10774_v63  ;;  %v10849_v63 = vld [vmem:[%s15847_s7 + $0x284] ss:$16 sps:$4 sm:$0xff]  }
 0x689   : > { %8457 = vmatpush1.bf16.msra.mxu0 %v10769_v0  ;;  %v10852_v0 = vld [vmem:[%s15847_s7 + $0x28c] ss:$16 sps:$4 sm:$0xff]  }
 0x68a   : > { %8621 = vmatpush1.bf16.msra.mxu1 %v10772_v3  ;;  %8458 = vmatprep.subr.bf16.mxu0 %v10777_v1  ;;  %v10847_v3 = vld [vmem:[%s15847_s7 + $0x280] ss:$16 sps:$4 sm:$0xff]   ;;  %v10850_v1 = vld [vmem:[%s15847_s7 + $0x288] ss:$16 sps:$4 sm:$0xff]  }
 0x68b   : > { %8622 = vmatprep.subr.bf16.mxu1 %v10780_v29  ;;  %v10855_v29 = vld [vmem:[%s15847_s7 + $0x2a4] ss:$16 sps:$4 sm:$0xff]  }
 0x68d   : > { %8459 = vmatpush1.bf16.msra.mxu0 %v10775_v14  ;;  %v10858_v14 = vld [vmem:[%s15847_s7 + $0x2ac] ss:$16 sps:$4 sm:$0xff]  }
 0x68e   : > { %8623 = vmatpush1.bf16.msra.mxu1 %v10778_v4  ;;  %8460 = vmatprep.subr.bf16.mxu0 %v10783_v16  ;;  %v10853_v4 = vld [vmem:[%s15847_s7 + $0x2a0] ss:$16 sps:$4 sm:$0xff]   ;;  %v10856_v16 = vld [vmem:[%s15847_s7 + $0x2a8] ss:$16 sps:$4 sm:$0xff]  }
 0x68f   : > { %8624 = vmatprep.subr.bf16.mxu1 %v10786_v53  ;;  %v10861_v53 = vld [vmem:[%s15847_s7 + $0x2c4] ss:$16 sps:$4 sm:$0xff]  }
 0x691   : > { %8461 = vmatpush1.bf16.msra.mxu0 %v10781_v55  ;;  %v10864_v55 = vld [vmem:[%s15847_s7 + $0x2cc] ss:$16 sps:$4 sm:$0xff]  }
 0x692   : > { %8625 = vmatpush1.bf16.msra.mxu1 %v10784_v25  ;;  %8462 = vmatprep.subr.bf16.mxu0 %v10789_v50  ;;  %v10859_v25 = vld [vmem:[%s15847_s7 + $0x2c0] ss:$16 sps:$4 sm:$0xff]   ;;  %v10862_v50 = vld [vmem:[%s15847_s7 + $0x2c8] ss:$16 sps:$4 sm:$0xff]  }
 0x693   : > { %8626 = vmatprep.subr.bf16.mxu1 %v10792_v48  ;;  %v10867_v48 = vld [vmem:[%s15847_s7 + $0x2e4] ss:$16 sps:$4 sm:$0xff]  }
 0x695   : > { %8463 = vmatpush1.bf16.msra.mxu0 %v10787_v15  ;;  %v10870_v15 = vld [vmem:[%s15847_s7 + $0x2ec] ss:$16 sps:$4 sm:$0xff]  }
 0x696   : > { %8627 = vmatpush1.bf16.msra.mxu1 %v10790_v22  ;;  %8464 = vmatprep.subr.bf16.mxu0 %v10795_v39  ;;  %v10865_v22 = vld [vmem:[%s15847_s7 + $0x2e0] ss:$16 sps:$4 sm:$0xff]   ;;  %v10868_v39 = vld [vmem:[%s15847_s7 + $0x2e8] ss:$16 sps:$4 sm:$0xff]  }
 0x697   : > { %8628 = vmatprep.subr.bf16.mxu1 %v10798_v54  ;;  %v10873_v54 = vld [vmem:[%s15847_s7 + $0x304] ss:$16 sps:$4 sm:$0xff]  }
 0x699   : > { %8465 = vmatpush1.bf16.msra.mxu0 %v10793_v23  ;;  %v10876_v23 = vld [vmem:[%s15847_s7 + $0x30c] ss:$16 sps:$4 sm:$0xff]  }
 0x69a   : > { %8629 = vmatpush1.bf16.msra.mxu1 %v10796_v7  ;;  %8466 = vmatprep.subr.bf16.mxu0 %v10801_v24  ;;  %v10871_v7 = vld [vmem:[%s15847_s7 + $0x300] ss:$16 sps:$4 sm:$0xff]   ;;  %v10874_v24 = vld [vmem:[%s15847_s7 + $0x308] ss:$16 sps:$4 sm:$0xff]  }
 0x69b   : > { %8630 = vmatprep.subr.bf16.mxu1 %v10804_v18  ;;  %v10879_v18 = vld [vmem:[%s15847_s7 + $0x324] ss:$16 sps:$4 sm:$0xff]  }
 0x69d   : > { %8467 = vmatpush1.bf16.msra.mxu0 %v10799_v52  ;;  %v10882_v52 = vld [vmem:[%s15847_s7 + $0x32c] ss:$16 sps:$4 sm:$0xff]  }
 0x69e   : > { %8631 = vmatpush1.bf16.msra.mxu1 %v10802_v9  ;;  %8468 = vmatprep.subr.bf16.mxu0 %v10807_v51  ;;  %v10877_v9 = vld [vmem:[%s15847_s7 + $0x320] ss:$16 sps:$4 sm:$0xff]   ;;  %v10880_v51 = vld [vmem:[%s15847_s7 + $0x328] ss:$16 sps:$4 sm:$0xff]  }
 0x69f   : > { %8632 = vmatprep.subr.bf16.mxu1 %v10810_v43  ;;  %v10885_v43 = vld [vmem:[%s15847_s7 + $0x344] ss:$16 sps:$4 sm:$0xff]  }
 0x6a1   : > { %8469 = vmatpush1.bf16.msra.mxu0 %v10805_v33  ;;  %v10888_v33 = vld [vmem:[%s15847_s7 + $0x34c] ss:$16 sps:$4 sm:$0xff]  }
 0x6a2   : > { %8633 = vmatpush1.bf16.msra.mxu1 %v10808_v36  ;;  %8470 = vmatprep.subr.bf16.mxu0 %v10813_v60  ;;  %v10886_v36 = vld [vmem:[%s15847_s7 + $0x348] ss:$16 sps:$4 sm:$0xff]   ;;  %v10891_v60 = vld [vmem:[%s15847_s7 + $0x364] ss:$16 sps:$4 sm:$0xff]  }
 0x6a3   : > { %8634 = vmatprep.subr.bf16.mxu1 %v10816_v47  ;;  %v10894_v47 = vld [vmem:[%s15847_s7 + $0x36c] ss:$16 sps:$4 sm:$0xff]  }
 0x6a5   : > { %8471 = vmatpush1.bf16.msra.mxu0 %v10811_v19  ;;  %v10892_v19 = vld [vmem:[%s15847_s7 + $0x368] ss:$16 sps:$4 sm:$0xff]  }
 0x6a6   : > { %8635 = vmatpush1.bf16.msra.mxu1 %v10814_v59  ;;  %8472 = vmatprep.subr.bf16.mxu0 %v10819_v17  ;;  %v10900_v59 = vld [vmem:[%s15847_s7 + $0x38c] ss:$16 sps:$4 sm:$0xff]   ;;  %v10895_v17 = vld [vmem:[%s15847_s7 + $0x380] ss:$16 sps:$4 sm:$0xff]  }
 0x6a7   : > { %8636 = vmatprep.subr.bf16.mxu1 %v10822_v49  ;;  %v10898_v49 = vld [vmem:[%s15847_s7 + $0x388] ss:$16 sps:$4 sm:$0xff]  }
 0x6a9   : > { %8473 = vmatpush1.bf16.msra.mxu0 %v10817_v44  ;;  %v10906_v44 = vld [vmem:[%s15847_s7 + $0x3ac] ss:$16 sps:$4 sm:$0xff]  }
 0x6aa   : > { %8637 = vmatpush1.bf16.msra.mxu1 %v10820_v28  ;;  %8483 = vmatprep.subr.bf16.mxu0 %v10825_v37  ;;  %v16098_v28 = vld [vmem:[#allocation4_spill] sm:$0xff] }
 0x6ab   : > { %8647 = vmatprep.subr.bf16.mxu1 %v10828_v58  ;;  %v3139_v37 = vrot.slane %v14887_v40, %v16098_v28  ;;  %v10904_v58 = vld [vmem:[%s15847_s7 + $0x3a8] ss:$16 sps:$4 sm:$0xff]  }
 0x6ac   : > { %8475 = vmatmul.mubr.bf16.vlgmr.msra.gmra.mrb[16].mxu0 %v6876_v12 }
 0x6ad   : > { %8639 = vmatmul.mubr.bf16.vlgmr.msra.gmra.mrb[20].mxu1 %v6876_v12  ;;  %8484 = vmatpush1.bf16.msra.mxu0 %v10823_v5  ;;  %v10912_v5 = vld [vmem:[%s15847_s7 + $0x3cc] ss:$16 sps:$4 sm:$0xff]   ;;  %v10907_v12 = vld [vmem:[%s15847_s7 + $0x3c0] ss:$16 sps:$4 sm:$0xff]  }
 0x6ae   : > { %8515 = vmatprep.mubr.bf16.mxu0 %v6879_v62  ;;  %8648 = vmatpush1.bf16.msra.mxu1 %v10826_v61  ;;  %v10395_v61 = vadd.f32 %v14688_v13, %v3139_v37  ;;  %v10913_v13 = vld [vmem:[%s15847_s7 + $0x3e0] ss:$16 sps:$4 sm:$0xff]  }
 0x6af   : > { %8679 = vmatprep.mubr.bf16.mxu1 %v6879_v62  ;;  %8485 = vmatprep.subr.bf16.mxu0 %v10831_v34  ;;  %v10910_v34 = vld [vmem:[%s15847_s7 + $0x3c8] ss:$16 sps:$4 sm:$0xff]   ;;  %v10915_v62 = vld [vmem:[%s15847_s7 + $0x3e4] ss:$16 sps:$4 sm:$0xff]   ;;  %v10985_v37 = vld [vmem:[%s15847_s7 + $0x560] ss:$16 sps:$4 sm:$0xff]  }
 0x6b0   : > { %8649 = vmatprep.subr.bf16.mxu1 %v10834_v6  ;;  %v10918_v6 = vld [vmem:[%s15847_s7 + $0x3ec] ss:$16 sps:$4 sm:$0xff]  }
 0x6b1   : > { %8486 = vmatpush1.bf16.msra.mxu0 %v10829_v41  ;;  %v6870_v41 = vmax.f32 %v10395_v61, 0.0  ;;  %v10994_v61 = vld [vmem:[%s15847_s7 + $0x588] ss:$16 sps:$4 sm:$0xff]  }
 0x6b2   : > { %8650 = vmatpush1.bf16.msra.mxu1 %v10832_v57  ;;  %8487 = vmatprep.subr.bf16.mxu0 %v10837_v30  ;;  %v10916_v57 = vld [vmem:[%s15847_s7 + $0x3e8] ss:$16 sps:$4 sm:$0xff]   ;;  %v10921_v30 = vld [vmem:[%s15847_s7 + $0x404] ss:$16 sps:$4 sm:$0xff]  }
 0x6b3   : > { %8651 = vmatprep.subr.bf16.mxu1 %v10840_v45  ;;  %v10924_v45 = vld [vmem:[%s15847_s7 + $0x40c] ss:$16 sps:$4 sm:$0xff]  }
 0x6b5   : > { %8488 = vmatpush1.bf16.msra.mxu0 %v10835_v27  ;;  %v10919_v27 = vld [vmem:[%s15847_s7 + $0x400] ss:$16 sps:$4 sm:$0xff]  }
 0x6b6   : > { %8652 = vmatpush1.bf16.msra.mxu1 %v10838_v11  ;;  %8489 = vmatprep.subr.bf16.mxu0 %v10843_v8  ;;  %v6878_v11 = vpack.c.bf16 %v6870_v41, %v6870_v41  ;;  %v10922_v8 = vld [vmem:[%s15847_s7 + $0x408] ss:$16 sps:$4 sm:$0xff]   ;;  %v11005_v41 = vld [vmem:[%s15847_s7 + $0x5c4] ss:$16 sps:$4 sm:$0xff]  }
 0x6b7   : > { %8653 = vmatprep.subr.bf16.mxu1 %v10846_v20  ;;  %v10927_v20 = vld [vmem:[%s15847_s7 + $0x424] ss:$16 sps:$4 sm:$0xff]  }
 0x6b9   : > { %8490 = vmatpush1.bf16.msra.mxu0 %v10841_v10  ;;  %v10930_v10 = vld [vmem:[%s15847_s7 + $0x42c] ss:$16 sps:$4 sm:$0xff]  }
 0x6ba   : > { %8654 = vmatpush1.bf16.msra.mxu1 %v10844_v35  ;;  %8491 = vmatprep.subr.bf16.mxu0 %v10849_v63  ;;  %v10925_v35 = vld [vmem:[%s15847_s7 + $0x420] ss:$16 sps:$4 sm:$0xff]   ;;  %v10928_v63 = vld [vmem:[%s15847_s7 + $0x428] ss:$16 sps:$4 sm:$0xff]  }
 0x6bb   : > { %8655 = vmatprep.subr.bf16.mxu1 %v10852_v0  ;;  %v10933_v0 = vld [vmem:[%s15847_s7 + $0x444] ss:$16 sps:$4 sm:$0xff]  }
 0x6bd   : > { %8492 = vmatpush1.bf16.msra.mxu0 %v10847_v3  ;;  %v10936_v3 = vld [vmem:[%s15847_s7 + $0x44c] ss:$16 sps:$4 sm:$0xff]  }
 0x6be   : > { %8656 = vmatpush1.bf16.msra.mxu1 %v10850_v1  ;;  %8493 = vmatprep.subr.bf16.mxu0 %v10855_v29  ;;  %v10931_v1 = vld [vmem:[%s15847_s7 + $0x440] ss:$16 sps:$4 sm:$0xff]   ;;  %v10934_v29 = vld [vmem:[%s15847_s7 + $0x448] ss:$16 sps:$4 sm:$0xff]  }
 0x6bf   : > { %8657 = vmatprep.subr.bf16.mxu1 %v10858_v14  ;;  %v10939_v14 = vld [vmem:[%s15847_s7 + $0x464] ss:$16 sps:$4 sm:$0xff]  }
 0x6c1   : > { %8494 = vmatpush1.bf16.msra.mxu0 %v10853_v4  ;;  %v10942_v4 = vld [vmem:[%s15847_s7 + $0x46c] ss:$16 sps:$4 sm:$0xff]  }
 0x6c2   : > { %8658 = vmatpush1.bf16.msra.mxu1 %v10856_v16  ;;  %8495 = vmatprep.subr.bf16.mxu0 %v10861_v53  ;;  %v10937_v16 = vld [vmem:[%s15847_s7 + $0x460] ss:$16 sps:$4 sm:$0xff]   ;;  %v10940_v53 = vld [vmem:[%s15847_s7 + $0x468] ss:$16 sps:$4 sm:$0xff]  }
 0x6c3   : > { %8659 = vmatprep.subr.bf16.mxu1 %v10864_v55  ;;  %v10945_v55 = vld [vmem:[%s15847_s7 + $0x484] ss:$16 sps:$4 sm:$0xff]  }
 0x6c5   : > { %8496 = vmatpush1.bf16.msra.mxu0 %v10859_v25  ;;  %v10948_v25 = vld [vmem:[%s15847_s7 + $0x48c] ss:$16 sps:$4 sm:$0xff]  }
 0x6c6   : > { %8660 = vmatpush1.bf16.msra.mxu1 %v10862_v50  ;;  %8497 = vmatprep.subr.bf16.mxu0 %v10867_v48  ;;  %v10943_v50 = vld [vmem:[%s15847_s7 + $0x480] ss:$16 sps:$4 sm:$0xff]   ;;  %v10946_v48 = vld [vmem:[%s15847_s7 + $0x488] ss:$16 sps:$4 sm:$0xff]  }
 0x6c7   : > { %8661 = vmatprep.subr.bf16.mxu1 %v10870_v15  ;;  %v10951_v15 = vld [vmem:[%s15847_s7 + $0x4a4] ss:$16 sps:$4 sm:$0xff]  }
 0x6c9   : > { %8498 = vmatpush1.bf16.msra.mxu0 %v10865_v22  ;;  %v10954_v22 = vld [vmem:[%s15847_s7 + $0x4ac] ss:$16 sps:$4 sm:$0xff]  }
 0x6ca   : > { %8662 = vmatpush1.bf16.msra.mxu1 %v10868_v39  ;;  %8499 = vmatprep.subr.bf16.mxu0 %v10873_v54  ;;  %v10949_v39 = vld [vmem:[%s15847_s7 + $0x4a0] ss:$16 sps:$4 sm:$0xff]   ;;  %v10952_v54 = vld [vmem:[%s15847_s7 + $0x4a8] ss:$16 sps:$4 sm:$0xff]  }
 0x6cb   : > { %8663 = vmatprep.subr.bf16.mxu1 %v10876_v23  ;;  %v10957_v23 = vld [vmem:[%s15847_s7 + $0x4c4] ss:$16 sps:$4 sm:$0xff]  }
 0x6cd   : > { %8500 = vmatpush1.bf16.msra.mxu0 %v10871_v7  ;;  %v10960_v7 = vld [vmem:[%s15847_s7 + $0x4cc] ss:$16 sps:$4 sm:$0xff]  }
 0x6ce   : > { %8664 = vmatpush1.bf16.msra.mxu1 %v10874_v24  ;;  %8501 = vmatprep.subr.bf16.mxu0 %v10879_v18  ;;  %v10955_v24 = vld [vmem:[%s15847_s7 + $0x4c0] ss:$16 sps:$4 sm:$0xff]   ;;  %v10958_v18 = vld [vmem:[%s15847_s7 + $0x4c8] ss:$16 sps:$4 sm:$0xff]  }
 0x6cf   : > { %8665 = vmatprep.subr.bf16.mxu1 %v10882_v52  ;;  %v10963_v52 = vld [vmem:[%s15847_s7 + $0x4e4] ss:$16 sps:$4 sm:$0xff]  }
 0x6d1   : > { %8502 = vmatpush1.bf16.msra.mxu0 %v10877_v9  ;;  %v10966_v9 = vld [vmem:[%s15847_s7 + $0x4ec] ss:$16 sps:$4 sm:$0xff]  }
 0x6d2   : > { %8666 = vmatpush1.bf16.msra.mxu1 %v10880_v51  ;;  %8503 = vmatprep.subr.bf16.mxu0 %v10885_v43  ;;  %v10961_v51 = vld [vmem:[%s15847_s7 + $0x4e0] ss:$16 sps:$4 sm:$0xff]   ;;  %v10964_v43 = vld [vmem:[%s15847_s7 + $0x4e8] ss:$16 sps:$4 sm:$0xff]  }
 0x6d3   : > { %8667 = vmatprep.subr.bf16.mxu1 %v10888_v33  ;;  %v10969_v33 = vld [vmem:[%s15847_s7 + $0x504] ss:$16 sps:$4 sm:$0xff]  }
 0x6d5   : > { %8504 = vmatpush1.bf16.msra.mxu0 %v10883_v21  ;;  %v10972_v21 = vld [vmem:[%s15847_s7 + $0x50c] ss:$16 sps:$4 sm:$0xff]  }
 0x6d6   : > { %8668 = vmatpush1.bf16.msra.mxu1 %v10886_v36  ;;  %8505 = vmatprep.subr.bf16.mxu0 %v10891_v60  ;;  %v10967_v36 = vld [vmem:[%s15847_s7 + $0x500] ss:$16 sps:$4 sm:$0xff]   ;;  %v10970_v60 = vld [vmem:[%s15847_s7 + $0x508] ss:$16 sps:$4 sm:$0xff]  }
 0x6d7   : > { %8669 = vmatprep.subr.bf16.mxu1 %v10894_v47  ;;  %v10975_v47 = vld [vmem:[%s15847_s7 + $0x524] ss:$16 sps:$4 sm:$0xff]  }
 0x6d9   : > { %8506 = vmatpush1.bf16.msra.mxu0 %v10889_v26  ;;  %v10978_v26 = vld [vmem:[%s15847_s7 + $0x52c] ss:$16 sps:$4 sm:$0xff]  }
 0x6da   : > { %8670 = vmatpush1.bf16.msra.mxu1 %v10892_v19  ;;  %8507 = vmatprep.subr.bf16.mxu0 %v10897_v32  ;;  %v10973_v19 = vld [vmem:[%s15847_s7 + $0x520] ss:$16 sps:$4 sm:$0xff]   ;;  %v10976_v32 = vld [vmem:[%s15847_s7 + $0x528] ss:$16 sps:$4 sm:$0xff]  }
 0x6db   : > { %8671 = vmatprep.subr.bf16.mxu1 %v10900_v59  ;;  %v10981_v59 = vld [vmem:[%s15847_s7 + $0x544] ss:$16 sps:$4 sm:$0xff]  }
 0x6dd   : > { %8508 = vmatpush1.bf16.msra.mxu0 %v10895_v17  ;;  %v10984_v17 = vld [vmem:[%s15847_s7 + $0x54c] ss:$16 sps:$4 sm:$0xff]  }
 0x6de   : > { %8672 = vmatpush1.bf16.msra.mxu1 %v10898_v49  ;;  %8509 = vmatprep.subr.bf16.mxu0 %v10903_v31  ;;  %v10979_v49 = vld [vmem:[%s15847_s7 + $0x540] ss:$16 sps:$4 sm:$0xff]   ;;  %v10982_v31 = vld [vmem:[%s15847_s7 + $0x548] ss:$16 sps:$4 sm:$0xff]  }
 0x6df   : > { %8673 = vmatprep.subr.bf16.mxu1 %v10906_v44  ;;  %v10987_v44 = vld [vmem:[%s15847_s7 + $0x564] ss:$16 sps:$4 sm:$0xff]  }
 0x6e1   : > { %8510 = vmatpush1.bf16.msra.mxu0 %v10901_v2  ;;  %v10990_v2 = vld [vmem:[%s15847_s7 + $0x56c] ss:$16 sps:$4 sm:$0xff]  }
 0x6e2   : > { %8674 = vmatpush1.bf16.msra.mxu1 %v10904_v58  ;;  %8511 = vmatprep.subr.bf16.mxu0 %v10909_v46  ;;  %v10988_v58 = vld [vmem:[%s15847_s7 + $0x568] ss:$16 sps:$4 sm:$0xff]   ;;  %v10993_v46 = vld [vmem:[%s15847_s7 + $0x584] ss:$16 sps:$4 sm:$0xff]  }
 0x6e3   : > { %8675 = vmatprep.subr.bf16.mxu1 %v10912_v5  ;;  %v10996_v5 = vld [vmem:[%s15847_s7 + $0x58c] ss:$16 sps:$4 sm:$0xff]  }
 0x6e5   : > { %8512 = vmatpush1.bf16.msra.mxu0 %v10907_v12  ;;  %v10991_v12 = vld [vmem:[%s15847_s7 + $0x580] ss:$16 sps:$4 sm:$0xff]  }
 0x6e6   : > { %8676 = vmatpush1.bf16.msra.mxu1 %v10910_v34  ;;  %8513 = vmatprep.subr.bf16.mxu0 %v10915_v62  ;;  %v10999_v34 = vld [vmem:[%s15847_s7 + $0x5a4] ss:$16 sps:$4 sm:$0xff]   ;;  %v11002_v62 = vld [vmem:[%s15847_s7 + $0x5ac] ss:$16 sps:$4 sm:$0xff]  }
 0x6e7   : > { %8677 = vmatprep.subr.bf16.mxu1 %v10918_v6  ;;  %v10997_v6 = vld [vmem:[%s15847_s7 + $0x5a0] ss:$16 sps:$4 sm:$0xff]  }
 0x6e9   : > { %8514 = vmatpush1.bf16.msra.mxu0 %v10913_v13  ;;  %v11000_v13 = vld [vmem:[%s15847_s7 + $0x5a8] ss:$16 sps:$4 sm:$0xff]  }
 0x6ea   : > { %8678 = vmatpush1.bf16.msra.mxu1 %v10916_v57  ;;  %8524 = vmatprep.subr.bf16.mxu0 %v10921_v30  ;;  %v11008_v57 = vld [vmem:[%s15847_s7 + $0x5cc] ss:$16 sps:$4 sm:$0xff]   ;;  %v11003_v30 = vld [vmem:[%s15847_s7 + $0x5c0] ss:$16 sps:$4 sm:$0xff]  }
 0x6eb   : > { %8688 = vmatprep.subr.bf16.mxu1 %v10924_v45  ;;  %v11006_v45 = vld [vmem:[%s15847_s7 + $0x5c8] ss:$16 sps:$4 sm:$0xff]  }
 0x6ec   : > { %8516 = vmatmul.mubr.bf16.vlgmr.msra.gmra.mrb[16].mxu0 %v6878_v11 }
 0x6ed   : > { %8680 = vmatmul.mubr.bf16.vlgmr.msra.gmra.mrb[20].mxu1 %v6878_v11  ;;  %8525 = vmatpush1.bf16.msra.mxu0 %v10919_v27  ;;  %v11011_v27 = vld [vmem:[%s15847_s7 + $0x5e4] ss:$16 sps:$4 sm:$0xff]   ;;  %v11014_v11 = vld [vmem:[%s15847_s7 + $0x5ec] ss:$16 sps:$4 sm:$0xff]  }
 0x6ee   : > { %8689 = vmatpush1.bf16.msra.mxu1 %v10922_v8  ;;  %8526 = vmatprep.subr.bf16.mxu0 %v10927_v20  ;;  %v11009_v8 = vld [vmem:[%s15847_s7 + $0x5e0] ss:$16 sps:$4 sm:$0xff]   ;;  %v11012_v20 = vld [vmem:[%s15847_s7 + $0x5e8] ss:$16 sps:$4 sm:$0xff]  }
 0x6ef   : > { %8690 = vmatprep.subr.bf16.mxu1 %v10930_v10  ;;  %v11017_v10 = vld [vmem:[%s15847_s7 + $0x604] ss:$16 sps:$4 sm:$0xff]  }
 0x6f1   : > { %8527 = vmatpush1.bf16.msra.mxu0 %v10925_v35  ;;  %v11020_v35 = vld [vmem:[%s15847_s7 + $0x60c] ss:$16 sps:$4 sm:$0xff]  }
 0x6f2   : > { %8691 = vmatpush1.bf16.msra.mxu1 %v10928_v63  ;;  %8528 = vmatprep.subr.bf16.mxu0 %v10933_v0  ;;  %v16099_v63 = vld [vmem:[#allocation2_spill] sm:$0xff] }
 0x6f3   : > { %8692 = vmatprep.subr.bf16.mxu1 %v10936_v3  ;;  %v16100_v0 = vsub.s32 4, %v16099_v63 }
 0x6f5   : > { %8529 = vmatpush1.bf16.msra.mxu0 %v10931_v1  ;;  %v3147_v3 = vrot.slane %v14887_v40, %v16100_v0  ;;  %v16101_v1 = vsub.s32 5, %v16099_v63  ;;  %v11069_v0 = vld [vmem:[%s15847_s7 + $0x720] ss:$16 sps:$4 sm:$0xff]  }
 0x6f6   : > { %8693 = vmatpush1.bf16.msra.mxu1 %v10934_v29  ;;  %8530 = vmatprep.subr.bf16.mxu0 %v10939_v14  ;;  %v16102_v14 = vsub.s32 7, %v16099_v63 }
 0x6f7   : > { %8694 = vmatprep.subr.bf16.mxu1 %v10942_v4  ;;  %v3151_v29 = vrot.slane %v14887_v40, %v16101_v1  ;;  %v11077_v1 = vld [vmem:[%s15847_s7 + $0x744] ss:$16 sps:$4 sm:$0xff]  }
 0x6f8   : > { %v3159_v4 = vrot.slane %v14887_v40, %v16102_v14  ;;  %v11015_v40 = vld [vmem:[%s15847_s7 + $0x600] ss:$16 sps:$4 sm:$0xff]  }
 0x6f9   : > { %8531 = vmatpush1.bf16.msra.mxu0 %v10937_v16  ;;  %v11075_v14 = vld [vmem:[%s15847_s7 + $0x740] ss:$16 sps:$4 sm:$0xff]  }
 0x6fa   : > { %8695 = vmatpush1.bf16.msra.mxu1 %v10940_v53  ;;  %8532 = vmatprep.subr.bf16.mxu0 %v10945_v55 }
 0x6fb   : > { %8696 = vmatprep.subr.bf16.mxu1 %v10948_v25 }
 0x6fd   : > { %8533 = vmatpush1.bf16.msra.mxu0 %v10943_v50 }
 0x6fe   : > { %8697 = vmatpush1.bf16.msra.mxu1 %v10946_v48  ;;  %8534 = vmatprep.subr.bf16.mxu0 %v10951_v15 }
 0x6ff   : > { %8698 = vmatprep.subr.bf16.mxu1 %v10954_v22 }
 0x701   : > { %8535 = vmatpush1.bf16.msra.mxu0 %v10949_v39 }
 0x702   : > { %8699 = vmatpush1.bf16.msra.mxu1 %v10952_v54  ;;  %8536 = vmatprep.subr.bf16.mxu0 %v10957_v23 }
 0x703   : > { %8700 = vmatprep.subr.bf16.mxu1 %v10960_v7 }
 0x705   : > { %8537 = vmatpush1.bf16.msra.mxu0 %v10955_v24 }
 0x706   : > { %8701 = vmatpush1.bf16.msra.mxu1 %v10958_v18  ;;  %8538 = vmatprep.subr.bf16.mxu0 %v10963_v52 }
 0x707   : > { %8702 = vmatprep.subr.bf16.mxu1 %v10966_v9  ;;  %v11018_v9 = vld [vmem:[%s15847_s7 + $0x608] ss:$16 sps:$4 sm:$0xff]  }
 0x709   : > { %8539 = vmatpush1.bf16.msra.mxu0 %v10961_v51 }
 0x70a   : > { %8703 = vmatpush1.bf16.msra.mxu1 %v10964_v43  ;;  %8540 = vmatprep.subr.bf16.mxu0 %v10969_v33  ;;  %v11023_v43 = vld [vmem:[%s15847_s7 + $0x624] ss:$16 sps:$4 sm:$0xff]   ;;  %v11026_v33 = vld [vmem:[%s15847_s7 + $0x62c] ss:$16 sps:$4 sm:$0xff]  }
 0x70b   : > { %8704 = vmatprep.subr.bf16.mxu1 %v10972_v21 }
 0x70d   : > { %8541 = vmatpush1.bf16.msra.mxu0 %v10967_v36  ;;  %v11021_v36 = vld [vmem:[%s15847_s7 + $0x620] ss:$16 sps:$4 sm:$0xff]  }
 0x70e   : > { %8705 = vmatpush1.bf16.msra.mxu1 %v10970_v60  ;;  %8542 = vmatprep.subr.bf16.mxu0 %v10975_v47  ;;  %v11024_v60 = vld [vmem:[%s15847_s7 + $0x628] ss:$16 sps:$4 sm:$0xff]   ;;  %v11029_v47 = vld [vmem:[%s15847_s7 + $0x644] ss:$16 sps:$4 sm:$0xff]  }
 0x70f   : > { %8706 = vmatprep.subr.bf16.mxu1 %v10978_v26  ;;  %v11032_v26 = vld [vmem:[%s15847_s7 + $0x64c] ss:$16 sps:$4 sm:$0xff]  }
 0x711   : > { %8543 = vmatpush1.bf16.msra.mxu0 %v10973_v19  ;;  %v11027_v19 = vld [vmem:[%s15847_s7 + $0x640] ss:$16 sps:$4 sm:$0xff]  }
 0x712   : > { %8707 = vmatpush1.bf16.msra.mxu1 %v10976_v32  ;;  %8544 = vmatprep.subr.bf16.mxu0 %v10981_v59  ;;  %v11030_v32 = vld [vmem:[%s15847_s7 + $0x648] ss:$16 sps:$4 sm:$0xff]   ;;  %v11035_v59 = vld [vmem:[%s15847_s7 + $0x664] ss:$16 sps:$4 sm:$0xff]  }
 0x713   : > { %8708 = vmatprep.subr.bf16.mxu1 %v10984_v17  ;;  %v11038_v17 = vld [vmem:[%s15847_s7 + $0x66c] ss:$16 sps:$4 sm:$0xff]  }
 0x715   : > { %8545 = vmatpush1.bf16.msra.mxu0 %v10979_v49  ;;  %v11033_v49 = vld [vmem:[%s15847_s7 + $0x660] ss:$16 sps:$4 sm:$0xff]  }
 0x716   : > { %8709 = vmatpush1.bf16.msra.mxu1 %v10982_v31  ;;  %8546 = vmatprep.subr.bf16.mxu0 %v10987_v44  ;;  %v11036_v31 = vld [vmem:[%s15847_s7 + $0x668] ss:$16 sps:$4 sm:$0xff]   ;;  %v11041_v44 = vld [vmem:[%s15847_s7 + $0x684] ss:$16 sps:$4 sm:$0xff]  }
 0x717   : > { %8710 = vmatprep.subr.bf16.mxu1 %v10990_v2  ;;  %v11044_v2 = vld [vmem:[%s15847_s7 + $0x68c] ss:$16 sps:$4 sm:$0xff]  }
 0x719   : > { %8547 = vmatpush1.bf16.msra.mxu0 %v10985_v37  ;;  %v11039_v37 = vld [vmem:[%s15847_s7 + $0x680] ss:$16 sps:$4 sm:$0xff]  }
 0x71a   : > { %8711 = vmatpush1.bf16.msra.mxu1 %v10988_v58  ;;  %8548 = vmatprep.subr.bf16.mxu0 %v10993_v46  ;;  %v11042_v58 = vld [vmem:[%s15847_s7 + $0x688] ss:$16 sps:$4 sm:$0xff]   ;;  %v11047_v46 = vld [vmem:[%s15847_s7 + $0x6a4] ss:$16 sps:$4 sm:$0xff]  }
 0x71b   : > { %8712 = vmatprep.subr.bf16.mxu1 %v10996_v5  ;;  %v11050_v5 = vld [vmem:[%s15847_s7 + $0x6ac] ss:$16 sps:$4 sm:$0xff]  }
 0x71d   : > { %8549 = vmatpush1.bf16.msra.mxu0 %v10991_v12  ;;  %v11045_v12 = vld [vmem:[%s15847_s7 + $0x6a0] ss:$16 sps:$4 sm:$0xff]  }
 0x71e   : > { %8713 = vmatpush1.bf16.msra.mxu1 %v10994_v61  ;;  %8550 = vmatprep.subr.bf16.mxu0 %v10999_v34  ;;  %v11048_v61 = vld [vmem:[%s15847_s7 + $0x6a8] ss:$16 sps:$4 sm:$0xff]   ;;  %v11053_v34 = vld [vmem:[%s15847_s7 + $0x6c4] ss:$16 sps:$4 sm:$0xff]  }
 0x71f   : > { %8714 = vmatprep.subr.bf16.mxu1 %v11002_v62  ;;  %v11056_v62 = vld [vmem:[%s15847_s7 + $0x6cc] ss:$16 sps:$4 sm:$0xff]  }
 0x721   : > { %8551 = vmatpush1.bf16.msra.mxu0 %v10997_v6  ;;  %v11051_v6 = vld [vmem:[%s15847_s7 + $0x6c0] ss:$16 sps:$4 sm:$0xff]  }
 0x722   : > { %8715 = vmatpush1.bf16.msra.mxu1 %v11000_v13  ;;  %8552 = vmatprep.subr.bf16.mxu0 %v11005_v41  ;;  %v11054_v13 = vld [vmem:[%s15847_s7 + $0x6c8] ss:$16 sps:$4 sm:$0xff]   ;;  %v11059_v41 = vld [vmem:[%s15847_s7 + $0x6e4] ss:$16 sps:$4 sm:$0xff]  }
 0x723   : > { %8716 = vmatprep.subr.bf16.mxu1 %v11008_v57  ;;  %v11062_v57 = vld [vmem:[%s15847_s7 + $0x6ec] ss:$16 sps:$4 sm:$0xff]  }
 0x725   : > { %8553 = vmatpush1.bf16.msra.mxu0 %v11003_v30  ;;  %v11057_v30 = vld [vmem:[%s15847_s7 + $0x6e0] ss:$16 sps:$4 sm:$0xff]  }
 0x726   : > { %8717 = vmatpush1.bf16.msra.mxu1 %v11006_v45  ;;  %8554 = vmatprep.subr.bf16.mxu0 %v11011_v27  ;;  %v11060_v45 = vld [vmem:[%s15847_s7 + $0x6e8] ss:$16 sps:$4 sm:$0xff]   ;;  %v11065_v27 = vld [vmem:[%s15847_s7 + $0x704] ss:$16 sps:$4 sm:$0xff]  }
 0x727   : > { %8718 = vmatprep.subr.bf16.mxu1 %v11014_v11  ;;  %v11068_v11 = vld [vmem:[%s15847_s7 + $0x70c] ss:$16 sps:$4 sm:$0xff]  }
 0x729   : > { %8555 = vmatpush1.bf16.msra.mxu0 %v11009_v8  ;;  %v11063_v8 = vld [vmem:[%s15847_s7 + $0x700] ss:$16 sps:$4 sm:$0xff]  }
 0x72a   : > { %8719 = vmatpush1.bf16.msra.mxu1 %v11012_v20  ;;  %8565 = vmatprep.subr.bf16.mxu0 %v11017_v10  ;;  %v11066_v20 = vld [vmem:[%s15847_s7 + $0x708] ss:$16 sps:$4 sm:$0xff]   ;;  %v11071_v10 = vld [vmem:[%s15847_s7 + $0x724] ss:$16 sps:$4 sm:$0xff]  }
 0x72b   : > { %8729 = vmatprep.subr.bf16.mxu1 %v11020_v35  ;;  %v11074_v35 = vld [vmem:[%s15847_s7 + $0x72c] ss:$16 sps:$4 sm:$0xff]  }
 0x73f   : > { %v6656_v16 = vpop.f32.mrb[12].mxu0 }
 0x740   : > { %v10397_v53 = vadd.f32 %v6656_v16, %v3147_v3  ;;  %v15506_v55 = vpop.f32.mrb[16].mxu1  ;;  %v6658_v25 = vpop.f32.mrb[13].mxu0  ;;  %v11072_v3 = vld [vmem:[%s15847_s7 + $0x728] ss:$16 sps:$4 sm:$0xff]   ;;  %v11083_v16 = vld [vmem:[%s15847_s7 + $0x764] ss:$16 sps:$4 sm:$0xff]  }
 0x741   : > { %v10398_v50 = vadd.f32 %v6658_v25, %v3151_v29  ;;  %v6863_v48 = vpop.f32.mrb[17].mxu1  ;;  %v6660_v15 = vpop.f32.mrb[14].mxu0  ;;  %v11080_v29 = vld [vmem:[%s15847_s7 + $0x74c] ss:$16 sps:$4 sm:$0xff]   ;;  %v11081_v25 = vld [vmem:[%s15847_s7 + $0x760] ss:$16 sps:$4 sm:$0xff]  }
 0x742   : > { %v6872_v22 = vmax.f32 %v10397_v53, 0.0  ;;  %v10400_v39 = vadd.f32 %v6863_v48, %v3159_v4  ;;  %v6865_v54 = vpop.f32.mrb[18].mxu1  ;;  %v6661_v23 = vpop.f32.mrb[15].mxu0  ;;  %v11078_v4 = vld [vmem:[%s15847_s7 + $0x748] ss:$16 sps:$4 sm:$0xff]  }
 0x743   : > { %v6873_v7 = vmax.f32 %v10398_v50, 0.0  ;;  %v6866_v24 = vpop.f32.mrb[19].mxu1  ;;  %v11086_v53 = vld [vmem:[%s15847_s7 + $0x76c] ss:$16 sps:$4 sm:$0xff]   ;;  %v11084_v50 = vld [vmem:[%s15847_s7 + $0x768] ss:$16 sps:$4 sm:$0xff]  }
 0x744   : > { %v6875_v18 = vmax.f32 %v10400_v39, 0.0  ;;  %v6880_v51 = vpack.c.bf16 %v6872_v22, %v6872_v22  ;;  %v11089_v48 = vld [vmem:[%s15847_s7 + $0x784] ss:$16 sps:$4 sm:$0xff]   ;;  %v11092_v15 = vld [vmem:[%s15847_s7 + $0x78c] ss:$16 sps:$4 sm:$0xff]  }
 0x745   : > { %v6881_v52 = vpack.c.bf16 %v6873_v7, %v6873_v7  ;;  %v11087_v22 = vld [vmem:[%s15847_s7 + $0x780] ss:$16 sps:$4 sm:$0xff]   ;;  %v11090_v39 = vld [vmem:[%s15847_s7 + $0x788] ss:$16 sps:$4 sm:$0xff]   ;;  %v11095_v54 = vld [vmem:[%s15847_s7 + $0x7a4] ss:$16 sps:$4 sm:$0xff]  }
 0x746   : > { %v6883_v21 = vpack.c.bf16 %v6875_v18, %v6875_v18  ;;  %v11098_v23 = vld [vmem:[%s15847_s7 + $0x7ac] ss:$16 sps:$4 sm:$0xff]   ;;  %v11093_v7 = vld [vmem:[%s15847_s7 + $0x7a0] ss:$16 sps:$4 sm:$0xff]   ;;  %v11096_v24 = vld [vmem:[%s15847_s7 + $0x7a8] ss:$16 sps:$4 sm:$0xff]  }
 0x747   : > { %8556 = vmatprep.mubr.bf16.mxu0 %v6881_v52  ;;  %8720 = vmatprep.mubr.bf16.mxu1 %v6881_v52  ;;  %v11201_v18 = vld [vmem:[%s15846_s6] sm:$0xff]  ;;  %v16103_v52 = vsub.s32 6, %v16099_v63  ;;  %v11102_v63 = vld [vmem:[%s15847_s7 + $0x7c8] ss:$16 sps:$4 sm:$0xff]  }
 0x748   : > { %8557 = vmatmul.mubr.bf16.vlgmr.msra.gmra.mrb[16].mxu0 %v6880_v51  ;;  %8721 = vmatmul.mubr.bf16.vlgmr.msra.gmra.mrb[20].mxu1 %v6880_v51  ;;  %v11104_v51 = vld [vmem:[%s15847_s7 + $0x7cc] ss:$16 sps:$4 sm:$0xff]  }
 0x749   : > { %8566 = vmatpush1.bf16.msra.mxu0 %v11015_v40  ;;  %8730 = vmatpush1.bf16.msra.mxu1 %v11018_v9  ;;  %v3155_v40 = vrot.slane %v11201_v18, %v16103_v52  ;;  %v11101_v9 = vld [vmem:[%s15847_s7 + $0x7c4] ss:$16 sps:$4 sm:$0xff]  }
 0x74a   : > { %8597 = vmatprep.mubr.bf16.mxu0 %v6883_v21  ;;  %8761 = vmatprep.mubr.bf16.mxu1 %v6883_v21  ;;  %v11107_v21 = vld [vmem:[%s15847_s7 + $0x7e4] ss:$16 sps:$4 sm:$0xff]  }
 0x74b   : > { %8567 = vmatprep.subr.bf16.mxu0 %v11023_v43  ;;  %8731 = vmatprep.subr.bf16.mxu1 %v11026_v33  ;;  %v11099_v43 = vld [vmem:[%s15847_s7 + $0x7c0] ss:$16 sps:$4 sm:$0xff]   ;;  %v10399_v33 = vadd.f32 %v15506_v55, %v3155_v40  ;;  %v11108_v55 = vld [vmem:[%s15847_s7 + $0x7e8] ss:$16 sps:$4 sm:$0xff]  }
 0x74d   : > { %8568 = vmatpush1.bf16.msra.mxu0 %v11021_v36  ;;  %8732 = vmatpush1.bf16.msra.mxu1 %v11024_v60  ;;  %v11110_v36 = vld [vmem:[%s15847_s7 + $0x7ec] ss:$16 sps:$4 sm:$0xff]   ;;  %v11105_v60 = vld [vmem:[%s15847_s7 + $0x7e0] ss:$16 sps:$4 sm:$0xff]  }
 0x74e   : > { %8569 = vmatprep.subr.bf16.mxu0 %v11029_v47  ;;  %8733 = vmatprep.subr.bf16.mxu1 %v11032_v26  ;;  %v6874_v47 = vmax.f32 %v10399_v33, 0.0  ;;  %v11111_v26 = vld [vmem:[%s15849_s9 + $0x40] sm:$0xff]  }
 0x751   : > { %8570 = vmatpush1.bf16.msra.mxu0 %v11027_v19  ;;  %8734 = vmatpush1.bf16.msra.mxu1 %v11030_v32  ;;  %v11112_v19 = vld [vmem:[%s15849_s9 + $0xc0] sm:$0xff]  }
 0x752   : > { %8571 = vmatprep.subr.bf16.mxu0 %v11035_v59  ;;  %8735 = vmatprep.subr.bf16.mxu1 %v11038_v17  ;;  %v11113_v32 = vld [vmem:[%s15849_s9] sm:$0xff]   ;;  %v6882_v17 = vpack.c.bf16 %v6874_v47, %v6874_v47 }
 0x753   : > { %v11114_v59 = vld [vmem:[%s15849_s9 + $0x80] sm:$0xff]  }
 0x754   : > { %v11147_v47 = vld [vmem:[%s15851_s11 + $0x20] sm:$0xff]  }
 0x755   : > { %8572 = vmatpush1.bf16.msra.mxu0 %v11033_v49  ;;  %8736 = vmatpush1.bf16.msra.mxu1 %v11036_v31  ;;  %v11115_v49 = vld [vmem:[%s15849_s9 + $0x48] sm:$0xff]  }
 0x756   : > { %8573 = vmatprep.subr.bf16.mxu0 %v11041_v44  ;;  %8737 = vmatprep.subr.bf16.mxu1 %v11044_v2  ;;  %v11116_v31 = vld [vmem:[%s15849_s9 + $0xc8] sm:$0xff]  }
 0x757   : > { %v11117_v44 = vld [vmem:[%s15849_s9 + $0x8] sm:$0xff]  }
 0x758   : > { %v11118_v2 = vld [vmem:[%s15849_s9 + $0x88] sm:$0xff]  }
 0x759   : > { %8574 = vmatpush1.bf16.msra.mxu0 %v11039_v37  ;;  %8738 = vmatpush1.bf16.msra.mxu1 %v11042_v58  ;;  %v11119_v37 = vld [vmem:[%s15849_s9 + $0x50] sm:$0xff]  }
 0x75a   : > { %8575 = vmatprep.subr.bf16.mxu0 %v11047_v46  ;;  %8739 = vmatprep.subr.bf16.mxu1 %v11050_v5  ;;  %v11120_v58 = vld [vmem:[%s15849_s9 + $0xd0] sm:$0xff]  }
 0x75b   : > { %v11121_v46 = vld [vmem:[%s15849_s9 + $0x10] sm:$0xff]  }
 0x75c   : > { %v11122_v5 = vld [vmem:[%s15849_s9 + $0x90] sm:$0xff]  }
 0x75d   : > { %8576 = vmatpush1.bf16.msra.mxu0 %v11045_v12  ;;  %8740 = vmatpush1.bf16.msra.mxu1 %v11048_v61  ;;  %v11123_v12 = vld [vmem:[%s15849_s9 + $0x58] sm:$0xff]  }
 0x75e   : > { %8577 = vmatprep.subr.bf16.mxu0 %v11053_v34  ;;  %8741 = vmatprep.subr.bf16.mxu1 %v11056_v62  ;;  %v11124_v61 = vld [vmem:[%s15849_s9 + $0xd8] sm:$0xff]  }
 0x75f   : > { %v11125_v34 = vld [vmem:[%s15849_s9 + $0x18] sm:$0xff]  }
 0x760   : > { %v11126_v62 = vld [vmem:[%s15849_s9 + $0x98] sm:$0xff]  }
 0x761   : > { %8578 = vmatpush1.bf16.msra.mxu0 %v11051_v6  ;;  %8742 = vmatpush1.bf16.msra.mxu1 %v11054_v13  ;;  %v11127_v6 = vld [vmem:[%s15849_s9 + $0x60] sm:$0xff]  }
 0x762   : > { %8579 = vmatprep.subr.bf16.mxu0 %v11059_v41  ;;  %8743 = vmatprep.subr.bf16.mxu1 %v11062_v57  ;;  %v11128_v13 = vld [vmem:[%s15849_s9 + $0xe0] sm:$0xff]  }
 0x763   : > { %v11129_v41 = vld [vmem:[%s15849_s9 + $0x20] sm:$0xff]  }
 0x764   : > { %v11130_v57 = vld [vmem:[%s15849_s9 + $0xa0] sm:$0xff]  }
 0x765   : > { %8580 = vmatpush1.bf16.msra.mxu0 %v11057_v30  ;;  %8744 = vmatpush1.bf16.msra.mxu1 %v11060_v45  ;;  %v11131_v30 = vld [vmem:[%s15849_s9 + $0x68] sm:$0xff]  }
 0x766   : > { %8581 = vmatprep.subr.bf16.mxu0 %v11065_v27  ;;  %8745 = vmatprep.subr.bf16.mxu1 %v11068_v11  ;;  %v11132_v45 = vld [vmem:[%s15849_s9 + $0xe8] sm:$0xff]  }
 0x767   : > { %v11133_v27 = vld [vmem:[%s15849_s9 + $0x28] sm:$0xff]  }
 0x768   : > { %v11134_v11 = vld [vmem:[%s15849_s9 + $0xa8] sm:$0xff]  }
 0x769   : > { %8582 = vmatpush1.bf16.msra.mxu0 %v11063_v8  ;;  %8746 = vmatpush1.bf16.msra.mxu1 %v11066_v20  ;;  %v11135_v8 = vld [vmem:[%s15849_s9 + $0x70] sm:$0xff]  }
 0x76a   : > { %8583 = vmatprep.subr.bf16.mxu0 %v11071_v10  ;;  %8747 = vmatprep.subr.bf16.mxu1 %v11074_v35  ;;  %v11136_v20 = vld [vmem:[%s15849_s9 + $0xf0] sm:$0xff]  }
 0x76b   : > { %v11137_v10 = vld [vmem:[%s15849_s9 + $0x30] sm:$0xff]  }
 0x76c   : > { %v11138_v35 = vld [vmem:[%s15849_s9 + $0xb0] sm:$0xff]  }
 0x76d   : > { %8584 = vmatpush1.bf16.msra.mxu0 %v11069_v0  ;;  %8748 = vmatpush1.bf16.msra.mxu1 %v11072_v3  ;;  %v11139_v0 = vld [vmem:[%s15849_s9 + $0x78] sm:$0xff]  }
 0x76e   : > { %8585 = vmatprep.subr.bf16.mxu0 %v11077_v1  ;;  %8749 = vmatprep.subr.bf16.mxu1 %v11080_v29  ;;  %v11140_v3 = vld [vmem:[%s15849_s9 + $0xf8] sm:$0xff]  }
 0x76f   : > { %v11141_v1 = vld [vmem:[%s15849_s9 + $0x38] sm:$0xff]  }
 0x770   : > { %v11142_v29 = vld [vmem:[%s15849_s9 + $0xb8] sm:$0xff]  }
 0x771   : > { %8586 = vmatpush1.bf16.msra.mxu0 %v11075_v14  ;;  %8750 = vmatpush1.bf16.msra.mxu1 %v11078_v4  ;;  %v11218_v14 = vmov 0.0   ;;  %v7140_v4 = vld [vmem:[%s15848_s8] sm:$0xf] }
 0x772   : > { %8587 = vmatprep.subr.bf16.mxu0 %v11083_v16  ;;  %8751 = vmatprep.subr.bf16.mxu1 %v11086_v53  ;;  %v7145_v16 = vrot.slane %v7140_v4, %v16095_v38  ;;  %v7153_v53 = vrot.slane %v7140_v4, %v16098_v28 }
 0x775   : > { %8588 = vmatpush1.bf16.msra.mxu0 %v11081_v25  ;;  %8752 = vmatpush1.bf16.msra.mxu1 %v11084_v50  ;;  %v7149_v25 = vrot.slane %v7140_v4, %v16096_v42  ;;  %v7157_v50 = vrot.slane %v7140_v4, %v16097_v56  ;;  %v11143_v56 = vld [vmem:[%s15851_s11] sm:$0xff]  }
 0x776   : > { %8589 = vmatprep.subr.bf16.mxu0 %v11089_v48  ;;  %8753 = vmatprep.subr.bf16.mxu1 %v11092_v15 }
 0x779   : > { %8590 = vmatpush1.bf16.msra.mxu0 %v11087_v22  ;;  %8754 = vmatpush1.bf16.msra.mxu1 %v11090_v39 }
 0x77a   : > { %8591 = vmatprep.subr.bf16.mxu0 %v11095_v54  ;;  %8755 = vmatprep.subr.bf16.mxu1 %v11098_v23 }
 0x77d   : > { %8592 = vmatpush1.bf16.msra.mxu0 %v11093_v7  ;;  %8756 = vmatpush1.bf16.msra.mxu1 %v11096_v24 }
 0x77e   : > { %8593 = vmatprep.subr.bf16.mxu0 %v11101_v9  ;;  %8757 = vmatprep.subr.bf16.mxu1 %v11104_v51 }
 0x781   : > { %8594 = vmatpush1.bf16.msra.mxu0 %v11099_v43  ;;  %8758 = vmatpush1.bf16.msra.mxu1 %v11102_v63 }
 0x782   : > { %8595 = vmatprep.subr.bf16.mxu0 %v11107_v21  ;;  %8759 = vmatprep.subr.bf16.mxu1 %v11110_v36  ;;  %v11144_v36 = vld [vmem:[%s15851_s11 + $0x8] sm:$0xff]  }
 0x785   : > { %8596 = vmatpush1.bf16.msra.mxu0 %v11105_v60  ;;  %8760 = vmatpush1.bf16.msra.mxu1 %v11108_v55  ;;  %v11145_v60 = vld [vmem:[%s15851_s11 + $0x10] sm:$0xff]   ;;  %v11146_v55 = vld [vmem:[%s15851_s11 + $0x18] sm:$0xff]  }
 0x786   : > { %10318 = vmatprep.subr.bf16.mxu0 %v11111_v26  ;;  %10340 = vmatprep.subr.bf16.mxu1 %v11112_v19  ;;  %v11148_v26 = vld [vmem:[%s15851_s11 + $0x28] sm:$0xff]   ;;  %v11149_v19 = vld [vmem:[%s15851_s11 + $0x30] sm:$0xff]  }
 0x788   : > { %8598 = vmatmul.mubr.bf16.vlgmr.msra.gmra.mrb[16].mxu0 %v6882_v17  ;;  %8762 = vmatmul.mubr.bf16.vlgmr.msra.gmra.mrb[20].mxu1 %v6882_v17 }
 0x789   : > { %10319 = vmatpush3.bf16.msra.mxu0 %v11113_v32  ;;  %10341 = vmatpush3.bf16.msra.mxu1 %v11114_v59  ;;  %v11150_v32 = vld [vmem:[%s15851_s11 + $0x38] sm:$0xff]  }
 0x78a   : > { %10320 = vmatprep.subr.bf16.mxu0 %v11115_v49  ;;  %10342 = vmatprep.subr.bf16.mxu1 %v11116_v31  ;;  %v10273_v49 = vld [vmem:[%s15850_s10] ss:$0 sm:$0xff] }
 0x78d   : > { %10321 = vmatpush3.bf16.msra.mxu0 %v11117_v44  ;;  %10343 = vmatpush3.bf16.msra.mxu1 %v11118_v2 }
 0x78e   : > { %10322 = vmatprep.subr.bf16.mxu0 %v11119_v37  ;;  %10344 = vmatprep.subr.bf16.mxu1 %v11120_v58 }
 0x791   : > { %10323 = vmatpush3.bf16.msra.mxu0 %v11121_v46  ;;  %10345 = vmatpush3.bf16.msra.mxu1 %v11122_v5 }
 0x792   : > { %10324 = vmatprep.subr.bf16.mxu0 %v11123_v12  ;;  %10346 = vmatprep.subr.bf16.mxu1 %v11124_v61 }
 0x795   : > { %10325 = vmatpush3.bf16.msra.mxu0 %v11125_v34  ;;  %10347 = vmatpush3.bf16.msra.mxu1 %v11126_v62 }
 0x796   : > { %10326 = vmatprep.subr.bf16.mxu0 %v11127_v6  ;;  %10348 = vmatprep.subr.bf16.mxu1 %v11128_v13  ;;  %v10306_v13 = vld [vmem:[%s15852_s12] ss:$0 sm:$0xff] }
 0x799   : > { %10327 = vmatpush3.bf16.msra.mxu0 %v11129_v41  ;;  %10349 = vmatpush3.bf16.msra.mxu1 %v11130_v57 }
 0x79a   : > { %10328 = vmatprep.subr.bf16.mxu0 %v11131_v30  ;;  %10350 = vmatprep.subr.bf16.mxu1 %v11132_v45 }
 0x79d   : > { %10329 = vmatpush3.bf16.msra.mxu0 %v11133_v27  ;;  %10351 = vmatpush3.bf16.msra.mxu1 %v11134_v11 }
 0x79e   : > { %10330 = vmatprep.subr.bf16.mxu0 %v11135_v8  ;;  %10352 = vmatprep.subr.bf16.mxu1 %v11136_v20 }
 0x7a1   : > { %10331 = vmatpush3.bf16.msra.mxu0 %v11137_v10  ;;  %10353 = vmatpush3.bf16.msra.mxu1 %v11138_v35 }
 0x7a2   : > { %10332 = vmatprep.subr.bf16.mxu0 %v11139_v0  ;;  %10354 = vmatprep.subr.bf16.mxu1 %v11140_v3 }
 0x7a5   : > { %10333 = vmatpush3.bf16.msra.mxu0 %v11141_v1  ;;  %10355 = vmatpush3.bf16.msra.mxu1 %v11142_v29 }
 0x7a6   : > { %10371 = vmatprep.subr.bf16.mxu0 %v11218_v14 }
 0x85b   : > { %v8599_v48 = vpop.f32.mrb[16].mxu0  ;;  %v8763_v15 = vpop.f32.mrb[20].mxu1 }
 0x85c   : > { %v10401_v22 = vadd.f32 %v8599_v48, %v7145_v16  ;;  %v10403_v39 = vadd.f32 %v8763_v15, %v7153_v53  ;;  %v8601_v54 = vpop.f32.mrb[17].mxu0  ;;  %v8765_v23 = vpop.f32.mrb[21].mxu1 }
 0x85d   : > { %v10402_v7 = vadd.f32 %v8601_v54, %v7149_v25  ;;  %v10404_v24 = vadd.f32 %v8765_v23, %v7157_v50  ;;  %v8603_v18 = vpop.f32.mrb[18].mxu0  ;;  %v8767_v52 = vpop.f32.mrb[22].mxu1 }
 0x85e   : > { %v8770_v40 = vmax.f32 %v10401_v22, 0.0  ;;  %v8772_v9 = vmax.f32 %v10403_v39, 0.0  ;;  %v8604_v51 = vpop.f32.mrb[19].mxu0  ;;  %v8768_v38 = vpop.f32.mrb[23].mxu1 }
 0x85f   : > { %v8771_v43 = vmax.f32 %v10402_v7, 0.0  ;;  %v8773_v28 = vmax.f32 %v10404_v24, 0.0 }
 0x860   : > { %v8774_v33 = vpack.c.bf16 %v8770_v40, %v8770_v40  ;;  %v8776_v21 = vpack.c.bf16 %v8772_v9, %v8772_v9 }
 0x861   : > { %v8775_v63 = vpack.c.bf16 %v8771_v43, %v8771_v43  ;;  %v8777_v42 = vpack.c.bf16 %v8773_v28, %v8773_v28 }
 0x863   : > { %9073 = vmatprep.mubr.bf16.mxu0 %v8775_v63  ;;  %9113 = vmatprep.mubr.bf16.mxu1 %v8777_v42 }
 0x864   : > { %9074 = vmatmul.mubr.bf16.vlgmr.msra.gmra.mrb[20].mxu0 %v8774_v33  ;;  %9114 = vmatmul.mubr.bf16.vlgmr.msra.gmra.mrb[24].mxu1 %v8776_v21 }
 0x865   : > { %10372 = vmatpush3.bf16.msra.mxu0 %v11143_v56  ;;  %10387 = vmatprep.mubr.msk.bf16.mxu0 %vm11219_vm3, %v11218_v14 }
 0x866   : > { %10373 = vmatprep.subr.bf16.mxu0 %v11218_v14 }
 0x869   : > { %10374 = vmatpush3.bf16.msra.mxu0 %v11144_v36 }
 0x86a   : > { %10375 = vmatprep.subr.bf16.mxu0 %v11218_v14 }
 0x86d   : > { %10376 = vmatpush3.bf16.msra.mxu0 %v11145_v60 }
 0x86e   : > { %10377 = vmatprep.subr.bf16.mxu0 %v11218_v14 }
 0x871   : > { %10378 = vmatpush3.bf16.msra.mxu0 %v11146_v55 }
 0x872   : > { %10379 = vmatprep.subr.bf16.mxu0 %v11218_v14 }
 0x875   : > { %10380 = vmatpush3.bf16.msra.mxu0 %v11147_v47 }
 0x876   : > { %10381 = vmatprep.subr.bf16.mxu0 %v11218_v14 }
 0x879   : > { %10382 = vmatpush3.bf16.msra.mxu0 %v11148_v26 }
 0x87a   : > { %10383 = vmatprep.subr.bf16.mxu0 %v11218_v14 }
 0x87d   : > { %10384 = vmatpush3.bf16.msra.mxu0 %v11149_v19 }
 0x87e   : > { %10385 = vmatprep.subr.bf16.mxu0 %v11218_v14 }
 0x881   : > { %10386 = vmatpush3.bf16.msra.mxu0 %v11150_v32 }
 0x937   : > { %v10334_v59 = vpop.f32.mrb[20].mxu0  ;;  %v10356_v17 = vpop.f32.mrb[24].mxu1 }
 0x938   : > { %v10335_v31 = vpop.f32.mrb[21].mxu0  ;;  %v10357_v44 = vpop.f32.mrb[25].mxu1 }
 0x939   : > { %v10336_v2 = vadd.f32 %v10335_v31, %v10334_v59  ;;  %v10358_v37 = vadd.f32 %v10357_v44, %v10356_v17  ;;  %v10337_v58 = vpop.f32.mrb[22].mxu0  ;;  %v10359_v46 = vpop.f32.mrb[26].mxu1 }
 0x93a   : > { %v10338_v5 = vpop.f32.mrb[23].mxu0  ;;  %v10360_v12 = vpop.f32.mrb[27].mxu1 }
 0x93b   : > { %v9076_v61 = vadd.f32 %v10336_v2, %v10273_v49 }
 0x93d   : > { %v9116_v34 = vadd.f32 %v10358_v37, %v9076_v61 }
 0x93f   : > { %v9121_v62 = vmax.f32 %v9116_v34, 0.0 }
 0x941   : > { %v9122_v6 = vpack.c.bf16 %v9121_v62, %v9121_v62 }
 0x943   : > { %10388 = vmatmul.mubr.bf16.vlgmr.msra.gmra.mrb[24].mxu0 %v9122_v6 }
 0xa16   : > { %v9228_v41 = vpop.f32.mrb[24].mxu0 }
 0xa17   : > { %v9229_v57 = vadd.f32 %v10306_v13, %v9228_v41  ;;  %v10389_v30 = vpop.f32.mrb[25].mxu0 }
 0xa18   : > { %v9231_v45 = vpop.f32.mrb[26].mxu0 }
 0xa19   : > { %9234 = vmax.xlane.f32.xlu1 %v9229_v57  ;;  %v10390_v27 = vpop.f32.mrb[27].mxu0 }
 0xaa6   : > { %v9235_v11 = vpop.xlane.xlu1 %9234 }
 0xaa7   : > { %v9236_v8 = vsub.f32 %v9229_v57, %v9235_v11 }
 0xaa9   : > { %v9237_v20 = vmul.f32 1.442695, %v9236_v8 }
 0xaab   : > { %11151 = vpow2.f32 %v9237_v20 }
 0xab5   : > { %v11152_v10 = vpop.eup %11151 }
 0xab6   : > { %9239 = vadd.xlane.f32.xlu0 %v11152_v10 }
 0xb43   : > { %v9240_v35 = vpop.xlane.xlu0 %9239 }
 0xb44   : > { %11153 = vrcp.f32 %v9240_v35 }
 0xb4e   : > { %v11154_v0 = vpop.eup %11153 }
 0xb4f   : > { %v9242_v3 = vmul.f32 %v11154_v0, %v11152_v10 }
 0xb51   : > { %9243 = vst [vmem:[%s438_s18] sm:$0xff] %v9242_v3 }
 0xb52 PF: > { %s23_s25 = sadd.s32 1, %s11208_s25  }
 0xb53   : > { %p20_p4 = scmp.ge.s32.totalorder %s23_s25, 4  }
 0xb55   :  { %22 = sbr.rel (!%p20_p4) target bundleno = 1 (0x1), region = 117 }

</bundles_post_ra>
